<compile_context>
chip_gen: v5e
topology: v5e:2x2
jax: 0.10.0
libtpu: 0.0.40
codegen_flags: <defaults>
</compile_context>

<pallas_src>
import jax
import jax.numpy as jnp
from jax.experimental import pallas as pl
from jax.experimental.pallas import tpu as pltpu

NEG_SLOPE = 0.01   # PyTorch LeakyReLU default
S2 = 19            # conv2 positions actually used by MaxPool1d(3,2)  (t=0..8 -> s=0..18)
T2 = 9             # cnn2 output length after pooling


def _leaky(x):
    return jnp.where(x > 0, x, NEG_SLOPE * x)


# ----------------------------------------------------------------------------
# Fused kernel
# ----------------------------------------------------------------------------
def _siamese_kernel(xt_ref, d_ref, w1_ref, b1_ref, w2_ref, b2_ref,
                    wa_ref, ba_ref, wb_ref, bb_ref, wf2_ref, bf2_ref,
                    o_ref, h1_scr, patch_scr, conv_scr):
    N = xt_ref.shape[1]              # 2 * batch_tile (rows: n = 2*b_local + branch)
    NPAD = conv_scr.shape[0] // S2   # per-conv-position row block, padded to multiple of 8

    # One-time hygiene init of the im2col pad rows (never read downstream; keeps the
    # scratch deterministic without paying the zero-fill on every grid step).
    @pl.when(pl.program_id(0) == 0)
    def _():
        patch_scr[...] = jnp.zeros_like(patch_scr)

    # ---- Stage 1: Conv1d(1,256,3,s=2) + LeakyReLU + MaxPool1d(2,2) on the VPU ------
    xt = xt_ref[...]                 # (64, N, 8) f32, xt[u, n, s] = x[n, 4u+s]
    w1 = w1_ref[...]                 # (3, 256)
    b1 = b1_ref[...]                 # (1, 256)

    x0 = xt[:, :, 0:1]
    x1 = xt[:, :, 1:2]
    x2 = xt[:, :, 2:3]
    x3 = xt[:, :, 3:4]
    x4 = xt[:, :, 4:5]
    c_even = x0 * w1[0:1, :] + x1 * w1[1:2, :] + x2 * w1[2:3, :]   # conv position 2u
    c_odd = x2 * w1[0:1, :] + x3 * w1[1:2, :] + x4 * w1[2:3, :]    # conv position 2u+1

    # max over the two pool taps FIRST, then bias + LeakyReLU once (monotone => exact)
    h1 = _leaky(jnp.maximum(c_even, c_odd) + b1)
    h1_scr[...] = h1.astype(jnp.bfloat16)      # (64, N, 256); time row 63 is pad, never read

    # ---- Stage 2: Conv1d(256,128,4,s=3) as ONE bf16 matmul over the used positions --
    # patch row = s*NPAD + n, lanes = k*256 + c1, built from contiguous time slices.
    for s in range(S2):
        patch_scr[pl.ds(s * NPAD, N), :] = jnp.concatenate(
            [h1_scr[3 * s + k] for k in range(4)], axis=-1)                 # (N, 1024)

    conv_scr[...] = jnp.dot(patch_scr[...], w2_ref[...],
                            preferred_element_type=jnp.float32)             # (S2*NPAD, 128)

    # ---- MaxPool1d(3,2) + bias + LeakyReLU, feeding fc1's first Linear ---------------
    b2 = b2_ref[...]                 # (1, 128)
    pre = [conv_scr[pl.ds(s * NPAD, N), :] for s in range(S2)]              # each (N, 128)
    pooled = [
        _leaky(jnp.maximum(jnp.maximum(pre[2 * t], pre[2 * t + 1]), pre[2 * t + 2]) + b2
               ).astype(jnp.bfloat16)
        for t in range(T2)
    ]
    # fc1a weight rows were permuted host-side to time-major (t*128 + c), so the flat
    # activation is just a lane-concat of the pooled blocks: single K=1152 matmul.
    flat = jnp.concatenate(pooled, axis=-1)                                 # (N, 1152)
    ya = _leaky(jnp.dot(flat, wa_ref[...],
                        preferred_element_type=jnp.float32) + ba_ref[...])  # (N, 512)
    # Dropout(0.3) == identity in eval.

    # ---- fc1 second Linear + LeakyReLU ----------------------------------------------
    yb = _leaky(jnp.dot(ya.astype(jnp.bfloat16), wb_ref[...],
                        preferred_element_type=jnp.float32) + bb_ref[...])  # (N, 256)

    # ---- per-sample L1 distance between branches + fc2 Linear(1,1) + Sigmoid --------
    # d_ref is the constant (+1/-1) pairing matrix: row b -> yb[2b] - yb[2b+1]
    diff = jnp.dot(d_ref[...], yb, preferred_element_type=jnp.float32)      # (TB, 256)
    dist = jnp.sum(jnp.abs(diff), axis=-1, keepdims=True)                   # (TB, 1)
    z = dist * wf2_ref[...] + bf2_ref[...]
    o_ref[...] = 1.0 / (1.0 + jnp.exp(-z))


# ----------------------------------------------------------------------------
# Host-side glue (input window prep / weight layout, all cheap XLA ops)
# ----------------------------------------------------------------------------
def _conv1_tap_slab(x1, x2):
    """(B,1,256) x2 -> (64, 2B, 8) with slab[u, 2b+br, s] = x_br[b, 4u+s]; row u=63 zero pad."""
    def taps(x):
        b = x.shape[0]
        y = x.reshape(b, 64, 4)                                    # y[b,p,r] = x[b, 4p+r]
        t = jnp.concatenate([y[:, :63, :], y[:, 1:, :]], axis=-1)  # (b, 63, 8)
        t = jnp.pad(t, ((0, 0), (0, 1), (0, 0)))                   # (b, 64, 8)
        return jnp.transpose(t, (1, 0, 2))                         # (64, b, 8)
    both = jnp.stack([taps(x1), taps(x2)], axis=2)                 # (64, B, 2, 8)
    return both.reshape(64, -1, 8)


def _pair_diff_matrix(tb):
    eye = jnp.eye(tb, dtype=jnp.float32)
    zero = jnp.zeros_like(eye)
    plus = jnp.stack([eye, zero], axis=-1).reshape(tb, 2 * tb)     # selects rows n = 2b   (x1 branch)
    minus = jnp.stack([zero, eye], axis=-1).reshape(tb, 2 * tb)    # selects rows n = 2b+1 (x2 branch)
    return plus - minus


def siamese_forward(x1, x2, params, *, batch_tile=None):
    """x1, x2: (B, 1, 256) float32 (PyTorch NCW). Returns (B, 1) sigmoid scores."""
    B = x1.shape[0]
    assert x1.shape == (B, 1, 256) and x2.shape == (B, 1, 256), \
        "SiameseNetwork4s topology fixes C_in=1, L=256"

    if batch_tile is None:
        batch_tile = B if (B <= 8 or B % 8 != 0) else 8
    assert B % batch_tile == 0
    TB = batch_tile
    N = 2 * TB
    NPAD = ((N + 7) // 8) * 8
    grid = (B // TB,)

    xt = _conv1_tap_slab(x1, x2)                                   # (64, 2B, 8)
    dmat = _pair_diff_matrix(TB)                                   # (TB, 2TB)

    # -- weight layout prep (trace-time) + bf16 cast; matmul accumulation stays f32 --
    w1 = params["conv1_w"].reshape(256, 3).T                       # (3, 256): [tap, out_ch]
    b1 = params["conv1_b"].reshape(1, 256)
    w2 = jnp.transpose(params["conv2_w"], (2, 1, 0)).reshape(1024, 128).astype(jnp.bfloat16)
    b2 = params["conv2_b"].reshape(1, 128)
    wa = params["fc1a_w"].T                                        # (1152, 512), rows c*9 + t
    wa = wa.reshape(128, 9, 512).transpose(1, 0, 2).reshape(1152, 512)   # rows t*128 + c
    wa = wa.astype(jnp.bfloat16)
    ba = params["fc1a_b"].reshape(1, 512)
    wb = params["fc1b_w"].T.astype(jnp.bfloat16)                   # (512, 256)
    bb = params["fc1b_b"].reshape(1, 256)
    wf2 = params["fc2_w"].reshape(1, 1)
    bf2 = params["fc2_b"].reshape(1, 1)

    def _rep(shape):   # weight-style spec: one block, same every grid step (DMA'd once)
        return pl.BlockSpec(shape, lambda i, _nd=len(shape): (0,) * _nd)

    return pl.pallas_call(
        _siamese_kernel,
        out_shape=jax.ShapeDtypeStruct((B, 1), jnp.float32),
        grid=grid,
        in_specs=[
            pl.BlockSpec((64, N, 8), lambda i: (0, i, 0)),         # conv1 tap slab (batch tiled)
            _rep((TB, N)),                                         # branch pairing matrix
            _rep((3, 256)), _rep((1, 256)),                        # conv1
            _rep((1024, 128)), _rep((1, 128)),                     # conv2
            _rep((1152, 512)), _rep((1, 512)),                     # fc1a
            _rep((512, 256)), _rep((1, 256)),                      # fc1b
            _rep((1, 1)), _rep((1, 1)),                            # fc2
        ],
        out_specs=pl.BlockSpec((TB, 1), lambda i: (i, 0)),
        scratch_shapes=[
            pltpu.VMEM((64, N, 256), jnp.bfloat16),                # cnn1 output (both branches)
            pltpu.VMEM((S2 * NPAD, 1024), jnp.bfloat16),           # conv2 im2col patch slab
            pltpu.VMEM((S2 * NPAD, 128), jnp.float32),             # conv2 pre-activation
        ],
        compiler_params=pltpu.CompilerParams(
            dimension_semantics=("parallel",),                     # batch tiles -> v7x megacore
        ),
    )(xt, dmat, w1, b1, w2, b2, wa, ba, wb, bb, wf2, bf2)


# ----------------------------------------------------------------------------
# Deterministic parameter init (PyTorch-like uniform(-1/sqrt(fan_in), ...))
# ----------------------------------------------------------------------------
def init_params(key):
    ks = jax.random.split(key, 10)

    def u(k, shape, fan_in):
        bound = 1.0 / float(fan_in) ** 0.5
        return jax.random.uniform(k, shape, jnp.float32, -bound, bound)

    return dict(
        conv1_w=u(ks[0], (256, 1, 3), 1 * 3),
        conv1_b=u(ks[1], (256,), 1 * 3),
        conv2_w=u(ks[2], (128, 256, 4), 256 * 4),
        conv2_b=u(ks[3], (128,), 256 * 4),
        fc1a_w=u(ks[4], (512, 1152), 1152),
        fc1a_b=u(ks[5], (512,), 1152),
        fc1b_w=u(ks[6], (256, 512), 512),
        fc1b_b=u(ks[7], (256,), 512),
        fc2_w=u(ks[8], (1, 1), 1),
        fc2_b=u(ks[9], (1,), 1),
    )


if __name__ == "__main__":
    key = jax.random.PRNGKey(0)
    kp, k1, k2 = jax.random.split(key, 3)
    params = init_params(kp)

    B, L = 2, 256   # L=256 is fixed by the architecture (fc1 expects 1152 = 128*9)
    x1 = jax.random.normal(k1, (B, 1, L), jnp.float32)
    x2 = jax.random.normal(k2, (B, 1, L), jnp.float32)

    fwd = jax.jit(lambda a, b: siamese_forward(a, b, params))
    out = jax.block_until_ready(fwd(x1, x2))
    assert out.shape == (B, 1) and out.dtype == jnp.float32
    assert bool(jnp.all(jnp.isfinite(out)))
    print("KERNEL_OK")
</pallas_src>

<mosaic_0001>
module attributes {stable_mosaic.version = 11 : i64} {
  func.func @_siamese_kernel(%arg0: i32, %arg1: memref<64x4x8xf32, #tpu.memory_space<vmem>>, %arg2: memref<2x4xf32, #tpu.memory_space<vmem>>, %arg3: memref<3x256xf32, #tpu.memory_space<vmem>>, %arg4: memref<1x256xf32, #tpu.memory_space<vmem>>, %arg5: memref<1024x128xbf16, #tpu.memory_space<vmem>>, %arg6: memref<1x128xf32, #tpu.memory_space<vmem>>, %arg7: memref<1152x512xbf16, #tpu.memory_space<vmem>>, %arg8: memref<1x512xf32, #tpu.memory_space<vmem>>, %arg9: memref<512x256xbf16, #tpu.memory_space<vmem>>, %arg10: memref<1x256xf32, #tpu.memory_space<vmem>>, %arg11: memref<1x1xf32, #tpu.memory_space<vmem>>, %arg12: memref<1x1xf32, #tpu.memory_space<vmem>>, %arg13: memref<2x1xf32, #tpu.memory_space<vmem>>, %arg14: memref<64x4x256xbf16, #tpu.memory_space<vmem>>, %arg15: memref<152x1024xbf16, #tpu.memory_space<vmem>>, %arg16: memref<152x128xf32, #tpu.memory_space<vmem>>) attributes {dimension_semantics = [#tpu.dimension_semantics<parallel>], iteration_bounds = array<i64: 1>, scalar_prefetch = 0 : i64, scratch_operands = 3 : i64, tpu.core_type = #tpu.core_type<tc>, window_params = [{transform_indices = @transform_0, window_bounds = array<i64: 64, 4, 8>}, {pipeline_mode = #tpu.pipeline_mode<synchronous>, transform_indices = @transform_1, window_bounds = array<i64: 2, 4>}, {pipeline_mode = #tpu.pipeline_mode<synchronous>, transform_indices = @transform_2, window_bounds = array<i64: 3, 256>}, {pipeline_mode = #tpu.pipeline_mode<synchronous>, transform_indices = @transform_3, window_bounds = array<i64: 1, 256>}, {pipeline_mode = #tpu.pipeline_mode<synchronous>, transform_indices = @transform_4, window_bounds = array<i64: 1024, 128>}, {pipeline_mode = #tpu.pipeline_mode<synchronous>, transform_indices = @transform_5, window_bounds = array<i64: 1, 128>}, {pipeline_mode = #tpu.pipeline_mode<synchronous>, transform_indices = @transform_6, window_bounds = array<i64: 1152, 512>}, {pipeline_mode = #tpu.pipeline_mode<synchronous>, transform_indices = @transform_7, window_bounds = array<i64: 1, 512>}, {pipeline_mode = #tpu.pipeline_mode<synchronous>, transform_indices = @transform_8, window_bounds = array<i64: 512, 256>}, {pipeline_mode = #tpu.pipeline_mode<synchronous>, transform_indices = @transform_9, window_bounds = array<i64: 1, 256>}, {pipeline_mode = #tpu.pipeline_mode<synchronous>, transform_indices = @transform_10, window_bounds = array<i64: 1, 1>}, {pipeline_mode = #tpu.pipeline_mode<synchronous>, transform_indices = @transform_11, window_bounds = array<i64: 1, 1>}, {transform_indices = @transform_12, window_bounds = array<i64: 2, 1>}]} {
    %c0_i32 = arith.constant 0 : i32
    %0 = arith.cmpi eq, %arg0, %c0_i32 : i32
    %1 = arith.extui %0 : i1 to i32
    %c0_i32_0 = arith.constant 0 : i32
    %2 = arith.cmpi ne, %1, %c0_i32_0 : i32
    scf.if %2 {
      %cst_301 = arith.constant 0.000000e+00 : bf16
      %401 = vector.broadcast %cst_301 : bf16 to vector<152x1024xbf16>
      %c0_302 = arith.constant 0 : index
      %c0_303 = arith.constant 0 : index
      %402 = vector.load %arg15[%c0_302, %c0_303] : memref<152x1024xbf16, #tpu.memory_space<vmem>>, vector<152x1024xbf16>
      tpu.vector_store %arg15[%c0_302, %c0_303], %401 {strides = array<i32>} : memref<152x1024xbf16, #tpu.memory_space<vmem>>, vector<152x1024xbf16>,
    } else {
    }
    %c0 = arith.constant 0 : index
    %c0_1 = arith.constant 0 : index
    %c0_2 = arith.constant 0 : index
    %3 = vector.load %arg1[%c0, %c0_1, %c0_2] : memref<64x4x8xf32, #tpu.memory_space<vmem>>, vector<64x4x8xf32>
    %c0_3 = arith.constant 0 : index
    %c0_4 = arith.constant 0 : index
    %4 = vector.load %arg3[%c0_3, %c0_4] : memref<3x256xf32, #tpu.memory_space<vmem>>, vector<3x256xf32>
    %c0_5 = arith.constant 0 : index
    %c0_6 = arith.constant 0 : index
    %5 = vector.load %arg4[%c0_5, %c0_6] : memref<1x256xf32, #tpu.memory_space<vmem>>, vector<1x256xf32>
    %6 = vector.extract_strided_slice %3 {offsets = [0, 0, 0], sizes = [64, 4, 1], strides = [1, 1, 1]} : vector<64x4x8xf32> to vector<64x4x1xf32>
    %7 = vector.extract_strided_slice %3 {offsets = [0, 0, 1], sizes = [64, 4, 1], strides = [1, 1, 1]} : vector<64x4x8xf32> to vector<64x4x1xf32>
    %8 = vector.extract_strided_slice %3 {offsets = [0, 0, 2], sizes = [64, 4, 1], strides = [1, 1, 1]} : vector<64x4x8xf32> to vector<64x4x1xf32>
    %9 = vector.extract_strided_slice %3 {offsets = [0, 0, 3], sizes = [64, 4, 1], strides = [1, 1, 1]} : vector<64x4x8xf32> to vector<64x4x1xf32>
    %10 = vector.extract_strided_slice %3 {offsets = [0, 0, 4], sizes = [64, 4, 1], strides = [1, 1, 1]} : vector<64x4x8xf32> to vector<64x4x1xf32>
    %11 = vector.extract_strided_slice %4 {offsets = [0, 0], sizes = [1, 256], strides = [1, 1]} : vector<3x256xf32> to vector<1x256xf32>
    %12 = vector.shape_cast %11 : vector<1x256xf32> to vector<1x1x256xf32>
    %13 = vector.broadcast %6 : vector<64x4x1xf32> to vector<64x4x256xf32>
    %14 = vector.broadcast %12 : vector<1x1x256xf32> to vector<64x4x256xf32>
    %15 = arith.mulf %13, %14 : vector<64x4x256xf32>
    %16 = vector.extract_strided_slice %4 {offsets = [1, 0], sizes = [1, 256], strides = [1, 1]} : vector<3x256xf32> to vector<1x256xf32>
    %17 = vector.shape_cast %16 : vector<1x256xf32> to vector<1x1x256xf32>
    %18 = vector.broadcast %7 : vector<64x4x1xf32> to vector<64x4x256xf32>
    %19 = vector.broadcast %17 : vector<1x1x256xf32> to vector<64x4x256xf32>
    %20 = arith.mulf %18, %19 : vector<64x4x256xf32>
    %21 = arith.addf %15, %20 : vector<64x4x256xf32>
    %22 = vector.extract_strided_slice %4 {offsets = [2, 0], sizes = [1, 256], strides = [1, 1]} : vector<3x256xf32> to vector<1x256xf32>
    %23 = vector.shape_cast %22 : vector<1x256xf32> to vector<1x1x256xf32>
    %24 = vector.broadcast %8 : vector<64x4x1xf32> to vector<64x4x256xf32>
    %25 = vector.broadcast %23 : vector<1x1x256xf32> to vector<64x4x256xf32>
    %26 = arith.mulf %24, %25 : vector<64x4x256xf32>
    %27 = arith.addf %21, %26 : vector<64x4x256xf32>
    %28 = vector.extract_strided_slice %4 {offsets = [0, 0], sizes = [1, 256], strides = [1, 1]} : vector<3x256xf32> to vector<1x256xf32>
    %29 = vector.shape_cast %28 : vector<1x256xf32> to vector<1x1x256xf32>
    %30 = vector.broadcast %8 : vector<64x4x1xf32> to vector<64x4x256xf32>
    %31 = vector.broadcast %29 : vector<1x1x256xf32> to vector<64x4x256xf32>
    %32 = arith.mulf %30, %31 : vector<64x4x256xf32>
    %33 = vector.extract_strided_slice %4 {offsets = [1, 0], sizes = [1, 256], strides = [1, 1]} : vector<3x256xf32> to vector<1x256xf32>
    %34 = vector.shape_cast %33 : vector<1x256xf32> to vector<1x1x256xf32>
    %35 = vector.broadcast %9 : vector<64x4x1xf32> to vector<64x4x256xf32>
    %36 = vector.broadcast %34 : vector<1x1x256xf32> to vector<64x4x256xf32>
    %37 = arith.mulf %35, %36 : vector<64x4x256xf32>
    %38 = arith.addf %32, %37 : vector<64x4x256xf32>
    %39 = vector.extract_strided_slice %4 {offsets = [2, 0], sizes = [1, 256], strides = [1, 1]} : vector<3x256xf32> to vector<1x256xf32>
    %40 = vector.shape_cast %39 : vector<1x256xf32> to vector<1x1x256xf32>
    %41 = vector.broadcast %10 : vector<64x4x1xf32> to vector<64x4x256xf32>
    %42 = vector.broadcast %40 : vector<1x1x256xf32> to vector<64x4x256xf32>
    %43 = arith.mulf %41, %42 : vector<64x4x256xf32>
    %44 = arith.addf %38, %43 : vector<64x4x256xf32>
    %45 = arith.maximumf %27, %44 : vector<64x4x256xf32>
    %46 = vector.shape_cast %5 : vector<1x256xf32> to vector<1x1x256xf32>
    %47 = vector.broadcast %46 : vector<1x1x256xf32> to vector<64x4x256xf32>
    %48 = arith.addf %45, %47 : vector<64x4x256xf32>
    %cst = arith.constant 0.000000e+00 : f32
    %49 = vector.broadcast %cst : f32 to vector<64x4x256xf32>
    %50 = arith.cmpf ogt, %48, %49 : vector<64x4x256xf32>
    %cst_7 = arith.constant 0.00999999977 : f32
    %51 = vector.broadcast %cst_7 : f32 to vector<64x4x256xf32>
    %52 = arith.mulf %51, %48 : vector<64x4x256xf32>
    %53 = arith.select %50, %48, %52 : vector<64x4x256xi1>, vector<64x4x256xf32>
    %54 = arith.truncf %53 : vector<64x4x256xf32> to vector<64x4x256xbf16>
    %c0_8 = arith.constant 0 : index
    %c0_9 = arith.constant 0 : index
    %c0_10 = arith.constant 0 : index
    %55 = vector.load %arg14[%c0_8, %c0_9, %c0_10] : memref<64x4x256xbf16, #tpu.memory_space<vmem>>, vector<64x4x256xbf16>
    tpu.vector_store %arg14[%c0_8, %c0_9, %c0_10], %54 {strides = array<i32>} : memref<64x4x256xbf16, #tpu.memory_space<vmem>>, vector<64x4x256xbf16>,
    %c0_11 = arith.constant 0 : index
    %c0_12 = arith.constant 0 : index
    %c0_13 = arith.constant 0 : index
    %56 = vector.load %arg14[%c0_11, %c0_12, %c0_13] : memref<64x4x256xbf16, #tpu.memory_space<vmem>>, vector<1x4x256xbf16>
    %57 = vector.shape_cast %56 : vector<1x4x256xbf16> to vector<4x256xbf16>
    %c1 = arith.constant 1 : index
    %c0_14 = arith.constant 0 : index
    %c0_15 = arith.constant 0 : index
    %58 = vector.load %arg14[%c1, %c0_14, %c0_15] : memref<64x4x256xbf16, #tpu.memory_space<vmem>>, vector<1x4x256xbf16>
    %59 = vector.shape_cast %58 : vector<1x4x256xbf16> to vector<4x256xbf16>
    %c2 = arith.constant 2 : index
    %c0_16 = arith.constant 0 : index
    %c0_17 = arith.constant 0 : index
    %60 = vector.load %arg14[%c2, %c0_16, %c0_17] : memref<64x4x256xbf16, #tpu.memory_space<vmem>>, vector<1x4x256xbf16>
    %61 = vector.shape_cast %60 : vector<1x4x256xbf16> to vector<4x256xbf16>
    %c3 = arith.constant 3 : index
    %c0_18 = arith.constant 0 : index
    %c0_19 = arith.constant 0 : index
    %62 = vector.load %arg14[%c3, %c0_18, %c0_19] : memref<64x4x256xbf16, #tpu.memory_space<vmem>>, vector<1x4x256xbf16>
    %63 = vector.shape_cast %62 : vector<1x4x256xbf16> to vector<4x256xbf16>
    %64 = tpu.concatenate %57, %59, %61, %63 in 1 : vector<4x256xbf16>, vector<4x256xbf16>, vector<4x256xbf16>, vector<4x256xbf16> -> vector<4x1024xbf16>
    %c0_20 = arith.constant 0 : index
    %c0_21 = arith.constant 0 : index
    %65 = vector.load %arg15[%c0_20, %c0_21] : memref<152x1024xbf16, #tpu.memory_space<vmem>>, vector<4x1024xbf16>
    tpu.vector_store %arg15[%c0_20, %c0_21], %64 {strides = array<i32>} : memref<152x1024xbf16, #tpu.memory_space<vmem>>, vector<4x1024xbf16>,
    %c3_22 = arith.constant 3 : index
    %c0_23 = arith.constant 0 : index
    %c0_24 = arith.constant 0 : index
    %66 = vector.load %arg14[%c3_22, %c0_23, %c0_24] : memref<64x4x256xbf16, #tpu.memory_space<vmem>>, vector<1x4x256xbf16>
    %67 = vector.shape_cast %66 : vector<1x4x256xbf16> to vector<4x256xbf16>
    %c4 = arith.constant 4 : index
    %c0_25 = arith.constant 0 : index
    %c0_26 = arith.constant 0 : index
    %68 = vector.load %arg14[%c4, %c0_25, %c0_26] : memref<64x4x256xbf16, #tpu.memory_space<vmem>>, vector<1x4x256xbf16>
    %69 = vector.shape_cast %68 : vector<1x4x256xbf16> to vector<4x256xbf16>
    %c5 = arith.constant 5 : index
    %c0_27 = arith.constant 0 : index
    %c0_28 = arith.constant 0 : index
    %70 = vector.load %arg14[%c5, %c0_27, %c0_28] : memref<64x4x256xbf16, #tpu.memory_space<vmem>>, vector<1x4x256xbf16>
    %71 = vector.shape_cast %70 : vector<1x4x256xbf16> to vector<4x256xbf16>
    %c6 = arith.constant 6 : index
    %c0_29 = arith.constant 0 : index
    %c0_30 = arith.constant 0 : index
    %72 = vector.load %arg14[%c6, %c0_29, %c0_30] : memref<64x4x256xbf16, #tpu.memory_space<vmem>>, vector<1x4x256xbf16>
    %73 = vector.shape_cast %72 : vector<1x4x256xbf16> to vector<4x256xbf16>
    %74 = tpu.concatenate %67, %69, %71, %73 in 1 : vector<4x256xbf16>, vector<4x256xbf16>, vector<4x256xbf16>, vector<4x256xbf16> -> vector<4x1024xbf16>
    %c8 = arith.constant 8 : index
    %c0_31 = arith.constant 0 : index
    %75 = vector.load %arg15[%c8, %c0_31] : memref<152x1024xbf16, #tpu.memory_space<vmem>>, vector<4x1024xbf16>
    tpu.vector_store %arg15[%c8, %c0_31], %74 {strides = array<i32>} : memref<152x1024xbf16, #tpu.memory_space<vmem>>, vector<4x1024xbf16>,
    %c6_32 = arith.constant 6 : index
    %c0_33 = arith.constant 0 : index
    %c0_34 = arith.constant 0 : index
    %76 = vector.load %arg14[%c6_32, %c0_33, %c0_34] : memref<64x4x256xbf16, #tpu.memory_space<vmem>>, vector<1x4x256xbf16>
    %77 = vector.shape_cast %76 : vector<1x4x256xbf16> to vector<4x256xbf16>
    %c7 = arith.constant 7 : index
    %c0_35 = arith.constant 0 : index
    %c0_36 = arith.constant 0 : index
    %78 = vector.load %arg14[%c7, %c0_35, %c0_36] : memref<64x4x256xbf16, #tpu.memory_space<vmem>>, vector<1x4x256xbf16>
    %79 = vector.shape_cast %78 : vector<1x4x256xbf16> to vector<4x256xbf16>
    %c8_37 = arith.constant 8 : index
    %c0_38 = arith.constant 0 : index
    %c0_39 = arith.constant 0 : index
    %80 = vector.load %arg14[%c8_37, %c0_38, %c0_39] : memref<64x4x256xbf16, #tpu.memory_space<vmem>>, vector<1x4x256xbf16>
    %81 = vector.shape_cast %80 : vector<1x4x256xbf16> to vector<4x256xbf16>
    %c9 = arith.constant 9 : index
    %c0_40 = arith.constant 0 : index
    %c0_41 = arith.constant 0 : index
    %82 = vector.load %arg14[%c9, %c0_40, %c0_41] : memref<64x4x256xbf16, #tpu.memory_space<vmem>>, vector<1x4x256xbf16>
    %83 = vector.shape_cast %82 : vector<1x4x256xbf16> to vector<4x256xbf16>
    %84 = tpu.concatenate %77, %79, %81, %83 in 1 : vector<4x256xbf16>, vector<4x256xbf16>, vector<4x256xbf16>, vector<4x256xbf16> -> vector<4x1024xbf16>
    %c16 = arith.constant 16 : index
    %c0_42 = arith.constant 0 : index
    %85 = vector.load %arg15[%c16, %c0_42] : memref<152x1024xbf16, #tpu.memory_space<vmem>>, vector<4x1024xbf16>
    tpu.vector_store %arg15[%c16, %c0_42], %84 {strides = array<i32>} : memref<152x1024xbf16, #tpu.memory_space<vmem>>, vector<4x1024xbf16>,
    %c9_43 = arith.constant 9 : index
    %c0_44 = arith.constant 0 : index
    %c0_45 = arith.constant 0 : index
    %86 = vector.load %arg14[%c9_43, %c0_44, %c0_45] : memref<64x4x256xbf16, #tpu.memory_space<vmem>>, vector<1x4x256xbf16>
    %87 = vector.shape_cast %86 : vector<1x4x256xbf16> to vector<4x256xbf16>
    %c10 = arith.constant 10 : index
    %c0_46 = arith.constant 0 : index
    %c0_47 = arith.constant 0 : index
    %88 = vector.load %arg14[%c10, %c0_46, %c0_47] : memref<64x4x256xbf16, #tpu.memory_space<vmem>>, vector<1x4x256xbf16>
    %89 = vector.shape_cast %88 : vector<1x4x256xbf16> to vector<4x256xbf16>
    %c11 = arith.constant 11 : index
    %c0_48 = arith.constant 0 : index
    %c0_49 = arith.constant 0 : index
    %90 = vector.load %arg14[%c11, %c0_48, %c0_49] : memref<64x4x256xbf16, #tpu.memory_space<vmem>>, vector<1x4x256xbf16>
    %91 = vector.shape_cast %90 : vector<1x4x256xbf16> to vector<4x256xbf16>
    %c12 = arith.constant 12 : index
    %c0_50 = arith.constant 0 : index
    %c0_51 = arith.constant 0 : index
    %92 = vector.load %arg14[%c12, %c0_50, %c0_51] : memref<64x4x256xbf16, #tpu.memory_space<vmem>>, vector<1x4x256xbf16>
    %93 = vector.shape_cast %92 : vector<1x4x256xbf16> to vector<4x256xbf16>
    %94 = tpu.concatenate %87, %89, %91, %93 in 1 : vector<4x256xbf16>, vector<4x256xbf16>, vector<4x256xbf16>, vector<4x256xbf16> -> vector<4x1024xbf16>
    %c24 = arith.constant 24 : index
    %c0_52 = arith.constant 0 : index
    %95 = vector.load %arg15[%c24, %c0_52] : memref<152x1024xbf16, #tpu.memory_space<vmem>>, vector<4x1024xbf16>
    tpu.vector_store %arg15[%c24, %c0_52], %94 {strides = array<i32>} : memref<152x1024xbf16, #tpu.memory_space<vmem>>, vector<4x1024xbf16>,
    %c12_53 = arith.constant 12 : index
    %c0_54 = arith.constant 0 : index
    %c0_55 = arith.constant 0 : index
    %96 = vector.load %arg14[%c12_53, %c0_54, %c0_55] : memref<64x4x256xbf16, #tpu.memory_space<vmem>>, vector<1x4x256xbf16>
    %97 = vector.shape_cast %96 : vector<1x4x256xbf16> to vector<4x256xbf16>
    %c13 = arith.constant 13 : index
    %c0_56 = arith.constant 0 : index
    %c0_57 = arith.constant 0 : index
    %98 = vector.load %arg14[%c13, %c0_56, %c0_57] : memref<64x4x256xbf16, #tpu.memory_space<vmem>>, vector<1x4x256xbf16>
    %99 = vector.shape_cast %98 : vector<1x4x256xbf16> to vector<4x256xbf16>
    %c14 = arith.constant 14 : index
    %c0_58 = arith.constant 0 : index
    %c0_59 = arith.constant 0 : index
    %100 = vector.load %arg14[%c14, %c0_58, %c0_59] : memref<64x4x256xbf16, #tpu.memory_space<vmem>>, vector<1x4x256xbf16>
    %101 = vector.shape_cast %100 : vector<1x4x256xbf16> to vector<4x256xbf16>
    %c15 = arith.constant 15 : index
    %c0_60 = arith.constant 0 : index
    %c0_61 = arith.constant 0 : index
    %102 = vector.load %arg14[%c15, %c0_60, %c0_61] : memref<64x4x256xbf16, #tpu.memory_space<vmem>>, vector<1x4x256xbf16>
    %103 = vector.shape_cast %102 : vector<1x4x256xbf16> to vector<4x256xbf16>
    %104 = tpu.concatenate %97, %99, %101, %103 in 1 : vector<4x256xbf16>, vector<4x256xbf16>, vector<4x256xbf16>, vector<4x256xbf16> -> vector<4x1024xbf16>
    %c32 = arith.constant 32 : index
    %c0_62 = arith.constant 0 : index
    %105 = vector.load %arg15[%c32, %c0_62] : memref<152x1024xbf16, #tpu.memory_space<vmem>>, vector<4x1024xbf16>
    tpu.vector_store %arg15[%c32, %c0_62], %104 {strides = array<i32>} : memref<152x1024xbf16, #tpu.memory_space<vmem>>, vector<4x1024xbf16>,
    %c15_63 = arith.constant 15 : index
    %c0_64 = arith.constant 0 : index
    %c0_65 = arith.constant 0 : index
    %106 = vector.load %arg14[%c15_63, %c0_64, %c0_65] : memref<64x4x256xbf16, #tpu.memory_space<vmem>>, vector<1x4x256xbf16>
    %107 = vector.shape_cast %106 : vector<1x4x256xbf16> to vector<4x256xbf16>
    %c16_66 = arith.constant 16 : index
    %c0_67 = arith.constant 0 : index
    %c0_68 = arith.constant 0 : index
    %108 = vector.load %arg14[%c16_66, %c0_67, %c0_68] : memref<64x4x256xbf16, #tpu.memory_space<vmem>>, vector<1x4x256xbf16>
    %109 = vector.shape_cast %108 : vector<1x4x256xbf16> to vector<4x256xbf16>
    %c17 = arith.constant 17 : index
    %c0_69 = arith.constant 0 : index
    %c0_70 = arith.constant 0 : index
    %110 = vector.load %arg14[%c17, %c0_69, %c0_70] : memref<64x4x256xbf16, #tpu.memory_space<vmem>>, vector<1x4x256xbf16>
    %111 = vector.shape_cast %110 : vector<1x4x256xbf16> to vector<4x256xbf16>
    %c18 = arith.constant 18 : index
    %c0_71 = arith.constant 0 : index
    %c0_72 = arith.constant 0 : index
    %112 = vector.load %arg14[%c18, %c0_71, %c0_72] : memref<64x4x256xbf16, #tpu.memory_space<vmem>>, vector<1x4x256xbf16>
    %113 = vector.shape_cast %112 : vector<1x4x256xbf16> to vector<4x256xbf16>
    %114 = tpu.concatenate %107, %109, %111, %113 in 1 : vector<4x256xbf16>, vector<4x256xbf16>, vector<4x256xbf16>, vector<4x256xbf16> -> vector<4x1024xbf16>
    %c40 = arith.constant 40 : index
    %c0_73 = arith.constant 0 : index
    %115 = vector.load %arg15[%c40, %c0_73] : memref<152x1024xbf16, #tpu.memory_space<vmem>>, vector<4x1024xbf16>
    tpu.vector_store %arg15[%c40, %c0_73], %114 {strides = array<i32>} : memref<152x1024xbf16, #tpu.memory_space<vmem>>, vector<4x1024xbf16>,
    %c18_74 = arith.constant 18 : index
    %c0_75 = arith.constant 0 : index
    %c0_76 = arith.constant 0 : index
    %116 = vector.load %arg14[%c18_74, %c0_75, %c0_76] : memref<64x4x256xbf16, #tpu.memory_space<vmem>>, vector<1x4x256xbf16>
    %117 = vector.shape_cast %116 : vector<1x4x256xbf16> to vector<4x256xbf16>
    %c19 = arith.constant 19 : index
    %c0_77 = arith.constant 0 : index
    %c0_78 = arith.constant 0 : index
    %118 = vector.load %arg14[%c19, %c0_77, %c0_78] : memref<64x4x256xbf16, #tpu.memory_space<vmem>>, vector<1x4x256xbf16>
    %119 = vector.shape_cast %118 : vector<1x4x256xbf16> to vector<4x256xbf16>
    %c20 = arith.constant 20 : index
    %c0_79 = arith.constant 0 : index
    %c0_80 = arith.constant 0 : index
    %120 = vector.load %arg14[%c20, %c0_79, %c0_80] : memref<64x4x256xbf16, #tpu.memory_space<vmem>>, vector<1x4x256xbf16>
    %121 = vector.shape_cast %120 : vector<1x4x256xbf16> to vector<4x256xbf16>
    %c21 = arith.constant 21 : index
    %c0_81 = arith.constant 0 : index
    %c0_82 = arith.constant 0 : index
    %122 = vector.load %arg14[%c21, %c0_81, %c0_82] : memref<64x4x256xbf16, #tpu.memory_space<vmem>>, vector<1x4x256xbf16>
    %123 = vector.shape_cast %122 : vector<1x4x256xbf16> to vector<4x256xbf16>
    %124 = tpu.concatenate %117, %119, %121, %123 in 1 : vector<4x256xbf16>, vector<4x256xbf16>, vector<4x256xbf16>, vector<4x256xbf16> -> vector<4x1024xbf16>
    %c48 = arith.constant 48 : index
    %c0_83 = arith.constant 0 : index
    %125 = vector.load %arg15[%c48, %c0_83] : memref<152x1024xbf16, #tpu.memory_space<vmem>>, vector<4x1024xbf16>
    tpu.vector_store %arg15[%c48, %c0_83], %124 {strides = array<i32>} : memref<152x1024xbf16, #tpu.memory_space<vmem>>, vector<4x1024xbf16>,
    %c21_84 = arith.constant 21 : index
    %c0_85 = arith.constant 0 : index
    %c0_86 = arith.constant 0 : index
    %126 = vector.load %arg14[%c21_84, %c0_85, %c0_86] : memref<64x4x256xbf16, #tpu.memory_space<vmem>>, vector<1x4x256xbf16>
    %127 = vector.shape_cast %126 : vector<1x4x256xbf16> to vector<4x256xbf16>
    %c22 = arith.constant 22 : index
    %c0_87 = arith.constant 0 : index
    %c0_88 = arith.constant 0 : index
    %128 = vector.load %arg14[%c22, %c0_87, %c0_88] : memref<64x4x256xbf16, #tpu.memory_space<vmem>>, vector<1x4x256xbf16>
    %129 = vector.shape_cast %128 : vector<1x4x256xbf16> to vector<4x256xbf16>
    %c23 = arith.constant 23 : index
    %c0_89 = arith.constant 0 : index
    %c0_90 = arith.constant 0 : index
    %130 = vector.load %arg14[%c23, %c0_89, %c0_90] : memref<64x4x256xbf16, #tpu.memory_space<vmem>>, vector<1x4x256xbf16>
    %131 = vector.shape_cast %130 : vector<1x4x256xbf16> to vector<4x256xbf16>
    %c24_91 = arith.constant 24 : index
    %c0_92 = arith.constant 0 : index
    %c0_93 = arith.constant 0 : index
    %132 = vector.load %arg14[%c24_91, %c0_92, %c0_93] : memref<64x4x256xbf16, #tpu.memory_space<vmem>>, vector<1x4x256xbf16>
    %133 = vector.shape_cast %132 : vector<1x4x256xbf16> to vector<4x256xbf16>
    %134 = tpu.concatenate %127, %129, %131, %133 in 1 : vector<4x256xbf16>, vector<4x256xbf16>, vector<4x256xbf16>, vector<4x256xbf16> -> vector<4x1024xbf16>
    %c56 = arith.constant 56 : index
    %c0_94 = arith.constant 0 : index
    %135 = vector.load %arg15[%c56, %c0_94] : memref<152x1024xbf16, #tpu.memory_space<vmem>>, vector<4x1024xbf16>
    tpu.vector_store %arg15[%c56, %c0_94], %134 {strides = array<i32>} : memref<152x1024xbf16, #tpu.memory_space<vmem>>, vector<4x1024xbf16>,
    %c24_95 = arith.constant 24 : index
    %c0_96 = arith.constant 0 : index
    %c0_97 = arith.constant 0 : index
    %136 = vector.load %arg14[%c24_95, %c0_96, %c0_97] : memref<64x4x256xbf16, #tpu.memory_space<vmem>>, vector<1x4x256xbf16>
    %137 = vector.shape_cast %136 : vector<1x4x256xbf16> to vector<4x256xbf16>
    %c25 = arith.constant 25 : index
    %c0_98 = arith.constant 0 : index
    %c0_99 = arith.constant 0 : index
    %138 = vector.load %arg14[%c25, %c0_98, %c0_99] : memref<64x4x256xbf16, #tpu.memory_space<vmem>>, vector<1x4x256xbf16>
    %139 = vector.shape_cast %138 : vector<1x4x256xbf16> to vector<4x256xbf16>
    %c26 = arith.constant 26 : index
    %c0_100 = arith.constant 0 : index
    %c0_101 = arith.constant 0 : index
    %140 = vector.load %arg14[%c26, %c0_100, %c0_101] : memref<64x4x256xbf16, #tpu.memory_space<vmem>>, vector<1x4x256xbf16>
    %141 = vector.shape_cast %140 : vector<1x4x256xbf16> to vector<4x256xbf16>
    %c27 = arith.constant 27 : index
    %c0_102 = arith.constant 0 : index
    %c0_103 = arith.constant 0 : index
    %142 = vector.load %arg14[%c27, %c0_102, %c0_103] : memref<64x4x256xbf16, #tpu.memory_space<vmem>>, vector<1x4x256xbf16>
    %143 = vector.shape_cast %142 : vector<1x4x256xbf16> to vector<4x256xbf16>
    %144 = tpu.concatenate %137, %139, %141, %143 in 1 : vector<4x256xbf16>, vector<4x256xbf16>, vector<4x256xbf16>, vector<4x256xbf16> -> vector<4x1024xbf16>
    %c64 = arith.constant 64 : index
    %c0_104 = arith.constant 0 : index
    %145 = vector.load %arg15[%c64, %c0_104] : memref<152x1024xbf16, #tpu.memory_space<vmem>>, vector<4x1024xbf16>
    tpu.vector_store %arg15[%c64, %c0_104], %144 {strides = array<i32>} : memref<152x1024xbf16, #tpu.memory_space<vmem>>, vector<4x1024xbf16>,
    %c27_105 = arith.constant 27 : index
    %c0_106 = arith.constant 0 : index
    %c0_107 = arith.constant 0 : index
    %146 = vector.load %arg14[%c27_105, %c0_106, %c0_107] : memref<64x4x256xbf16, #tpu.memory_space<vmem>>, vector<1x4x256xbf16>
    %147 = vector.shape_cast %146 : vector<1x4x256xbf16> to vector<4x256xbf16>
    %c28 = arith.constant 28 : index
    %c0_108 = arith.constant 0 : index
    %c0_109 = arith.constant 0 : index
    %148 = vector.load %arg14[%c28, %c0_108, %c0_109] : memref<64x4x256xbf16, #tpu.memory_space<vmem>>, vector<1x4x256xbf16>
    %149 = vector.shape_cast %148 : vector<1x4x256xbf16> to vector<4x256xbf16>
    %c29 = arith.constant 29 : index
    %c0_110 = arith.constant 0 : index
    %c0_111 = arith.constant 0 : index
    %150 = vector.load %arg14[%c29, %c0_110, %c0_111] : memref<64x4x256xbf16, #tpu.memory_space<vmem>>, vector<1x4x256xbf16>
    %151 = vector.shape_cast %150 : vector<1x4x256xbf16> to vector<4x256xbf16>
    %c30 = arith.constant 30 : index
    %c0_112 = arith.constant 0 : index
    %c0_113 = arith.constant 0 : index
    %152 = vector.load %arg14[%c30, %c0_112, %c0_113] : memref<64x4x256xbf16, #tpu.memory_space<vmem>>, vector<1x4x256xbf16>
    %153 = vector.shape_cast %152 : vector<1x4x256xbf16> to vector<4x256xbf16>
    %154 = tpu.concatenate %147, %149, %151, %153 in 1 : vector<4x256xbf16>, vector<4x256xbf16>, vector<4x256xbf16>, vector<4x256xbf16> -> vector<4x1024xbf16>
    %c72 = arith.constant 72 : index
    %c0_114 = arith.constant 0 : index
    %155 = vector.load %arg15[%c72, %c0_114] : memref<152x1024xbf16, #tpu.memory_space<vmem>>, vector<4x1024xbf16>
    tpu.vector_store %arg15[%c72, %c0_114], %154 {strides = array<i32>} : memref<152x1024xbf16, #tpu.memory_space<vmem>>, vector<4x1024xbf16>,
    %c30_115 = arith.constant 30 : index
    %c0_116 = arith.constant 0 : index
    %c0_117 = arith.constant 0 : index
    %156 = vector.load %arg14[%c30_115, %c0_116, %c0_117] : memref<64x4x256xbf16, #tpu.memory_space<vmem>>, vector<1x4x256xbf16>
    %157 = vector.shape_cast %156 : vector<1x4x256xbf16> to vector<4x256xbf16>
    %c31 = arith.constant 31 : index
    %c0_118 = arith.constant 0 : index
    %c0_119 = arith.constant 0 : index
    %158 = vector.load %arg14[%c31, %c0_118, %c0_119] : memref<64x4x256xbf16, #tpu.memory_space<vmem>>, vector<1x4x256xbf16>
    %159 = vector.shape_cast %158 : vector<1x4x256xbf16> to vector<4x256xbf16>
    %c32_120 = arith.constant 32 : index
    %c0_121 = arith.constant 0 : index
    %c0_122 = arith.constant 0 : index
    %160 = vector.load %arg14[%c32_120, %c0_121, %c0_122] : memref<64x4x256xbf16, #tpu.memory_space<vmem>>, vector<1x4x256xbf16>
    %161 = vector.shape_cast %160 : vector<1x4x256xbf16> to vector<4x256xbf16>
    %c33 = arith.constant 33 : index
    %c0_123 = arith.constant 0 : index
    %c0_124 = arith.constant 0 : index
    %162 = vector.load %arg14[%c33, %c0_123, %c0_124] : memref<64x4x256xbf16, #tpu.memory_space<vmem>>, vector<1x4x256xbf16>
    %163 = vector.shape_cast %162 : vector<1x4x256xbf16> to vector<4x256xbf16>
    %164 = tpu.concatenate %157, %159, %161, %163 in 1 : vector<4x256xbf16>, vector<4x256xbf16>, vector<4x256xbf16>, vector<4x256xbf16> -> vector<4x1024xbf16>
    %c80 = arith.constant 80 : index
    %c0_125 = arith.constant 0 : index
    %165 = vector.load %arg15[%c80, %c0_125] : memref<152x1024xbf16, #tpu.memory_space<vmem>>, vector<4x1024xbf16>
    tpu.vector_store %arg15[%c80, %c0_125], %164 {strides = array<i32>} : memref<152x1024xbf16, #tpu.memory_space<vmem>>, vector<4x1024xbf16>,
    %c33_126 = arith.constant 33 : index
    %c0_127 = arith.constant 0 : index
    %c0_128 = arith.constant 0 : index
    %166 = vector.load %arg14[%c33_126, %c0_127, %c0_128] : memref<64x4x256xbf16, #tpu.memory_space<vmem>>, vector<1x4x256xbf16>
    %167 = vector.shape_cast %166 : vector<1x4x256xbf16> to vector<4x256xbf16>
    %c34 = arith.constant 34 : index
    %c0_129 = arith.constant 0 : index
    %c0_130 = arith.constant 0 : index
    %168 = vector.load %arg14[%c34, %c0_129, %c0_130] : memref<64x4x256xbf16, #tpu.memory_space<vmem>>, vector<1x4x256xbf16>
    %169 = vector.shape_cast %168 : vector<1x4x256xbf16> to vector<4x256xbf16>
    %c35 = arith.constant 35 : index
    %c0_131 = arith.constant 0 : index
    %c0_132 = arith.constant 0 : index
    %170 = vector.load %arg14[%c35, %c0_131, %c0_132] : memref<64x4x256xbf16, #tpu.memory_space<vmem>>, vector<1x4x256xbf16>
    %171 = vector.shape_cast %170 : vector<1x4x256xbf16> to vector<4x256xbf16>
    %c36 = arith.constant 36 : index
    %c0_133 = arith.constant 0 : index
    %c0_134 = arith.constant 0 : index
    %172 = vector.load %arg14[%c36, %c0_133, %c0_134] : memref<64x4x256xbf16, #tpu.memory_space<vmem>>, vector<1x4x256xbf16>
    %173 = vector.shape_cast %172 : vector<1x4x256xbf16> to vector<4x256xbf16>
    %174 = tpu.concatenate %167, %169, %171, %173 in 1 : vector<4x256xbf16>, vector<4x256xbf16>, vector<4x256xbf16>, vector<4x256xbf16> -> vector<4x1024xbf16>
    %c88 = arith.constant 88 : index
    %c0_135 = arith.constant 0 : index
    %175 = vector.load %arg15[%c88, %c0_135] : memref<152x1024xbf16, #tpu.memory_space<vmem>>, vector<4x1024xbf16>
    tpu.vector_store %arg15[%c88, %c0_135], %174 {strides = array<i32>} : memref<152x1024xbf16, #tpu.memory_space<vmem>>, vector<4x1024xbf16>,
    %c36_136 = arith.constant 36 : index
    %c0_137 = arith.constant 0 : index
    %c0_138 = arith.constant 0 : index
    %176 = vector.load %arg14[%c36_136, %c0_137, %c0_138] : memref<64x4x256xbf16, #tpu.memory_space<vmem>>, vector<1x4x256xbf16>
    %177 = vector.shape_cast %176 : vector<1x4x256xbf16> to vector<4x256xbf16>
    %c37 = arith.constant 37 : index
    %c0_139 = arith.constant 0 : index
    %c0_140 = arith.constant 0 : index
    %178 = vector.load %arg14[%c37, %c0_139, %c0_140] : memref<64x4x256xbf16, #tpu.memory_space<vmem>>, vector<1x4x256xbf16>
    %179 = vector.shape_cast %178 : vector<1x4x256xbf16> to vector<4x256xbf16>
    %c38 = arith.constant 38 : index
    %c0_141 = arith.constant 0 : index
    %c0_142 = arith.constant 0 : index
    %180 = vector.load %arg14[%c38, %c0_141, %c0_142] : memref<64x4x256xbf16, #tpu.memory_space<vmem>>, vector<1x4x256xbf16>
    %181 = vector.shape_cast %180 : vector<1x4x256xbf16> to vector<4x256xbf16>
    %c39 = arith.constant 39 : index
    %c0_143 = arith.constant 0 : index
    %c0_144 = arith.constant 0 : index
    %182 = vector.load %arg14[%c39, %c0_143, %c0_144] : memref<64x4x256xbf16, #tpu.memory_space<vmem>>, vector<1x4x256xbf16>
    %183 = vector.shape_cast %182 : vector<1x4x256xbf16> to vector<4x256xbf16>
    %184 = tpu.concatenate %177, %179, %181, %183 in 1 : vector<4x256xbf16>, vector<4x256xbf16>, vector<4x256xbf16>, vector<4x256xbf16> -> vector<4x1024xbf16>
    %c96 = arith.constant 96 : index
    %c0_145 = arith.constant 0 : index
    %185 = vector.load %arg15[%c96, %c0_145] : memref<152x1024xbf16, #tpu.memory_space<vmem>>, vector<4x1024xbf16>
    tpu.vector_store %arg15[%c96, %c0_145], %184 {strides = array<i32>} : memref<152x1024xbf16, #tpu.memory_space<vmem>>, vector<4x1024xbf16>,
    %c39_146 = arith.constant 39 : index
    %c0_147 = arith.constant 0 : index
    %c0_148 = arith.constant 0 : index
    %186 = vector.load %arg14[%c39_146, %c0_147, %c0_148] : memref<64x4x256xbf16, #tpu.memory_space<vmem>>, vector<1x4x256xbf16>
    %187 = vector.shape_cast %186 : vector<1x4x256xbf16> to vector<4x256xbf16>
    %c40_149 = arith.constant 40 : index
    %c0_150 = arith.constant 0 : index
    %c0_151 = arith.constant 0 : index
    %188 = vector.load %arg14[%c40_149, %c0_150, %c0_151] : memref<64x4x256xbf16, #tpu.memory_space<vmem>>, vector<1x4x256xbf16>
    %189 = vector.shape_cast %188 : vector<1x4x256xbf16> to vector<4x256xbf16>
    %c41 = arith.constant 41 : index
    %c0_152 = arith.constant 0 : index
    %c0_153 = arith.constant 0 : index
    %190 = vector.load %arg14[%c41, %c0_152, %c0_153] : memref<64x4x256xbf16, #tpu.memory_space<vmem>>, vector<1x4x256xbf16>
    %191 = vector.shape_cast %190 : vector<1x4x256xbf16> to vector<4x256xbf16>
    %c42 = arith.constant 42 : index
    %c0_154 = arith.constant 0 : index
    %c0_155 = arith.constant 0 : index
    %192 = vector.load %arg14[%c42, %c0_154, %c0_155] : memref<64x4x256xbf16, #tpu.memory_space<vmem>>, vector<1x4x256xbf16>
    %193 = vector.shape_cast %192 : vector<1x4x256xbf16> to vector<4x256xbf16>
    %194 = tpu.concatenate %187, %189, %191, %193 in 1 : vector<4x256xbf16>, vector<4x256xbf16>, vector<4x256xbf16>, vector<4x256xbf16> -> vector<4x1024xbf16>
    %c104 = arith.constant 104 : index
    %c0_156 = arith.constant 0 : index
    %195 = vector.load %arg15[%c104, %c0_156] : memref<152x1024xbf16, #tpu.memory_space<vmem>>, vector<4x1024xbf16>
    tpu.vector_store %arg15[%c104, %c0_156], %194 {strides = array<i32>} : memref<152x1024xbf16, #tpu.memory_space<vmem>>, vector<4x1024xbf16>,
    %c42_157 = arith.constant 42 : index
    %c0_158 = arith.constant 0 : index
    %c0_159 = arith.constant 0 : index
    %196 = vector.load %arg14[%c42_157, %c0_158, %c0_159] : memref<64x4x256xbf16, #tpu.memory_space<vmem>>, vector<1x4x256xbf16>
    %197 = vector.shape_cast %196 : vector<1x4x256xbf16> to vector<4x256xbf16>
    %c43 = arith.constant 43 : index
    %c0_160 = arith.constant 0 : index
    %c0_161 = arith.constant 0 : index
    %198 = vector.load %arg14[%c43, %c0_160, %c0_161] : memref<64x4x256xbf16, #tpu.memory_space<vmem>>, vector<1x4x256xbf16>
    %199 = vector.shape_cast %198 : vector<1x4x256xbf16> to vector<4x256xbf16>
    %c44 = arith.constant 44 : index
    %c0_162 = arith.constant 0 : index
    %c0_163 = arith.constant 0 : index
    %200 = vector.load %arg14[%c44, %c0_162, %c0_163] : memref<64x4x256xbf16, #tpu.memory_space<vmem>>, vector<1x4x256xbf16>
    %201 = vector.shape_cast %200 : vector<1x4x256xbf16> to vector<4x256xbf16>
    %c45 = arith.constant 45 : index
    %c0_164 = arith.constant 0 : index
    %c0_165 = arith.constant 0 : index
    %202 = vector.load %arg14[%c45, %c0_164, %c0_165] : memref<64x4x256xbf16, #tpu.memory_space<vmem>>, vector<1x4x256xbf16>
    %203 = vector.shape_cast %202 : vector<1x4x256xbf16> to vector<4x256xbf16>
    %204 = tpu.concatenate %197, %199, %201, %203 in 1 : vector<4x256xbf16>, vector<4x256xbf16>, vector<4x256xbf16>, vector<4x256xbf16> -> vector<4x1024xbf16>
    %c112 = arith.constant 112 : index
    %c0_166 = arith.constant 0 : index
    %205 = vector.load %arg15[%c112, %c0_166] : memref<152x1024xbf16, #tpu.memory_space<vmem>>, vector<4x1024xbf16>
    tpu.vector_store %arg15[%c112, %c0_166], %204 {strides = array<i32>} : memref<152x1024xbf16, #tpu.memory_space<vmem>>, vector<4x1024xbf16>,
    %c45_167 = arith.constant 45 : index
    %c0_168 = arith.constant 0 : index
    %c0_169 = arith.constant 0 : index
    %206 = vector.load %arg14[%c45_167, %c0_168, %c0_169] : memref<64x4x256xbf16, #tpu.memory_space<vmem>>, vector<1x4x256xbf16>
    %207 = vector.shape_cast %206 : vector<1x4x256xbf16> to vector<4x256xbf16>
    %c46 = arith.constant 46 : index
    %c0_170 = arith.constant 0 : index
    %c0_171 = arith.constant 0 : index
    %208 = vector.load %arg14[%c46, %c0_170, %c0_171] : memref<64x4x256xbf16, #tpu.memory_space<vmem>>, vector<1x4x256xbf16>
    %209 = vector.shape_cast %208 : vector<1x4x256xbf16> to vector<4x256xbf16>
    %c47 = arith.constant 47 : index
    %c0_172 = arith.constant 0 : index
    %c0_173 = arith.constant 0 : index
    %210 = vector.load %arg14[%c47, %c0_172, %c0_173] : memref<64x4x256xbf16, #tpu.memory_space<vmem>>, vector<1x4x256xbf16>
    %211 = vector.shape_cast %210 : vector<1x4x256xbf16> to vector<4x256xbf16>
    %c48_174 = arith.constant 48 : index
    %c0_175 = arith.constant 0 : index
    %c0_176 = arith.constant 0 : index
    %212 = vector.load %arg14[%c48_174, %c0_175, %c0_176] : memref<64x4x256xbf16, #tpu.memory_space<vmem>>, vector<1x4x256xbf16>
    %213 = vector.shape_cast %212 : vector<1x4x256xbf16> to vector<4x256xbf16>
    %214 = tpu.concatenate %207, %209, %211, %213 in 1 : vector<4x256xbf16>, vector<4x256xbf16>, vector<4x256xbf16>, vector<4x256xbf16> -> vector<4x1024xbf16>
    %c120 = arith.constant 120 : index
    %c0_177 = arith.constant 0 : index
    %215 = vector.load %arg15[%c120, %c0_177] : memref<152x1024xbf16, #tpu.memory_space<vmem>>, vector<4x1024xbf16>
    tpu.vector_store %arg15[%c120, %c0_177], %214 {strides = array<i32>} : memref<152x1024xbf16, #tpu.memory_space<vmem>>, vector<4x1024xbf16>,
    %c48_178 = arith.constant 48 : index
    %c0_179 = arith.constant 0 : index
    %c0_180 = arith.constant 0 : index
    %216 = vector.load %arg14[%c48_178, %c0_179, %c0_180] : memref<64x4x256xbf16, #tpu.memory_space<vmem>>, vector<1x4x256xbf16>
    %217 = vector.shape_cast %216 : vector<1x4x256xbf16> to vector<4x256xbf16>
    %c49 = arith.constant 49 : index
    %c0_181 = arith.constant 0 : index
    %c0_182 = arith.constant 0 : index
    %218 = vector.load %arg14[%c49, %c0_181, %c0_182] : memref<64x4x256xbf16, #tpu.memory_space<vmem>>, vector<1x4x256xbf16>
    %219 = vector.shape_cast %218 : vector<1x4x256xbf16> to vector<4x256xbf16>
    %c50 = arith.constant 50 : index
    %c0_183 = arith.constant 0 : index
    %c0_184 = arith.constant 0 : index
    %220 = vector.load %arg14[%c50, %c0_183, %c0_184] : memref<64x4x256xbf16, #tpu.memory_space<vmem>>, vector<1x4x256xbf16>
    %221 = vector.shape_cast %220 : vector<1x4x256xbf16> to vector<4x256xbf16>
    %c51 = arith.constant 51 : index
    %c0_185 = arith.constant 0 : index
    %c0_186 = arith.constant 0 : index
    %222 = vector.load %arg14[%c51, %c0_185, %c0_186] : memref<64x4x256xbf16, #tpu.memory_space<vmem>>, vector<1x4x256xbf16>
    %223 = vector.shape_cast %222 : vector<1x4x256xbf16> to vector<4x256xbf16>
    %224 = tpu.concatenate %217, %219, %221, %223 in 1 : vector<4x256xbf16>, vector<4x256xbf16>, vector<4x256xbf16>, vector<4x256xbf16> -> vector<4x1024xbf16>
    %c128 = arith.constant 128 : index
    %c0_187 = arith.constant 0 : index
    %225 = vector.load %arg15[%c128, %c0_187] : memref<152x1024xbf16, #tpu.memory_space<vmem>>, vector<4x1024xbf16>
    tpu.vector_store %arg15[%c128, %c0_187], %224 {strides = array<i32>} : memref<152x1024xbf16, #tpu.memory_space<vmem>>, vector<4x1024xbf16>,
    %c51_188 = arith.constant 51 : index
    %c0_189 = arith.constant 0 : index
    %c0_190 = arith.constant 0 : index
    %226 = vector.load %arg14[%c51_188, %c0_189, %c0_190] : memref<64x4x256xbf16, #tpu.memory_space<vmem>>, vector<1x4x256xbf16>
    %227 = vector.shape_cast %226 : vector<1x4x256xbf16> to vector<4x256xbf16>
    %c52 = arith.constant 52 : index
    %c0_191 = arith.constant 0 : index
    %c0_192 = arith.constant 0 : index
    %228 = vector.load %arg14[%c52, %c0_191, %c0_192] : memref<64x4x256xbf16, #tpu.memory_space<vmem>>, vector<1x4x256xbf16>
    %229 = vector.shape_cast %228 : vector<1x4x256xbf16> to vector<4x256xbf16>
    %c53 = arith.constant 53 : index
    %c0_193 = arith.constant 0 : index
    %c0_194 = arith.constant 0 : index
    %230 = vector.load %arg14[%c53, %c0_193, %c0_194] : memref<64x4x256xbf16, #tpu.memory_space<vmem>>, vector<1x4x256xbf16>
    %231 = vector.shape_cast %230 : vector<1x4x256xbf16> to vector<4x256xbf16>
    %c54 = arith.constant 54 : index
    %c0_195 = arith.constant 0 : index
    %c0_196 = arith.constant 0 : index
    %232 = vector.load %arg14[%c54, %c0_195, %c0_196] : memref<64x4x256xbf16, #tpu.memory_space<vmem>>, vector<1x4x256xbf16>
    %233 = vector.shape_cast %232 : vector<1x4x256xbf16> to vector<4x256xbf16>
    %234 = tpu.concatenate %227, %229, %231, %233 in 1 : vector<4x256xbf16>, vector<4x256xbf16>, vector<4x256xbf16>, vector<4x256xbf16> -> vector<4x1024xbf16>
    %c136 = arith.constant 136 : index
    %c0_197 = arith.constant 0 : index
    %235 = vector.load %arg15[%c136, %c0_197] : memref<152x1024xbf16, #tpu.memory_space<vmem>>, vector<4x1024xbf16>
    tpu.vector_store %arg15[%c136, %c0_197], %234 {strides = array<i32>} : memref<152x1024xbf16, #tpu.memory_space<vmem>>, vector<4x1024xbf16>,
    %c54_198 = arith.constant 54 : index
    %c0_199 = arith.constant 0 : index
    %c0_200 = arith.constant 0 : index
    %236 = vector.load %arg14[%c54_198, %c0_199, %c0_200] : memref<64x4x256xbf16, #tpu.memory_space<vmem>>, vector<1x4x256xbf16>
    %237 = vector.shape_cast %236 : vector<1x4x256xbf16> to vector<4x256xbf16>
    %c55 = arith.constant 55 : index
    %c0_201 = arith.constant 0 : index
    %c0_202 = arith.constant 0 : index
    %238 = vector.load %arg14[%c55, %c0_201, %c0_202] : memref<64x4x256xbf16, #tpu.memory_space<vmem>>, vector<1x4x256xbf16>
    %239 = vector.shape_cast %238 : vector<1x4x256xbf16> to vector<4x256xbf16>
    %c56_203 = arith.constant 56 : index
    %c0_204 = arith.constant 0 : index
    %c0_205 = arith.constant 0 : index
    %240 = vector.load %arg14[%c56_203, %c0_204, %c0_205] : memref<64x4x256xbf16, #tpu.memory_space<vmem>>, vector<1x4x256xbf16>
    %241 = vector.shape_cast %240 : vector<1x4x256xbf16> to vector<4x256xbf16>
    %c57 = arith.constant 57 : index
    %c0_206 = arith.constant 0 : index
    %c0_207 = arith.constant 0 : index
    %242 = vector.load %arg14[%c57, %c0_206, %c0_207] : memref<64x4x256xbf16, #tpu.memory_space<vmem>>, vector<1x4x256xbf16>
    %243 = vector.shape_cast %242 : vector<1x4x256xbf16> to vector<4x256xbf16>
    %244 = tpu.concatenate %237, %239, %241, %243 in 1 : vector<4x256xbf16>, vector<4x256xbf16>, vector<4x256xbf16>, vector<4x256xbf16> -> vector<4x1024xbf16>
    %c144 = arith.constant 144 : index
    %c0_208 = arith.constant 0 : index
    %245 = vector.load %arg15[%c144, %c0_208] : memref<152x1024xbf16, #tpu.memory_space<vmem>>, vector<4x1024xbf16>
    tpu.vector_store %arg15[%c144, %c0_208], %244 {strides = array<i32>} : memref<152x1024xbf16, #tpu.memory_space<vmem>>, vector<4x1024xbf16>,
    %c0_209 = arith.constant 0 : index
    %c0_210 = arith.constant 0 : index
    %246 = vector.load %arg15[%c0_209, %c0_210] : memref<152x1024xbf16, #tpu.memory_space<vmem>>, vector<152x1024xbf16>
    %c0_211 = arith.constant 0 : index
    %c0_212 = arith.constant 0 : index
    %247 = vector.load %arg5[%c0_211, %c0_212] : memref<1024x128xbf16, #tpu.memory_space<vmem>>, vector<1024x128xbf16>
    %cst_213 = arith.constant dense<0.000000e+00> : vector<152x128xf32>
    %248 = tpu.matmul %246, %247, %cst_213 {dimension_numbers = #tpu.dot_dimension_numbers<[1], [0], [0], [1], [0, 0, 1, 1], [], []>} : vector<152x1024xbf16>, vector<1024x128xbf16>, vector<152x128xf32> -> vector<152x128xf32>
    %c0_214 = arith.constant 0 : index
    %c0_215 = arith.constant 0 : index
    %249 = vector.load %arg16[%c0_214, %c0_215] : memref<152x128xf32, #tpu.memory_space<vmem>>, vector<152x128xf32>
    tpu.vector_store %arg16[%c0_214, %c0_215], %248 {strides = array<i32>} : memref<152x128xf32, #tpu.memory_space<vmem>>, vector<152x128xf32>,
    %c0_216 = arith.constant 0 : index
    %c0_217 = arith.constant 0 : index
    %250 = vector.load %arg6[%c0_216, %c0_217] : memref<1x128xf32, #tpu.memory_space<vmem>>, vector<1x128xf32>
    %c0_218 = arith.constant 0 : index
    %c0_219 = arith.constant 0 : index
    %251 = vector.load %arg16[%c0_218, %c0_219] : memref<152x128xf32, #tpu.memory_space<vmem>>, vector<4x128xf32>
    %c8_220 = arith.constant 8 : index
    %c0_221 = arith.constant 0 : index
    %252 = vector.load %arg16[%c8_220, %c0_221] : memref<152x128xf32, #tpu.memory_space<vmem>>, vector<4x128xf32>
    %c16_222 = arith.constant 16 : index
    %c0_223 = arith.constant 0 : index
    %253 = vector.load %arg16[%c16_222, %c0_223] : memref<152x128xf32, #tpu.memory_space<vmem>>, vector<4x128xf32>
    %c24_224 = arith.constant 24 : index
    %c0_225 = arith.constant 0 : index
    %254 = vector.load %arg16[%c24_224, %c0_225] : memref<152x128xf32, #tpu.memory_space<vmem>>, vector<4x128xf32>
    %c32_226 = arith.constant 32 : index
    %c0_227 = arith.constant 0 : index
    %255 = vector.load %arg16[%c32_226, %c0_227] : memref<152x128xf32, #tpu.memory_space<vmem>>, vector<4x128xf32>
    %c40_228 = arith.constant 40 : index
    %c0_229 = arith.constant 0 : index
    %256 = vector.load %arg16[%c40_228, %c0_229] : memref<152x128xf32, #tpu.memory_space<vmem>>, vector<4x128xf32>
    %c48_230 = arith.constant 48 : index
    %c0_231 = arith.constant 0 : index
    %257 = vector.load %arg16[%c48_230, %c0_231] : memref<152x128xf32, #tpu.memory_space<vmem>>, vector<4x128xf32>
    %c56_232 = arith.constant 56 : index
    %c0_233 = arith.constant 0 : index
    %258 = vector.load %arg16[%c56_232, %c0_233] : memref<152x128xf32, #tpu.memory_space<vmem>>, vector<4x128xf32>
    %c64_234 = arith.constant 64 : index
    %c0_235 = arith.constant 0 : index
    %259 = vector.load %arg16[%c64_234, %c0_235] : memref<152x128xf32, #tpu.memory_space<vmem>>, vector<4x128xf32>
    %c72_236 = arith.constant 72 : index
    %c0_237 = arith.constant 0 : index
    %260 = vector.load %arg16[%c72_236, %c0_237] : memref<152x128xf32, #tpu.memory_space<vmem>>, vector<4x128xf32>
    %c80_238 = arith.constant 80 : index
    %c0_239 = arith.constant 0 : index
    %261 = vector.load %arg16[%c80_238, %c0_239] : memref<152x128xf32, #tpu.memory_space<vmem>>, vector<4x128xf32>
    %c88_240 = arith.constant 88 : index
    %c0_241 = arith.constant 0 : index
    %262 = vector.load %arg16[%c88_240, %c0_241] : memref<152x128xf32, #tpu.memory_space<vmem>>, vector<4x128xf32>
    %c96_242 = arith.constant 96 : index
    %c0_243 = arith.constant 0 : index
    %263 = vector.load %arg16[%c96_242, %c0_243] : memref<152x128xf32, #tpu.memory_space<vmem>>, vector<4x128xf32>
    %c104_244 = arith.constant 104 : index
    %c0_245 = arith.constant 0 : index
    %264 = vector.load %arg16[%c104_244, %c0_245] : memref<152x128xf32, #tpu.memory_space<vmem>>, vector<4x128xf32>
    %c112_246 = arith.constant 112 : index
    %c0_247 = arith.constant 0 : index
    %265 = vector.load %arg16[%c112_246, %c0_247] : memref<152x128xf32, #tpu.memory_space<vmem>>, vector<4x128xf32>
    %c120_248 = arith.constant 120 : index
    %c0_249 = arith.constant 0 : index
    %266 = vector.load %arg16[%c120_248, %c0_249] : memref<152x128xf32, #tpu.memory_space<vmem>>, vector<4x128xf32>
    %c128_250 = arith.constant 128 : index
    %c0_251 = arith.constant 0 : index
    %267 = vector.load %arg16[%c128_250, %c0_251] : memref<152x128xf32, #tpu.memory_space<vmem>>, vector<4x128xf32>
    %c136_252 = arith.constant 136 : index
    %c0_253 = arith.constant 0 : index
    %268 = vector.load %arg16[%c136_252, %c0_253] : memref<152x128xf32, #tpu.memory_space<vmem>>, vector<4x128xf32>
    %c144_254 = arith.constant 144 : index
    %c0_255 = arith.constant 0 : index
    %269 = vector.load %arg16[%c144_254, %c0_255] : memref<152x128xf32, #tpu.memory_space<vmem>>, vector<4x128xf32>
    %270 = arith.maximumf %251, %252 : vector<4x128xf32>
    %271 = arith.maximumf %270, %253 : vector<4x128xf32>
    %272 = vector.broadcast %250 : vector<1x128xf32> to vector<4x128xf32>
    %273 = arith.addf %271, %272 : vector<4x128xf32>
    %cst_256 = arith.constant 0.000000e+00 : f32
    %274 = vector.broadcast %cst_256 : f32 to vector<4x128xf32>
    %275 = arith.cmpf ogt, %273, %274 : vector<4x128xf32>
    %cst_257 = arith.constant 0.00999999977 : f32
    %276 = vector.broadcast %cst_257 : f32 to vector<4x128xf32>
    %277 = arith.mulf %276, %273 : vector<4x128xf32>
    %278 = arith.select %275, %273, %277 : vector<4x128xi1>, vector<4x128xf32>
    %279 = arith.truncf %278 : vector<4x128xf32> to vector<4x128xbf16>
    %280 = arith.maximumf %253, %254 : vector<4x128xf32>
    %281 = arith.maximumf %280, %255 : vector<4x128xf32>
    %282 = vector.broadcast %250 : vector<1x128xf32> to vector<4x128xf32>
    %283 = arith.addf %281, %282 : vector<4x128xf32>
    %cst_258 = arith.constant 0.000000e+00 : f32
    %284 = vector.broadcast %cst_258 : f32 to vector<4x128xf32>
    %285 = arith.cmpf ogt, %283, %284 : vector<4x128xf32>
    %cst_259 = arith.constant 0.00999999977 : f32
    %286 = vector.broadcast %cst_259 : f32 to vector<4x128xf32>
    %287 = arith.mulf %286, %283 : vector<4x128xf32>
    %288 = arith.select %285, %283, %287 : vector<4x128xi1>, vector<4x128xf32>
    %289 = arith.truncf %288 : vector<4x128xf32> to vector<4x128xbf16>
    %290 = arith.maximumf %255, %256 : vector<4x128xf32>
    %291 = arith.maximumf %290, %257 : vector<4x128xf32>
    %292 = vector.broadcast %250 : vector<1x128xf32> to vector<4x128xf32>
    %293 = arith.addf %291, %292 : vector<4x128xf32>
    %cst_260 = arith.constant 0.000000e+00 : f32
    %294 = vector.broadcast %cst_260 : f32 to vector<4x128xf32>
    %295 = arith.cmpf ogt, %293, %294 : vector<4x128xf32>
    %cst_261 = arith.constant 0.00999999977 : f32
    %296 = vector.broadcast %cst_261 : f32 to vector<4x128xf32>
    %297 = arith.mulf %296, %293 : vector<4x128xf32>
    %298 = arith.select %295, %293, %297 : vector<4x128xi1>, vector<4x128xf32>
    %299 = arith.truncf %298 : vector<4x128xf32> to vector<4x128xbf16>
    %300 = arith.maximumf %257, %258 : vector<4x128xf32>
    %301 = arith.maximumf %300, %259 : vector<4x128xf32>
    %302 = vector.broadcast %250 : vector<1x128xf32> to vector<4x128xf32>
    %303 = arith.addf %301, %302 : vector<4x128xf32>
    %cst_262 = arith.constant 0.000000e+00 : f32
    %304 = vector.broadcast %cst_262 : f32 to vector<4x128xf32>
    %305 = arith.cmpf ogt, %303, %304 : vector<4x128xf32>
    %cst_263 = arith.constant 0.00999999977 : f32
    %306 = vector.broadcast %cst_263 : f32 to vector<4x128xf32>
    %307 = arith.mulf %306, %303 : vector<4x128xf32>
    %308 = arith.select %305, %303, %307 : vector<4x128xi1>, vector<4x128xf32>
    %309 = arith.truncf %308 : vector<4x128xf32> to vector<4x128xbf16>
    %310 = arith.maximumf %259, %260 : vector<4x128xf32>
    %311 = arith.maximumf %310, %261 : vector<4x128xf32>
    %312 = vector.broadcast %250 : vector<1x128xf32> to vector<4x128xf32>
    %313 = arith.addf %311, %312 : vector<4x128xf32>
    %cst_264 = arith.constant 0.000000e+00 : f32
    %314 = vector.broadcast %cst_264 : f32 to vector<4x128xf32>
    %315 = arith.cmpf ogt, %313, %314 : vector<4x128xf32>
    %cst_265 = arith.constant 0.00999999977 : f32
    %316 = vector.broadcast %cst_265 : f32 to vector<4x128xf32>
    %317 = arith.mulf %316, %313 : vector<4x128xf32>
    %318 = arith.select %315, %313, %317 : vector<4x128xi1>, vector<4x128xf32>
    %319 = arith.truncf %318 : vector<4x128xf32> to vector<4x128xbf16>
    %320 = arith.maximumf %261, %262 : vector<4x128xf32>
    %321 = arith.maximumf %320, %263 : vector<4x128xf32>
    %322 = vector.broadcast %250 : vector<1x128xf32> to vector<4x128xf32>
    %323 = arith.addf %321, %322 : vector<4x128xf32>
    %cst_266 = arith.constant 0.000000e+00 : f32
    %324 = vector.broadcast %cst_266 : f32 to vector<4x128xf32>
    %325 = arith.cmpf ogt, %323, %324 : vector<4x128xf32>
    %cst_267 = arith.constant 0.00999999977 : f32
    %326 = vector.broadcast %cst_267 : f32 to vector<4x128xf32>
    %327 = arith.mulf %326, %323 : vector<4x128xf32>
    %328 = arith.select %325, %323, %327 : vector<4x128xi1>, vector<4x128xf32>
    %329 = arith.truncf %328 : vector<4x128xf32> to vector<4x128xbf16>
    %330 = arith.maximumf %263, %264 : vector<4x128xf32>
    %331 = arith.maximumf %330, %265 : vector<4x128xf32>
    %332 = vector.broadcast %250 : vector<1x128xf32> to vector<4x128xf32>
    %333 = arith.addf %331, %332 : vector<4x128xf32>
    %cst_268 = arith.constant 0.000000e+00 : f32
    %334 = vector.broadcast %cst_268 : f32 to vector<4x128xf32>
    %335 = arith.cmpf ogt, %333, %334 : vector<4x128xf32>
    %cst_269 = arith.constant 0.00999999977 : f32
    %336 = vector.broadcast %cst_269 : f32 to vector<4x128xf32>
    %337 = arith.mulf %336, %333 : vector<4x128xf32>
    %338 = arith.select %335, %333, %337 : vector<4x128xi1>, vector<4x128xf32>
    %339 = arith.truncf %338 : vector<4x128xf32> to vector<4x128xbf16>
    %340 = arith.maximumf %265, %266 : vector<4x128xf32>
    %341 = arith.maximumf %340, %267 : vector<4x128xf32>
    %342 = vector.broadcast %250 : vector<1x128xf32> to vector<4x128xf32>
    %343 = arith.addf %341, %342 : vector<4x128xf32>
    %cst_270 = arith.constant 0.000000e+00 : f32
    %344 = vector.broadcast %cst_270 : f32 to vector<4x128xf32>
    %345 = arith.cmpf ogt, %343, %344 : vector<4x128xf32>
    %cst_271 = arith.constant 0.00999999977 : f32
    %346 = vector.broadcast %cst_271 : f32 to vector<4x128xf32>
    %347 = arith.mulf %346, %343 : vector<4x128xf32>
    %348 = arith.select %345, %343, %347 : vector<4x128xi1>, vector<4x128xf32>
    %349 = arith.truncf %348 : vector<4x128xf32> to vector<4x128xbf16>
    %350 = arith.maximumf %267, %268 : vector<4x128xf32>
    %351 = arith.maximumf %350, %269 : vector<4x128xf32>
    %352 = vector.broadcast %250 : vector<1x128xf32> to vector<4x128xf32>
    %353 = arith.addf %351, %352 : vector<4x128xf32>
    %cst_272 = arith.constant 0.000000e+00 : f32
    %354 = vector.broadcast %cst_272 : f32 to vector<4x128xf32>
    %355 = arith.cmpf ogt, %353, %354 : vector<4x128xf32>
    %cst_273 = arith.constant 0.00999999977 : f32
    %356 = vector.broadcast %cst_273 : f32 to vector<4x128xf32>
    %357 = arith.mulf %356, %353 : vector<4x128xf32>
    %358 = arith.select %355, %353, %357 : vector<4x128xi1>, vector<4x128xf32>
    %359 = arith.truncf %358 : vector<4x128xf32> to vector<4x128xbf16>
    %360 = tpu.concatenate %279, %289, %299, %309, %319, %329, %339, %349, %359 in 1 : vector<4x128xbf16>, vector<4x128xbf16>, vector<4x128xbf16>, vector<4x128xbf16>, vector<4x128xbf16>, vector<4x128xbf16>, vector<4x128xbf16>, vector<4x128xbf16>, vector<4x128xbf16> -> vector<4x1152xbf16>
    %c0_274 = arith.constant 0 : index
    %c0_275 = arith.constant 0 : index
    %361 = vector.load %arg7[%c0_274, %c0_275] : memref<1152x512xbf16, #tpu.memory_space<vmem>>, vector<1152x512xbf16>
    %cst_276 = arith.constant dense<0.000000e+00> : vector<4x512xf32>
    %362 = tpu.matmul %360, %361, %cst_276 {dimension_numbers = #tpu.dot_dimension_numbers<[1], [0], [0], [1], [0, 0, 1, 1], [], []>} : vector<4x1152xbf16>, vector<1152x512xbf16>, vector<4x512xf32> -> vector<4x512xf32>
    %c0_277 = arith.constant 0 : index
    %c0_278 = arith.constant 0 : index
    %363 = vector.load %arg8[%c0_277, %c0_278] : memref<1x512xf32, #tpu.memory_space<vmem>>, vector<1x512xf32>
    %364 = vector.broadcast %363 : vector<1x512xf32> to vector<4x512xf32>
    %365 = arith.addf %362, %364 : vector<4x512xf32>
    %cst_279 = arith.constant 0.000000e+00 : f32
    %366 = vector.broadcast %cst_279 : f32 to vector<4x512xf32>
    %367 = arith.cmpf ogt, %365, %366 : vector<4x512xf32>
    %cst_280 = arith.constant 0.00999999977 : f32
    %368 = vector.broadcast %cst_280 : f32 to vector<4x512xf32>
    %369 = arith.mulf %368, %365 : vector<4x512xf32>
    %370 = arith.select %367, %365, %369 : vector<4x512xi1>, vector<4x512xf32>
    %371 = arith.truncf %370 : vector<4x512xf32> to vector<4x512xbf16>
    %c0_281 = arith.constant 0 : index
    %c0_282 = arith.constant 0 : index
    %372 = vector.load %arg9[%c0_281, %c0_282] : memref<512x256xbf16, #tpu.memory_space<vmem>>, vector<512x256xbf16>
    %cst_283 = arith.constant dense<0.000000e+00> : vector<4x256xf32>
    %373 = tpu.matmul %371, %372, %cst_283 {dimension_numbers = #tpu.dot_dimension_numbers<[1], [0], [0], [1], [0, 0, 1, 1], [], []>} : vector<4x512xbf16>, vector<512x256xbf16>, vector<4x256xf32> -> vector<4x256xf32>
    %c0_284 = arith.constant 0 : index
    %c0_285 = arith.constant 0 : index
    %374 = vector.load %arg10[%c0_284, %c0_285] : memref<1x256xf32, #tpu.memory_space<vmem>>, vector<1x256xf32>
    %375 = vector.broadcast %374 : vector<1x256xf32> to vector<4x256xf32>
    %376 = arith.addf %373, %375 : vector<4x256xf32>
    %cst_286 = arith.constant 0.000000e+00 : f32
    %377 = vector.broadcast %cst_286 : f32 to vector<4x256xf32>
    %378 = arith.cmpf ogt, %376, %377 : vector<4x256xf32>
    %cst_287 = arith.constant 0.00999999977 : f32
    %379 = vector.broadcast %cst_287 : f32 to vector<4x256xf32>
    %380 = arith.mulf %379, %376 : vector<4x256xf32>
    %381 = arith.select %378, %376, %380 : vector<4x256xi1>, vector<4x256xf32>
    %c0_288 = arith.constant 0 : index
    %c0_289 = arith.constant 0 : index
    %382 = vector.load %arg2[%c0_288, %c0_289] : memref<2x4xf32, #tpu.memory_space<vmem>>, vector<2x4xf32>
    %cst_290 = arith.constant dense<0.000000e+00> : vector<2x256xf32>
    %383 = tpu.matmul %382, %381, %cst_290 {dimension_numbers = #tpu.dot_dimension_numbers<[1], [0], [0], [1], [0, 0, 1, 1], [], []>} : vector<2x4xf32>, vector<4x256xf32>, vector<2x256xf32> -> vector<2x256xf32>
    %384 = math.absf %383 : vector<2x256xf32>
    %cst_291 = arith.constant dense<0.000000e+00> : vector<2xf32>
    %385 = vector.multi_reduction <add>, %384, %cst_291 [1] : vector<2x256xf32> to vector<2xf32>
    %386 = vector.shape_cast %385 : vector<2xf32> to vector<2x1xf32>
    %c0_292 = arith.constant 0 : index
    %c0_293 = arith.constant 0 : index
    %387 = vector.load %arg11[%c0_292, %c0_293] : memref<1x1xf32, #tpu.memory_space<vmem>>, vector<1x1xf32>
    %388 = vector.broadcast %387 : vector<1x1xf32> to vector<2x1xf32>
    %389 = arith.mulf %386, %388 : vector<2x1xf32>
    %c0_294 = arith.constant 0 : index
    %c0_295 = arith.constant 0 : index
    %390 = vector.load %arg12[%c0_294, %c0_295] : memref<1x1xf32, #tpu.memory_space<vmem>>, vector<1x1xf32>
    %391 = vector.broadcast %390 : vector<1x1xf32> to vector<2x1xf32>
    %392 = arith.addf %389, %391 : vector<2x1xf32>
    %cst_296 = arith.constant 0.000000e+00 : f32
    %393 = vector.broadcast %cst_296 : f32 to vector<2x1xf32>
    %394 = arith.subf %393, %392 : vector<2x1xf32>
    %395 = math.exp %394 : vector<2x1xf32>
    %cst_297 = arith.constant 1.000000e+00 : f32
    %396 = vector.broadcast %cst_297 : f32 to vector<2x1xf32>
    %397 = arith.addf %396, %395 : vector<2x1xf32>
    %cst_298 = arith.constant 1.000000e+00 : f32
    %398 = vector.broadcast %cst_298 : f32 to vector<2x1xf32>
    %399 = arith.divf %398, %397 : vector<2x1xf32>
    %c0_299 = arith.constant 0 : index
    %c0_300 = arith.constant 0 : index
    %400 = vector.load %arg13[%c0_299, %c0_300] : memref<2x1xf32, #tpu.memory_space<vmem>>, vector<2x1xf32>
    tpu.vector_store %arg13[%c0_299, %c0_300], %399 {strides = array<i32>} : memref<2x1xf32, #tpu.memory_space<vmem>>, vector<2x1xf32>,
    return
  }
  func.func @transform_0(%arg0: i32) -> (i32, i32, i32) {
    %c0_i32 = arith.constant 0 : i32
    %c0_i32_0 = arith.constant 0 : i32
    %c0_i32_1 = arith.constant 0 : i32
    return %c0_i32, %arg0, %c0_i32_0 : i32, i32, i32
  }
  func.func @transform_1(%arg0: i32) -> (i32, i32) {
    %c0_i32 = arith.constant 0 : i32
    %c0_i32_0 = arith.constant 0 : i32
    %c0_i32_1 = arith.constant 0 : i32
    return %c0_i32, %c0_i32_0 : i32, i32
  }
  func.func @transform_2(%arg0: i32) -> (i32, i32) {
    %c0_i32 = arith.constant 0 : i32
    %c0_i32_0 = arith.constant 0 : i32
    %c0_i32_1 = arith.constant 0 : i32
    return %c0_i32, %c0_i32_0 : i32, i32
  }
  func.func @transform_3(%arg0: i32) -> (i32, i32) {
    %c0_i32 = arith.constant 0 : i32
    %c0_i32_0 = arith.constant 0 : i32
    %c0_i32_1 = arith.constant 0 : i32
    return %c0_i32, %c0_i32_0 : i32, i32
  }
  func.func @transform_4(%arg0: i32) -> (i32, i32) {
    %c0_i32 = arith.constant 0 : i32
    %c0_i32_0 = arith.constant 0 : i32
    %c0_i32_1 = arith.constant 0 : i32
    return %c0_i32, %c0_i32_0 : i32, i32
  }
  func.func @transform_5(%arg0: i32) -> (i32, i32) {
    %c0_i32 = arith.constant 0 : i32
    %c0_i32_0 = arith.constant 0 : i32
    %c0_i32_1 = arith.constant 0 : i32
    return %c0_i32, %c0_i32_0 : i32, i32
  }
  func.func @transform_6(%arg0: i32) -> (i32, i32) {
    %c0_i32 = arith.constant 0 : i32
    %c0_i32_0 = arith.constant 0 : i32
    %c0_i32_1 = arith.constant 0 : i32
    return %c0_i32, %c0_i32_0 : i32, i32
  }
  func.func @transform_7(%arg0: i32) -> (i32, i32) {
    %c0_i32 = arith.constant 0 : i32
    %c0_i32_0 = arith.constant 0 : i32
    %c0_i32_1 = arith.constant 0 : i32
    return %c0_i32, %c0_i32_0 : i32, i32
  }
  func.func @transform_8(%arg0: i32) -> (i32, i32) {
    %c0_i32 = arith.constant 0 : i32
    %c0_i32_0 = arith.constant 0 : i32
    %c0_i32_1 = arith.constant 0 : i32
    return %c0_i32, %c0_i32_0 : i32, i32
  }
  func.func @transform_9(%arg0: i32) -> (i32, i32) {
    %c0_i32 = arith.constant 0 : i32
    %c0_i32_0 = arith.constant 0 : i32
    %c0_i32_1 = arith.constant 0 : i32
    return %c0_i32, %c0_i32_0 : i32, i32
  }
  func.func @transform_10(%arg0: i32) -> (i32, i32) {
    %c0_i32 = arith.constant 0 : i32
    %c0_i32_0 = arith.constant 0 : i32
    %c0_i32_1 = arith.constant 0 : i32
    return %c0_i32, %c0_i32_0 : i32, i32
  }
  func.func @transform_11(%arg0: i32) -> (i32, i32) {
    %c0_i32 = arith.constant 0 : i32
    %c0_i32_0 = arith.constant 0 : i32
    %c0_i32_1 = arith.constant 0 : i32
    return %c0_i32, %c0_i32_0 : i32, i32
  }
  func.func @transform_12(%arg0: i32) -> (i32, i32) {
    %c0_i32 = arith.constant 0 : i32
    %c0_i32_0 = arith.constant 0 : i32
    return %arg0, %c0_i32 : i32, i32
  }
}

</mosaic_0001>

<bundles_post_ra>
// kernel: _lambda_.1
= control target key start
LH: loop header
LB: loop body
LE: loop exit
PB: predicated region body
PF: predicated region fallthrough
CT: control target
= control target key end

     0   :  { %s15365_s0 = inlined_call_operand.vmem [shape: f32[64,4,8], index: 0, kind: input, shape index: {}]   ;;  %s15366_s1 = inlined_call_operand.vmem [shape: f32[2,4], index: 1, kind: input, shape index: {}]   ;;  %s15367_s2 = inlined_call_operand.hbm [shape: f32[3,256], index: 2, kind: input, shape index: {}]   ;;  %s15368_s3 = inlined_call_operand.hbm [shape: f32[1,256], index: 3, kind: input, shape index: {}]   ;;  %s15369_s4 = inlined_call_operand.hbm [shape: bf16[1024,128], index: 4, kind: input, shape index: {}]   ;;  %s15370_s5 = inlined_call_operand.hbm [shape: f32[1,128], index: 5, kind: input, shape index: {}]   ;;  %s15371_s6 = inlined_call_operand.hbm [shape: bf16[1152,512], index: 6, kind: input, shape index: {}]   ;;  %s15372_s7 = inlined_call_operand.hbm [shape: f32[1,512], index: 7, kind: input, shape index: {}]   ;;  %s15373_s8 = inlined_call_operand.hbm [shape: bf16[512,256], index: 8, kind: input, shape index: {}]   ;;  %s15374_s9 = inlined_call_operand.hbm [shape: f32[1,256], index: 9, kind: input, shape index: {}]   ;;  %s15375_s10 = inlined_call_operand.<no memory space> [shape: f32[1,1], index: 10, kind: input, shape index: {}]   ;;  %s15376_s12 = inlined_call_operand.vmem [shape: f32[2,1], index: 12, kind: output, shape index: {}]   ;;  %s15377_s11 = inlined_call_operand.<no memory space> [shape: f32[1,1], index: 11, kind: input, shape index: {}]  }
   0x1   :  { %v17_v0 = vstv %s15375_s10  ;;  %v19_v1 = vstv %s15377_s11 }
   0x2   :  { %18 = vst [vmem:[#allocation5] sm:$0x1] %v17_v0 }
   0x3   :  { %20 = vst [vmem:[#allocation6] sm:$0x1] %v19_v1 }
   0x4   :  { %21 = vsyncpa [#allocation8], 0 }
   0x5   :  { %22 = vsyncpa [#allocation10], 0 }
   0x6   :  { %23 = vsyncpa [#allocation13], 0 }
   0x7   :  { %24 = vsyncpa [#allocation16], 0  ;;  %s46_s27 = sshll.u32 %s15368_s3, 4  ;;  %s47_s27 = int_to_ptr.hbm [resolvable:$true] %s46_s27 }
   0x8   :  { %25 = vsyncpa [#allocation19], 0  ;;  %s12430_s28 = smov [#allocation9]   ;;  %s70_s13 = sshll.u32 %s15370_s5, 4  ;;  %s71_s13 = int_to_ptr.hbm [resolvable:$true] %s70_s13 }
   0x9   :  { %s48_s29 = sshll.u32 %s12430_s28, 4  ;;  %s12431_s11 = smov [#allocation12]   ;;  %s49_s29 = int_to_ptr.vmem [resolvable:$true] %s48_s29 }
   0xa   :  { %51 = dma.hbm_to_vmem [thread:$0]  %s47_s27, 32, %s49_s29, [#allocation10]  }
   0xb   :  { %s72_s14 = sshll.u32 %s12431_s11, 4  ;;  %s94_s17 = sshll.u32 %s15372_s7, 4  ;;  %s73_s14 = int_to_ptr.vmem [resolvable:$true] %s72_s14  ;;  %s95_s17 = int_to_ptr.hbm [resolvable:$true] %s94_s17 }
   0xc   :  { %75 = dma.hbm_to_vmem [thread:$0]  %s71_s13, 16, %s73_s14, [#allocation13]  }
   0xd   :  { %s35_s19 = sshll.u32 %s15367_s2, 4  ;;  %s12432_s20 = smov [#allocation15]   ;;  %s36_s19 = int_to_ptr.hbm [resolvable:$true] %s35_s19 }
   0xe   :  { %s96_s21 = sshll.u32 %s12432_s20, 4  ;;  %s12433_s5 = smov [#allocation7]   ;;  %s97_s21 = int_to_ptr.vmem [resolvable:$true] %s96_s21 }
   0xf   :  { %99 = dma.hbm_to_vmem [thread:$0]  %s95_s17, 64, %s97_s21, [#allocation16]  }
  0x10   :  { %s37_s22 = sshll.u32 %s12433_s5, 4  ;;  %s56_s25 = sshll.u32 %s15369_s4, 4  ;;  %s38_s22 = int_to_ptr.vmem [resolvable:$true] %s37_s22  ;;  %s57_s25 = int_to_ptr.hbm [resolvable:$true] %s56_s25 }
  0x11   :  { %40 = dma.hbm_to_vmem [thread:$0]  %s36_s19, 128, %s38_s22, [#allocation8]  }
  0x12   :  { %s12434_s7 = smov [#allocation11]   ;;  %s80_s2 = sshll.u32 %s15371_s6, 4  ;;  %s81_s2 = int_to_ptr.hbm [resolvable:$true] %s80_s2 }
  0x13   :  { %s58_s26 = sshll.u32 %s12434_s7, 4  ;;  %s12435_s29 = smov 64   ;;  %s59_s26 = int_to_ptr.vmem [resolvable:$true] %s58_s26 }
  0x14   :  { %s12436_s10 = smov 4   ;;  %s12437_s30 = smov [#allocation14]  }
  0x15   :  { %64 = dma.hbm_to_vmem [thread:$0]  %s57_s25, 8192, %s59_s26, [#allocation10], %s12435_s29, %s12435_s29, %s12436_s10  }
  0x16   :  { %s82_s13 = sshll.u32 %s12437_s30, 4  ;;  %s12438_s11 = smov 256   ;;  %s83_s13 = int_to_ptr.vmem [resolvable:$true] %s82_s13 }
  0x17   :  { %s12439_s14 = smov 16   ;;  %s104_s16 = sshll.u32 %s15373_s8, 4  ;;  %s105_s16 = int_to_ptr.hbm [resolvable:$true] %s104_s16 }
  0x18   :  { %88 = dma.hbm_to_vmem [thread:$0]  %s81_s2, 36864, %s83_s13, [#allocation13], %s12438_s11, %s12438_s11, %s12439_s14  }
  0x19   :  { %s12440_s17 = smov [#allocation17]   ;;  %s118_s19 = sshll.u32 %s15374_s9, 4  ;;  %s119_s19 = int_to_ptr.hbm [resolvable:$true] %s118_s19 }
  0x1a   :  { %s106_s3 = sshll.u32 %s12440_s17, 4  ;;  %s12441_s20 = smov 128   ;;  %s107_s3 = int_to_ptr.vmem [resolvable:$true] %s106_s3 }
  0x1b   :  { %s12442_s21 = smov 8   ;;  %s12443_s5 = smov [#allocation18]  }
  0x1c   :  { %112 = dma.hbm_to_vmem [thread:$0]  %s105_s16, 8192, %s107_s3, [#allocation16], %s12441_s20, %s12441_s20, %s12442_s21  }
  0x1d   :  { %s120_s22 = sshll.u32 %s12443_s5, 4  ;;  %s121_s22 = int_to_ptr.vmem [resolvable:$true] %s120_s22 }
  0x1e   :  { %123 = dma.hbm_to_vmem [thread:$0]  %s119_s19, 32, %s121_s22, [#allocation19]  }
  0x1f   :  { %12420 = dma.done.wait [#allocation8], 128  }
  0x20   :  { %12421 = vsyncadd [#allocation8], 4294967168 }
  0x21   :  { %12422 = dma.done.wait [#allocation10], 8224  }
  0x22   :  { %12423 = vsyncadd [#allocation10], 4294959072 }
  0x23   :  { %12424 = dma.done.wait [#allocation13], 36880  }
  0x24   :  { %12425 = vsyncadd [#allocation13], 4294930416 }
  0x25   :  { %12426 = dma.done.wait [#allocation16], 8256  }
  0x26   :  { %12427 = vsyncadd [#allocation16], 4294959040 }
  0x27   :  { %12428 = dma.done.wait [#allocation19], 32  }
  0x28   :  { %12429 = vsyncadd [#allocation19], 4294967264  ;;  %v12444_v2 = vmov 0   ;;  %v12557_v3 = vld [vmem:[%s15365_s0 + $0x10] sm:$0xf]  ;;  %vm3787_vm0 = vcmask 1041408  }
  0x29   :  { %11908 = vset.pattern.permute.xlu2 %v12444_v2  ;;  %165 = vst [vmem:[#allocation3] sm:$0xff] %v12444_v2  ;;  %11907 = vset.pattern.permute.xlu1 %v12444_v2  ;;  %v12562_v4 = vld [vmem:[%s15365_s0 + $0x8] sm:$0xf]  ;;  %v12570_v5 = vld [vmem:[%s15365_s0] sm:$0xf] }
  0x2a   :  { %166 = vst [vmem:[#allocation3 + $0x8] sm:$0xff] %v12444_v2  ;;  %11906 = vset.pattern.permute.xlu0 %v12444_v2  ;;  %329 = vperm.xlu2 %11908, %v12557_v3   ;;  %v12581_v6 = vld [vmem:[%s15365_s0 + $0x14] sm:$0xf]  ;;  %v12586_v7 = vld [vmem:[%s15365_s0 + $0xc] sm:$0xf] }
  0x2b   :  { %167 = vst [vmem:[#allocation3 + $0x10] sm:$0xff] %v12444_v2  ;;  %319 = vperm.xlu1 %11907, %v12562_v4   ;;  %309 = vperm.xlu0 %11906, %v12570_v5   ;;  %v12592_v8 = vld [vmem:[%s15365_s0 + $0x4] sm:$0xf]  ;;  %v12607_v9 = vld [vmem:[%s15365_s0 + $0x20] sm:$0xf] }
  0x2c   :  { %168 = vst [vmem:[#allocation3 + $0x18] sm:$0xff] %v12444_v2  ;;  %v12612_v10 = vld [vmem:[%s15365_s0 + $0x1c] sm:$0xf]  ;;  %v12618_v11 = vld [vmem:[%s15365_s0 + $0x18] sm:$0xf] }
  0x2d   :  { %169 = vst [vmem:[#allocation3 + $0x20] sm:$0xff] %v12444_v2  ;;  %v12633_v12 = vld [vmem:[%s15365_s0 + $0x2c] sm:$0xf]  ;;  %v12638_v13 = vld [vmem:[%s15365_s0 + $0x28] sm:$0xf] }
  0x2e   :  { %170 = vst [vmem:[#allocation3 + $0x28] sm:$0xff] %v12444_v2  ;;  %v12644_v14 = vld [vmem:[%s15365_s0 + $0x24] sm:$0xf]  ;;  %v12659_v15 = vld [vmem:[%s15365_s0 + $0x38] sm:$0xf] }
  0x2f   :  { %171 = vst [vmem:[#allocation3 + $0x30] sm:$0xff] %v12444_v2  ;;  %v254_v16 = vld [vmem:[%s15365_s0 + $0x34] sm:$0xf]  ;;  %v12668_v17 = vld [vmem:[%s15365_s0 + $0x30] sm:$0xf] }
  0x30   :  { %172 = vst [vmem:[#allocation3 + $0x38] sm:$0xff] %v12444_v2  ;;  %v12682_v18 = vld [vmem:[%s15365_s0 + $0x44] sm:$0xf]  ;;  %v12687_v19 = vld [vmem:[%s15365_s0 + $0x40] sm:$0xf] }
  0x31   :  { %173 = vst [vmem:[#allocation3 + $0x40] sm:$0xff] %v12444_v2  ;;  %v12693_v20 = vld [vmem:[%s15365_s0 + $0x3c] sm:$0xf]  ;;  %v12708_v21 = vld [vmem:[%s15365_s0 + $0x50] sm:$0xf] }
  0x32   :  { %174 = vst [vmem:[#allocation3 + $0x48] sm:$0xff] %v12444_v2  ;;  %334 = vperm.xlu2 %11908, %v12581_v6   ;;  %v12713_v22 = vld [vmem:[%s15365_s0 + $0x4c] sm:$0xf]  ;;  %v259_v23 = vld [vmem:[%s15365_s0 + $0x48] sm:$0xf] }
  0x33   :  { %175 = vst [vmem:[#allocation3 + $0x50] sm:$0xff] %v12444_v2  ;;  %324 = vperm.xlu1 %11907, %v12586_v7   ;;  %314 = vperm.xlu0 %11906, %v12592_v8   ;;  %v264_v24 = vld [vmem:[%s15365_s0 + $0x5c] sm:$0xf]  ;;  %v12734_v25 = vld [vmem:[%s15365_s0 + $0x58] sm:$0xf] }
  0x34   :  { %176 = vst [vmem:[#allocation3 + $0x58] sm:$0xff] %v12444_v2  ;;  %v12740_v26 = vld [vmem:[%s15365_s0 + $0x54] sm:$0xf]  ;;  %v267_v27 = vld [vmem:[%s15365_s0 + $0x68] sm:$0xf] }
  0x35   :  { %177 = vst [vmem:[#allocation3 + $0x60] sm:$0xff] %v12444_v2  ;;  %v12757_v28 = vld [vmem:[%s15365_s0 + $0x64] sm:$0xf]  ;;  %v12763_v29 = vld [vmem:[%s15365_s0 + $0x60] sm:$0xf] }
  0x36   :  { %178 = vst [vmem:[#allocation3 + $0x68] sm:$0xff] %v12444_v2  ;;  %v270_v30 = vld [vmem:[%s15365_s0 + $0x74] sm:$0xf]  ;;  %v269_v31 = vld [vmem:[%s15365_s0 + $0x70] sm:$0xf] }
  0x37   :  { %179 = vst [vmem:[#allocation3 + $0x70] sm:$0xff] %v12444_v2  ;;  %v268_v32 = vld [vmem:[%s15365_s0 + $0x6c] sm:$0xf]  ;;  %v273_v33 = vld [vmem:[%s15365_s0 + $0x80] sm:$0xf] }
  0x38   :  { %180 = vst [vmem:[#allocation3 + $0x78] sm:$0xff] %v12444_v2  ;;  %v272_v34 = vld [vmem:[%s15365_s0 + $0x7c] sm:$0xf]  ;;  %v12791_v35 = vld [vmem:[%s15365_s0 + $0x78] sm:$0xf] }
  0x39   :  { %181 = vst [vmem:[#allocation3 + $0x80] sm:$0xff] %v12444_v2  ;;  %v276_v36 = vld [vmem:[%s15365_s0 + $0x8c] sm:$0xf]  ;;  %v275_v37 = vld [vmem:[%s15365_s0 + $0x88] sm:$0xf] }
  0x3a   :  { %182 = vst [vmem:[#allocation3 + $0x88] sm:$0xff] %v12444_v2  ;;  %349 = vperm.xlu2 %11908, %v12607_v9   ;;  %v274_v38 = vld [vmem:[%s15365_s0 + $0x84] sm:$0xf]  ;;  %v279_v40 = vld [vmem:[%s15365_s0 + $0x98] sm:$0xf] }
  0x3b   :  { %183 = vst [vmem:[#allocation3 + $0x90] sm:$0xff] %v12444_v2  ;;  %344 = vperm.xlu1 %11907, %v12612_v10   ;;  %339 = vperm.xlu0 %11906, %v12618_v11   ;;  %v278_v41 = vld [vmem:[%s15365_s0 + $0x94] sm:$0xf]  ;;  %v277_v42 = vld [vmem:[%s15365_s0 + $0x90] sm:$0xf] }
  0x3c   :  { %184 = vst [vmem:[#allocation3 + $0x98] sm:$0xff] %v12444_v2  ;;  %v282_v44 = vld [vmem:[%s15365_s0 + $0xa4] sm:$0xf]  ;;  %v281_v45 = vld [vmem:[%s15365_s0 + $0xa0] sm:$0xf] }
  0x3d   :  { %185 = vst [vmem:[#allocation3 + $0xa0] sm:$0xff] %v12444_v2  ;;  %v280_v46 = vld [vmem:[%s15365_s0 + $0x9c] sm:$0xf]  ;;  %v285_v48 = vld [vmem:[%s15365_s0 + $0xb0] sm:$0xf] }
  0x3e   :  { %186 = vst [vmem:[#allocation3 + $0xa8] sm:$0xff] %v12444_v2  ;;  %v284_v49 = vld [vmem:[%s15365_s0 + $0xac] sm:$0xf]  ;;  %v283_v50 = vld [vmem:[%s15365_s0 + $0xa8] sm:$0xf] }
  0x3f   :  { %187 = vst [vmem:[#allocation3 + $0xb0] sm:$0xff] %v12444_v2  ;;  %v288_v54 = vld [vmem:[%s15365_s0 + $0xbc] sm:$0xf]  ;;  %v287_v55 = vld [vmem:[%s15365_s0 + $0xb8] sm:$0xf] }
  0x40   :  { %188 = vst [vmem:[#allocation3 + $0xb8] sm:$0xff] %v12444_v2  ;;  %v286_v56 = vld [vmem:[%s15365_s0 + $0xb4] sm:$0xf]  ;;  %v291_v60 = vld [vmem:[%s15365_s0 + $0xc8] sm:$0xf] }
  0x41   :  { %189 = vst [vmem:[#allocation3 + $0xc0] sm:$0xff] %v12444_v2  ;;  %v290_v61 = vld [vmem:[%s15365_s0 + $0xc4] sm:$0xf]  ;;  %v289_v62 = vld [vmem:[%s15365_s0 + $0xc0] sm:$0xf] }
  0x42   :  { %190 = vst [vmem:[#allocation3 + $0xc8] sm:$0xff] %v12444_v2  ;;  %364 = vperm.xlu2 %11908, %v12633_v12  }
  0x43   :  { %191 = vst [vmem:[#allocation3 + $0xd0] sm:$0xff] %v12444_v2  ;;  %359 = vperm.xlu1 %11907, %v12638_v13   ;;  %354 = vperm.xlu0 %11906, %v12644_v14  }
  0x44   :  { %192 = vst [vmem:[#allocation3 + $0xd8] sm:$0xff] %v12444_v2 }
  0x45   :  { %193 = vst [vmem:[#allocation3 + $0xe0] sm:$0xff] %v12444_v2 }
  0x46   :  { %194 = vst [vmem:[#allocation3 + $0xe8] sm:$0xff] %v12444_v2 }
  0x47   :  { %195 = vst [vmem:[#allocation3 + $0xf0] sm:$0xff] %v12444_v2 }
  0x48   :  { %196 = vst [vmem:[#allocation3 + $0xf8] sm:$0xff] %v12444_v2 }
  0x49   :  { %197 = vst [vmem:[#allocation3 + $0x100] sm:$0xff] %v12444_v2 }
  0x4a   :  { %198 = vst [vmem:[#allocation3 + $0x108] sm:$0xff] %v12444_v2  ;;  %379 = vperm.xlu2 %11908, %v12659_v15  }
  0x4b   :  { %199 = vst [vmem:[#allocation3 + $0x110] sm:$0xff] %v12444_v2  ;;  %374 = vperm.xlu1 %11907, %v254_v16   ;;  %369 = vperm.xlu0 %11906, %v12668_v17   ;;  %v293_v16 = vld [vmem:[%s15365_s0 + $0xd0] sm:$0xf] }
  0x4c   :  { %200 = vst [vmem:[#allocation3 + $0x118] sm:$0xff] %v12444_v2 }
  0x4d   :  { %201 = vst [vmem:[#allocation3 + $0x120] sm:$0xff] %v12444_v2 }
  0x4e   :  { %202 = vst [vmem:[#allocation3 + $0x128] sm:$0xff] %v12444_v2 }
  0x4f   :  { %203 = vst [vmem:[#allocation3 + $0x130] sm:$0xff] %v12444_v2 }
  0x50   :  { %204 = vst [vmem:[#allocation3 + $0x138] sm:$0xff] %v12444_v2 }
  0x51   :  { %205 = vst [vmem:[#allocation3 + $0x140] sm:$0xff] %v12444_v2 }
  0x52   :  { %206 = vst [vmem:[#allocation3 + $0x148] sm:$0xff] %v12444_v2  ;;  %394 = vperm.xlu2 %11908, %v12682_v18  }
  0x53   :  { %207 = vst [vmem:[#allocation3 + $0x150] sm:$0xff] %v12444_v2  ;;  %389 = vperm.xlu1 %11907, %v12687_v19   ;;  %384 = vperm.xlu0 %11906, %v12693_v20  }
  0x54   :  { %208 = vst [vmem:[#allocation3 + $0x158] sm:$0xff] %v12444_v2 }
  0x55   :  { %209 = vst [vmem:[#allocation3 + $0x160] sm:$0xff] %v12444_v2 }
  0x56   :  { %210 = vst [vmem:[#allocation3 + $0x168] sm:$0xff] %v12444_v2 }
  0x57   :  { %211 = vst [vmem:[#allocation3 + $0x170] sm:$0xff] %v12444_v2 }
  0x58   :  { %212 = vst [vmem:[#allocation3 + $0x178] sm:$0xff] %v12444_v2 }
  0x59   :  { %213 = vst [vmem:[#allocation3 + $0x180] sm:$0xff] %v12444_v2 }
  0x5a   :  { %214 = vst [vmem:[#allocation3 + $0x188] sm:$0xff] %v12444_v2  ;;  %409 = vperm.xlu2 %11908, %v12708_v21  }
  0x5b   :  { %215 = vst [vmem:[#allocation3 + $0x190] sm:$0xff] %v12444_v2  ;;  %404 = vperm.xlu1 %11907, %v12713_v22   ;;  %399 = vperm.xlu0 %11906, %v259_v23   ;;  %v292_v23 = vld [vmem:[%s15365_s0 + $0xcc] sm:$0xf] }
  0x5c   :  { %216 = vst [vmem:[#allocation3 + $0x198] sm:$0xff] %v12444_v2 }
  0x5d   :  { %217 = vst [vmem:[#allocation3 + $0x1a0] sm:$0xff] %v12444_v2 }
  0x5e   :  { %218 = vst [vmem:[#allocation3 + $0x1a8] sm:$0xff] %v12444_v2 }
  0x5f   :  { %219 = vst [vmem:[#allocation3 + $0x1b0] sm:$0xff] %v12444_v2 }
  0x60   :  { %220 = vst [vmem:[#allocation3 + $0x1b8] sm:$0xff] %v12444_v2 }
  0x61   :  { %221 = vst [vmem:[#allocation3 + $0x1c0] sm:$0xff] %v12444_v2 }
  0x62   :  { %222 = vst [vmem:[#allocation3 + $0x1c8] sm:$0xff] %v12444_v2  ;;  %424 = vperm.xlu2 %11908, %v264_v24  }
  0x63   :  { %223 = vst [vmem:[#allocation3 + $0x1d0] sm:$0xff] %v12444_v2  ;;  %419 = vperm.xlu1 %11907, %v12734_v25   ;;  %414 = vperm.xlu0 %11906, %v12740_v26  }
  0x64   :  { %224 = vst [vmem:[#allocation3 + $0x1d8] sm:$0xff] %v12444_v2 }
  0x65   :  { %225 = vst [vmem:[#allocation3 + $0x1e0] sm:$0xff] %v12444_v2 }
  0x66   :  { %226 = vst [vmem:[#allocation3 + $0x1e8] sm:$0xff] %v12444_v2 }
  0x67   :  { %227 = vst [vmem:[#allocation3 + $0x1f0] sm:$0xff] %v12444_v2 }
  0x68   :  { %228 = vst [vmem:[#allocation3 + $0x1f8] sm:$0xff] %v12444_v2 }
  0x69   :  { %229 = vst [vmem:[#allocation3 + $0x200] sm:$0xff] %v12444_v2 }
  0x6a   :  { %230 = vst [vmem:[#allocation3 + $0x208] sm:$0xff] %v12444_v2  ;;  %439 = vperm.xlu2 %11908, %v267_v27  }
  0x6b   :  { %231 = vst [vmem:[#allocation3 + $0x210] sm:$0xff] %v12444_v2  ;;  %434 = vperm.xlu1 %11907, %v12757_v28   ;;  %429 = vperm.xlu0 %11906, %v12763_v29  }
  0x6c   :  { %232 = vst [vmem:[#allocation3 + $0x218] sm:$0xff] %v12444_v2 }
  0x6d   :  { %233 = vst [vmem:[#allocation3 + $0x220] sm:$0xff] %v12444_v2 }
  0x6e   :  { %234 = vst [vmem:[#allocation3 + $0x228] sm:$0xff] %v12444_v2 }
  0x6f   :  { %235 = vst [vmem:[#allocation3 + $0x230] sm:$0xff] %v12444_v2 }
  0x70   :  { %236 = vst [vmem:[#allocation3 + $0x238] sm:$0xff] %v12444_v2 }
  0x71   :  { %237 = vst [vmem:[#allocation3 + $0x240] sm:$0xff] %v12444_v2 }
  0x72   :  { %238 = vst [vmem:[#allocation3 + $0x248] sm:$0xff] %v12444_v2  ;;  %454 = vperm.xlu2 %11908, %v270_v30  }
  0x73   :  { %239 = vst [vmem:[#allocation3 + $0x250] sm:$0xff] %v12444_v2  ;;  %449 = vperm.xlu1 %11907, %v269_v31   ;;  %444 = vperm.xlu0 %11906, %v268_v32   ;;  %v297_v31 = vld [vmem:[%s15365_s0 + $0xe0] sm:$0xf]  ;;  %v296_v32 = vld [vmem:[%s15365_s0 + $0xdc] sm:$0xf] }
  0x74   :  { %240 = vst [vmem:[#allocation3 + $0x258] sm:$0xff] %v12444_v2  ;;  %v294_v2 = vld [vmem:[%s15365_s0 + $0xd4] sm:$0xf] }
  0x7a   :  { %469 = vperm.xlu2 %11908, %v273_v33   ;;  %v295_v33 = vld [vmem:[%s15365_s0 + $0xd8] sm:$0xf] }
  0x7b   :  { %464 = vperm.xlu1 %11907, %v272_v34   ;;  %459 = vperm.xlu0 %11906, %v12791_v35  }
  0x82   :  { %484 = vperm.xlu2 %11908, %v276_v36  }
  0x83   :  { %479 = vperm.xlu1 %11907, %v275_v37   ;;  %474 = vperm.xlu0 %11906, %v274_v38   ;;  %v299_v38 = vld [vmem:[%s15365_s0 + $0xe8] sm:$0xf] }
  0x84   :  { %v12803_v39 = vpop.permute.xlu2 %329 }
  0x8a   :  { %499 = vperm.xlu2 %11908, %v279_v40   ;;  %v298_v40 = vld [vmem:[%s15365_s0 + $0xe4] sm:$0xf] }
  0x8b   :  { %494 = vperm.xlu1 %11907, %v278_v41   ;;  %489 = vperm.xlu0 %11906, %v277_v42   ;;  %v15378_v41 = vmov 1  }
  0x8c   :  { %v12814_v43 = vpop.permute.xlu2 %334 }
  0x92   :  { %514 = vperm.xlu2 %11908, %v282_v44  }
  0x93   :  { %509 = vperm.xlu1 %11907, %v281_v45   ;;  %504 = vperm.xlu0 %11906, %v280_v46   ;;  %v15387_v46 = vmov 3  }
  0x94   :  { %v12825_v47 = vpop.permute.xlu2 %349 }
  0x9a   :  { %529 = vperm.xlu2 %11908, %v285_v48   ;;  %v15396_v48 = vmov 4  }
  0x9b   :  { %524 = vperm.xlu1 %11907, %v284_v49   ;;  %519 = vperm.xlu0 %11906, %v283_v50  }
  0x9c   :  { %v12836_v51 = vpop.permute.xlu2 %364 }
  0x9d   :  { %v12838_v52 = vpop.permute.xlu1 %319  ;;  %v12840_v53 = vpop.permute.xlu0 %309 }
  0xa2   :  { %544 = vperm.xlu2 %11908, %v288_v54  }
  0xa3   :  { %539 = vperm.xlu1 %11907, %v287_v55   ;;  %534 = vperm.xlu0 %11906, %v286_v56  }
  0xa4   :  { %v12851_v57 = vpop.permute.xlu2 %379 }
  0xa5   :  { %15431 = vst [vmem:[#allocation25_spill] sm:$0xff] %v12851_v57  ;;  %v12853_v58 = vpop.permute.xlu1 %324  ;;  %v12855_v59 = vpop.permute.xlu0 %314 }
  0xaa   :  { %559 = vperm.xlu2 %11908, %v291_v60   ;;  %v15380_v60 = vmov 2  }
  0xab   :  { %554 = vperm.xlu1 %11907, %v290_v61   ;;  %549 = vperm.xlu0 %11906, %v289_v62  }
  0xac   :  { %v12866_v63 = vpop.permute.xlu2 %394 }
  0xad   :  { %15432 = vst [vmem:[#allocation26_spill] sm:$0xff] %v12866_v63  ;;  %v12868_v0 = vpop.permute.xlu1 %344  ;;  %v12870_v1 = vpop.permute.xlu0 %339 }
  0xb2   :  { %574 = vperm.xlu2 %11908, %v294_v2  }
  0xb3   :  { %569 = vperm.xlu1 %11907, %v293_v16   ;;  %564 = vperm.xlu0 %11906, %v292_v23  }
  0xb4   :  { %v12881_v24 = vpop.permute.xlu2 %409 }
  0xb5   :  { %15433 = vst [vmem:[#allocation27_spill] sm:$0xff] %v12881_v24  ;;  %v12883_v27 = vpop.permute.xlu1 %359  ;;  %v12885_v30 = vpop.permute.xlu0 %354 }
  0xba   :  { %589 = vperm.xlu2 %11908, %v297_v31  }
  0xbb   :  { %584 = vperm.xlu1 %11907, %v296_v32   ;;  %579 = vperm.xlu0 %11906, %v295_v33  }
  0xbc   :  { %v12896_v34 = vpop.permute.xlu2 %424 }
  0xbd   :  { %15434 = vst [vmem:[#allocation28_spill] sm:$0xff] %v12896_v34  ;;  %v12898_v36 = vpop.permute.xlu1 %374  ;;  %v12900_v37 = vpop.permute.xlu0 %369 }
  0xbe   :  { %15435 = vst [vmem:[#allocation29_spill] sm:$0xff] %v12898_v36 }
  0xc2   :  { %11909 = vset.pattern.permute.xlu2 %v15378_v41 }
  0xc3   :  { %599 = vperm.xlu1 %11907, %v299_v38   ;;  %594 = vperm.xlu0 %11906, %v298_v40  }
  0xc4   :  { %763 = vperm.xlu2 %11909, %v12570_v5   ;;  %v12910_v42 = vpop.permute.xlu2 %439 }
  0xc5   :  { %15436 = vst [vmem:[#allocation30_spill] sm:$0xff] %v12910_v42  ;;  %v12912_v44 = vpop.permute.xlu1 %389  ;;  %v12914_v45 = vpop.permute.xlu0 %384 }
  0xc6   :  { %15437 = vst [vmem:[#allocation31_spill] sm:$0xff] %v12912_v44 }
  0xc7   :  { %15438 = vst [vmem:[#allocation32_spill] sm:$0xff] %v12914_v45 }
  0xcb   :  { %11910 = vset.pattern.permute.xlu1 %v15387_v46  ;;  %11914 = vset.pattern.permute.xlu0 %v15387_v46 }
  0xcc   :  { %1927 = vperm.xlu1 %11910, %v12570_v5   ;;  %11911 = vset.pattern.permute.xlu2 %v15396_v48  ;;  %v12921_v49 = vpop.permute.xlu2 %454 }
  0xcd   :  { %1931 = vperm.xlu0 %11914, %v12592_v8   ;;  %15439 = vst [vmem:[#allocation33_spill] sm:$0xff] %v12921_v49  ;;  %v12923_v50 = vpop.permute.xlu1 %404  ;;  %2439 = vperm.xlu2 %11911, %v12570_v5   ;;  %v12926_v54 = vpop.permute.xlu0 %399 }
  0xce   :  { %15440 = vst [vmem:[#allocation34_spill] sm:$0xff] %v12923_v50 }
  0xcf   :  { %15441 = vst [vmem:[#allocation35_spill] sm:$0xff] %v12926_v54  ;;  %v306_v54 = vld [vmem:[#allocation9] sm:$0x3] }
  0xd4   :  { %11912 = vset.pattern.permute.xlu1 %v15378_v41  ;;  %v12930_v55 = vpop.permute.xlu2 %469 }
  0xd5   :  { %11919 = vset.pattern.permute.xlu0 %v15396_v48  ;;  %15442 = vst [vmem:[#allocation36_spill] sm:$0xff] %v12930_v55  ;;  %v12932_v56 = vpop.permute.xlu1 %419  ;;  %767 = vperm.xlu1 %11912, %v12592_v8   ;;  %v12936_v61 = vpop.permute.xlu0 %414 }
  0xd6   :  { %15443 = vst [vmem:[#allocation37_spill] sm:$0xff] %v12932_v56  ;;  %11913 = vset.pattern.permute.xlu2 %v15380_v60  ;;  %2447 = vperm.xlu0 %11919, %v12562_v4  }
  0xd7   :  { %15444 = vst [vmem:[#allocation38_spill] sm:$0xff] %v12936_v61  ;;  %1285 = vperm.xlu2 %11913, %v12592_v8  }
  0xdc   :  { %v12940_v62 = vpop.permute.xlu2 %484 }
  0xdd   :  { %15445 = vst [vmem:[#allocation39_spill] sm:$0xff] %v12940_v62  ;;  %v12942_v2 = vpop.permute.xlu1 %434  ;;  %11915 = vset.pattern.permute.xlu1 %v15396_v48  ;;  %v12946_v16 = vpop.permute.xlu0 %429 }
  0xde   :  { %15446 = vst [vmem:[#allocation40_spill] sm:$0xff] %v12942_v2  ;;  %2443 = vperm.xlu1 %11915, %v12592_v8   ;;  %11924 = vset.pattern.permute.xlu0 %v15378_v41 }
  0xdf   :  { %15447 = vst [vmem:[#allocation41_spill] sm:$0xff] %v12946_v16  ;;  %11916 = vset.pattern.permute.xlu2 %v15378_v41  ;;  %779 = vperm.xlu0 %11924, %v12557_v3  }
  0xe0   :  { %771 = vperm.xlu2 %11916, %v12562_v4  }
  0xe4   :  { %v12952_v23 = vpop.permute.xlu2 %499 }
  0xe5   :  { %15448 = vst [vmem:[#allocation42_spill] sm:$0xff] %v12952_v23  ;;  %v12954_v31 = vpop.permute.xlu1 %449  ;;  %v12957_v32 = vpop.permute.xlu0 %444 }
  0xe6   :  { %15449 = vst [vmem:[#allocation43_spill] sm:$0xff] %v12954_v31  ;;  %11917 = vset.pattern.permute.xlu1 %v15380_v60 }
  0xe7   :  { %15450 = vst [vmem:[#allocation44_spill] sm:$0xff] %v12957_v32  ;;  %1289 = vperm.xlu1 %11917, %v12562_v4   ;;  %11925 = vset.pattern.permute.xlu0 %v15380_v60 }
  0xe8   :  { %11918 = vset.pattern.permute.xlu2 %v15387_v46  ;;  %1281 = vperm.xlu0 %11925, %v12570_v5  }
  0xe9   :  { %1935 = vperm.xlu2 %11918, %v12562_v4  }
  0xec   :  { %v12964_v8 = vpop.permute.xlu2 %514 }
  0xed   :  { %15451 = vst [vmem:[#allocation45_spill] sm:$0xff] %v12964_v8  ;;  %v12966_v33 = vpop.permute.xlu1 %464  ;;  %v12968_v38 = vpop.permute.xlu0 %459  ;;  %v15460_v8 = vmov 2  }
  0xee   :  { %15452 = vst [vmem:[#allocation46_spill] sm:$0xff] %v12966_v33 }
  0xef   :  { %15453 = vst [vmem:[#allocation47_spill] sm:$0xff] %v12968_v38  ;;  %11920 = vset.pattern.permute.xlu1 %v15378_v41 }
  0xf0   :  { %775 = vperm.xlu1 %11920, %v12586_v7   ;;  %1301 = vperm.xlu0 %11925, %v12581_v6  }
  0xf1   :  { %11921 = vset.pattern.permute.xlu2 %v15380_v60 }
  0xf2   :  { %1293 = vperm.xlu2 %11921, %v12586_v7  }
  0xf4   :  { %v12975_v40 = vpop.permute.xlu2 %529 }
  0xf5   :  { %15454 = vst [vmem:[#allocation48_spill] sm:$0xff] %v12975_v40  ;;  %v12977_v5 = vpop.permute.xlu1 %479  ;;  %v12979_v4 = vpop.permute.xlu0 %474 }
  0xf6   :  { %15455 = vst [vmem:[#allocation49_spill] sm:$0xff] %v12977_v5 }
  0xf7   :  { %15456 = vst [vmem:[#allocation50_spill] sm:$0xff] %v12979_v4 }
  0xf8   :  { %11922 = vset.pattern.permute.xlu1 %v15387_v46  ;;  %11934 = vset.pattern.permute.xlu0 %v15387_v46 }
  0xf9   :  { %1939 = vperm.xlu1 %11922, %v12586_v7   ;;  %1951 = vperm.xlu0 %11934, %v12618_v11  }
  0xfa   :  { %11923 = vset.pattern.permute.xlu2 %v15396_v48 }
  0xfb   :  { %2451 = vperm.xlu2 %11923, %v12586_v7  }
  0xfc   :  { %v12987_v41 = vpop.permute.xlu2 %544 }
  0xfd   :  { %15457 = vst [vmem:[#allocation51_spill] sm:$0xff] %v12987_v41  ;;  %v12989_v60 = vpop.permute.xlu1 %494  ;;  %v12991_v40 = vpop.permute.xlu0 %489 }
  0xfe   :  { %15458 = vst [vmem:[#allocation52_spill] sm:$0xff] %v12989_v60  ;;  %v15464_v60 = vmov 1  }
  0xff   :  { %15459 = vst [vmem:[#allocation53_spill] sm:$0xff] %v12991_v40 }
 0x101   :  { %11926 = vset.pattern.permute.xlu1 %v15460_v8  ;;  %11939 = vset.pattern.permute.xlu0 %v15396_v48 }
 0x102   :  { %1297 = vperm.xlu1 %11926, %v12557_v3   ;;  %2467 = vperm.xlu0 %11939, %v12612_v10  }
 0x103   :  { %11927 = vset.pattern.permute.xlu2 %v15387_v46 }
 0x104   :  { %1943 = vperm.xlu2 %11927, %v12557_v3   ;;  %v12999_v23 = vpop.permute.xlu2 %559 }
 0x105   :  { %15461 = vst [vmem:[#allocation54_spill] sm:$0xff] %v12999_v23  ;;  %v13001_v7 = vpop.permute.xlu1 %509  ;;  %v13003_v41 = vpop.permute.xlu0 %504 }
 0x106   :  { %15462 = vst [vmem:[#allocation55_spill] sm:$0xff] %v13001_v7  ;;  %v15468_v7 = vmov 3  }
 0x107   :  { %15463 = vst [vmem:[#allocation56_spill] sm:$0xff] %v13003_v41 }
 0x10a   :  { %11928 = vset.pattern.permute.xlu1 %v15396_v48  ;;  %11944 = vset.pattern.permute.xlu0 %v15464_v60 }
 0x10b   :  { %2455 = vperm.xlu1 %11928, %v12557_v3   ;;  %799 = vperm.xlu0 %11944, %v12644_v14  }
 0x10c   :  { %11929 = vset.pattern.permute.xlu2 %v15464_v60  ;;  %v13011_v46 = vpop.permute.xlu2 %574 }
 0x10d   :  { %783 = vperm.xlu2 %11929, %v12581_v6   ;;  %15465 = vst [vmem:[#allocation57_spill] sm:$0xff] %v13011_v46  ;;  %v13013_v40 = vpop.permute.xlu1 %524  ;;  %v13015_v23 = vpop.permute.xlu0 %519 }
 0x10e   :  { %15466 = vst [vmem:[#allocation58_spill] sm:$0xff] %v13013_v40 }
 0x10f   :  { %15467 = vst [vmem:[#allocation59_spill] sm:$0xff] %v13015_v23 }
 0x113   :  { %11930 = vset.pattern.permute.xlu1 %v15468_v7  ;;  %11949 = vset.pattern.permute.xlu0 %v15460_v8 }
 0x114   :  { %1947 = vperm.xlu1 %11930, %v12581_v6   ;;  %1321 = vperm.xlu0 %11949, %v12638_v13   ;;  %v13024_v41 = vpop.permute.xlu2 %589 }
 0x115   :  { %11931 = vset.pattern.permute.xlu2 %v15396_v48  ;;  %v13022_v3 = vpop.permute.xlu1 %539  ;;  %15470 = vst [vmem:[#allocation61_spill] sm:$0xff] %v13024_v41  ;;  %v13027_v46 = vpop.permute.xlu0 %534  ;;  %v15475_v41 = vmov 4  }
 0x116   :  { %15469 = vst [vmem:[#allocation60_spill] sm:$0xff] %v13022_v3  ;;  %2459 = vperm.xlu2 %11931, %v12581_v6  }
 0x117   :  { %15471 = vst [vmem:[#allocation62_spill] sm:$0xff] %v13027_v46 }
 0x11c   :  { %11932 = vset.pattern.permute.xlu1 %v15464_v60  ;;  %1341 = vperm.xlu0 %11949, %v12693_v20  }
 0x11d   :  { %v13031_v40 = vpop.permute.xlu1 %554  ;;  %787 = vperm.xlu1 %11932, %v12618_v11   ;;  %v13035_v23 = vpop.permute.xlu0 %549 }
 0x11e   :  { %15472 = vst [vmem:[#allocation63_spill] sm:$0xff] %v13031_v40  ;;  %11933 = vset.pattern.permute.xlu2 %v15460_v8  ;;  %v13037_v48 = vpop.permute.xlu2 %763 }
 0x11f   :  { %15473 = vst [vmem:[#allocation64_spill] sm:$0xff] %v13035_v23  ;;  %1305 = vperm.xlu2 %11933, %v12618_v11  }
 0x124   :  { %11966 = vset.pattern.permute.xlu0 %v15468_v7 }
 0x125   :  { %v13041_v6 = vpop.permute.xlu1 %569  ;;  %11935 = vset.pattern.permute.xlu1 %v15475_v41  ;;  %1971 = vperm.xlu0 %11966, %v12633_v12   ;;  %v13046_v20 = vpop.permute.xlu0 %564 }
 0x126   :  { %15474 = vst [vmem:[#allocation65_spill] sm:$0xff] %v13041_v6  ;;  %2463 = vperm.xlu1 %11935, %v12618_v11  }
 0x127   :  { %15476 = vst [vmem:[#allocation66_spill] sm:$0xff] %v13046_v20  ;;  %11936 = vset.pattern.permute.xlu2 %v15464_v60  ;;  %v13050_v40 = vpop.permute.xlu2 %2439 }
 0x128   :  { %791 = vperm.xlu2 %11936, %v12612_v10  }
 0x12d   :  { %v13052_v23 = vpop.permute.xlu1 %584  ;;  %1991 = vperm.xlu0 %11966, %v12687_v19   ;;  %v13056_v6 = vpop.permute.xlu0 %579 }
 0x12e   :  { %15477 = vst [vmem:[#allocation67_spill] sm:$0xff] %v13052_v23  ;;  %11937 = vset.pattern.permute.xlu1 %v15460_v8 }
 0x12f   :  { %15478 = vst [vmem:[#allocation68_spill] sm:$0xff] %v13056_v6  ;;  %1309 = vperm.xlu1 %11937, %v12612_v10  }
 0x130   :  { %11938 = vset.pattern.permute.xlu2 %v15468_v7 }
 0x131   :  { %1955 = vperm.xlu2 %11938, %v12612_v10   ;;  %v1286_v11 = vpop.permute.xlu2 %1285 }
 0x135   :  { %v600_v20 = vpop.permute.xlu1 %599  ;;  %11971 = vset.pattern.permute.xlu0 %v15475_v41  ;;  %v13062_v3 = vpop.permute.xlu0 %594 }
 0x136   :  { %15479 = vst [vmem:[#allocation69_spill] sm:$0xff] %v13062_v3  ;;  %2487 = vperm.xlu0 %11971, %v12668_v17   ;;  %v305_v20 = vld [vmem:[#allocation7] sm:$0x77] }
 0x137   :  { %11940 = vset.pattern.permute.xlu1 %v15464_v60  ;;  %v628_v6 = vperm.slane %v305_v20, 0  ;;  %v629_v46 = vperm.slane %v305_v20, 4  ;;  %v1018_v62 = vperm.slane %v305_v20, 1  ;;  %v1019_v5 = vperm.slane %v305_v20, 5 }
 0x138   :  { %795 = vperm.xlu1 %11940, %v12607_v9   ;;  %v1536_v33 = vperm.slane %v305_v20, 2  ;;  %v1537_v38 = vperm.slane %v305_v20, 6 }
 0x139   :  { %11941 = vset.pattern.permute.xlu2 %v15460_v8  ;;  %v13083_v55 = vperm.slane %v629_v46, 0  ;;  %v13086_v49 = vperm.slane %v1018_v62, 1 }
 0x13a   :  { %1313 = vperm.xlu2 %11941, %v12607_v9   ;;  %v13069_v19 = vpop.permute.xlu2 %771  ;;  %v13105_v2 = vperm.slane %v1536_v33, 2  ;;  %v13107_v16 = vperm.slane %v1537_v38, 2 }
 0x13b   :  { %v1801_v20 = vmul.f32 %v1286_v11, %v13083_v55  ;;  %v635_v38 = vmul.f32 %v13083_v55, %v12840_v53 }
 0x13c   :  { %v1544_v34 = vmul.f32 %v13105_v2, %v1286_v11  ;;  %v1545_v56 = vmul.f32 %v13107_v16, %v1286_v11 }
 0x13e   :  { %v13071_v23 = vpop.permute.xlu1 %1927  ;;  %2507 = vperm.xlu0 %11971, %v12682_v18   ;;  %v13081_v18 = vperm.slane %v628_v6, 0  ;;  %v637_v6 = vmul.f32 %v13083_v55, %v12855_v59 }
 0x13f   :  { %v1932_v10 = vpop.permute.xlu0 %1931 }
 0x140   :  { %11942 = vset.pattern.permute.xlu1 %v15468_v7  ;;  %v636_v32 = vmul.f32 %v13081_v18, %v12855_v59  ;;  %v1800_v46 = vmul.f32 %v1286_v11, %v13081_v18  ;;  %v634_v33 = vmul.f32 %v13081_v18, %v12840_v53  ;;  %v1024_v11 = vmul.f32 %v13086_v49, %v13037_v48 }
 0x141   :  { %1959 = vperm.xlu1 %11942, %v12607_v9  }
 0x142   :  { %11943 = vset.pattern.permute.xlu2 %v15475_v41 }
 0x143   :  { %2471 = vperm.xlu2 %11943, %v12607_v9   ;;  %v13078_v3 = vpop.permute.xlu2 %1935  ;;  %v13088_v9 = vperm.slane %v1019_v5, 1 }
 0x145   :  { %v2185_v62 = vmul.f32 %v1932_v10, %v13088_v9 }
 0x146   :  { %11976 = vset.pattern.permute.xlu0 %v15464_v60 }
 0x147   :  { %v768_v4 = vpop.permute.xlu1 %767  ;;  %819 = vperm.xlu0 %11976, %v12659_v15   ;;  %v2184_v15 = vmul.f32 %v1932_v10, %v13086_v49  ;;  %v2313_v10 = vadd.f32 %v2185_v62, %v1801_v20  ;;  %v1028_v62 = vmul.f32 %v13086_v49, %v13069_v19 }
 0x148   :  { %v13090_v31 = vpop.permute.xlu0 %2447  ;;  %v1026_v5 = vmul.f32 %v13086_v49, %v768_v4  ;;  %v1027_v42 = vmul.f32 %v13088_v9, %v768_v4 }
 0x149   :  { %11945 = vset.pattern.permute.xlu1 %v15460_v8  ;;  %v2312_v61 = vadd.f32 %v2184_v15, %v1800_v46 }
 0x14a   :  { %1317 = vperm.xlu1 %11945, %v12644_v14   ;;  %v1154_v24 = vadd.f32 %v1026_v5, %v636_v32  ;;  %v1155_v50 = vadd.f32 %v1027_v42, %v637_v6  ;;  %v1025_v42 = vmul.f32 %v13088_v9, %v13037_v48  ;;  %v13125_v32 = vperm.slane %v306_v54, 0 }
 0x14b   :  { %11946 = vset.pattern.permute.xlu2 %v15468_v7  ;;  %v1029_v48 = vmul.f32 %v13088_v9, %v13069_v19  ;;  %v2186_v19 = vmul.f32 %v13078_v3, %v13086_v49 }
 0x14c   :  { %1963 = vperm.xlu2 %11946, %v12644_v14   ;;  %v13110_v59 = vpop.permute.xlu2 %1293  ;;  %v1672_v46 = vadd.f32 %v1544_v34, %v1154_v24  ;;  %v1673_v53 = vadd.f32 %v1545_v56, %v1155_v50  ;;  %v1152_v24 = vadd.f32 %v1024_v11, %v634_v33  ;;  %v1153_v34 = vadd.f32 %v1025_v42, %v635_v38 }
 0x14d   :  { %v2698_v11 = vmul.f32 %v13090_v31, %v13105_v2 }
 0x14f   :  { %839 = vperm.xlu0 %11976, %v12713_v22   ;;  %v13127_v22 = vperm.slane %v306_v54, 1 }
 0x150   :  { %v2444_v4 = vpop.permute.xlu1 %2443 }
 0x151   :  { %v2696_v63 = vmul.f32 %v2444_v4, %v13105_v2  ;;  %v2697_v44 = vmul.f32 %v2444_v4, %v13107_v16  ;;  %v13129_v6 = vpop.permute.xlu0 %779 }
 0x152   :  { %11947 = vset.pattern.permute.xlu1 %v15475_v41 }
 0x153   :  { %v2824_v20 = vadd.f32 %v2696_v63, %v2312_v61  ;;  %v2825_v15 = vadd.f32 %v2697_v44, %v2313_v10  ;;  %2475 = vperm.xlu1 %11947, %v12644_v14   ;;  %v638_v63 = vmul.f32 %v13081_v18, %v12838_v52  ;;  %v639_v14 = vmul.f32 %v13083_v55, %v12838_v52 }
 0x154   :  { %11948 = vset.pattern.permute.xlu2 %v15464_v60  ;;  %v2187_v10 = vmul.f32 %v13078_v3, %v13088_v9  ;;  %v2699_v3 = vmul.f32 %v13090_v31, %v13107_v16 }
 0x155   :  { %v2952_v54 = vmax.f32 %v1672_v46, %v2824_v20  ;;  %v2953_v5 = vmax.f32 %v1673_v53, %v2825_v15  ;;  %803 = vperm.xlu2 %11948, %v12638_v13   ;;  %v13139_v4 = vpop.permute.xlu2 %2451  ;;  %v1156_v56 = vadd.f32 %v1028_v62, %v638_v63  ;;  %v1157_v61 = vadd.f32 %v1029_v48, %v639_v14 }
 0x157   :  { %v3085_v44 = vadd.f32 %v13125_v32, %v2952_v54  ;;  %v3086_v50 = vadd.f32 %v13127_v22, %v2953_v5  ;;  %11985 = vset.pattern.permute.xlu0 %v15460_v8  ;;  %v2183_v54 = vmul.f32 %v13071_v23, %v13088_v9 }
 0x158   :  { %1361 = vperm.xlu0 %11985, %v12708_v21   ;;  %v2182_v21 = vmul.f32 %v13071_v23, %v13086_v49 }
 0x159   :  { %vm3213_vm1 = vcmp.gt.f32.partialorder %v3085_v44, 0.0  ;;  %vm3214_vm2 = vcmp.gt.f32.partialorder %v3086_v50, 0.0  ;;  %v3341_v52 = vmul.f32 0.01, %v3085_v44  ;;  %v3342_v33 = vmul.f32 0.01, %v3086_v50  ;;  %v1290_v38 = vpop.permute.xlu1 %1289 }
 0x15a   :  { %v1546_v42 = vmul.f32 %v13105_v2, %v1290_v38  ;;  %v1802_v46 = vmul.f32 %v1290_v38, %v13081_v18  ;;  %v1803_v53 = vmul.f32 %v1290_v38, %v13083_v55  ;;  %v1547_v62 = vmul.f32 %v13107_v16, %v1290_v38  ;;  %v1282_v48 = vpop.permute.xlu0 %1281 }
 0x15b   :  { %v3469_v20 = vsel %vm3213_vm1, %v3085_v44, %v3341_v52  ;;  %v3470_v15 = vsel %vm3214_vm2, %v3086_v50, %v3342_v33  ;;  %11950 = vset.pattern.permute.xlu1 %v15468_v7  ;;  %v1542_v31 = vmul.f32 %v13105_v2, %v1282_v48  ;;  %v1798_v44 = vmul.f32 %v1282_v48, %v13081_v18 }
 0x15c   :  { %v3596_v5 = vpack.c.bf16 %v3470_v15, %v3469_v20  ;;  %v2314_v63 = vadd.f32 %v2186_v19, %v1802_v46  ;;  %1967 = vperm.xlu1 %11950, %v12638_v13   ;;  %v1674_v14 = vadd.f32 %v1546_v42, %v1156_v56  ;;  %v2315_v45 = vadd.f32 %v2187_v10, %v1803_v53 }
 0x15d   :  { %11951 = vset.pattern.permute.xlu2 %v15475_v41  ;;  %v1543_v33 = vmul.f32 %v13107_v16, %v1282_v48  ;;  %v1799_v38 = vmul.f32 %v1282_v48, %v13083_v55  ;;  %v2694_v56 = vmul.f32 %v13050_v40, %v13105_v2  ;;  %v1675_v19 = vadd.f32 %v1547_v62, %v1157_v61 }
 0x15e   :  { %v3724_v50 = vrot.slane %v3596_v5, 2  ;;  %v2826_v52 = vadd.f32 %v2698_v11, %v2314_v63  ;;  %2479 = vperm.xlu2 %11951, %v12638_v13   ;;  %v13173_v23 = vpop.permute.xlu2 %1943  ;;  %v2827_v10 = vadd.f32 %v2699_v3, %v2315_v45  ;;  %v2310_v42 = vadd.f32 %v2182_v21, %v1798_v44 }
 0x15f   :  { %v2695_v46 = vmul.f32 %v13050_v40, %v13107_v16  ;;  %v2311_v20 = vadd.f32 %v2183_v54, %v1799_v38  ;;  %v1670_v48 = vadd.f32 %v1542_v31, %v1152_v24  ;;  %v1671_v57 = vadd.f32 %v1543_v33, %v1153_v34 }
 0x160   :  { %v3793_v53 = vsel %vm3787_vm0, %v3596_v5, %v3724_v50  ;;  %v2954_v11 = vmax.f32 %v1674_v14, %v2826_v52  ;;  %v2955_v15 = vmax.f32 %v1675_v19, %v2827_v10  ;;  %v2822_v63 = vadd.f32 %v2694_v56, %v2310_v42  ;;  %11990 = vset.pattern.permute.xlu0 %v15468_v7 }
 0x161   :  { %4045 = vst [vmem:[#allocation2 + $0x4] sm:$0xf] %v3793_v53  ;;  %v2823_v36 = vadd.f32 %v2695_v46, %v2311_v20  ;;  %2011 = vperm.xlu0 %11990, %v12740_v26   ;;  %v640_v34 = vmul.f32 %v13081_v18, %v12853_v58  ;;  %v641_v52 = vmul.f32 %v13083_v55, %v12853_v58 }
 0x162   :  { %v3087_v13 = vadd.f32 %v13125_v32, %v2954_v11  ;;  %v776_v45 = vpop.permute.xlu1 %775  ;;  %v3088_v61 = vadd.f32 %v13127_v22, %v2955_v15  ;;  %v2950_v40 = vmax.f32 %v1670_v48, %v2822_v63  ;;  %v1548_v33 = vmul.f32 %v13105_v2, %v13110_v59 }
 0x163   :  { %v2951_v62 = vmax.f32 %v1671_v57, %v2823_v36  ;;  %v1030_v57 = vmul.f32 %v13086_v49, %v776_v45  ;;  %v1031_v44 = vmul.f32 %v13088_v9, %v776_v45  ;;  %v1549_v38 = vmul.f32 %v13107_v16, %v13110_v59 }
 0x164   :  { %vm3215_vm3 = vcmp.gt.f32.partialorder %v3087_v13, 0.0  ;;  %v3343_v3 = vmul.f32 0.01, %v3087_v13  ;;  %11952 = vset.pattern.permute.xlu1 %v15464_v60  ;;  %vm3216_vm4 = vcmp.gt.f32.partialorder %v3088_v61, 0.0  ;;  %v3344_v24 = vmul.f32 0.01, %v3088_v61 }
 0x165   :  { %v3083_v21 = vadd.f32 %v13125_v32, %v2950_v40  ;;  %807 = vperm.xlu1 %11952, %v12633_v12   ;;  %v3084_v26 = vadd.f32 %v13127_v22, %v2951_v62  ;;  %v1804_v42 = vmul.f32 %v13110_v59, %v13081_v18  ;;  %v1805_v46 = vmul.f32 %v13110_v59, %v13083_v55  ;;  %v11486_v40 = vld [vmem:[#allocation11 + $0x78] sm:$0xff] }
 0x166   :  { %v3471_v54 = vsel %vm3215_vm3, %v3087_v13, %v3343_v3  ;;  %11953 = vset.pattern.permute.xlu2 %v15460_v8  ;;  %v3472_v5 = vsel %vm3216_vm4, %v3088_v61, %v3344_v24  ;;  %v2700_v58 = vmul.f32 %v13139_v4, %v13105_v2  ;;  %v2701_v53 = vmul.f32 %v13139_v4, %v13107_v16  ;;  %v11478_v61 = vld [vmem:[#allocation11 + $0x38] sm:$0xff] }
 0x167   :  { %vm3211_vm5 = vcmp.gt.f32.partialorder %v3083_v21, 0.0  ;;  %v3339_v14 = vmul.f32 0.01, %v3083_v21  ;;  %1325 = vperm.xlu2 %11953, %v12633_v12   ;;  %v3597_v36 = vpack.c.bf16 %v3472_v5, %v3471_v54  ;;  %vm3212_vm6 = vcmp.gt.f32.partialorder %v3084_v26, 0.0  ;;  %v13194_v50 = vpop.permute.xlu2 %783  ;;  %6053 = vmatpush.bf16.msra.mxu0 %v11478_v61  ;;  %v11485_v5 = vld [vmem:[#allocation11 + $0x70] sm:$0xff] }
 0x168   :  { %v3340_v31 = vmul.f32 0.01, %v3084_v26  ;;  %v1158_v20 = vadd.f32 %v1030_v57, %v640_v34  ;;  %v1159_v63 = vadd.f32 %v1031_v44, %v641_v52  ;;  %6111 = vmatpush.bf16.msra.mxu1 %v11486_v40  ;;  %v11476_v44 = vld [vmem:[#allocation11 + $0x28] sm:$0xff]  ;;  %v11501_v61 = vld [vmem:[#allocation11 + $0xf0] sm:$0xff] }
 0x169   :  { %v3467_v56 = vsel %vm3211_vm5, %v3083_v21, %v3339_v14  ;;  %v3725_v19 = vrot.slane %v3597_v36, 2  ;;  %11995 = vset.pattern.permute.xlu0 %v15475_v41  ;;  %v11484_v52 = vld [vmem:[#allocation11 + $0x68] sm:$0xff] }
 0x16a   :  { %v3468_v10 = vsel %vm3212_vm6, %v3084_v26, %v3340_v31  ;;  %2527 = vperm.xlu0 %11995, %v12734_v25   ;;  %v1676_v62 = vadd.f32 %v1548_v33, %v1158_v20  ;;  %v1677_v24 = vadd.f32 %v1549_v38, %v1159_v63  ;;  %v11477_v26 = vld [vmem:[#allocation11 + $0x30] sm:$0xff]  ;;  %v11494_v33 = vld [vmem:[#allocation11 + $0xb8] sm:$0xff]  ;;  %v11483_v63 = vld [vmem:[#allocation11 + $0x60] sm:$0xff] }
 0x16b   :  { %v3595_v11 = vpack.c.bf16 %v3468_v10, %v3467_v56  ;;  %v1940_v15 = vpop.permute.xlu1 %1939  ;;  %v3796_v48 = vsel %vm3787_vm0, %v3597_v36, %v3725_v19  ;;  %6054 = vmatpush.bf16.msra.mxu0 %v11477_v26  ;;  %v1032_v19 = vmul.f32 %v13086_v49, %v13129_v6  ;;  %6169 = vmatpush.bf16.msra.mxu2 %v11494_v33  ;;  %v11482_v26 = vld [vmem:[#allocation11 + $0x58] sm:$0xff] }
 0x16c   :  { %v2188_v13 = vmul.f32 %v1940_v15, %v13086_v49  ;;  %v2189_v45 = vmul.f32 %v1940_v15, %v13088_v9  ;;  %4046 = vst [vmem:[#allocation2 + $0x8] sm:$0xf] %v3796_v48  ;;  %6112 = vmatpush.bf16.msra.mxu1 %v11485_v5  ;;  %v11475_v48 = vld [vmem:[#allocation11 + $0x20] sm:$0xff] }
 0x16d   :  { %v3723_v59 = vrot.slane %v3595_v11, 2  ;;  %11954 = vset.pattern.permute.xlu1 %v15475_v41 }
 0x16e   :  { %v2316_v3 = vadd.f32 %v2188_v13, %v1804_v42  ;;  %v2317_v4 = vadd.f32 %v2189_v45, %v1805_v46  ;;  %2483 = vperm.xlu1 %11954, %v12633_v12   ;;  %v11502_v42 = vld [vmem:[#allocation11 + $0xf8] sm:$0xff]  ;;  %v2191_v13 = vmul.f32 %v13173_v23, %v13088_v9 }
 0x16f   :  { %v3790_v25 = vsel %vm3787_vm0, %v3595_v11, %v3723_v59  ;;  %11955 = vset.pattern.permute.xlu2 %v15464_v60  ;;  %6055 = vmatpush.bf16.msra.mxu0 %v11476_v44  ;;  %v11493_v59 = vld [vmem:[#allocation11 + $0xb0] sm:$0xff] }
 0x170   :  { %4044 = vst [vmem:[#allocation2] sm:$0xf] %v3790_v25  ;;  %v2828_v21 = vadd.f32 %v2700_v58, %v2316_v3  ;;  %v2829_v34 = vadd.f32 %v2701_v53, %v2317_v4  ;;  %811 = vperm.xlu2 %11955, %v12668_v17   ;;  %v13220_v54 = vpop.permute.xlu2 %2459  ;;  %v2190_v53 = vmul.f32 %v13173_v23, %v13086_v49 }
 0x171   :  { %6113 = vmatpush.bf16.msra.mxu1 %v11484_v52  ;;  %6227 = vmatpush.bf16.msra.mxu3 %v11502_v42  ;;  %v1034_v42 = vmul.f32 %v13086_v49, %v13194_v50 }
 0x172   :  { %v2956_v14 = vmax.f32 %v1676_v62, %v2828_v21  ;;  %v2957_v57 = vmax.f32 %v1677_v24, %v2829_v34  ;;  %12000 = vset.pattern.permute.xlu0 %v15464_v60  ;;  %v11474_v34 = vld [vmem:[#allocation11 + $0x18] sm:$0xff]  ;;  %6170 = vmatpush.bf16.msra.mxu2 %v11493_v59 }
 0x173   :  { %859 = vperm.xlu0 %12000, %v12763_v29   ;;  %v1033_v29 = vmul.f32 %v13088_v9, %v13129_v6  ;;  %v642_v6 = vmul.f32 %v13081_v18, %v12803_v39  ;;  %6056 = vmatpush.bf16.msra.mxu0 %v11475_v48  ;;  %v11491_v48 = vld [vmem:[#allocation11 + $0xa0] sm:$0xff] }
 0x174   :  { %v3089_v12 = vadd.f32 %v13125_v32, %v2956_v14  ;;  %v3090_v36 = vadd.f32 %v13127_v22, %v2957_v57  ;;  %v1298_v31 = vpop.permute.xlu1 %1297 }
 0x175   :  { %v1806_v20 = vmul.f32 %v1298_v31, %v13081_v18  ;;  %v1807_v45 = vmul.f32 %v1298_v31, %v13083_v55  ;;  %v1550_v3 = vmul.f32 %v13105_v2, %v1298_v31  ;;  %v1551_v4 = vmul.f32 %v13107_v16, %v1298_v31  ;;  %6114 = vmatpush.bf16.msra.mxu1 %v11483_v63 }
 0x176   :  { %vm3217_vm7 = vcmp.gt.f32.partialorder %v3089_v12, 0.0  ;;  %vm3218_vm8 = vcmp.gt.f32.partialorder %v3090_v36, 0.0  ;;  %v3345_v38 = vmul.f32 0.01, %v3089_v12  ;;  %v3346_v56 = vmul.f32 0.01, %v3090_v36  ;;  %11956 = vset.pattern.permute.xlu1 %v15460_v8  ;;  %6228 = vmatpush.bf16.msra.mxu3 %v11501_v61 }
 0x177   :  { %v4108_v10 = vld [vmem:[#allocation2] sm:$0xf]  ;;  %1329 = vperm.xlu1 %11956, %v12668_v17   ;;  %v1160_v25 = vadd.f32 %v1032_v19, %v642_v6  ;;  %v2318_v21 = vadd.f32 %v2190_v53, %v1806_v20  ;;  %v2319_v5 = vadd.f32 %v2191_v13, %v1807_v45  ;;  %6057 = vmatpush.bf16.msra.mxu0 %v11474_v34  ;;  %v1302_v53 = vpop.permute.xlu0 %1301  ;;  %v11499_v61 = vld [vmem:[#allocation11 + $0xe0] sm:$0xff] }
 0x178   :  { %4116 = vst [vmem:[#allocation1] ss:$4 sm:$0xff] %v4108_v10  ;;  %v3473_v46 = vsel %vm3217_vm7, %v3089_v12, %v3345_v38  ;;  %v3474_v58 = vsel %vm3218_vm8, %v3090_v36, %v3346_v56  ;;  %11957 = vset.pattern.permute.xlu2 %v15468_v7  ;;  %v11492_v12 = vld [vmem:[#allocation11 + $0xa8] sm:$0xff]  ;;  %v644_v6 = vmul.f32 %v13081_v18, %v12814_v43 }
 0x179   :  { %v3598_v11 = vpack.c.bf16 %v3474_v58, %v3473_v46  ;;  %1975 = vperm.xlu2 %11957, %v12668_v17   ;;  %v13237_v15 = vpop.permute.xlu2 %1305  ;;  %v643_v17 = vmul.f32 %v13083_v55, %v12803_v39  ;;  %v4110_v39 = vld [vmem:[#allocation2 + $0x4] sm:$0xf]  ;;  %v11500_v36 = vld [vmem:[#allocation11 + $0xe8] sm:$0xff]  ;;  %v1678_v52 = vadd.f32 %v1550_v3, %v1160_v25  ;;  %6115 = vmatpush.bf16.msra.mxu1 %v11482_v26  ;;  %v11473_v46 = vld [vmem:[#allocation11 + $0x10] sm:$0xff] }
 0x17a   :  { %v13257_v56 = vld [vmem:[%s15365_s0 + $0x34] sm:$0xf]  ;;  %v11481_v58 = vld [vmem:[#allocation11 + $0x50] sm:$0xff]  ;;  %6171 = vmatpush.bf16.msra.mxu2 %v11492_v12  ;;  %v645_v13 = vmul.f32 %v13083_v55, %v12814_v43  ;;  %v1553_v45 = vmul.f32 %v13107_v16, %v1302_v53  ;;  %6229 = vmatpush.bf16.msra.mxu3 %v11500_v36  ;;  %v1809_v25 = vmul.f32 %v1302_v53, %v13083_v55 }
 0x17b   :  { %v3726_v40 = vrot.slane %v3598_v11, 2  ;;  %12005 = vset.pattern.permute.xlu0 %v15460_v8  ;;  %v1161_v62 = vadd.f32 %v1033_v29, %v643_v17  ;;  %v1035_v29 = vmul.f32 %v13088_v9, %v13194_v50  ;;  %v1552_v50 = vmul.f32 %v13105_v2, %v1302_v53  ;;  %6058 = vmatpush.bf16.msra.mxu0 %v11473_v46 }
 0x17c   :  { %1381 = vperm.xlu0 %12005, %v12757_v28   ;;  %v1808_v17 = vmul.f32 %v1302_v53, %v13081_v18  ;;  %v1162_v43 = vadd.f32 %v1034_v42, %v644_v6 }
 0x17d   :  { %v3799_v23 = vsel %vm3787_vm0, %v3598_v11, %v3726_v40  ;;  %v2456_v24 = vpop.permute.xlu1 %2455  ;;  %v1679_v28 = vadd.f32 %v1551_v4, %v1161_v62  ;;  %v4112_v4 = vld [vmem:[#allocation2 + $0x8] sm:$0xf]  ;;  %v1163_v62 = vadd.f32 %v1035_v29, %v645_v13  ;;  %6116 = vmatpush.bf16.msra.mxu1 %v11481_v58 }
 0x17e   :  { %4047 = vst [vmem:[#allocation2 + $0xc] sm:$0xf] %v3799_v23  ;;  %v2702_v14 = vmul.f32 %v2456_v24, %v13105_v2  ;;  %v2703_v57 = vmul.f32 %v2456_v24, %v13107_v16  ;;  %v11472_v23 = vld [vmem:[#allocation11 + $0x8] sm:$0xff]  ;;  %6172 = vmatpush.bf16.msra.mxu2 %v11491_v48  ;;  %6230 = vmatpush.bf16.msra.mxu3 %v11499_v61  ;;  %v11479_v29 = vld [vmem:[#allocation11 + $0x40] sm:$0xff]  ;;  %v11497_v61 = vld [vmem:[#allocation11 + $0xd0] sm:$0xff] }
 0x17f   :  { %v4117_v31 = vld.sshfl [vmem:[#allocation1] sm:$0xff pattern:$0x73625140]  ;;  %v4119_v44 = vld.sshfl [vmem:[#allocation1 + $0x8] sm:$0xff pattern:$0x73625140]  ;;  %11958 = vset.pattern.permute.xlu1 %v15464_v60  ;;  %6059 = vmatpush.bf16.msra.mxu0 %v11472_v23  ;;  %v1680_v42 = vadd.f32 %v1552_v50, %v1162_v43  ;;  %v1681_v58 = vadd.f32 %v1553_v45, %v1163_v62  ;;  %v1952_v23 = vpop.permute.xlu0 %1951 }
 0x180   :  { %4122 = vst [vmem:[#allocation1] ss:$4 sm:$0xff] %v4110_v39  ;;  %v2830_v33 = vadd.f32 %v2702_v14, %v2318_v21  ;;  %v2831_v38 = vadd.f32 %v2703_v57, %v2319_v5  ;;  %815 = vperm.xlu1 %11958, %v13257_v56   ;;  %v4139_v19 = vunpack.c.l.b16 %v4117_v31  ;;  %v4140_v10 = vunpack.c.l.b16 %v4119_v44  ;;  %v11480_v31 = vld [vmem:[#allocation11 + $0x48] sm:$0xff]  ;;  %v11490_v44 = vld [vmem:[#allocation11 + $0x98] sm:$0xff] }
 0x181   :  { %11959 = vset.pattern.permute.xlu2 %v15460_v8  ;;  %v2704_v5 = vmul.f32 %v13220_v54, %v13105_v2  ;;  %v2705_v14 = vmul.f32 %v13220_v54, %v13107_v16  ;;  %v11471_v54 = vld [vmem:[#allocation11] sm:$0xff]  ;;  %6117 = vmatpush.bf16.msra.mxu1 %v11480_v31  ;;  %v11488_v43 = vld [vmem:[#allocation11 + $0x88] sm:$0xff] }
 0x182   :  { %v2958_v11 = vmax.f32 %v1678_v52, %v2830_v33  ;;  %v2959_v20 = vmax.f32 %v1679_v28, %v2831_v38  ;;  %1333 = vperm.xlu2 %11959, %v13257_v56   ;;  %v4147_v63 = vpack.c.b16 %v4140_v10, %v4139_v19  ;;  %v13272_v59 = vpop.permute.xlu2 %791  ;;  %v11498_v52 = vld [vmem:[#allocation11 + $0xd8] sm:$0xff]  ;;  %6173 = vmatpush.bf16.msra.mxu2 %v11490_v44  ;;  %v11496_v62 = vld [vmem:[#allocation11 + $0xc8] sm:$0xff] }
 0x183   :  { %6231 = vmatpush.bf16.msra.mxu3 %v11498_v52  ;;  %6060 = vmatpush.bf16.msra.mxu0 %v11471_v54  ;;  %v11487_v52 = vld [vmem:[#allocation11 + $0x80] sm:$0xff] }
 0x184   :  { %v3091_v40 = vadd.f32 %v13125_v32, %v2958_v11  ;;  %v3092_v3 = vadd.f32 %v13127_v22, %v2959_v20  ;;  %4155 = vst [vmem:[#allocation3] sm:$0x33] %v4147_v63  ;;  %1401 = vperm.xlu0 %12005, %v12791_v35   ;;  %v11489_v63 = vld [vmem:[#allocation11 + $0x90] sm:$0xff] }
 0x185   :  { %v4114_v45 = vld [vmem:[#allocation2 + $0xc] sm:$0xf]  ;;  %6118 = vmatpush.bf16.msra.mxu1 %v11479_v29  ;;  %v1555_v29 = vmul.f32 %v13107_v16, %v13237_v15 }
 0x186   :  { %vm3219_vm9 = vcmp.gt.f32.partialorder %v3091_v40, 0.0  ;;  %vm3220_vm10 = vcmp.gt.f32.partialorder %v3092_v3, 0.0  ;;  %v3347_v24 = vmul.f32 0.01, %v3091_v40  ;;  %v3348_v21 = vmul.f32 0.01, %v3092_v3  ;;  %v1948_v34 = vpop.permute.xlu1 %1947  ;;  %6174 = vmatpush.bf16.msra.mxu2 %v11489_v63 }
 0x187   :  { %v4123_v26 = vld.sshfl [vmem:[#allocation1] sm:$0xff pattern:$0x73625140]  ;;  %v4125_v39 = vld.sshfl [vmem:[#allocation1 + $0x8] sm:$0xff pattern:$0x73625140]  ;;  %v2192_v57 = vmul.f32 %v1948_v34, %v13086_v49  ;;  %v2193_v35 = vmul.f32 %v1948_v34, %v13088_v9  ;;  %6232 = vmatpush.bf16.msra.mxu3 %v11497_v61  ;;  %v2194_v34 = vmul.f32 %v1952_v23, %v13086_v49 }
 0x188   :  { %4128 = vst [vmem:[#allocation1] ss:$4 sm:$0xff] %v4112_v4  ;;  %v3475_v12 = vsel %vm3219_vm9, %v3091_v40, %v3347_v24  ;;  %v3476_v36 = vsel %vm3220_vm10, %v3092_v3, %v3348_v21  ;;  %11960 = vset.pattern.permute.xlu1 %v15468_v7  ;;  %v4141_v28 = vunpack.c.l.b16 %v4123_v26  ;;  %v4142_v33 = vunpack.c.l.b16 %v4125_v39  ;;  %v4159_v54 = vld [vmem:[#allocation2 + $0xc] sm:$0xf] }
 0x189   :  { %v3599_v38 = vpack.c.bf16 %v3476_v36, %v3475_v12  ;;  %v2320_v19 = vadd.f32 %v2192_v57, %v1808_v17  ;;  %v2321_v10 = vadd.f32 %v2193_v35, %v1809_v25  ;;  %1979 = vperm.xlu1 %11960, %v13257_v56   ;;  %v2195_v26 = vmul.f32 %v1952_v23, %v13088_v9 }
 0x18a   :  { %11961 = vset.pattern.permute.xlu2 %v15475_v41  ;;  %v4148_v46 = vpack.c.b16 %v4142_v33, %v4141_v28  ;;  %v1810_v39 = vmul.f32 %v13237_v15, %v13081_v18  ;;  %6175 = vmatpush.bf16.msra.mxu2 %v11488_v43  ;;  %v646_v33 = vmul.f32 %v13081_v18, %v12870_v1 }
 0x18b   :  { %v3727_v53 = vrot.slane %v3599_v38, 2  ;;  %v2832_v11 = vadd.f32 %v2704_v5, %v2320_v19  ;;  %v2833_v20 = vadd.f32 %v2705_v14, %v2321_v10  ;;  %2491 = vperm.xlu2 %11961, %v13257_v56   ;;  %v13289_v48 = vpop.permute.xlu2 %1955  ;;  %v12154_v56 = vld [vmem:[%s15365_s0 + $0x68] sm:$0xf]  ;;  %v1811_v5 = vmul.f32 %v13237_v15, %v13083_v55  ;;  %v12155_v14 = vld [vmem:[%s15365_s0 + $0x38] sm:$0xf]  ;;  %6233 = vmatpush.bf16.msra.mxu3 %v11496_v62  ;;  %v11495_v19 = vld [vmem:[#allocation11 + $0xc0] sm:$0xff] }
 0x18c   :  { %4156 = vst [vmem:[#allocation3 + $0x8] sm:$0x33] %v4148_v46  ;;  %12022 = vset.pattern.permute.xlu0 %v15468_v7 }
 0x18d   :  { %v3802_v6 = vsel %vm3787_vm0, %v3599_v38, %v3727_v53  ;;  %v2960_v13 = vmax.f32 %v1680_v42, %v2832_v11  ;;  %v2961_v50 = vmax.f32 %v1681_v58, %v2833_v20  ;;  %2031 = vperm.xlu0 %12022, %v12154_v56   ;;  %v647_v38 = vmul.f32 %v13083_v55, %v12870_v1  ;;  %v12156_v58 = vld [vmem:[%s15365_s0 + $0x7c] sm:$0xf] }
 0x18e   :  { %4048 = vst [vmem:[#allocation2 + $0x10] sm:$0xf] %v3802_v6  ;;  %v1554_v42 = vmul.f32 %v13105_v2, %v13237_v15  ;;  %v2322_v53 = vadd.f32 %v2194_v34, %v1810_v39  ;;  %v2323_v6 = vadd.f32 %v2195_v26, %v1811_v5  ;;  %6176 = vmatpush.bf16.msra.mxu2 %v11487_v52 }
 0x18f   :  { %v4129_v17 = vld.sshfl [vmem:[#allocation1] sm:$0xff pattern:$0x73625140]  ;;  %v4131_v40 = vld.sshfl [vmem:[#allocation1 + $0x8] sm:$0xff pattern:$0x73625140]  ;;  %v3093_v3 = vadd.f32 %v13125_v32, %v2960_v13  ;;  %v3094_v4 = vadd.f32 %v13127_v22, %v2961_v50  ;;  %v788_v25 = vpop.permute.xlu1 %787  ;;  %6234 = vmatpush.bf16.msra.mxu3 %v11495_v19  ;;  %v648_v34 = vmul.f32 %v13081_v18, %v12868_v0  ;;  %v649_v26 = vmul.f32 %v13083_v55, %v12868_v0 }
 0x190   :  { %4134 = vst [vmem:[#allocation1] ss:$4 sm:$0xff] %v4114_v45  ;;  %v1036_v12 = vmul.f32 %v13086_v49, %v788_v25  ;;  %v1037_v36 = vmul.f32 %v13088_v9, %v788_v25  ;;  %v4143_v28 = vunpack.c.l.b16 %v4129_v17  ;;  %v4144_v10 = vunpack.c.l.b16 %v4131_v40 }
 0x191   :  { %vm3221_vm11 = vcmp.gt.f32.partialorder %v3093_v3, 0.0  ;;  %vm3222_vm12 = vcmp.gt.f32.partialorder %v3094_v4, 0.0  ;;  %v3349_v24 = vmul.f32 0.01, %v3093_v3  ;;  %v3350_v21 = vmul.f32 0.01, %v3094_v4  ;;  %11962 = vset.pattern.permute.xlu1 %v15460_v8 }
 0x192   :  { %1337 = vperm.xlu1 %11962, %v12155_v14   ;;  %v1164_v1 = vadd.f32 %v1036_v12, %v646_v33  ;;  %v1165_v63 = vadd.f32 %v1037_v36, %v647_v38  ;;  %v4149_v13 = vpack.c.b16 %v4144_v10, %v4143_v28  ;;  %v2196_v0 = vmul.f32 %v13289_v48, %v13086_v49  ;;  %v2468_v38 = vpop.permute.xlu0 %2467 }
 0x193   :  { %v3477_v57 = vsel %vm3221_vm11, %v3093_v3, %v3349_v24  ;;  %v3478_v35 = vsel %vm3222_vm12, %v3094_v4, %v3350_v21  ;;  %11963 = vset.pattern.permute.xlu2 %v15468_v7  ;;  %v12157_v24 = vld [vmem:[%s15365_s0 + $0x3c] sm:$0xf]  ;;  %v2197_v52 = vmul.f32 %v13289_v48, %v13088_v9 }
 0x194   :  { %v3600_v31 = vpack.c.bf16 %v3478_v35, %v3477_v57  ;;  %1983 = vperm.xlu2 %11963, %v12155_v14   ;;  %v13311_v44 = vpop.permute.xlu2 %1313  ;;  %4157 = vst [vmem:[#allocation3 + $0x10] sm:$0x33] %v4149_v13  ;;  %v1682_v3 = vadd.f32 %v1554_v42, %v1164_v1  ;;  %v1683_v4 = vadd.f32 %v1555_v29, %v1165_v63 }
 0x195   :  { %2051 = vperm.xlu0 %12022, %v12156_v58   ;;  %v4161_v39 = vld [vmem:[#allocation2 + $0x10] sm:$0xf]  ;;  %v1038_v57 = vmul.f32 %v13086_v49, %v13272_v59  ;;  %v1039_v35 = vmul.f32 %v13088_v9, %v13272_v59  ;;  %v2709_v42 = vmul.f32 %v2468_v38, %v13107_v16 }
 0x196   :  { %v3728_v46 = vrot.slane %v3600_v31, 2 }
 0x197   :  { %v4135_v11 = vld.sshfl [vmem:[#allocation1] sm:$0xff pattern:$0x73625140]  ;;  %v4137_v20 = vld.sshfl [vmem:[#allocation1 + $0x8] sm:$0xff pattern:$0x73625140]  ;;  %v1166_v63 = vadd.f32 %v1038_v57, %v648_v34 }
 0x198   :  { %4167 = vst [vmem:[#allocation1] ss:$4 sm:$0xff] %v4159_v54  ;;  %v3805_v50 = vsel %vm3787_vm0, %v3600_v31, %v3728_v46  ;;  %v2464_v61 = vpop.permute.xlu1 %2463  ;;  %v4145_v45 = vunpack.c.l.b16 %v4135_v11  ;;  %v4146_v15 = vunpack.c.l.b16 %v4137_v20  ;;  %v12158_v31 = vld [vmem:[%s15365_s0 + $0x6c] sm:$0xf]  ;;  %v2708_v54 = vmul.f32 %v2468_v38, %v13105_v2 }
 0x199   :  { %4049 = vst [vmem:[#allocation2 + $0x14] sm:$0xf] %v3805_v50  ;;  %v2706_v56 = vmul.f32 %v2464_v61, %v13105_v2  ;;  %v2707_v17 = vmul.f32 %v2464_v61, %v13107_v16 }
 0x19a   :  { %11964 = vset.pattern.permute.xlu1 %v15475_v41  ;;  %v4150_v40 = vpack.c.b16 %v4146_v15, %v4145_v45 }
 0x19b   :  { %v2834_v25 = vadd.f32 %v2706_v56, %v2322_v53  ;;  %v2835_v43 = vadd.f32 %v2707_v17, %v2323_v6  ;;  %2495 = vperm.xlu1 %11964, %v12155_v14   ;;  %v1167_v6 = vadd.f32 %v1039_v35, %v649_v26  ;;  %v9445_v35 = vld [vmem:[#allocation3] sm:$0xf] }
 0x19c   :  { %11965 = vset.pattern.permute.xlu2 %v15464_v60  ;;  %4158 = vst [vmem:[#allocation3 + $0x18] sm:$0x33] %v4150_v40 }
 0x19d   :  { %v2962_v62 = vmax.f32 %v1682_v3, %v2834_v25  ;;  %v2963_v23 = vmax.f32 %v1683_v4, %v2835_v43  ;;  %823 = vperm.xlu2 %11965, %v12157_v24   ;;  %v13332_v21 = vpop.permute.xlu2 %2471  ;;  %12027 = vset.pattern.permute.xlu0 %v15475_v41  ;;  %v12159_v43 = vld [vmem:[%s15365_s0 + $0x80] sm:$0xf] }
 0x19e   :  { %2547 = vperm.xlu0 %12027, %v12158_v31   ;;  %v12160_v31 = vld [vmem:[%s15365_s0 + $0x40] sm:$0xf] }
 0x19f   :  { %v4168_v5 = vld.sshfl [vmem:[#allocation1] sm:$0xff pattern:$0x73625140]  ;;  %v4170_v14 = vld.sshfl [vmem:[#allocation1 + $0x8] sm:$0xff pattern:$0x73625140]  ;;  %v3095_v12 = vadd.f32 %v13125_v32, %v2962_v62  ;;  %v3096_v36 = vadd.f32 %v13127_v22, %v2963_v23 }
 0x1a0   :  { %4173 = vst [vmem:[#allocation1] ss:$4 sm:$0xff] %v4161_v39  ;;  %v4190_v28 = vunpack.c.l.b16 %v4168_v5  ;;  %v4191_v33 = vunpack.c.l.b16 %v4170_v14  ;;  %v4163_v61 = vld [vmem:[#allocation2 + $0x14] sm:$0xf] }
 0x1a1   :  { %vm3223_vm13 = vcmp.gt.f32.partialorder %v3095_v12, 0.0  ;;  %vm3224_vm14 = vcmp.gt.f32.partialorder %v3096_v36, 0.0  ;;  %v3351_v59 = vmul.f32 0.01, %v3095_v12  ;;  %v3352_v19 = vmul.f32 0.01, %v3096_v36  ;;  %v1310_v10 = vpop.permute.xlu1 %1309 }
 0x1a2   :  { %v1556_v29 = vmul.f32 %v13105_v2, %v1310_v10  ;;  %v1557_v46 = vmul.f32 %v13107_v16, %v1310_v10  ;;  %v1812_v48 = vmul.f32 %v1310_v10, %v13081_v18  ;;  %v1813_v11 = vmul.f32 %v1310_v10, %v13083_v55 }
 0x1a3   :  { %v3479_v58 = vsel %vm3223_vm13, %v3095_v12, %v3351_v59  ;;  %v3480_v53 = vsel %vm3224_vm14, %v3096_v36, %v3352_v19  ;;  %11967 = vset.pattern.permute.xlu1 %v15468_v7  ;;  %v4198_v1 = vpack.c.b16 %v4191_v33, %v4190_v28 }
 0x1a4   :  { %v3601_v20 = vpack.c.bf16 %v3480_v53, %v3479_v58  ;;  %1987 = vperm.xlu1 %11967, %v12157_v24   ;;  %v2324_v13 = vadd.f32 %v2196_v0, %v1812_v48  ;;  %v2325_v50 = vadd.f32 %v2197_v52, %v1813_v11  ;;  %v1684_v40 = vadd.f32 %v1556_v29, %v1166_v63  ;;  %v11399_v52 = vld [vmem:[#allocation3 + $0x4] sm:$0xf] }
 0x1a5   :  { %11968 = vset.pattern.permute.xlu2 %v15475_v41  ;;  %4206 = vst [vmem:[#allocation3 + $0x20] sm:$0x33] %v4198_v1  ;;  %v1685_v3 = vadd.f32 %v1557_v46, %v1167_v6  ;;  %v651_v48 = vmul.f32 %v13083_v55, %v12825_v47  ;;  %v1558_v63 = vmul.f32 %v13105_v2, %v13311_v44 }
 0x1a6   :  { %v3729_v45 = vrot.slane %v3601_v20, 2  ;;  %2499 = vperm.xlu2 %11968, %v12157_v24   ;;  %v13360_v15 = vpop.permute.xlu2 %1963  ;;  %v2836_v4 = vadd.f32 %v2708_v54, %v2324_v13  ;;  %v2837_v25 = vadd.f32 %v2709_v42, %v2325_v50  ;;  %2567 = vperm.xlu0 %12027, %v12159_v43   ;;  %v650_v42 = vmul.f32 %v13081_v18, %v12825_v47  ;;  %v12161_v50 = vld [vmem:[%s15365_s0 + $0x74] sm:$0xf]  ;;  %v9453_v47 = vld [vmem:[#allocation3 + $0x8] sm:$0xf] }
 0x1a7   :  { %v4174_v56 = vld.sshfl [vmem:[#allocation1] sm:$0xff pattern:$0x73625140]  ;;  %v4176_v17 = vld.sshfl [vmem:[#allocation1 + $0x8] sm:$0xff pattern:$0x73625140]  ;;  %v1559_v6 = vmul.f32 %v13107_v16, %v13311_v44 }
 0x1a8   :  { %4179 = vst [vmem:[#allocation1] ss:$4 sm:$0xff] %v4163_v61  ;;  %v3808_v62 = vsel %vm3787_vm0, %v3601_v20, %v3729_v45  ;;  %v4192_v23 = vunpack.c.l.b16 %v4174_v56  ;;  %v4193_v34 = vunpack.c.l.b16 %v4176_v17  ;;  %v2964_v24 = vmax.f32 %v1684_v40, %v2836_v4  ;;  %v11400_v40 = vld [vmem:[#allocation3 + $0xc] sm:$0xf] }
 0x1a9   :  { %4050 = vst [vmem:[#allocation2 + $0x18] sm:$0xf] %v3808_v62  ;;  %v2965_v26 = vmax.f32 %v1685_v3, %v2837_v25  ;;  %v1814_v61 = vmul.f32 %v13311_v44, %v13081_v18  ;;  %v2710_v45 = vmul.f32 %v13332_v21, %v13105_v2  ;;  %v2711_v56 = vmul.f32 %v13332_v21, %v13107_v16  ;;  %v800_v21 = vpop.permute.xlu0 %799 }
 0x1aa   :  { %v796_v39 = vpop.permute.xlu1 %795  ;;  %v4199_v5 = vpack.c.b16 %v4193_v34, %v4192_v23  ;;  %v3097_v14 = vadd.f32 %v13125_v32, %v2964_v24  ;;  %v1815_v25 = vmul.f32 %v13311_v44, %v13083_v55 }
 0x1ab   :  { %v3098_v57 = vadd.f32 %v13127_v22, %v2965_v26  ;;  %v1040_v58 = vmul.f32 %v13086_v49, %v796_v39  ;;  %v1041_v11 = vmul.f32 %v13088_v9, %v796_v39 }
 0x1ac   :  { %11969 = vset.pattern.permute.xlu1 %v15464_v60  ;;  %4207 = vst [vmem:[#allocation3 + $0x28] sm:$0x33] %v4199_v5  ;;  %vm3225_vm15 = vcmp.gt.f32.partialorder %v3097_v14, 0.0  ;;  %v3353_v12 = vmul.f32 0.01, %v3097_v14 }
 0x1ad   :  { %vm3226_vm1 = vcmp.gt.f32.partialorder %v3098_v57, 0.0  ;;  %v3354_v36 = vmul.f32 0.01, %v3098_v57  ;;  %827 = vperm.xlu1 %11969, %v12160_v31   ;;  %v11403_v0 = vld [vmem:[#allocation3 + $0x1c] sm:$0xf0]  ;;  %v1168_v23 = vadd.f32 %v1040_v58, %v650_v42  ;;  %v1169_v26 = vadd.f32 %v1041_v11, %v651_v48 }
 0x1ae   :  { %v9447_v28 = vld [vmem:[#allocation3 + $0x20] sm:$0xf0]  ;;  %11970 = vset.pattern.permute.xlu2 %v15460_v8  ;;  %v3481_v59 = vsel %vm3225_vm15, %v3097_v14, %v3353_v12  ;;  %v9446_v10 = vor.u32 %v11403_v0, %v9445_v35  ;;  %12032 = vset.pattern.permute.xlu0 %v15464_v60 }
 0x1af   :  { %v4180_v33 = vld.sshfl [vmem:[#allocation1] sm:$0xff pattern:$0x73625140]  ;;  %v4182_v38 = vld.sshfl [vmem:[#allocation1 + $0x8] sm:$0xff pattern:$0x73625140]  ;;  %v3482_v19 = vsel %vm3226_vm1, %v3098_v57, %v3354_v36  ;;  %v9450_v54 = vor.u32 %v11399_v52, %v9447_v28  ;;  %1345 = vperm.xlu2 %11970, %v12160_v31   ;;  %v13377_v53 = vpop.permute.xlu2 %803  ;;  %879 = vperm.xlu0 %12032, %v12161_v50   ;;  %v1686_v36 = vadd.f32 %v1558_v63, %v1168_v23 }
 0x1b0   :  { %v4165_v29 = vld [vmem:[#allocation2 + $0x18] sm:$0xf]  ;;  %v3602_v46 = vpack.c.bf16 %v3482_v19, %v3481_v59  ;;  %6061 = vmatmul.bf16.vlgmr.msra.gmra.mxu0 %v9446_v10  ;;  %v4194_v20 = vunpack.c.l.b16 %v4180_v33  ;;  %v4195_v1 = vunpack.c.l.b16 %v4182_v38  ;;  %v1687_v52 = vadd.f32 %v1559_v6, %v1169_v26  ;;  %v12162_v38 = vld [vmem:[%s15365_s0 + $0x44] sm:$0xf] }
 0x1b1   :  { %4185 = vst [vmem:[#allocation1] ss:$4 sm:$0xff] %v4165_v29  ;;  %6119 = vmatmul.bf16.vlgmr.msra.gmra.mxu1 %v9450_v54  ;;  %v4210_v14 = vld [vmem:[#allocation2 + $0x18] sm:$0xf]  ;;  %v13412_v48 = vpop.permute.xlu0 %1321  ;;  %v1042_v63 = vmul.f32 %v13086_v49, %v800_v21  ;;  %v1043_v6 = vmul.f32 %v13088_v9, %v800_v21  ;;  %v653_v23 = vmul.f32 %v13083_v55, %v12885_v30 }
 0x1b2   :  { %v3730_v13 = vrot.slane %v3602_v46, 2  ;;  %v4200_v43 = vpack.c.b16 %v4195_v1, %v4194_v20 }
 0x1b3   :  { %v11404_v17 = vld [vmem:[#allocation3 + $0x24] sm:$0xf0]  ;;  %v9455_v3 = vld [vmem:[#allocation3 + $0x28] sm:$0xf0]  ;;  %v1960_v4 = vpop.permute.xlu1 %1959  ;;  %v1171_v21 = vadd.f32 %v1043_v6, %v653_v23 }
 0x1b4   :  { %v3811_v62 = vsel %vm3787_vm0, %v3602_v46, %v3730_v13  ;;  %v9454_v34 = vor.u32 %v11404_v17, %v9453_v47  ;;  %v9458_v24 = vor.u32 %v11400_v40, %v9455_v3  ;;  %v2198_v39 = vmul.f32 %v1960_v4, %v13086_v49  ;;  %4208 = vst [vmem:[#allocation3 + $0x30] sm:$0x33] %v4200_v43 }
 0x1b5   :  { %4051 = vst [vmem:[#allocation2 + $0x1c] sm:$0xf] %v3811_v62  ;;  %v2199_v5 = vmul.f32 %v1960_v4, %v13088_v9  ;;  %11972 = vset.pattern.permute.xlu1 %v15475_v41  ;;  %v2200_v47 = vmul.f32 %v13360_v15, %v13086_v49  ;;  %v2201_v4 = vmul.f32 %v13360_v15, %v13088_v9 }
 0x1b6   :  { %6177 = vmatmul.bf16.vlgmr.msra.gmra.mxu2 %v9454_v34  ;;  %6235 = vmatmul.bf16.vlgmr.msra.gmra.mxu3 %v9458_v24  ;;  %v2326_v44 = vadd.f32 %v2198_v39, %v1814_v61  ;;  %v652_v62 = vmul.f32 %v13081_v18, %v12885_v30  ;;  %v12164_v34 = vld [vmem:[%s15365_s0 + $0x8c] sm:$0xf] }
 0x1b7   :  { %v2327_v57 = vadd.f32 %v2199_v5, %v1815_v25  ;;  %2503 = vperm.xlu1 %11972, %v12160_v31   ;;  %11973 = vset.pattern.permute.xlu2 %v15464_v60  ;;  %v12163_v31 = vld [vmem:[%s15365_s0 + $0x88] sm:$0xf] }
 0x1b8   :  { %v4186_v35 = vld.sshfl [vmem:[#allocation1] sm:$0xff pattern:$0x73625140]  ;;  %v4188_v12 = vld.sshfl [vmem:[#allocation1 + $0x8] sm:$0xff pattern:$0x73625140]  ;;  %v13402_v0 = vpop.permute.xlu2 %2479  ;;  %v2838_v28 = vadd.f32 %v2710_v45, %v2326_v44  ;;  %831 = vperm.xlu2 %11973, %v12162_v38   ;;  %899 = vperm.xlu0 %12032, %v12163_v31   ;;  %v1170_v5 = vadd.f32 %v1042_v63, %v652_v62 }
 0x1b9   :  { %4218 = vst [vmem:[#allocation1] ss:$4 sm:$0xff] %v4210_v14  ;;  %v2839_v33 = vadd.f32 %v2711_v56, %v2327_v57  ;;  %v4196_v59 = vunpack.c.l.b16 %v4186_v35  ;;  %v4197_v19 = vunpack.c.l.b16 %v4188_v12  ;;  %v2715_v62 = vmul.f32 %v13402_v0, %v13107_v16 }
 0x1ba   :  { %v2966_v10 = vmax.f32 %v1686_v36, %v2838_v28  ;;  %v13439_v36 = vpop.permute.xlu0 %1341 }
 0x1bb   :  { %v2967_v54 = vmax.f32 %v1687_v52, %v2839_v33  ;;  %v4201_v29 = vpack.c.b16 %v4197_v19, %v4196_v59  ;;  %v12165_v19 = vld [vmem:[%s15365_s0 + $0x48] sm:$0xf] }
 0x1bc   :  { %v1318_v42 = vpop.permute.xlu1 %1317  ;;  %v3099_v46 = vadd.f32 %v13125_v32, %v2966_v10  ;;  %v4212_v11 = vld [vmem:[#allocation2 + $0x1c] sm:$0xf] }
 0x1bd   :  { %v3100_v58 = vadd.f32 %v13127_v22, %v2967_v54  ;;  %4209 = vst [vmem:[#allocation3 + $0x38] sm:$0x33] %v4201_v29  ;;  %v1816_v61 = vmul.f32 %v1318_v42, %v13081_v18  ;;  %v1817_v43 = vmul.f32 %v1318_v42, %v13083_v55  ;;  %v1560_v15 = vmul.f32 %v13105_v2, %v1318_v42 }
 0x1be   :  { %vm3227_vm2 = vcmp.gt.f32.partialorder %v3099_v46, 0.0  ;;  %v3355_v20 = vmul.f32 0.01, %v3099_v46  ;;  %v1561_v26 = vmul.f32 %v13107_v16, %v1318_v42 }
 0x1bf   :  { %vm3228_vm3 = vcmp.gt.f32.partialorder %v3100_v58, 0.0  ;;  %v3356_v1 = vmul.f32 0.01, %v3100_v58  ;;  %11974 = vset.pattern.permute.xlu1 %v15460_v8  ;;  %v2328_v44 = vadd.f32 %v2200_v47, %v1816_v61  ;;  %v2329_v35 = vadd.f32 %v2201_v4, %v1817_v43 }
 0x1c0   :  { %v4219_v13 = vld.sshfl [vmem:[#allocation1] sm:$0xff pattern:$0x73625140]  ;;  %v4221_v50 = vld.sshfl [vmem:[#allocation1 + $0x8] sm:$0xff pattern:$0x73625140]  ;;  %1349 = vperm.xlu1 %11974, %v12162_v38   ;;  %v3483_v45 = vsel %vm3227_vm2, %v3099_v46, %v3355_v20  ;;  %11975 = vset.pattern.permute.xlu2 %v15468_v7  ;;  %v1688_v33 = vadd.f32 %v1560_v15, %v1170_v5  ;;  %v1044_v46 = vmul.f32 %v13086_v49, %v13377_v53 }
 0x1c1   :  { %4224 = vst [vmem:[#allocation1] ss:$4 sm:$0xff] %v4212_v11  ;;  %v3484_v56 = vsel %vm3228_vm3, %v3100_v58, %v3356_v1  ;;  %v13421_v17 = vpop.permute.xlu2 %1325  ;;  %v4241_v40 = vunpack.c.l.b16 %v4219_v13  ;;  %v4242_v3 = vunpack.c.l.b16 %v4221_v50  ;;  %12041 = vset.pattern.permute.xlu0 %v15460_v8  ;;  %1995 = vperm.xlu2 %11975, %v12162_v38   ;;  %v1689_v38 = vadd.f32 %v1561_v26, %v1171_v21  ;;  %v12166_v13 = vld [vmem:[%s15365_s0 + $0x90] sm:$0xf] }
 0x1c2   :  { %v3603_v25 = vpack.c.bf16 %v3484_v56, %v3483_v45  ;;  %1421 = vperm.xlu0 %12041, %v12164_v34   ;;  %v1045_v58 = vmul.f32 %v13088_v9, %v13377_v53  ;;  %v654_v1 = vmul.f32 %v13081_v18, %v12883_v27  ;;  %v655_v53 = vmul.f32 %v13083_v55, %v12883_v27  ;;  %v1972_v15 = vpop.permute.xlu0 %1971 }
 0x1c3   :  { %v4249_v39 = vpack.c.b16 %v4242_v3, %v4241_v40  ;;  %v1562_v50 = vmul.f32 %v13105_v2, %v13412_v48  ;;  %v1563_v47 = vmul.f32 %v13107_v16, %v13412_v48  ;;  %v1818_v61 = vmul.f32 %v13412_v48, %v13081_v18 }
 0x1c4   :  { %v3731_v24 = vrot.slane %v3603_v25, 2  ;;  %v1819_v45 = vmul.f32 %v13412_v48, %v13083_v55  ;;  %v1172_v4 = vadd.f32 %v1044_v46, %v654_v1  ;;  %v1173_v27 = vadd.f32 %v1045_v58, %v655_v53  ;;  %v12168_v53 = vld [vmem:[%s15365_s0 + $0x4c] sm:$0xf] }
 0x1c5   :  { %v2476_v14 = vpop.permute.xlu1 %2475  ;;  %4257 = vst [vmem:[#allocation3 + $0x40] sm:$0x33] %v4249_v39  ;;  %v1820_v46 = vmul.f32 %v13421_v17, %v13081_v18 }
 0x1c6   :  { %v3814_v57 = vsel %vm3787_vm0, %v3603_v25, %v3731_v24  ;;  %v2712_v30 = vmul.f32 %v2476_v14, %v13105_v2  ;;  %v2713_v12 = vmul.f32 %v2476_v14, %v13107_v16  ;;  %v2714_v25 = vmul.f32 %v13402_v0, %v13105_v2 }
 0x1c7   :  { %4052 = vst [vmem:[#allocation2 + $0x20] sm:$0xf] %v3814_v57  ;;  %v1690_v21 = vadd.f32 %v1562_v50, %v1172_v4  ;;  %v1564_v4 = vmul.f32 %v13105_v2, %v13421_v17 }
 0x1c8   :  { %v4225_v52 = vld.sshfl [vmem:[#allocation1] sm:$0xff pattern:$0x73625140]  ;;  %v4227_v28 = vld.sshfl [vmem:[#allocation1 + $0x8] sm:$0xff pattern:$0x73625140]  ;;  %v2840_v59 = vadd.f32 %v2712_v30, %v2328_v44  ;;  %v2841_v31 = vadd.f32 %v2713_v12, %v2329_v35  ;;  %11977 = vset.pattern.permute.xlu1 %v15464_v60  ;;  %v1691_v44 = vadd.f32 %v1563_v47, %v1173_v27  ;;  %v1565_v27 = vmul.f32 %v13107_v16, %v13421_v17 }
 0x1c9   :  { %835 = vperm.xlu1 %11977, %v12165_v19   ;;  %v4243_v10 = vunpack.c.l.b16 %v4225_v52  ;;  %v4244_v54 = vunpack.c.l.b16 %v4227_v28  ;;  %11978 = vset.pattern.permute.xlu2 %v15460_v8  ;;  %v12167_v30 = vld [vmem:[%s15365_s0 + $0x94] sm:$0xf] }
 0x1ca   :  { %v2968_v42 = vmax.f32 %v1688_v33, %v2840_v59  ;;  %v2969_v29 = vmax.f32 %v1689_v38, %v2841_v31  ;;  %12046 = vset.pattern.permute.xlu0 %v15468_v7  ;;  %1353 = vperm.xlu2 %11978, %v12165_v19   ;;  %v13451_v11 = vpop.permute.xlu2 %811  ;;  %v13499_v50 = vpop.permute.xlu0 %1991 }
 0x1cb   :  { %v4250_v20 = vpack.c.b16 %v4244_v54, %v4243_v10  ;;  %2071 = vperm.xlu0 %12046, %v12166_v13  }
 0x1cc   :  { %v3101_v63 = vadd.f32 %v13125_v32, %v2968_v42  ;;  %v3102_v6 = vadd.f32 %v13127_v22, %v2969_v29  ;;  %v2205_v29 = vmul.f32 %v1972_v15, %v13088_v9 }
 0x1cd   :  { %4258 = vst [vmem:[#allocation3 + $0x48] sm:$0x33] %v4250_v20 }
 0x1ce   :  { %v4214_v56 = vld [vmem:[#allocation2 + $0x20] sm:$0xf]  ;;  %vm3229_vm4 = vcmp.gt.f32.partialorder %v3101_v63, 0.0  ;;  %vm3230_vm5 = vcmp.gt.f32.partialorder %v3102_v6, 0.0  ;;  %v3357_v40 = vmul.f32 0.01, %v3101_v63  ;;  %v1968_v3 = vpop.permute.xlu1 %1967 }
 0x1cf   :  { %4230 = vst [vmem:[#allocation1] ss:$4 sm:$0xff] %v4214_v56  ;;  %v3358_v43 = vmul.f32 0.01, %v3102_v6  ;;  %v2202_v34 = vmul.f32 %v1968_v3, %v13086_v49  ;;  %v2203_v48 = vmul.f32 %v1968_v3, %v13088_v9  ;;  %v656_v56 = vmul.f32 %v13081_v18, %v12836_v51 }
 0x1d0   :  { %v3485_v23 = vsel %vm3229_vm4, %v3101_v63, %v3357_v40  ;;  %v1821_v63 = vmul.f32 %v13421_v17, %v13083_v55  ;;  %v657_v40 = vmul.f32 %v13083_v55, %v12836_v51 }
 0x1d1   :  { %v3486_v24 = vsel %vm3230_vm5, %v3102_v6, %v3358_v43  ;;  %11979 = vset.pattern.permute.xlu1 %v15468_v7  ;;  %v2330_v39 = vadd.f32 %v2202_v34, %v1818_v61  ;;  %v2331_v5 = vadd.f32 %v2203_v48, %v1819_v45  ;;  %v12169_v43 = vld [vmem:[%s15365_s0 + $0x9c] sm:$0xf] }
 0x1d2   :  { %v3604_v26 = vpack.c.bf16 %v3486_v24, %v3485_v23  ;;  %1999 = vperm.xlu1 %11979, %v12165_v19   ;;  %11980 = vset.pattern.permute.xlu2 %v15475_v41  ;;  %v2333_v48 = vadd.f32 %v2205_v29, %v1821_v63  ;;  %v1049_v29 = vmul.f32 %v13088_v9, %v13451_v11 }
 0x1d3   :  { %v13478_v14 = vpop.permute.xlu2 %1975  ;;  %v2842_v57 = vadd.f32 %v2714_v25, %v2330_v39  ;;  %v2843_v35 = vadd.f32 %v2715_v62, %v2331_v5  ;;  %12051 = vset.pattern.permute.xlu0 %v15475_v41  ;;  %2511 = vperm.xlu2 %11980, %v12165_v19   ;;  %v2204_v19 = vmul.f32 %v1972_v15, %v13086_v49 }
 0x1d4   :  { %v3732_v0 = vrot.slane %v3604_v26, 2  ;;  %2587 = vperm.xlu0 %12051, %v12167_v30  }
 0x1d5   :  { %v2970_v33 = vmax.f32 %v1690_v21, %v2842_v57  ;;  %v2971_v38 = vmax.f32 %v1691_v44, %v2843_v35  ;;  %v2332_v62 = vadd.f32 %v2204_v19, %v1820_v46  ;;  %v1048_v19 = vmul.f32 %v13086_v49, %v13451_v11 }
 0x1d6   :  { %v4231_v12 = vld.sshfl [vmem:[#allocation1] sm:$0xff pattern:$0x73625140]  ;;  %v4233_v52 = vld.sshfl [vmem:[#allocation1 + $0x8] sm:$0xff pattern:$0x73625140]  ;;  %v3817_v28 = vsel %vm3787_vm0, %v3604_v26, %v3732_v0  ;;  %v2206_v46 = vmul.f32 %v13478_v14, %v13086_v49 }
 0x1d7   :  { %4053 = vst [vmem:[#allocation2 + $0x24] sm:$0xf] %v3817_v28  ;;  %v808_v59 = vpop.permute.xlu1 %807  ;;  %v4245_v31 = vunpack.c.l.b16 %v4231_v12  ;;  %v4246_v10 = vunpack.c.l.b16 %v4233_v52  ;;  %v3103_v54 = vadd.f32 %v13125_v32, %v2970_v33  ;;  %v3104_v42 = vadd.f32 %v13127_v22, %v2971_v38  ;;  %v2488_v28 = vpop.permute.xlu0 %2487 }
 0x1d8   :  { %v1046_v6 = vmul.f32 %v13086_v49, %v808_v59  ;;  %v1047_v13 = vmul.f32 %v13088_v9, %v808_v59  ;;  %v658_v12 = vmul.f32 %v13081_v18, %v12900_v37  ;;  %v659_v52 = vmul.f32 %v13083_v55, %v12900_v37  ;;  %v12170_v59 = vld [vmem:[%s15365_s0 + $0x50] sm:$0xf]  ;;  %v12171_v37 = vld [vmem:[%s15365_s0 + $0xa0] sm:$0xf] }
 0x1d9   :  { %v4251_v58 = vpack.c.b16 %v4246_v10, %v4245_v31  ;;  %vm3231_vm6 = vcmp.gt.f32.partialorder %v3103_v54, 0.0  ;;  %vm3232_vm7 = vcmp.gt.f32.partialorder %v3104_v42, 0.0  ;;  %v3359_v20 = vmul.f32 0.01, %v3103_v54 }
 0x1da   :  { %v3360_v1 = vmul.f32 0.01, %v3104_v42  ;;  %11981 = vset.pattern.permute.xlu1 %v15460_v8  ;;  %v1174_v51 = vadd.f32 %v1046_v6, %v656_v56  ;;  %v1175_v34 = vadd.f32 %v1047_v13, %v657_v40  ;;  %v2718_v31 = vmul.f32 %v2488_v28, %v13105_v2 }
 0x1db   :  { %1357 = vperm.xlu1 %11981, %v12168_v53   ;;  %4259 = vst [vmem:[#allocation3 + $0x50] sm:$0x33] %v4251_v58  ;;  %v3487_v47 = vsel %vm3231_vm6, %v3103_v54, %v3359_v20  ;;  %11982 = vset.pattern.permute.xlu2 %v15468_v7  ;;  %v2207_v20 = vmul.f32 %v13478_v14, %v13088_v9 }
 0x1dc   :  { %v3488_v61 = vsel %vm3232_vm7, %v3104_v42, %v3360_v1  ;;  %v13502_v45 = vpop.permute.xlu2 %1333  ;;  %12056 = vset.pattern.permute.xlu0 %v15464_v60  ;;  %2003 = vperm.xlu2 %11982, %v12168_v53   ;;  %v1692_v17 = vadd.f32 %v1564_v4, %v1174_v51  ;;  %v1693_v5 = vadd.f32 %v1565_v27, %v1175_v34 }
 0x1dd   :  { %v3605_v3 = vpack.c.bf16 %v3488_v61, %v3487_v47  ;;  %919 = vperm.xlu0 %12056, %v12169_v43   ;;  %v2719_v6 = vmul.f32 %v2488_v28, %v13107_v16  ;;  %v1177_v4 = vadd.f32 %v1049_v29, %v659_v52 }
 0x1de   :  { %v4216_v25 = vld [vmem:[#allocation2 + $0x24] sm:$0xf] }
 0x1df   :  { %4236 = vst [vmem:[#allocation1] ss:$4 sm:$0xff] %v4216_v25  ;;  %v3733_v23 = vrot.slane %v3605_v3, 2  ;;  %v4261_v0 = vld [vmem:[#allocation2 + $0x24] sm:$0xf] }
 0x1e0   :  { %v2484_v24 = vpop.permute.xlu1 %2483 }
 0x1e1   :  { %v3820_v15 = vsel %vm3787_vm0, %v3605_v3, %v3733_v23  ;;  %v2716_v26 = vmul.f32 %v2484_v24, %v13105_v2  ;;  %v2717_v39 = vmul.f32 %v2484_v24, %v13107_v16  ;;  %v1176_v3 = vadd.f32 %v1048_v19, %v658_v12 }
 0x1e2   :  { %4054 = vst [vmem:[#allocation2 + $0x28] sm:$0xf] %v3820_v15 }
 0x1e3   :  { %v2844_v21 = vadd.f32 %v2716_v26, %v2332_v62  ;;  %v2845_v44 = vadd.f32 %v2717_v39, %v2333_v48  ;;  %11983 = vset.pattern.permute.xlu1 %v15475_v41 }
 0x1e4   :  { %2515 = vperm.xlu1 %11983, %v12168_v53   ;;  %11984 = vset.pattern.permute.xlu2 %v15464_v60 }
 0x1e5   :  { %v2972_v57 = vmax.f32 %v1692_v17, %v2844_v21  ;;  %v2973_v35 = vmax.f32 %v1693_v5, %v2845_v44  ;;  %v13521_v30 = vpop.permute.xlu2 %2491  ;;  %12061 = vset.pattern.permute.xlu0 %v15460_v8  ;;  %843 = vperm.xlu2 %11984, %v12170_v59   ;;  %v12172_v5 = vld [vmem:[%s15365_s0 + $0xa4] sm:$0xf] }
 0x1e6   :  { %v4237_v33 = vld.sshfl [vmem:[#allocation1] sm:$0xff pattern:$0x73625140]  ;;  %v4239_v38 = vld.sshfl [vmem:[#allocation1 + $0x8] sm:$0xff pattern:$0x73625140]  ;;  %1441 = vperm.xlu0 %12061, %v12171_v37  }
 0x1e7   :  { %4269 = vst [vmem:[#allocation1] ss:$4 sm:$0xff] %v4261_v0  ;;  %v3105_v10 = vadd.f32 %v13125_v32, %v2972_v57  ;;  %v3106_v54 = vadd.f32 %v13127_v22, %v2973_v35  ;;  %v4247_v42 = vunpack.c.l.b16 %v4237_v33  ;;  %v4248_v58 = vunpack.c.l.b16 %v4239_v38  ;;  %v12173_v37 = vld [vmem:[%s15365_s0 + $0x54] sm:$0xf] }
 0x1e9   :  { %vm3233_vm8 = vcmp.gt.f32.partialorder %v3105_v10, 0.0  ;;  %vm3234_vm9 = vcmp.gt.f32.partialorder %v3106_v54, 0.0  ;;  %v3361_v1 = vmul.f32 0.01, %v3105_v10  ;;  %v1330_v63 = vpop.permute.xlu1 %1329  ;;  %v3362_v13 = vmul.f32 0.01, %v3106_v54 }
 0x1ea   :  { %v1566_v53 = vmul.f32 %v13105_v2, %v1330_v63  ;;  %v1567_v47 = vmul.f32 %v13107_v16, %v1330_v63  ;;  %v1822_v11 = vmul.f32 %v1330_v63, %v13081_v18  ;;  %v1823_v56 = vmul.f32 %v1330_v63, %v13083_v55  ;;  %v4263_v27 = vld [vmem:[#allocation2 + $0x28] sm:$0xf] }
 0x1eb   :  { %v3489_v61 = vsel %vm3233_vm8, %v3105_v10, %v3361_v1  ;;  %v4252_v40 = vpack.c.b16 %v4248_v58, %v4247_v42  ;;  %v3490_v14 = vsel %vm3234_vm9, %v3106_v54, %v3362_v13  ;;  %v15480_v1 = vld [vmem:[#allocation29_spill] sm:$0xff]  ;;  %v1568_v13 = vmul.f32 %v13105_v2, %v13502_v45 }
 0x1ec   :  { %11986 = vset.pattern.permute.xlu1 %v15468_v7  ;;  %v3606_v25 = vpack.c.bf16 %v3490_v14, %v3489_v61  ;;  %v2334_v43 = vadd.f32 %v2206_v46, %v1822_v11  ;;  %v2335_v62 = vadd.f32 %v2207_v20, %v1823_v56  ;;  %v1694_v34 = vadd.f32 %v1566_v53, %v1176_v3  ;;  %v12174_v61 = vld [vmem:[%s15365_s0 + $0xa8] sm:$0xf] }
 0x1ed   :  { %2007 = vperm.xlu1 %11986, %v12170_v59   ;;  %4260 = vst [vmem:[#allocation3 + $0x58] sm:$0x33] %v4252_v40  ;;  %v1695_v48 = vadd.f32 %v1567_v47, %v1177_v4  ;;  %11987 = vset.pattern.permute.xlu2 %v15475_v41  ;;  %v660_v63 = vmul.f32 %v13081_v18, %v15480_v1  ;;  %v13586_v4 = vpop.permute.xlu0 %2507 }
 0x1ee   :  { %v4270_v23 = vld.sshfl [vmem:[#allocation1] sm:$0xff pattern:$0x73625140]  ;;  %v4272_v51 = vld.sshfl [vmem:[#allocation1 + $0x8] sm:$0xff pattern:$0x73625140]  ;;  %v13552_v24 = vpop.permute.xlu2 %1983  ;;  %v2846_v26 = vadd.f32 %v2718_v31, %v2334_v43  ;;  %v2847_v39 = vadd.f32 %v2719_v6, %v2335_v62  ;;  %12066 = vset.pattern.permute.xlu0 %v15468_v7  ;;  %2519 = vperm.xlu2 %11987, %v12170_v59   ;;  %v661_v6 = vmul.f32 %v13083_v55, %v15480_v1 }
 0x1ef   :  { %4275 = vst [vmem:[#allocation1] ss:$4 sm:$0xff] %v4263_v27  ;;  %v3734_v15 = vrot.slane %v3606_v25, 2  ;;  %v4292_v17 = vunpack.c.l.b16 %v4270_v23  ;;  %2091 = vperm.xlu0 %12066, %v12172_v5   ;;  %v4293_v21 = vunpack.c.l.b16 %v4272_v51  ;;  %v1569_v53 = vmul.f32 %v13107_v16, %v13502_v45  ;;  %v9477_v23 = vld [vmem:[#allocation3 + $0x40] sm:$0xf] }
 0x1f0   :  { %v2974_v0 = vmax.f32 %v1694_v34, %v2846_v26  ;;  %v2975_v57 = vmax.f32 %v1695_v48, %v2847_v39  ;;  %v1824_v56 = vmul.f32 %v13502_v45, %v13081_v18  ;;  %v1825_v40 = vmul.f32 %v13502_v45, %v13083_v55  ;;  %v11407_v39 = vld [vmem:[#allocation3 + $0x44] sm:$0xf] }
 0x1f1   :  { %v3823_v44 = vsel %vm3787_vm0, %v3606_v25, %v3734_v15  ;;  %v4300_v12 = vpack.c.b16 %v4293_v21, %v4292_v17  ;;  %v2720_v14 = vmul.f32 %v13521_v30, %v13105_v2  ;;  %v2721_v27 = vmul.f32 %v13521_v30, %v13107_v16 }
 0x1f2   :  { %4055 = vst [vmem:[#allocation2 + $0x2c] sm:$0xf] %v3823_v44  ;;  %v816_v35 = vpop.permute.xlu1 %815  ;;  %v3107_v52 = vadd.f32 %v13125_v32, %v2974_v0  ;;  %v3108_v28 = vadd.f32 %v13127_v22, %v2975_v57 }
 0x1f3   :  { %4308 = vst [vmem:[#allocation3 + $0x60] sm:$0x33] %v4300_v12  ;;  %v1050_v10 = vmul.f32 %v13086_v49, %v816_v35  ;;  %v1051_v54 = vmul.f32 %v13088_v9, %v816_v35 }
 0x1f4   :  { %vm3235_vm10 = vcmp.gt.f32.partialorder %v3107_v52, 0.0  ;;  %vm3236_vm11 = vcmp.gt.f32.partialorder %v3108_v28, 0.0  ;;  %v3363_v33 = vmul.f32 0.01, %v3107_v52  ;;  %v3364_v38 = vmul.f32 0.01, %v3108_v28 }
 0x1f5   :  { %11988 = vset.pattern.permute.xlu1 %v15464_v60  ;;  %v1178_v25 = vadd.f32 %v1050_v10, %v660_v63  ;;  %v1179_v43 = vadd.f32 %v1051_v54, %v661_v6  ;;  %v11408_v54 = vld [vmem:[#allocation3 + $0x4c] sm:$0xf] }
 0x1f6   :  { %v4276_v59 = vld.sshfl [vmem:[#allocation1] sm:$0xff pattern:$0x73625140]  ;;  %v4278_v31 = vld.sshfl [vmem:[#allocation1 + $0x8] sm:$0xff pattern:$0x73625140]  ;;  %847 = vperm.xlu1 %11988, %v12173_v37   ;;  %v3491_v42 = vsel %vm3235_vm10, %v3107_v52, %v3363_v33  ;;  %v3492_v19 = vsel %vm3236_vm11, %v3108_v28, %v3364_v38  ;;  %11989 = vset.pattern.permute.xlu2 %v15460_v8 }
 0x1f7   :  { %v4294_v29 = vunpack.c.l.b16 %v4276_v59  ;;  %v4295_v46 = vunpack.c.l.b16 %v4278_v31  ;;  %v3607_v58 = vpack.c.bf16 %v3492_v19, %v3491_v42  ;;  %12071 = vset.pattern.permute.xlu0 %v15475_v41  ;;  %1365 = vperm.xlu2 %11989, %v12173_v37   ;;  %v13569_v20 = vpop.permute.xlu2 %823  ;;  %v1696_v30 = vadd.f32 %v1568_v13, %v1178_v25  ;;  %v12175_v28 = vld [vmem:[%s15365_s0 + $0x58] sm:$0xf]  ;;  %v12176_v59 = vld [vmem:[%s15365_s0 + $0xb0] sm:$0xf]  ;;  %v820_v13 = vpop.permute.xlu0 %819 }
 0x1f8   :  { %2607 = vperm.xlu0 %12071, %v12174_v61   ;;  %v1697_v44 = vadd.f32 %v1569_v53, %v1179_v43  ;;  %v9485_v31 = vld [vmem:[#allocation3 + $0x48] sm:$0xf]  ;;  %v1052_v61 = vmul.f32 %v13086_v49, %v820_v13  ;;  %v2210_v25 = vmul.f32 %v13552_v24, %v13086_v49 }
 0x1f9   :  { %v4265_v47 = vld [vmem:[#allocation2 + $0x2c] sm:$0xf]  ;;  %v3735_v11 = vrot.slane %v3607_v58, 2  ;;  %v4301_v3 = vpack.c.b16 %v4295_v46, %v4294_v29 }
 0x1fa   :  { %4281 = vst [vmem:[#allocation1] ss:$4 sm:$0xff] %v4265_v47  ;;  %v11411_v51 = vld [vmem:[#allocation3 + $0x5c] sm:$0xf0]  ;;  %v9479_v34 = vld [vmem:[#allocation3 + $0x60] sm:$0xf0] }
 0x1fb   :  { %v1980_v62 = vpop.permute.xlu1 %1979  ;;  %v3826_v48 = vsel %vm3787_vm0, %v3607_v58, %v3735_v11  ;;  %v9478_v26 = vor.u32 %v11411_v51, %v9477_v23  ;;  %4309 = vst [vmem:[#allocation3 + $0x68] sm:$0x33] %v4301_v3  ;;  %v9482_v17 = vor.u32 %v11407_v39, %v9479_v34  ;;  %v15481_v3 = vld [vmem:[#allocation25_spill] sm:$0xff] }
 0x1fc   :  { %v2208_v15 = vmul.f32 %v1980_v62, %v13086_v49  ;;  %v2209_v45 = vmul.f32 %v1980_v62, %v13088_v9  ;;  %4056 = vst [vmem:[#allocation2 + $0x30] sm:$0xf] %v3826_v48  ;;  %v2211_v62 = vmul.f32 %v13552_v24, %v13088_v9  ;;  %v663_v48 = vmul.f32 %v13083_v55, %v15481_v3 }
 0x1fd   :  { %6066 = vmatmul.bf16.gmra.mxu0 %v9478_v26  ;;  %6124 = vmatmul.bf16.gmra.mxu1 %v9482_v17  ;;  %v12177_v26 = vld [vmem:[%s15365_s0 + $0xb4] sm:$0xf] }
 0x1fe   :  { %v2336_v5 = vadd.f32 %v2208_v15, %v1824_v56  ;;  %v2337_v21 = vadd.f32 %v2209_v45, %v1825_v40  ;;  %11991 = vset.pattern.permute.xlu1 %v15475_v41 }
 0x1ff   :  { %2523 = vperm.xlu1 %11991, %v12173_v37   ;;  %11992 = vset.pattern.permute.xlu2 %v15464_v60 }
 0x200   :  { %v2848_v0 = vadd.f32 %v2720_v14, %v2336_v5  ;;  %v2849_v57 = vadd.f32 %v2721_v27, %v2337_v21  ;;  %v13597_v35 = vpop.permute.xlu2 %2499  ;;  %12076 = vset.pattern.permute.xlu0 %v15464_v60  ;;  %851 = vperm.xlu2 %11992, %v12175_v28   ;;  %v662_v14 = vmul.f32 %v13081_v18, %v15481_v3  ;;  %v12179_v3 = vld [vmem:[%s15365_s0 + $0xb8] sm:$0xf] }
 0x201   :  { %v4282_v12 = vld.sshfl [vmem:[#allocation1] sm:$0xff pattern:$0x73625140]  ;;  %v4284_v52 = vld.sshfl [vmem:[#allocation1 + $0x8] sm:$0xff pattern:$0x73625140]  ;;  %939 = vperm.xlu0 %12076, %v12176_v59   ;;  %v1053_v27 = vmul.f32 %v13088_v9, %v820_v13  ;;  %v1572_v13 = vmul.f32 %v13105_v2, %v13439_v36 }
 0x202   :  { %v2976_v33 = vmax.f32 %v1696_v30, %v2848_v0  ;;  %v2977_v38 = vmax.f32 %v1697_v44, %v2849_v57  ;;  %v11412_v10 = vld [vmem:[#allocation3 + $0x64] sm:$0xf0]  ;;  %v9487_v37 = vld [vmem:[#allocation3 + $0x68] sm:$0xf0]  ;;  %v4296_v42 = vunpack.c.l.b16 %v4282_v12  ;;  %v4297_v19 = vunpack.c.l.b16 %v4284_v52 }
 0x203   :  { %v4267_v29 = vld [vmem:[#allocation2 + $0x30] sm:$0xf]  ;;  %v9486_v63 = vor.u32 %v11412_v10, %v9485_v31  ;;  %v9490_v6 = vor.u32 %v11408_v54, %v9487_v37  ;;  %v1180_v24 = vadd.f32 %v1052_v61, %v662_v14  ;;  %v1181_v30 = vadd.f32 %v1053_v27, %v663_v48 }
 0x204   :  { %v3109_v46 = vadd.f32 %v13125_v32, %v2976_v33  ;;  %v3110_v58 = vadd.f32 %v13127_v22, %v2977_v38  ;;  %v1338_v1 = vpop.permute.xlu1 %1337  ;;  %4287 = vst [vmem:[#allocation1] ss:$4 sm:$0xff] %v4267_v29  ;;  %v4302_v40 = vpack.c.b16 %v4297_v19, %v4296_v42  ;;  %v4312_v15 = vld [vmem:[#allocation2 + $0x30] sm:$0xf]  ;;  %v1054_v42 = vmul.f32 %v13086_v49, %v13569_v20  ;;  %v12178_v29 = vld [vmem:[%s15365_s0 + $0x5c] sm:$0xf] }
 0x205   :  { %6182 = vmatmul.bf16.gmra.mxu2 %v9486_v63  ;;  %6240 = vmatmul.bf16.gmra.mxu3 %v9490_v6  ;;  %v1826_v23 = vmul.f32 %v1338_v1, %v13081_v18  ;;  %v1827_v51 = vmul.f32 %v1338_v1, %v13083_v55  ;;  %v1570_v5 = vmul.f32 %v13105_v2, %v1338_v1 }
 0x206   :  { %vm3237_vm12 = vcmp.gt.f32.partialorder %v3109_v46, 0.0  ;;  %vm3238_vm13 = vcmp.gt.f32.partialorder %v3110_v58, 0.0  ;;  %v3365_v53 = vmul.f32 0.01, %v3109_v46  ;;  %v3366_v47 = vmul.f32 0.01, %v3110_v58 }
 0x207   :  { %11993 = vset.pattern.permute.xlu1 %v15460_v8  ;;  %4310 = vst [vmem:[#allocation3 + $0x70] sm:$0x33] %v4302_v40  ;;  %v1571_v21 = vmul.f32 %v13107_v16, %v1338_v1  ;;  %v2338_v52 = vadd.f32 %v2210_v25, %v1826_v23  ;;  %v1698_v31 = vadd.f32 %v1570_v5, %v1180_v24 }
 0x208   :  { %v3493_v11 = vsel %vm3237_vm12, %v3109_v46, %v3365_v53  ;;  %v3494_v56 = vsel %vm3238_vm13, %v3110_v58, %v3366_v47  ;;  %1369 = vperm.xlu1 %11993, %v12175_v28   ;;  %11994 = vset.pattern.permute.xlu2 %v15468_v7  ;;  %v1055_v19 = vmul.f32 %v13088_v9, %v13569_v20  ;;  %v15482_v46 = vld [vmem:[#allocation32_spill] sm:$0xff] }
 0x209   :  { %v3608_v43 = vpack.c.bf16 %v3494_v56, %v3493_v11  ;;  %12081 = vset.pattern.permute.xlu0 %v15460_v8  ;;  %2015 = vperm.xlu2 %11994, %v12175_v28   ;;  %v13621_v34 = vpop.permute.xlu2 %1345  ;;  %v2339_v28 = vadd.f32 %v2211_v62, %v1827_v51  ;;  %v1699_v10 = vadd.f32 %v1571_v21, %v1181_v30 }
 0x20a   :  { %1461 = vperm.xlu0 %12081, %v12177_v26   ;;  %v664_v58 = vmul.f32 %v13081_v18, %v15482_v46  ;;  %v665_v6 = vmul.f32 %v13083_v55, %v15482_v46  ;;  %v1573_v20 = vmul.f32 %v13107_v16, %v13439_v36  ;;  %v1828_v53 = vmul.f32 %v13439_v36, %v13081_v18 }
 0x20b   :  { %v3736_v45 = vrot.slane %v3608_v43, 2  ;;  %v4288_v39 = vld.sshfl [vmem:[#allocation1] sm:$0xff pattern:$0x73625140]  ;;  %v1829_v47 = vmul.f32 %v13439_v36, %v13083_v55  ;;  %v2724_v36 = vmul.f32 %v13597_v35, %v13105_v2 }
 0x20c   :  { %v4290_v17 = vld.sshfl [vmem:[#allocation1 + $0x8] sm:$0xff pattern:$0x73625140]  ;;  %v4298_v57 = vunpack.c.l.b16 %v4288_v39  ;;  %v1182_v27 = vadd.f32 %v1054_v42, %v664_v58  ;;  %v1183_v25 = vadd.f32 %v1055_v19, %v665_v6  ;;  %v2215_v6 = vmul.f32 %v13499_v50, %v13088_v9 }
 0x20d   :  { %4320 = vst [vmem:[#allocation1] ss:$4 sm:$0xff] %v4312_v15  ;;  %v3829_v44 = vsel %vm3787_vm0, %v3608_v43, %v3736_v45  ;;  %v2496_v0 = vpop.permute.xlu1 %2495  ;;  %v4299_v12 = vunpack.c.l.b16 %v4290_v17  ;;  %v2725_v15 = vmul.f32 %v13597_v35, %v13107_v16 }
 0x20e   :  { %4057 = vst [vmem:[#allocation2 + $0x34] sm:$0xf] %v3829_v44  ;;  %v2722_v33 = vmul.f32 %v2496_v0, %v13105_v2  ;;  %v2723_v38 = vmul.f32 %v2496_v0, %v13107_v16  ;;  %v1700_v0 = vadd.f32 %v1572_v13, %v1182_v27  ;;  %v15483_v27 = vld [vmem:[#allocation31_spill] sm:$0xff] }
 0x20f   :  { %v4303_v59 = vpack.c.b16 %v4299_v12, %v4298_v57  ;;  %v1701_v57 = vadd.f32 %v1573_v20, %v1183_v25  ;;  %v1830_v20 = vmul.f32 %v13621_v34, %v13081_v18  ;;  %v666_v25 = vmul.f32 %v13081_v18, %v15483_v27 }
 0x210   :  { %v2850_v54 = vadd.f32 %v2722_v33, %v2338_v52  ;;  %v2851_v37 = vadd.f32 %v2723_v38, %v2339_v28  ;;  %11996 = vset.pattern.permute.xlu1 %v15464_v60 }
 0x211   :  { %855 = vperm.xlu1 %11996, %v12178_v29   ;;  %4311 = vst [vmem:[#allocation3 + $0x78] sm:$0x33] %v4303_v59  ;;  %11997 = vset.pattern.permute.xlu2 %v15460_v8 }
 0x212   :  { %v2978_v1 = vmax.f32 %v1698_v31, %v2850_v54  ;;  %v2979_v63 = vmax.f32 %v1699_v10, %v2851_v37  ;;  %12086 = vset.pattern.permute.xlu0 %v15468_v7  ;;  %1373 = vperm.xlu2 %11997, %v12178_v29   ;;  %v13660_v14 = vpop.permute.xlu2 %831  ;;  %v12180_v10 = vld [vmem:[%s15365_s0 + $0xbc] sm:$0xf] }
 0x213   :  { %2111 = vperm.xlu0 %12086, %v12179_v3  }
 0x214   :  { %v4321_v61 = vld.sshfl [vmem:[#allocation1] sm:$0xff pattern:$0x73625140]  ;;  %v4323_v11 = vld.sshfl [vmem:[#allocation1 + $0x8] sm:$0xff pattern:$0x73625140]  ;;  %v3111_v56 = vadd.f32 %v13125_v32, %v2978_v1  ;;  %v3112_v40 = vadd.f32 %v13127_v22, %v2979_v63  ;;  %v2214_v63 = vmul.f32 %v13499_v50, %v13086_v49 }
 0x215   :  { %v4314_v43 = vld [vmem:[#allocation2 + $0x34] sm:$0xf]  ;;  %v4343_v62 = vunpack.c.l.b16 %v4321_v61  ;;  %v4344_v23 = vunpack.c.l.b16 %v4323_v11  ;;  %v12181_v11 = vld [vmem:[%s15365_s0 + $0x60] sm:$0xf] }
 0x216   :  { %4326 = vst [vmem:[#allocation1] ss:$4 sm:$0xff] %v4314_v43  ;;  %vm3239_vm14 = vcmp.gt.f32.partialorder %v3111_v56, 0.0  ;;  %vm3240_vm15 = vcmp.gt.f32.partialorder %v3112_v40, 0.0  ;;  %v3367_v51 = vmul.f32 0.01, %v3111_v56  ;;  %v1988_v48 = vpop.permute.xlu1 %1987  ;;  %v667_v43 = vmul.f32 %v13083_v55, %v15483_v27 }
 0x217   :  { %v3368_v45 = vmul.f32 0.01, %v3112_v40  ;;  %v2212_v26 = vmul.f32 %v1988_v48, %v13086_v49  ;;  %v2213_v24 = vmul.f32 %v1988_v48, %v13088_v9  ;;  %v4351_v17 = vpack.c.b16 %v4344_v23, %v4343_v62 }
 0x218   :  { %v3495_v39 = vsel %vm3239_vm14, %v3111_v56, %v3367_v51  ;;  %v1574_v51 = vmul.f32 %v13105_v2, %v13621_v34  ;;  %v1575_v48 = vmul.f32 %v13107_v16, %v13621_v34 }
 0x219   :  { %v3496_v5 = vsel %vm3240_vm15, %v3112_v40, %v3368_v45  ;;  %v2340_v21 = vadd.f32 %v2212_v26, %v1828_v53  ;;  %v2341_v30 = vadd.f32 %v2213_v24, %v1829_v47  ;;  %11998 = vset.pattern.permute.xlu1 %v15468_v7  ;;  %4359 = vst [vmem:[#allocation3 + $0x80] sm:$0x33] %v4351_v17 }
 0x21a   :  { %v3609_v44 = vpack.c.bf16 %v3496_v5, %v3495_v39  ;;  %2019 = vperm.xlu1 %11998, %v12178_v29   ;;  %11999 = vset.pattern.permute.xlu2 %v15475_v41  ;;  %v1831_v53 = vmul.f32 %v13621_v34, %v13083_v55 }
 0x21b   :  { %v2852_v12 = vadd.f32 %v2724_v36, %v2340_v21  ;;  %v2853_v52 = vadd.f32 %v2725_v15, %v2341_v30  ;;  %12091 = vset.pattern.permute.xlu0 %v15475_v41  ;;  %2531 = vperm.xlu2 %11999, %v12178_v29   ;;  %v13671_v28 = vpop.permute.xlu2 %1995  ;;  %v12182_v36 = vld [vmem:[%s15365_s0 + $0xc4] sm:$0xf]  ;;  %v2342_v15 = vadd.f32 %v2214_v63, %v1830_v20 }
 0x21c   :  { %v3737_v35 = vrot.slane %v3609_v44, 2  ;;  %2627 = vperm.xlu0 %12091, %v12180_v10   ;;  %v2343_v39 = vadd.f32 %v2215_v6, %v1831_v53  ;;  %v2216_v20 = vmul.f32 %v13671_v28, %v13086_v49  ;;  %v2217_v53 = vmul.f32 %v13671_v28, %v13088_v9 }
 0x21d   :  { %v4327_v33 = vld.sshfl [vmem:[#allocation1] sm:$0xff pattern:$0x73625140]  ;;  %v4329_v38 = vld.sshfl [vmem:[#allocation1 + $0x8] sm:$0xff pattern:$0x73625140]  ;;  %v2980_v59 = vmax.f32 %v1700_v0, %v2852_v12  ;;  %v2981_v31 = vmax.f32 %v1701_v57, %v2853_v52 }
 0x21e   :  { %v3832_v54 = vsel %vm3787_vm0, %v3609_v44, %v3737_v35  ;;  %v4345_v37 = vunpack.c.l.b16 %v4327_v33  ;;  %v4346_v42 = vunpack.c.l.b16 %v4329_v38 }
 0x21f   :  { %4058 = vst [vmem:[#allocation2 + $0x38] sm:$0xf] %v3832_v54  ;;  %v3113_v19 = vadd.f32 %v13125_v32, %v2980_v59  ;;  %v3114_v29 = vadd.f32 %v13127_v22, %v2981_v31  ;;  %v828_v46 = vpop.permute.xlu1 %827  ;;  %v12183_v59 = vld [vmem:[%s15365_s0 + $0x64] sm:$0xf]  ;;  %v15484_v31 = vld [vmem:[#allocation26_spill] sm:$0xff] }
 0x220   :  { %v4352_v13 = vpack.c.b16 %v4346_v42, %v4345_v37  ;;  %v1056_v40 = vmul.f32 %v13086_v49, %v828_v46  ;;  %v1057_v50 = vmul.f32 %v13088_v9, %v828_v46  ;;  %v668_v10 = vmul.f32 %v13081_v18, %v15484_v31 }
 0x221   :  { %vm3241_vm1 = vcmp.gt.f32.partialorder %v3113_v19, 0.0  ;;  %vm3242_vm2 = vcmp.gt.f32.partialorder %v3114_v29, 0.0  ;;  %v3369_v58 = vmul.f32 0.01, %v3113_v19  ;;  %v3370_v1 = vmul.f32 0.01, %v3114_v29 }
 0x222   :  { %12001 = vset.pattern.permute.xlu1 %v15460_v8  ;;  %4360 = vst [vmem:[#allocation3 + $0x88] sm:$0x33] %v4352_v13  ;;  %v1184_v26 = vadd.f32 %v1056_v40, %v666_v25  ;;  %v1185_v24 = vadd.f32 %v1057_v50, %v667_v43  ;;  %v669_v54 = vmul.f32 %v13083_v55, %v15484_v31 }
 0x223   :  { %v3497_v47 = vsel %vm3241_vm1, %v3113_v19, %v3369_v58  ;;  %v3498_v61 = vsel %vm3242_vm2, %v3114_v29, %v3370_v1  ;;  %1377 = vperm.xlu1 %12001, %v12181_v11   ;;  %12002 = vset.pattern.permute.xlu2 %v15468_v7  ;;  %v2728_v37 = vmul.f32 %v13586_v4, %v13105_v2  ;;  %v12184_v19 = vld [vmem:[%s15365_s0 + $0xc8] sm:$0xf] }
 0x224   :  { %v3610_v56 = vpack.c.bf16 %v3498_v61, %v3497_v47  ;;  %12096 = vset.pattern.permute.xlu0 %v15464_v60  ;;  %2023 = vperm.xlu2 %12002, %v12181_v11   ;;  %v13695_v3 = vpop.permute.xlu2 %1353  ;;  %v1702_v30 = vadd.f32 %v1574_v51, %v1184_v26  ;;  %v1703_v44 = vadd.f32 %v1575_v48, %v1185_v24 }
 0x225   :  { %959 = vperm.xlu0 %12096, %v12182_v36   ;;  %v1058_v46 = vmul.f32 %v13086_v49, %v13660_v14  ;;  %v1059_v13 = vmul.f32 %v13088_v9, %v13660_v14  ;;  %v2729_v40 = vmul.f32 %v13586_v4, %v13107_v16 }
 0x226   :  { %v4316_v62 = vld [vmem:[#allocation2 + $0x38] sm:$0xf]  ;;  %v3738_v23 = vrot.slane %v3610_v56, 2 }
 0x227   :  { %4332 = vst [vmem:[#allocation1] ss:$4 sm:$0xff] %v4316_v62  ;;  %v1187_v48 = vadd.f32 %v1059_v13, %v669_v54 }
 0x228   :  { %v3835_v45 = vsel %vm3787_vm0, %v3610_v56, %v3738_v23  ;;  %v1186_v23 = vadd.f32 %v1058_v46, %v668_v10 }
 0x229   :  { %4059 = vst [vmem:[#allocation2 + $0x3c] sm:$0xf] %v3835_v45  ;;  %v2504_v17 = vpop.permute.xlu1 %2503 }
 0x22a   :  { %v2726_v5 = vmul.f32 %v2504_v17, %v13105_v2  ;;  %v2727_v21 = vmul.f32 %v2504_v17, %v13107_v16 }
 0x22b   :  { %12003 = vset.pattern.permute.xlu1 %v15475_v41 }
 0x22c   :  { %v2854_v0 = vadd.f32 %v2726_v5, %v2342_v15  ;;  %v2855_v57 = vadd.f32 %v2727_v21, %v2343_v39  ;;  %2535 = vperm.xlu1 %12003, %v12181_v11   ;;  %12004 = vset.pattern.permute.xlu2 %v15464_v60 }
 0x22d   :  { %v6062_v52 = vpop.f32.mrf.mxu0  ;;  %12101 = vset.pattern.permute.xlu0 %v15460_v8  ;;  %863 = vperm.xlu2 %12004, %v12183_v59   ;;  %v13726_v29 = vpop.permute.xlu2 %2511 }
 0x22e   :  { %v4333_v34 = vld.sshfl [vmem:[#allocation1] sm:$0xff pattern:$0x73625140]  ;;  %v4335_v12 = vld.sshfl [vmem:[#allocation1 + $0x8] sm:$0xff pattern:$0x73625140]  ;;  %v6120_v35 = vpop.f32.mrf.mxu1  ;;  %v2982_v33 = vmax.f32 %v1702_v30, %v2854_v0  ;;  %v2983_v38 = vmax.f32 %v1703_v44, %v2855_v57  ;;  %1481 = vperm.xlu0 %12101, %v12184_v19  }
 0x22f   :  { %v6121_v42 = vadd.f32 %v6120_v35, %v6062_v52  ;;  %v4347_v6 = vunpack.c.l.b16 %v4333_v34  ;;  %v4348_v47 = vunpack.c.l.b16 %v4335_v12  ;;  %v12185_v44 = vld [vmem:[%s15365_s0 + $0xcc] sm:$0xf] }
 0x230   :  { %v4318_v58 = vld [vmem:[#allocation2 + $0x3c] sm:$0xf]  ;;  %v3115_v1 = vadd.f32 %v13125_v32, %v2982_v33  ;;  %v3116_v63 = vadd.f32 %v13127_v22, %v2983_v38 }
 0x231   :  { %4338 = vst [vmem:[#allocation1] ss:$4 sm:$0xff] %v4318_v58  ;;  %v4353_v28 = vpack.c.b16 %v4348_v47, %v4347_v6  ;;  %v4363_v4 = vld [vmem:[#allocation2 + $0x3c] sm:$0xf]  ;;  %v12186_v58 = vld [vmem:[%s15365_s0 + $0x68] sm:$0xf] }
 0x232   :  { %vm3243_vm3 = vcmp.gt.f32.partialorder %v3115_v1, 0.0  ;;  %vm3244_vm4 = vcmp.gt.f32.partialorder %v3116_v63, 0.0  ;;  %v3371_v61 = vmul.f32 0.01, %v3115_v1  ;;  %v3372_v11 = vmul.f32 0.01, %v3116_v63  ;;  %v1350_v56 = vpop.permute.xlu1 %1349 }
 0x233   :  { %v1576_v50 = vmul.f32 %v13105_v2, %v1350_v56  ;;  %v1832_v14 = vmul.f32 %v1350_v56, %v13081_v18  ;;  %v1833_v27 = vmul.f32 %v1350_v56, %v13083_v55  ;;  %v1577_v62 = vmul.f32 %v13107_v16, %v1350_v56  ;;  %4361 = vst [vmem:[#allocation3 + $0x90] sm:$0x33] %v4353_v28  ;;  %v12187_v47 = vld [vmem:[%s15365_s0 + $0xd0] sm:$0xf] }
 0x234   :  { %v3499_v25 = vsel %vm3243_vm3, %v3115_v1, %v3371_v61  ;;  %v3500_v43 = vsel %vm3244_vm4, %v3116_v63, %v3372_v11  ;;  %12006 = vset.pattern.permute.xlu1 %v15468_v7 }
 0x235   :  { %v3611_v36 = vpack.c.bf16 %v3500_v43, %v3499_v25  ;;  %v2344_v51 = vadd.f32 %v2216_v20, %v1832_v14  ;;  %2027 = vperm.xlu1 %12006, %v12183_v59   ;;  %v2345_v15 = vadd.f32 %v2217_v53, %v1833_v27  ;;  %12007 = vset.pattern.permute.xlu2 %v15475_v41 }
 0x236   :  { %v1704_v26 = vadd.f32 %v1576_v50, %v1186_v23  ;;  %12106 = vset.pattern.permute.xlu0 %v15468_v7  ;;  %2539 = vperm.xlu2 %12007, %v12183_v59   ;;  %v13747_v39 = vpop.permute.xlu2 %2003  ;;  %v1705_v21 = vadd.f32 %v1577_v62, %v1187_v48  ;;  %v15485_v50 = vld [vmem:[#allocation35_spill] sm:$0xff]  ;;  %v1578_v25 = vmul.f32 %v13105_v2, %v13695_v3 }
 0x237   :  { %v3739_v45 = vrot.slane %v3611_v36, 2  ;;  %v2856_v24 = vadd.f32 %v2728_v37, %v2344_v51  ;;  %v2857_v30 = vadd.f32 %v2729_v40, %v2345_v15  ;;  %2131 = vperm.xlu0 %12106, %v12185_v44   ;;  %v670_v14 = vmul.f32 %v13081_v18, %v15485_v50 }
 0x238   :  { %v4339_v17 = vld.sshfl [vmem:[#allocation1] sm:$0xff pattern:$0x73625140]  ;;  %v4341_v5 = vld.sshfl [vmem:[#allocation1 + $0x8] sm:$0xff pattern:$0x73625140]  ;;  %v671_v27 = vmul.f32 %v13083_v55, %v15485_v50  ;;  %v1579_v62 = vmul.f32 %v13107_v16, %v13695_v3  ;;  %v1834_v23 = vmul.f32 %v13695_v3, %v13081_v18  ;;  %v2730_v48 = vmul.f32 %v13726_v29, %v13105_v2 }
 0x239   :  { %4371 = vst [vmem:[#allocation1] ss:$4 sm:$0xff] %v4363_v4  ;;  %v3838_v0 = vsel %vm3787_vm0, %v3611_v36, %v3739_v45  ;;  %v2984_v57 = vmax.f32 %v1704_v26, %v2856_v24  ;;  %v6178_v34 = vpop.f32.mrf.mxu2  ;;  %v4349_v12 = vunpack.c.l.b16 %v4339_v17  ;;  %v4350_v52 = vunpack.c.l.b16 %v4341_v5  ;;  %v6236_v59 = vpop.f32.mrf.mxu3 }
 0x23a   :  { %4060 = vst [vmem:[#allocation2 + $0x40] sm:$0xf] %v3838_v0  ;;  %v2985_v35 = vmax.f32 %v1705_v21, %v2857_v30  ;;  %v6179_v33 = vadd.f32 %v6178_v34, %v6121_v42  ;;  %v1835_v36 = vmul.f32 %v13695_v3, %v13083_v55  ;;  %v2731_v26 = vmul.f32 %v13726_v29, %v13107_v16  ;;  %v12188_v29 = vld [vmem:[%s15365_s0 + $0x6c] sm:$0xf] }
 0x23b   :  { %v3117_v38 = vadd.f32 %v13125_v32, %v2984_v57  ;;  %v836_v31 = vpop.permute.xlu1 %835  ;;  %v4354_v10 = vpack.c.b16 %v4350_v52, %v4349_v12  ;;  %v12189_v52 = vld [vmem:[%s15365_s0 + $0xd8] sm:$0xf] }
 0x23c   :  { %v3118_v54 = vadd.f32 %v13127_v22, %v2985_v35  ;;  %v13755_v37 = vadd.f32 %v6236_v59, %v6179_v33  ;;  %v1060_v53 = vmul.f32 %v13086_v49, %v836_v31  ;;  %v1061_v56 = vmul.f32 %v13088_v9, %v836_v31  ;;  %v840_v59 = vpop.permute.xlu0 %839 }
 0x23d   :  { %vm3245_vm5 = vcmp.gt.f32.partialorder %v3117_v38, 0.0  ;;  %v3373_v19 = vmul.f32 0.01, %v3117_v38  ;;  %12008 = vset.pattern.permute.xlu1 %v15464_v60  ;;  %4362 = vst [vmem:[#allocation3 + $0x98] sm:$0x33] %v4354_v10 }
 0x23e   :  { %vm3246_vm6 = vcmp.gt.f32.partialorder %v3118_v54, 0.0  ;;  %v3374_v46 = vmul.f32 0.01, %v3118_v54  ;;  %867 = vperm.xlu1 %12008, %v12186_v58   ;;  %12009 = vset.pattern.permute.xlu2 %v15460_v8  ;;  %v1188_v4 = vadd.f32 %v1060_v53, %v670_v14  ;;  %v1189_v24 = vadd.f32 %v1061_v56, %v671_v27 }
 0x23f   :  { %v3501_v42 = vsel %vm3245_vm5, %v3117_v38, %v3373_v19  ;;  %12111 = vset.pattern.permute.xlu0 %v15475_v41  ;;  %1385 = vperm.xlu2 %12009, %v12186_v58   ;;  %v13767_v61 = vpop.permute.xlu2 %843  ;;  %v2221_v27 = vmul.f32 %v13747_v39, %v13088_v9 }
 0x240   :  { %v4372_v1 = vld.sshfl [vmem:[#allocation1] sm:$0xff pattern:$0x73625140]  ;;  %v4374_v63 = vld.sshfl [vmem:[#allocation1 + $0x8] sm:$0xff pattern:$0x73625140]  ;;  %v3502_v6 = vsel %vm3246_vm6, %v3118_v54, %v3374_v46  ;;  %2647 = vperm.xlu0 %12111, %v12187_v47   ;;  %v1706_v44 = vadd.f32 %v1578_v25, %v1188_v4  ;;  %v1707_v34 = vadd.f32 %v1579_v62, %v1189_v24  ;;  %v1063_v47 = vmul.f32 %v13088_v9, %v840_v59 }
 0x241   :  { %v4365_v13 = vld [vmem:[#allocation2 + $0x40] sm:$0xf]  ;;  %v3612_v20 = vpack.c.bf16 %v3502_v6, %v3501_v42  ;;  %v4394_v11 = vunpack.c.l.b16 %v4372_v1  ;;  %v4395_v40 = vunpack.c.l.b16 %v4374_v63  ;;  %v12190_v4 = vld [vmem:[%s15365_s0 + $0xdc] sm:$0xf] }
 0x242   :  { %4377 = vst [vmem:[#allocation1] ss:$4 sm:$0xff] %v4365_v13  ;;  %v9509_v46 = vld [vmem:[#allocation3 + $0x80] sm:$0xf]  ;;  %v1062_v13 = vmul.f32 %v13086_v49, %v840_v59 }
 0x243   :  { %v3740_v43 = vrot.slane %v3612_v20, 2  ;;  %v4402_v51 = vpack.c.b16 %v4395_v40, %v4394_v11  ;;  %v2220_v40 = vmul.f32 %v13747_v39, %v13086_v49  ;;  %v11416_v39 = vld [vmem:[#allocation3 + $0x8c] sm:$0xf] }
 0x244   :  { %v2000_v28 = vpop.permute.xlu1 %1999 }
 0x245   :  { %v3841_v15 = vsel %vm3787_vm0, %v3612_v20, %v3740_v43  ;;  %v2218_v45 = vmul.f32 %v2000_v28, %v13086_v49  ;;  %v2219_v17 = vmul.f32 %v2000_v28, %v13088_v9  ;;  %4410 = vst [vmem:[#allocation3 + $0xa0] sm:$0x33] %v4402_v51  ;;  %v15486_v28 = vld [vmem:[#allocation34_spill] sm:$0xff] }
 0x246   :  { %4061 = vst [vmem:[#allocation2 + $0x44] sm:$0xf] %v3841_v15  ;;  %12010 = vset.pattern.permute.xlu1 %v15475_v41  ;;  %v9517_v15 = vld [vmem:[#allocation3 + $0x88] sm:$0xf] }
 0x247   :  { %v2346_v5 = vadd.f32 %v2218_v45, %v1834_v23  ;;  %2543 = vperm.xlu1 %12010, %v12186_v58   ;;  %v2347_v3 = vadd.f32 %v2219_v17, %v1835_v36  ;;  %12011 = vset.pattern.permute.xlu2 %v15464_v60  ;;  %v11415_v58 = vld [vmem:[#allocation3 + $0x84] sm:$0xf]  ;;  %v672_v23 = vmul.f32 %v13081_v18, %v15486_v28 }
 0x248   :  { %12116 = vset.pattern.permute.xlu0 %v15464_v60  ;;  %871 = vperm.xlu2 %12011, %v12188_v29   ;;  %v13795_v57 = vpop.permute.xlu2 %2519  ;;  %v673_v36 = vmul.f32 %v13083_v55, %v15486_v28 }
 0x249   :  { %v4378_v21 = vld.sshfl [vmem:[#allocation1] sm:$0xff pattern:$0x73625140]  ;;  %v4380_v30 = vld.sshfl [vmem:[#allocation1 + $0x8] sm:$0xff pattern:$0x73625140]  ;;  %v2858_v0 = vadd.f32 %v2730_v48, %v2346_v5  ;;  %v2859_v12 = vadd.f32 %v2731_v26, %v2347_v3  ;;  %979 = vperm.xlu0 %12116, %v12189_v52   ;;  %v1190_v45 = vadd.f32 %v1062_v13, %v672_v23 }
 0x24a   :  { %v4396_v35 = vunpack.c.l.b16 %v4378_v21  ;;  %v4397_v38 = vunpack.c.l.b16 %v4380_v30  ;;  %v1191_v26 = vadd.f32 %v1063_v47, %v673_v36  ;;  %v15487_v13 = vld [vmem:[#allocation27_spill] sm:$0xff]  ;;  %v1362_v47 = vpop.permute.xlu0 %1361 }
 0x24b   :  { %v2986_v33 = vmax.f32 %v1706_v44, %v2858_v0  ;;  %v2987_v31 = vmax.f32 %v1707_v34, %v2859_v12 }
 0x24c   :  { %v4403_v42 = vpack.c.b16 %v4397_v38, %v4396_v35  ;;  %v11419_v63 = vld [vmem:[#allocation3 + $0x9c] sm:$0xf0]  ;;  %v9511_v6 = vld [vmem:[#allocation3 + $0xa0] sm:$0xf0] }
 0x24d   :  { %v4367_v10 = vld [vmem:[#allocation2 + $0x44] sm:$0xf]  ;;  %v3119_v54 = vadd.f32 %v13125_v32, %v2986_v33  ;;  %v1358_v19 = vpop.permute.xlu1 %1357  ;;  %v3120_v1 = vadd.f32 %v13127_v22, %v2987_v31  ;;  %v9510_v53 = vor.u32 %v11419_v63, %v9509_v46  ;;  %v9514_v56 = vor.u32 %v11415_v58, %v9511_v6 }
 0x24e   :  { %4383 = vst [vmem:[#allocation1] ss:$4 sm:$0xff] %v4367_v10  ;;  %v1836_v14 = vmul.f32 %v1358_v19, %v13081_v18  ;;  %v1837_v43 = vmul.f32 %v1358_v19, %v13083_v55  ;;  %v1580_v48 = vmul.f32 %v13105_v2, %v1358_v19  ;;  %v1581_v5 = vmul.f32 %v13107_v16, %v1358_v19 }
 0x24f   :  { %vm3247_vm7 = vcmp.gt.f32.partialorder %v3119_v54, 0.0  ;;  %v3375_v20 = vmul.f32 0.01, %v3119_v54  ;;  %12012 = vset.pattern.permute.xlu1 %v15460_v8  ;;  %4411 = vst [vmem:[#allocation3 + $0xa8] sm:$0x33] %v4403_v42  ;;  %vm3248_vm8 = vcmp.gt.f32.partialorder %v3120_v1, 0.0  ;;  %6071 = vmatmul.bf16.gmra.mxu0 %v9510_v53  ;;  %v1064_v58 = vmul.f32 %v13086_v49, %v13767_v61 }
 0x250   :  { %v3376_v11 = vmul.f32 0.01, %v3120_v1  ;;  %1389 = vperm.xlu1 %12012, %v12188_v29   ;;  %12013 = vset.pattern.permute.xlu2 %v15468_v7  ;;  %v2348_v3 = vadd.f32 %v2220_v40, %v1836_v14  ;;  %v2349_v44 = vadd.f32 %v2221_v27, %v1837_v43  ;;  %v1708_v31 = vadd.f32 %v1580_v48, %v1190_v45  ;;  %v12192_v14 = vld [vmem:[%s15365_s0 + $0xe0] sm:$0xf] }
 0x251   :  { %v3503_v50 = vsel %vm3247_vm7, %v3119_v54, %v3375_v20  ;;  %6129 = vmatmul.bf16.gmra.mxu1 %v9514_v56  ;;  %2035 = vperm.xlu2 %12013, %v12188_v29   ;;  %v13812_v62 = vpop.permute.xlu2 %1365  ;;  %v1709_v54 = vadd.f32 %v1581_v5, %v1191_v26  ;;  %v1065_v42 = vmul.f32 %v13088_v9, %v13767_v61 }
 0x252   :  { %v3504_v25 = vsel %vm3248_vm8, %v3120_v1, %v3376_v11  ;;  %12121 = vset.pattern.permute.xlu0 %v15460_v8  ;;  %v12191_v1 = vld [vmem:[%s15365_s0 + $0x70] sm:$0xf]  ;;  %v674_v20 = vmul.f32 %v13081_v18, %v15487_v13  ;;  %v675_v53 = vmul.f32 %v13083_v55, %v15487_v13  ;;  %v1582_v61 = vmul.f32 %v13105_v2, %v1362_v47 }
 0x253   :  { %v3613_v51 = vpack.c.bf16 %v3504_v25, %v3503_v50  ;;  %1501 = vperm.xlu0 %12121, %v12190_v4   ;;  %v1583_v56 = vmul.f32 %v13107_v16, %v1362_v47  ;;  %v1838_v27 = vmul.f32 %v1362_v47, %v13081_v18  ;;  %v1839_v25 = vmul.f32 %v1362_v47, %v13083_v55 }
 0x254   :  { %v1192_v43 = vadd.f32 %v1064_v58, %v674_v20  ;;  %v1193_v28 = vadd.f32 %v1065_v42, %v675_v53  ;;  %v1840_v13 = vmul.f32 %v13812_v62, %v13081_v18  ;;  %v1841_v47 = vmul.f32 %v13812_v62, %v13083_v55 }
 0x255   :  { %v4384_v24 = vld.sshfl [vmem:[#allocation1] sm:$0xff pattern:$0x73625140]  ;;  %v4386_v17 = vld.sshfl [vmem:[#allocation1 + $0x8] sm:$0xff pattern:$0x73625140] }
 0x256   :  { %v3741_v21 = vrot.slane %v3613_v51, 2  ;;  %v2516_v30 = vpop.permute.xlu1 %2515  ;;  %v11420_v0 = vld [vmem:[#allocation3 + $0xa4] sm:$0xf0]  ;;  %v9519_v29 = vld [vmem:[#allocation3 + $0xa8] sm:$0xf0]  ;;  %v4398_v34 = vunpack.c.l.b16 %v4384_v24  ;;  %v4399_v12 = vunpack.c.l.b16 %v4386_v17 }
 0x257   :  { %v2732_v52 = vmul.f32 %v2516_v30, %v13105_v2  ;;  %v2733_v35 = vmul.f32 %v2516_v30, %v13107_v16  ;;  %v9518_v33 = vor.u32 %v11420_v0, %v9517_v15  ;;  %v9522_v38 = vor.u32 %v11416_v39, %v9519_v29 }
 0x258   :  { %v3844_v59 = vsel %vm3787_vm0, %v3613_v51, %v3741_v21  ;;  %12014 = vset.pattern.permute.xlu1 %v15464_v60  ;;  %v4404_v10 = vpack.c.b16 %v4399_v12, %v4398_v34  ;;  %v2734_v15 = vmul.f32 %v13795_v57, %v13105_v2  ;;  %v2735_v39 = vmul.f32 %v13795_v57, %v13107_v16 }
 0x259   :  { %4062 = vst [vmem:[#allocation2 + $0x48] sm:$0xf] %v3844_v59  ;;  %v2860_v19 = vadd.f32 %v2732_v52, %v2348_v3  ;;  %v2861_v46 = vadd.f32 %v2733_v35, %v2349_v44  ;;  %6187 = vmatmul.bf16.gmra.mxu2 %v9518_v33  ;;  %6245 = vmatmul.bf16.gmra.mxu3 %v9522_v38  ;;  %v12193_v35 = vld [vmem:[%s15365_s0 + $0xe4] sm:$0xf]  ;;  %v2012_v38 = vpop.permute.xlu0 %2011 }
 0x25a   :  { %875 = vperm.xlu1 %12014, %v12191_v1   ;;  %12015 = vset.pattern.permute.xlu2 %v15460_v8  ;;  %4412 = vst [vmem:[#allocation3 + $0xb0] sm:$0x33] %v4404_v10  ;;  %v13840_v11 = vpop.permute.xlu2 %851  ;;  %v1710_v21 = vadd.f32 %v1582_v61, %v1192_v43  ;;  %v1711_v30 = vadd.f32 %v1583_v56, %v1193_v28 }
 0x25b   :  { %v2988_v63 = vmax.f32 %v1708_v31, %v2860_v19  ;;  %v2989_v6 = vmax.f32 %v1709_v54, %v2861_v46  ;;  %1393 = vperm.xlu2 %12015, %v12191_v1   ;;  %12126 = vset.pattern.permute.xlu0 %v15468_v7  ;;  %v2224_v46 = vmul.f32 %v2012_v38, %v13086_v49 }
 0x25c   :  { %2151 = vperm.xlu0 %12126, %v12192_v14   ;;  %v15488_v14 = vld [vmem:[#allocation38_spill] sm:$0xff] }
 0x25d   :  { %v3121_v40 = vadd.f32 %v13125_v32, %v2988_v63  ;;  %v3122_v50 = vadd.f32 %v13127_v22, %v2989_v6  ;;  %v2225_v6 = vmul.f32 %v2012_v38, %v13088_v9  ;;  %v677_v28 = vmul.f32 %v13083_v55, %v15488_v14 }
 0x25f   :  { %vm3249_vm9 = vcmp.gt.f32.partialorder %v3121_v40, 0.0  ;;  %vm3250_vm10 = vcmp.gt.f32.partialorder %v3122_v50, 0.0  ;;  %v3377_v23 = vmul.f32 0.01, %v3121_v40  ;;  %v3378_v36 = vmul.f32 0.01, %v3122_v50  ;;  %v2008_v51 = vpop.permute.xlu1 %2007 }
 0x260   :  { %v4369_v48 = vld [vmem:[#allocation2 + $0x48] sm:$0xf]  ;;  %v2222_v4 = vmul.f32 %v2008_v51, %v13086_v49  ;;  %v2223_v45 = vmul.f32 %v2008_v51, %v13088_v9  ;;  %v1584_v51 = vmul.f32 %v13105_v2, %v13812_v62 }
 0x261   :  { %4389 = vst [vmem:[#allocation1] ss:$4 sm:$0xff] %v4369_v48  ;;  %v3505_v26 = vsel %vm3249_vm9, %v3121_v40, %v3377_v23  ;;  %v3506_v24 = vsel %vm3250_vm10, %v3122_v50, %v3378_v36  ;;  %v4414_v33 = vld [vmem:[#allocation2 + $0x48] sm:$0xf]  ;;  %v12194_v50 = vld [vmem:[%s15365_s0 + $0x74] sm:$0xf] }
 0x262   :  { %v3614_v17 = vpack.c.bf16 %v3506_v24, %v3505_v26  ;;  %v2350_v5 = vadd.f32 %v2222_v4, %v1838_v27  ;;  %v2351_v3 = vadd.f32 %v2223_v45, %v1839_v25  ;;  %12016 = vset.pattern.permute.xlu1 %v15468_v7  ;;  %v676_v27 = vmul.f32 %v13081_v18, %v15488_v14  ;;  %v12195_v36 = vld [vmem:[#allocation3 + $0xc0] sm:$0xff] }
 0x263   :  { %2039 = vperm.xlu1 %12016, %v12191_v1   ;;  %12017 = vset.pattern.permute.xlu2 %v15475_v41  ;;  %v13860_v29 = vpop.permute.xlu2 %2015  ;;  %v2352_v24 = vadd.f32 %v2224_v46, %v1840_v13  ;;  %v2528_v46 = vpop.permute.xlu0 %2527 }
 0x264   :  { %v3742_v44 = vrot.slane %v3614_v17, 2  ;;  %v2862_v0 = vadd.f32 %v2734_v15, %v2350_v5  ;;  %v2863_v57 = vadd.f32 %v2735_v39, %v2351_v3  ;;  %2551 = vperm.xlu2 %12017, %v12191_v1   ;;  %12131 = vset.pattern.permute.xlu0 %v15475_v41  ;;  %v1585_v39 = vmul.f32 %v13107_v16, %v13812_v62  ;;  %v13897_v62 = vpop.f32.mrf.mxu1 }
 0x265   :  { %2667 = vperm.xlu0 %12131, %v12193_v35  }
 0x266   :  { %v3847_v34 = vsel %vm3787_vm0, %v3614_v17, %v3742_v44  ;;  %v2990_v12 = vmax.f32 %v1710_v21, %v2862_v0  ;;  %v2991_v52 = vmax.f32 %v1711_v30, %v2863_v57  ;;  %v2353_v17 = vadd.f32 %v2225_v6, %v1841_v47  ;;  %v13895_v57 = vpop.f32.mrf.mxu0 }
 0x267   :  { %4063 = vst [vmem:[#allocation2 + $0x4c] sm:$0xf] %v3847_v34  ;;  %v1068_v6 = vmul.f32 %v13086_v49, %v13840_v11 }
 0x268   :  { %v4390_v59 = vld.sshfl [vmem:[#allocation1] sm:$0xff pattern:$0x73625140]  ;;  %v4392_v31 = vld.sshfl [vmem:[#allocation1 + $0x8] sm:$0xff pattern:$0x73625140]  ;;  %v3123_v10 = vadd.f32 %v13125_v32, %v2990_v12  ;;  %v3124_v54 = vadd.f32 %v13127_v22, %v2991_v52  ;;  %v848_v19 = vpop.permute.xlu1 %847 }
 0x269   :  { %4422 = vst [vmem:[#allocation1] ss:$4 sm:$0xff] %v4414_v33  ;;  %v4400_v58 = vunpack.c.l.b16 %v4390_v59  ;;  %v4401_v42 = vunpack.c.l.b16 %v4392_v31  ;;  %v1066_v20 = vmul.f32 %v13086_v49, %v848_v19  ;;  %v1067_v40 = vmul.f32 %v13088_v9, %v848_v19 }
 0x26a   :  { %vm3251_vm11 = vcmp.gt.f32.partialorder %v3123_v10, 0.0  ;;  %vm3252_vm12 = vcmp.gt.f32.partialorder %v3124_v54, 0.0  ;;  %v3379_v1 = vmul.f32 0.01, %v3123_v10  ;;  %v3380_v63 = vmul.f32 0.01, %v3124_v54 }
 0x26b   :  { %12018 = vset.pattern.permute.xlu1 %v15460_v8  ;;  %v4405_v53 = vpack.c.b16 %v4401_v42, %v4400_v58  ;;  %v1194_v15 = vadd.f32 %v1066_v20, %v676_v27  ;;  %v1195_v26 = vadd.f32 %v1067_v40, %v677_v28  ;;  %v12196_v58 = vld [vmem:[%s15365_s0 + $0x78] sm:$0xf]  ;;  %v2738_v42 = vmul.f32 %v2528_v46, %v13105_v2 }
 0x26c   :  { %v3507_v61 = vsel %vm3251_vm11, %v3123_v10, %v3379_v1  ;;  %v3508_v56 = vsel %vm3252_vm12, %v3124_v54, %v3380_v63  ;;  %1397 = vperm.xlu1 %12018, %v12194_v50   ;;  %12019 = vset.pattern.permute.xlu2 %v15468_v7  ;;  %v13884_v43 = vpop.permute.xlu2 %1373  ;;  %v15489_v10 = vld [vmem:[#allocation37_spill] sm:$0xff] }
 0x26d   :  { %v3615_v25 = vpack.c.bf16 %v3508_v56, %v3507_v61  ;;  %4413 = vst [vmem:[#allocation3 + $0xb8] sm:$0x33] %v4405_v53  ;;  %2043 = vperm.xlu2 %12019, %v12194_v50   ;;  %12134 = vset.pattern.permute.xlu0 %v12195_v36  ;;  %v1712_v34 = vadd.f32 %v1584_v51, %v1194_v15 }
 0x26e   :  { %v4416_v23 = vld [vmem:[#allocation2 + $0x4c] sm:$0xf]  ;;  %v1713_v12 = vadd.f32 %v1585_v39, %v1195_v26  ;;  %v678_v54 = vmul.f32 %v13081_v18, %v15489_v10  ;;  %v679_v19 = vmul.f32 %v13083_v55, %v15489_v10  ;;  %v1069_v53 = vmul.f32 %v13088_v9, %v13840_v11 }
 0x26f   :  { %v3743_v48 = vrot.slane %v3615_v25, 2  ;;  %v2226_v61 = vmul.f32 %v13860_v29, %v13086_v49 }
 0x270   :  { %v4423_v4 = vld.sshfl [vmem:[#allocation1] sm:$0xff pattern:$0x73625140]  ;;  %v4425_v45 = vld.sshfl [vmem:[#allocation1 + $0x8] sm:$0xff pattern:$0x73625140] }
 0x271   :  { %4428 = vst [vmem:[#allocation1] ss:$4 sm:$0xff] %v4416_v23  ;;  %v3850_v5 = vsel %vm3787_vm0, %v3615_v25, %v3743_v48  ;;  %v2524_v3 = vpop.permute.xlu1 %2523  ;;  %v4445_v21 = vunpack.c.l.b16 %v4423_v4  ;;  %v4446_v0 = vunpack.c.l.b16 %v4425_v45  ;;  %v2739_v25 = vmul.f32 %v2528_v46, %v13107_v16  ;;  %v13933_v46 = vpop.f32.mrf.mxu3 }
 0x272   :  { %4064 = vst [vmem:[#allocation2 + $0x50] sm:$0xf] %v3850_v5  ;;  %v2736_v30 = vmul.f32 %v2524_v3, %v13105_v2  ;;  %v2737_v44 = vmul.f32 %v2524_v3, %v13107_v16 }
 0x273   :  { %v4453_v33 = vpack.c.b16 %v4446_v0, %v4445_v21 }
 0x274   :  { %v2864_v52 = vadd.f32 %v2736_v30, %v2352_v24  ;;  %v2865_v35 = vadd.f32 %v2737_v44, %v2353_v17  ;;  %12020 = vset.pattern.permute.xlu1 %v15475_v41  ;;  %v1197_v24 = vadd.f32 %v1069_v53, %v679_v19  ;;  %v12197_v53 = vld [vmem:[%s15365_s0 + $0x7c] sm:$0xf] }
 0x275   :  { %2555 = vperm.xlu1 %12020, %v12194_v50   ;;  %12021 = vset.pattern.permute.xlu2 %v15464_v60  ;;  %v13901_v31 = vpop.permute.xlu2 %2531  ;;  %4461 = vst [vmem:[#allocation3 + $0xc0] sm:$0x33] %v4453_v33  ;;  %v2227_v50 = vmul.f32 %v13860_v29, %v13088_v9  ;;  %v1196_v29 = vadd.f32 %v1068_v6, %v678_v54 }
 0x276   :  { %v2992_v38 = vmax.f32 %v1712_v34, %v2864_v52  ;;  %v2993_v59 = vmax.f32 %v1713_v12, %v2865_v35  ;;  %883 = vperm.xlu2 %12021, %v12196_v58   ;;  %v13930_v52 = vpop.f32.mrf.mxu2 }
 0x278   :  { %v4429_v1 = vld.sshfl [vmem:[#allocation1] sm:$0xff pattern:$0x73625140]  ;;  %v4431_v63 = vld.sshfl [vmem:[#allocation1 + $0x8] sm:$0xff pattern:$0x73625140]  ;;  %v3125_v13 = vadd.f32 %v13125_v32, %v2992_v38  ;;  %v3126_v20 = vadd.f32 %v13127_v22, %v2993_v59 }
 0x279   :  { %v4418_v47 = vld [vmem:[#allocation2 + $0x50] sm:$0xf]  ;;  %v4447_v56 = vunpack.c.l.b16 %v4429_v1  ;;  %v4448_v40 = vunpack.c.l.b16 %v4431_v63 }
 0x27a   :  { %4434 = vst [vmem:[#allocation1] ss:$4 sm:$0xff] %v4418_v47  ;;  %vm3253_vm13 = vcmp.gt.f32.partialorder %v3125_v13, 0.0  ;;  %vm3254_vm14 = vcmp.gt.f32.partialorder %v3126_v20, 0.0  ;;  %v3381_v14 = vmul.f32 0.01, %v3125_v13  ;;  %v1370_v27 = vpop.permute.xlu1 %1369  ;;  %v6067_v36 = vpop.f32.mrf.mxu0 }
 0x27b   :  { %v3382_v28 = vmul.f32 0.01, %v3126_v20  ;;  %v1586_v23 = vmul.f32 %v13105_v2, %v1370_v27  ;;  %v1842_v11 = vmul.f32 %v1370_v27, %v13081_v18  ;;  %v1587_v48 = vmul.f32 %v13107_v16, %v1370_v27  ;;  %v6125_v39 = vpop.f32.mrf.mxu1 }
 0x27c   :  { %v3509_v51 = vsel %vm3253_vm13, %v3125_v13, %v3381_v14  ;;  %v1843_v15 = vmul.f32 %v1370_v27, %v13083_v55  ;;  %v4454_v4 = vpack.c.b16 %v4448_v40, %v4447_v56  ;;  %v6126_v3 = vadd.f32 %v6125_v39, %v6067_v36 }
 0x27d   :  { %v3510_v45 = vsel %vm3254_vm14, %v3126_v20, %v3382_v28  ;;  %v2354_v26 = vadd.f32 %v2226_v61, %v1842_v11  ;;  %12023 = vset.pattern.permute.xlu1 %v15468_v7  ;;  %v1714_v21 = vadd.f32 %v1586_v23, %v1196_v29  ;;  %v1715_v0 = vadd.f32 %v1587_v48, %v1197_v24  ;;  %v15490_v28 = vld [vmem:[#allocation28_spill] sm:$0xff] }
 0x27e   :  { %v3616_v17 = vpack.c.bf16 %v3510_v45, %v3509_v51  ;;  %v2355_v5 = vadd.f32 %v2227_v50, %v1843_v15  ;;  %2047 = vperm.xlu1 %12023, %v12196_v58   ;;  %12024 = vset.pattern.permute.xlu2 %v15475_v41  ;;  %4462 = vst [vmem:[#allocation3 + $0xc8] sm:$0x33] %v4454_v4  ;;  %v13928_v12 = vpop.permute.xlu2 %2023 }
 0x27f   :  { %v2866_v30 = vadd.f32 %v2738_v42, %v2354_v26  ;;  %2559 = vperm.xlu2 %12024, %v12196_v58   ;;  %v680_v23 = vmul.f32 %v13081_v18, %v15490_v28  ;;  %v681_v11 = vmul.f32 %v13083_v55, %v15490_v28  ;;  %v1588_v48 = vmul.f32 %v13105_v2, %v13884_v43 }
 0x280   :  { %v3744_v44 = vrot.slane %v3616_v17, 2  ;;  %v2867_v34 = vadd.f32 %v2739_v25, %v2355_v5  ;;  %v1589_v15 = vmul.f32 %v13107_v16, %v13884_v43  ;;  %v1844_v29 = vmul.f32 %v13884_v43, %v13081_v18  ;;  %v860_v5 = vpop.permute.xlu0 %859 }
 0x281   :  { %v4435_v35 = vld.sshfl [vmem:[#allocation1] sm:$0xff pattern:$0x73625140]  ;;  %v4437_v33 = vld.sshfl [vmem:[#allocation1 + $0x8] sm:$0xff pattern:$0x73625140]  ;;  %v2994_v38 = vmax.f32 %v1714_v21, %v2866_v30  ;;  %v2740_v45 = vmul.f32 %v13901_v31, %v13105_v2  ;;  %v1845_v30 = vmul.f32 %v13884_v43, %v13083_v55  ;;  %v2231_v28 = vmul.f32 %v13928_v12, %v13088_v9 }
 0x282   :  { %v3853_v59 = vsel %vm3787_vm0, %v3616_v17, %v3744_v44  ;;  %v2995_v10 = vmax.f32 %v1715_v0, %v2867_v34  ;;  %v4449_v54 = vunpack.c.l.b16 %v4435_v35  ;;  %v4450_v19 = vunpack.c.l.b16 %v4437_v33  ;;  %v12198_v43 = vld [vmem:[%s15365_s0 + $0x80] sm:$0xf] }
 0x283   :  { %4065 = vst [vmem:[#allocation2 + $0x54] sm:$0xf] %v3853_v59  ;;  %v3127_v42 = vadd.f32 %v13125_v32, %v2994_v38  ;;  %v856_v1 = vpop.permute.xlu1 %855 }
 0x284   :  { %v3128_v58 = vadd.f32 %v13127_v22, %v2995_v10  ;;  %v4455_v63 = vpack.c.b16 %v4450_v19, %v4449_v54  ;;  %v1070_v56 = vmul.f32 %v13086_v49, %v856_v1  ;;  %v1071_v14 = vmul.f32 %v13088_v9, %v856_v1 }
 0x285   :  { %vm3255_vm15 = vcmp.gt.f32.partialorder %v3127_v42, 0.0  ;;  %v3383_v6 = vmul.f32 0.01, %v3127_v42 }
 0x286   :  { %vm3256_vm1 = vcmp.gt.f32.partialorder %v3128_v58, 0.0  ;;  %v3384_v13 = vmul.f32 0.01, %v3128_v58  ;;  %12025 = vset.pattern.permute.xlu1 %v15464_v60  ;;  %4463 = vst [vmem:[#allocation3 + $0xd0] sm:$0x33] %v4455_v63  ;;  %v1198_v24 = vadd.f32 %v1070_v56, %v680_v23  ;;  %v1199_v21 = vadd.f32 %v1071_v14, %v681_v11 }
 0x287   :  { %v3511_v20 = vsel %vm3255_vm15, %v3127_v42, %v3383_v6  ;;  %887 = vperm.xlu1 %12025, %v12197_v53   ;;  %12026 = vset.pattern.permute.xlu2 %v15460_v8  ;;  %v13944_v27 = vpop.permute.xlu2 %863 }
 0x288   :  { %v3512_v47 = vsel %vm3256_vm1, %v3128_v58, %v3384_v13  ;;  %1405 = vperm.xlu2 %12026, %v12197_v53   ;;  %v6183_v40 = vpop.f32.mrf.mxu2  ;;  %v6241_v51 = vpop.f32.mrf.mxu3  ;;  %v1716_v33 = vadd.f32 %v1588_v48, %v1198_v24 }
 0x289   :  { %v3617_v61 = vpack.c.bf16 %v3512_v47, %v3511_v20  ;;  %v6184_v25 = vadd.f32 %v6183_v40, %v6126_v3  ;;  %v2741_v3 = vmul.f32 %v13901_v31, %v13107_v16  ;;  %v1717_v31 = vadd.f32 %v1589_v15, %v1199_v21  ;;  %v13975_v20 = vpop.permute.xlu0 %1381 }
 0x28a   :  { %v4420_v50 = vld [vmem:[#allocation2 + $0x54] sm:$0xf]  ;;  %v1073_v40 = vmul.f32 %v13088_v9, %v860_v5 }
 0x28b   :  { %4440 = vst [vmem:[#allocation1] ss:$4 sm:$0xff] %v4420_v50  ;;  %v3745_v36 = vrot.slane %v3617_v61, 2  ;;  %v13954_v39 = vadd.f32 %v6241_v51, %v6184_v25  ;;  %v4465_v35 = vld [vmem:[#allocation2 + $0x54] sm:$0xf]  ;;  %v2230_v50 = vmul.f32 %v13928_v12, %v13086_v49 }
 0x28c   :  { %v2020_v4 = vpop.permute.xlu1 %2019 }
 0x28d   :  { %v3856_v26 = vsel %vm3787_vm0, %v3617_v61, %v3745_v36  ;;  %v2228_v17 = vmul.f32 %v2020_v4, %v13086_v49  ;;  %v2229_v44 = vmul.f32 %v2020_v4, %v13088_v9  ;;  %v1072_v61 = vmul.f32 %v13086_v49, %v860_v5 }
 0x28e   :  { %4066 = vst [vmem:[#allocation2 + $0x58] sm:$0xf] %v3856_v26 }
 0x28f   :  { %v2356_v0 = vadd.f32 %v2228_v17, %v1844_v29  ;;  %12028 = vset.pattern.permute.xlu1 %v15475_v41  ;;  %v2357_v34 = vadd.f32 %v2229_v44, %v1845_v30 }
 0x290   :  { %2563 = vperm.xlu1 %12028, %v12197_v53   ;;  %12029 = vset.pattern.permute.xlu2 %v15464_v60  ;;  %v13972_v19 = vpop.permute.xlu2 %2539 }
 0x291   :  { %v2868_v38 = vadd.f32 %v2740_v45, %v2356_v0  ;;  %v2869_v54 = vadd.f32 %v2741_v3, %v2357_v34  ;;  %891 = vperm.xlu2 %12029, %v12198_v43   ;;  %v15491_v45 = vld [vmem:[#allocation41_spill] sm:$0xff] }
 0x292   :  { %v4441_v59 = vld.sshfl [vmem:[#allocation1] sm:$0xff pattern:$0x73625140]  ;;  %v4443_v10 = vld.sshfl [vmem:[#allocation1 + $0x8] sm:$0xff pattern:$0x73625140]  ;;  %v682_v26 = vmul.f32 %v13081_v18, %v15491_v45  ;;  %v683_v12 = vmul.f32 %v13083_v55, %v15491_v45 }
 0x293   :  { %4473 = vst [vmem:[#allocation1] ss:$4 sm:$0xff] %v4465_v35  ;;  %v2996_v42 = vmax.f32 %v1716_v33, %v2868_v38  ;;  %v2997_v1 = vmax.f32 %v1717_v31, %v2869_v54  ;;  %v4451_v6 = vunpack.c.l.b16 %v4441_v59  ;;  %v4452_v13 = vunpack.c.l.b16 %v4443_v10  ;;  %v13999_v31 = vpop.permute.xlu0 %1401  ;;  %v9541_v45 = vld [vmem:[#allocation3 + $0xc0] sm:$0xf] }
 0x294   :  { %v1200_v30 = vadd.f32 %v1072_v61, %v682_v26  ;;  %v1201_v44 = vadd.f32 %v1073_v40, %v683_v12  ;;  %v11423_v26 = vld [vmem:[#allocation3 + $0xc4] sm:$0xf] }
 0x295   :  { %v3129_v58 = vadd.f32 %v13125_v32, %v2996_v42  ;;  %v1378_v63 = vpop.permute.xlu1 %1377  ;;  %v3130_v53 = vadd.f32 %v13127_v22, %v2997_v1  ;;  %v4456_v25 = vpack.c.b16 %v4452_v13, %v4451_v6  ;;  %v4467_v4 = vld [vmem:[#allocation2 + $0x58] sm:$0xf]  ;;  %v12199_v6 = vld [vmem:[%s15365_s0 + $0x84] sm:$0xf]  ;;  %v15492_v13 = vld [vmem:[#allocation40_spill] sm:$0xff] }
 0x296   :  { %v1846_v11 = vmul.f32 %v1378_v63, %v13081_v18  ;;  %v1847_v36 = vmul.f32 %v1378_v63, %v13083_v55  ;;  %v1590_v24 = vmul.f32 %v13105_v2, %v1378_v63  ;;  %v1591_v3 = vmul.f32 %v13107_v16, %v1378_v63 }
 0x297   :  { %vm3257_vm2 = vcmp.gt.f32.partialorder %v3129_v58, 0.0  ;;  %v3385_v47 = vmul.f32 0.01, %v3129_v58  ;;  %vm3258_vm3 = vcmp.gt.f32.partialorder %v3130_v53, 0.0  ;;  %v3386_v56 = vmul.f32 0.01, %v3130_v53 }
 0x298   :  { %12030 = vset.pattern.permute.xlu1 %v15460_v8  ;;  %4464 = vst [vmem:[#allocation3 + $0xd8] sm:$0x33] %v4456_v25  ;;  %v2358_v34 = vadd.f32 %v2230_v50, %v1846_v11  ;;  %v2359_v35 = vadd.f32 %v2231_v28, %v1847_v36  ;;  %v1718_v54 = vadd.f32 %v1590_v24, %v1200_v30 }
 0x299   :  { %v3513_v14 = vsel %vm3257_vm2, %v3129_v58, %v3385_v47  ;;  %1409 = vperm.xlu1 %12030, %v12198_v43   ;;  %v3514_v23 = vsel %vm3258_vm3, %v3130_v53, %v3386_v56  ;;  %12031 = vset.pattern.permute.xlu2 %v15468_v7  ;;  %v13988_v51 = vpop.permute.xlu2 %1385  ;;  %v1074_v58 = vmul.f32 %v13086_v49, %v13944_v27 }
 0x29a   :  { %v4474_v48 = vld.sshfl [vmem:[#allocation1] sm:$0xff pattern:$0x73625140]  ;;  %v4476_v15 = vld.sshfl [vmem:[#allocation1 + $0x8] sm:$0xff pattern:$0x73625140]  ;;  %v3618_v29 = vpack.c.bf16 %v3514_v23, %v3513_v14  ;;  %2055 = vperm.xlu2 %12031, %v12198_v43   ;;  %v1719_v43 = vadd.f32 %v1591_v3, %v1201_v44  ;;  %v1075_v63 = vmul.f32 %v13088_v9, %v13944_v27  ;;  %v684_v53 = vmul.f32 %v13081_v18, %v15492_v13 }
 0x29b   :  { %v4496_v17 = vunpack.c.l.b16 %v4474_v48  ;;  %4479 = vst [vmem:[#allocation1] ss:$4 sm:$0xff] %v4467_v4  ;;  %v4497_v21 = vunpack.c.l.b16 %v4476_v15  ;;  %v685_v50 = vmul.f32 %v13083_v55, %v15492_v13  ;;  %v1592_v27 = vmul.f32 %v13105_v2, %v13975_v20 }
 0x29c   :  { %v3746_v5 = vrot.slane %v3618_v29, 2  ;;  %v1593_v23 = vmul.f32 %v13107_v16, %v13975_v20  ;;  %v1848_v11 = vmul.f32 %v13975_v20, %v13081_v18  ;;  %v1849_v15 = vmul.f32 %v13975_v20, %v13083_v55 }
 0x29d   :  { %v4504_v10 = vpack.c.b16 %v4497_v21, %v4496_v17  ;;  %v1202_v4 = vadd.f32 %v1074_v58, %v684_v53  ;;  %v2744_v17 = vmul.f32 %v13972_v19, %v13105_v2  ;;  %v2745_v21 = vmul.f32 %v13972_v19, %v13107_v16 }
 0x29e   :  { %v2536_v0 = vpop.permute.xlu1 %2535  ;;  %v3859_v33 = vsel %vm3787_vm0, %v3618_v29, %v3746_v5  ;;  %v1203_v29 = vadd.f32 %v1075_v63, %v685_v50 }
 0x29f   :  { %v2742_v38 = vmul.f32 %v2536_v0, %v13105_v2  ;;  %v2743_v59 = vmul.f32 %v2536_v0, %v13107_v16  ;;  %4067 = vst [vmem:[#allocation2 + $0x5c] sm:$0xf] %v3859_v33 }
 0x2a0   :  { %4512 = vst [vmem:[#allocation3 + $0xe0] sm:$0x33] %v4504_v10 }
 0x2a1   :  { %v2870_v42 = vadd.f32 %v2742_v38, %v2358_v34  ;;  %v2871_v1 = vadd.f32 %v2743_v59, %v2359_v35  ;;  %12033 = vset.pattern.permute.xlu1 %v15464_v60  ;;  %v2032_v59 = vpop.permute.xlu0 %2031 }
 0x2a2   :  { %895 = vperm.xlu1 %12033, %v12199_v6   ;;  %12034 = vset.pattern.permute.xlu2 %v15460_v8  ;;  %v4480_v56 = vld.sshfl [vmem:[#allocation1] sm:$0xff pattern:$0x73625140]  ;;  %v4482_v40 = vld.sshfl [vmem:[#allocation1 + $0x8] sm:$0xff pattern:$0x73625140]  ;;  %v14016_v14 = vpop.permute.xlu2 %871 }
 0x2a3   :  { %v2998_v47 = vmax.f32 %v1718_v54, %v2870_v42  ;;  %v2999_v61 = vmax.f32 %v1719_v43, %v2871_v1  ;;  %1413 = vperm.xlu2 %12034, %v12199_v6   ;;  %v4498_v25 = vunpack.c.l.b16 %v4480_v56  ;;  %v4499_v28 = vunpack.c.l.b16 %v4482_v40 }
 0x2a4   :  { %v1720_v42 = vadd.f32 %v1592_v27, %v1202_v4  ;;  %v1721_v1 = vadd.f32 %v1593_v23, %v1203_v29  ;;  %v2234_v23 = vmul.f32 %v2032_v59, %v13086_v49 }
 0x2a5   :  { %v3131_v36 = vadd.f32 %v13125_v32, %v2998_v47  ;;  %v3132_v48 = vadd.f32 %v13127_v22, %v2999_v61  ;;  %v4505_v12 = vpack.c.b16 %v4499_v28, %v4498_v25  ;;  %v9549_v28 = vld [vmem:[#allocation3 + $0xc8] sm:$0xf] }
 0x2a6   :  { %v4469_v24 = vld [vmem:[#allocation2 + $0x5c] sm:$0xf] }
 0x2a7   :  { %vm3259_vm4 = vcmp.gt.f32.partialorder %v3131_v36, 0.0  ;;  %vm3260_vm5 = vcmp.gt.f32.partialorder %v3132_v48, 0.0  ;;  %v3387_v5 = vmul.f32 0.01, %v3131_v36  ;;  %v2028_v3 = vpop.permute.xlu1 %2027  ;;  %v3388_v30 = vmul.f32 0.01, %v3132_v48 }
 0x2a8   :  { %v2232_v44 = vmul.f32 %v2028_v3, %v13086_v49  ;;  %v2233_v20 = vmul.f32 %v2028_v3, %v13088_v9  ;;  %v11427_v0 = vld [vmem:[#allocation3 + $0xdc] sm:$0xf0]  ;;  %v9543_v34 = vld [vmem:[#allocation3 + $0xe0] sm:$0xf0]  ;;  %4485 = vst [vmem:[#allocation1] ss:$4 sm:$0xff] %v4469_v24 }
 0x2a9   :  { %v3515_v35 = vsel %vm3259_vm4, %v3131_v36, %v3387_v5  ;;  %v9542_v33 = vor.u32 %v11427_v0, %v9541_v45  ;;  %v9546_v38 = vor.u32 %v11423_v26, %v9543_v34  ;;  %v3516_v10 = vsel %vm3260_vm5, %v3132_v48, %v3388_v30  ;;  %4513 = vst [vmem:[#allocation3 + $0xe8] sm:$0x33] %v4505_v12  ;;  %v11424_v24 = vld [vmem:[#allocation3 + $0xcc] sm:$0xf]  ;;  %v14046_v3 = vpop.permute.xlu0 %2051 }
 0x2aa   :  { %v2360_v54 = vadd.f32 %v2232_v44, %v1848_v11  ;;  %v2361_v43 = vadd.f32 %v2233_v20, %v1849_v15  ;;  %12035 = vset.pattern.permute.xlu1 %v15468_v7  ;;  %v3619_v19 = vpack.c.bf16 %v3516_v10, %v3515_v35  ;;  %v2235_v11 = vmul.f32 %v2032_v59, %v13088_v9  ;;  %v15493_v35 = vld [vmem:[#allocation30_spill] sm:$0xff]  ;;  %v12200_v59 = vld [vmem:[%s15365_s0 + $0x88] sm:$0xf] }
 0x2ab   :  { %6076 = vmatmul.bf16.gmra.mxu0 %v9542_v33  ;;  %6134 = vmatmul.bf16.gmra.mxu1 %v9546_v38  ;;  %v14034_v13 = vpop.permute.xlu2 %2035  ;;  %v1850_v36 = vmul.f32 %v13988_v51, %v13081_v18  ;;  %v1851_v45 = vmul.f32 %v13988_v51, %v13083_v55  ;;  %v686_v33 = vmul.f32 %v13081_v18, %v15493_v35 }
 0x2ac   :  { %v2872_v58 = vadd.f32 %v2744_v17, %v2360_v54  ;;  %v2873_v63 = vadd.f32 %v2745_v21, %v2361_v43  ;;  %2059 = vperm.xlu1 %12035, %v12199_v6   ;;  %12036 = vset.pattern.permute.xlu2 %v15475_v41  ;;  %v3747_v53 = vrot.slane %v3619_v19, 2  ;;  %v687_v38 = vmul.f32 %v13083_v55, %v15493_v35 }
 0x2ad   :  { %2571 = vperm.xlu2 %12036, %v12199_v6   ;;  %v1594_v54 = vmul.f32 %v13105_v2, %v13988_v51  ;;  %v1595_v43 = vmul.f32 %v13107_v16, %v13988_v51 }
 0x2ae   :  { %v3000_v47 = vmax.f32 %v1720_v42, %v2872_v58  ;;  %v3001_v61 = vmax.f32 %v1721_v1, %v2873_v63  ;;  %v3862_v56 = vsel %vm3787_vm0, %v3619_v19, %v3747_v53  ;;  %v2362_v1 = vadd.f32 %v2234_v23, %v1850_v36 }
 0x2af   :  { %4068 = vst [vmem:[#allocation2 + $0x60] sm:$0xf] %v3862_v56  ;;  %v4486_v25 = vld.sshfl [vmem:[#allocation1] sm:$0xff pattern:$0x73625140]  ;;  %v2363_v53 = vadd.f32 %v2235_v11, %v1851_v45 }
 0x2b0   :  { %v3133_v40 = vadd.f32 %v13125_v32, %v3000_v47  ;;  %v3134_v50 = vadd.f32 %v13127_v22, %v3001_v61  ;;  %v868_v27 = vpop.permute.xlu1 %867  ;;  %v4488_v6 = vld.sshfl [vmem:[#allocation1 + $0x8] sm:$0xff pattern:$0x73625140]  ;;  %v11428_v48 = vld [vmem:[#allocation3 + $0xe4] sm:$0xf0]  ;;  %v4500_v15 = vunpack.c.l.b16 %v4486_v25 }
 0x2b1   :  { %v1076_v26 = vmul.f32 %v13086_v49, %v868_v27  ;;  %v9550_v12 = vor.u32 %v11428_v48, %v9549_v28  ;;  %v9551_v17 = vld [vmem:[#allocation3 + $0xe8] sm:$0xf0]  ;;  %v4501_v5 = vunpack.c.l.b16 %v4488_v6  ;;  %v1077_v44 = vmul.f32 %v13088_v9, %v868_v27  ;;  %v2548_v28 = vpop.permute.xlu0 %2547  ;;  %v15494_v48 = vld [vmem:[#allocation44_spill] sm:$0xff] }
 0x2b2   :  { %vm3261_vm6 = vcmp.gt.f32.partialorder %v3133_v40, 0.0  ;;  %vm3262_vm7 = vcmp.gt.f32.partialorder %v3134_v50, 0.0  ;;  %v3389_v4 = vmul.f32 0.01, %v3133_v40  ;;  %v3390_v29 = vmul.f32 0.01, %v3134_v50 }
 0x2b3   :  { %v9554_v20 = vor.u32 %v11424_v24, %v9551_v17  ;;  %6192 = vmatmul.bf16.gmra.mxu2 %v9550_v12  ;;  %v4506_v10 = vpack.c.b16 %v4501_v5, %v4500_v15  ;;  %v1204_v58 = vadd.f32 %v1076_v26, %v686_v33  ;;  %v1205_v63 = vadd.f32 %v1077_v44, %v687_v38 }
 0x2b4   :  { %v3517_v21 = vsel %vm3261_vm6, %v3133_v40, %v3389_v4  ;;  %v3518_v30 = vsel %vm3262_vm7, %v3134_v50, %v3390_v29  ;;  %12037 = vset.pattern.permute.xlu1 %v15460_v8  ;;  %v688_v15 = vmul.f32 %v13081_v18, %v15494_v48  ;;  %v689_v4 = vmul.f32 %v13083_v55, %v15494_v48 }
 0x2b5   :  { %v3620_v0 = vpack.c.bf16 %v3518_v30, %v3517_v21  ;;  %v14050_v34 = vpop.permute.xlu2 %1393  ;;  %6250 = vmatmul.bf16.gmra.mxu3 %v9554_v20  ;;  %1417 = vperm.xlu1 %12037, %v12200_v59   ;;  %4514 = vst [vmem:[#allocation3 + $0xf0] sm:$0x33] %v4506_v10  ;;  %v1722_v51 = vadd.f32 %v1594_v54, %v1204_v58 }
 0x2b6   :  { %v4471_v42 = vld [vmem:[#allocation2 + $0x60] sm:$0xf]  ;;  %12038 = vset.pattern.permute.xlu2 %v15468_v7  ;;  %v1723_v50 = vadd.f32 %v1595_v43, %v1205_v63  ;;  %v2748_v29 = vmul.f32 %v2548_v28, %v13105_v2  ;;  %v1078_v21 = vmul.f32 %v13086_v49, %v14016_v14  ;;  %v1079_v30 = vmul.f32 %v13088_v9, %v14016_v14 }
 0x2b7   :  { %v3748_v19 = vrot.slane %v3620_v0, 2  ;;  %4491 = vst [vmem:[#allocation1] ss:$4 sm:$0xff] %v4471_v42  ;;  %2063 = vperm.xlu2 %12038, %v12200_v59   ;;  %v4516_v23 = vld [vmem:[#allocation2 + $0x60] sm:$0xf]  ;;  %v2236_v44 = vmul.f32 %v14034_v13, %v13086_v49  ;;  %v2237_v20 = vmul.f32 %v14034_v13, %v13088_v9 }
 0x2b9   :  { %v3865_v47 = vsel %vm3787_vm0, %v3620_v0, %v3748_v19  ;;  %v2544_v61 = vpop.permute.xlu1 %2543  ;;  %v12201_v0 = vld [vmem:[%s15365_s0 + $0x8c] sm:$0xf] }
 0x2ba   :  { %4069 = vst [vmem:[#allocation2 + $0x64] sm:$0xf] %v3865_v47  ;;  %v2746_v56 = vmul.f32 %v2544_v61, %v13105_v2  ;;  %v2747_v40 = vmul.f32 %v2544_v61, %v13107_v16  ;;  %v1207_v47 = vadd.f32 %v1079_v30, %v689_v4 }
 0x2bc   :  { %v2874_v27 = vadd.f32 %v2746_v56, %v2362_v1  ;;  %v2875_v25 = vadd.f32 %v2747_v40, %v2363_v53  ;;  %v1206_v1 = vadd.f32 %v1078_v21, %v688_v15  ;;  %v14094_v53 = vpop.f32.mrf.mxu0  ;;  %v14096_v56 = vpop.f32.mrf.mxu1 }
 0x2bd   :  { %12039 = vset.pattern.permute.xlu1 %v15475_v41 }
 0x2be   :  { %v3002_v36 = vmax.f32 %v1722_v51, %v2874_v27  ;;  %v3003_v6 = vmax.f32 %v1723_v50, %v2875_v25  ;;  %v14068_v11 = vpop.permute.xlu2 %2551  ;;  %2575 = vperm.xlu1 %12039, %v12200_v59   ;;  %v4492_v45 = vld.sshfl [vmem:[#allocation1] sm:$0xff pattern:$0x73625140]  ;;  %v4494_v26 = vld.sshfl [vmem:[#allocation1 + $0x8] sm:$0xff pattern:$0x73625140]  ;;  %v2749_v59 = vmul.f32 %v2548_v28, %v13107_v16 }
 0x2bf   :  { %12040 = vset.pattern.permute.xlu2 %v15464_v60  ;;  %4524 = vst [vmem:[#allocation1] ss:$4 sm:$0xff] %v4516_v23  ;;  %v4502_v17 = vunpack.c.l.b16 %v4492_v45  ;;  %v4503_v5 = vunpack.c.l.b16 %v4494_v26 }
 0x2c0   :  { %v3135_v12 = vadd.f32 %v13125_v32, %v3002_v36  ;;  %v3136_v24 = vadd.f32 %v13127_v22, %v3003_v6  ;;  %903 = vperm.xlu2 %12040, %v12201_v0  }
 0x2c1   :  { %v4507_v19 = vpack.c.b16 %v4503_v5, %v4502_v17  ;;  %v4518_v4 = vld [vmem:[#allocation2 + $0x64] sm:$0xf] }
 0x2c2   :  { %vm3263_vm8 = vcmp.gt.f32.partialorder %v3135_v12, 0.0  ;;  %vm3264_vm9 = vcmp.gt.f32.partialorder %v3136_v24, 0.0  ;;  %v3391_v35 = vmul.f32 0.01, %v3135_v12  ;;  %v3392_v33 = vmul.f32 0.01, %v3136_v24  ;;  %v1390_v38 = vpop.permute.xlu1 %1389 }
 0x2c3   :  { %v1596_v14 = vmul.f32 %v13105_v2, %v1390_v38  ;;  %v1852_v10 = vmul.f32 %v1390_v38, %v13081_v18  ;;  %v1853_v54 = vmul.f32 %v1390_v38, %v13083_v55  ;;  %v1597_v42 = vmul.f32 %v13107_v16, %v1390_v38  ;;  %4515 = vst [vmem:[#allocation3 + $0xf8] sm:$0x33] %v4507_v19 }
 0x2c4   :  { %v3519_v43 = vsel %vm3263_vm8, %v3135_v12, %v3391_v35  ;;  %v3520_v13 = vsel %vm3264_vm9, %v3136_v24, %v3392_v33 }
 0x2c5   :  { %v3621_v58 = vpack.c.bf16 %v3520_v13, %v3519_v43  ;;  %v2364_v63 = vadd.f32 %v2236_v44, %v1852_v10  ;;  %v2365_v61 = vadd.f32 %v2237_v20, %v1853_v54  ;;  %v1724_v51 = vadd.f32 %v1596_v14, %v1206_v1  ;;  %v15495_v14 = vld [vmem:[#allocation43_spill] sm:$0xff] }
 0x2c6   :  { %12042 = vset.pattern.permute.xlu1 %v15468_v7  ;;  %v4525_v27 = vld.sshfl [vmem:[#allocation1] sm:$0xff pattern:$0x73625140]  ;;  %v1725_v25 = vadd.f32 %v1597_v42, %v1207_v47  ;;  %v4527_v36 = vld.sshfl [vmem:[#allocation1 + $0x8] sm:$0xff pattern:$0x73625140]  ;;  %v690_v10 = vmul.f32 %v13081_v18, %v15495_v14  ;;  %v691_v1 = vmul.f32 %v13083_v55, %v15495_v14 }
 0x2c7   :  { %v3749_v40 = vrot.slane %v3621_v58, 2  ;;  %v2876_v50 = vadd.f32 %v2748_v29, %v2364_v63  ;;  %v2877_v28 = vadd.f32 %v2749_v59, %v2365_v61  ;;  %2067 = vperm.xlu1 %12042, %v12201_v0   ;;  %v14099_v23 = vpop.permute.xlu2 %2043  ;;  %v4547_v6 = vunpack.c.l.b16 %v4525_v27  ;;  %4530 = vst [vmem:[#allocation1] ss:$4 sm:$0xff] %v4518_v4  ;;  %v12202_v59 = vld [vmem:[%s15365_s0 + $0x90] sm:$0xf]  ;;  %v14118_v61 = vpop.f32.mrf.mxu2 }
 0x2c8   :  { %12043 = vset.pattern.permute.xlu2 %v15475_v41  ;;  %v4548_v29 = vunpack.c.l.b16 %v4527_v36  ;;  %v1855_v27 = vmul.f32 %v14050_v34, %v13083_v55  ;;  %v14135_v4 = vpop.f32.mrf.mxu3 }
 0x2c9   :  { %v3868_v48 = vsel %vm3787_vm0, %v3621_v58, %v3749_v40  ;;  %v3004_v15 = vmax.f32 %v1724_v51, %v2876_v50  ;;  %v3005_v45 = vmax.f32 %v1725_v25, %v2877_v28  ;;  %2579 = vperm.xlu2 %12043, %v12201_v0   ;;  %v1598_v40 = vmul.f32 %v13105_v2, %v14050_v34 }
 0x2ca   :  { %4070 = vst [vmem:[#allocation2 + $0x68] sm:$0xf] %v3868_v48  ;;  %v4555_v17 = vpack.c.b16 %v4548_v29, %v4547_v6  ;;  %v1599_v51 = vmul.f32 %v13107_v16, %v14050_v34  ;;  %v1854_v50 = vmul.f32 %v14050_v34, %v13081_v18  ;;  %v2750_v25 = vmul.f32 %v14068_v11, %v13105_v2 }
 0x2cb   :  { %v3137_v26 = vadd.f32 %v13125_v32, %v3004_v15  ;;  %v3138_v12 = vadd.f32 %v13127_v22, %v3005_v45  ;;  %v2751_v28 = vmul.f32 %v14068_v11, %v13107_v16  ;;  %v14133_v15 = vpop.permute.xlu0 %2567 }
 0x2cc   :  { %v876_v24 = vpop.permute.xlu1 %875  ;;  %v6072_v30 = vpop.f32.mrf.mxu0  ;;  %4563 = vst [vmem:[#allocation3 + $0x100] sm:$0x33] %v4555_v17 }
 0x2cd   :  { %vm3265_vm10 = vcmp.gt.f32.partialorder %v3137_v26, 0.0  ;;  %v3393_v5 = vmul.f32 0.01, %v3137_v26  ;;  %vm3266_vm11 = vcmp.gt.f32.partialorder %v3138_v12, 0.0  ;;  %v3394_v21 = vmul.f32 0.01, %v3138_v12 }
 0x2ce   :  { %v6130_v20 = vpop.f32.mrf.mxu1  ;;  %v1080_v54 = vmul.f32 %v13086_v49, %v876_v24  ;;  %v1081_v43 = vmul.f32 %v13088_v9, %v876_v24  ;;  %v4531_v42 = vld.sshfl [vmem:[#allocation1] sm:$0xff pattern:$0x73625140]  ;;  %v4533_v19 = vld.sshfl [vmem:[#allocation1 + $0x8] sm:$0xff pattern:$0x73625140] }
 0x2cf   :  { %v3521_v44 = vsel %vm3265_vm10, %v3137_v26, %v3393_v5  ;;  %v3522_v35 = vsel %vm3266_vm11, %v3138_v12, %v3394_v21  ;;  %12044 = vset.pattern.permute.xlu1 %v15464_v60  ;;  %v6131_v0 = vadd.f32 %v6130_v20, %v6072_v30  ;;  %v4549_v63 = vunpack.c.l.b16 %v4531_v42 }
 0x2d0   :  { %v3622_v38 = vpack.c.bf16 %v3522_v35, %v3521_v44  ;;  %907 = vperm.xlu1 %12044, %v12202_v59   ;;  %v14114_v13 = vpop.permute.xlu2 %883  ;;  %v4550_v47 = vunpack.c.l.b16 %v4533_v19  ;;  %v1208_v45 = vadd.f32 %v1080_v54, %v690_v10  ;;  %v1209_v29 = vadd.f32 %v1081_v43, %v691_v1  ;;  %v12203_v10 = vld [vmem:[%s15365_s0 + $0x94] sm:$0xf] }
 0x2d1   :  { %v4520_v33 = vld [vmem:[#allocation2 + $0x68] sm:$0xf]  ;;  %12045 = vset.pattern.permute.xlu2 %v15460_v8 }
 0x2d2   :  { %v3750_v58 = vrot.slane %v3622_v38, 2  ;;  %1425 = vperm.xlu2 %12045, %v12202_v59   ;;  %4536 = vst [vmem:[#allocation1] ss:$4 sm:$0xff] %v4520_v33  ;;  %v4556_v48 = vpack.c.b16 %v4550_v47, %v4549_v63  ;;  %v1726_v11 = vadd.f32 %v1598_v40, %v1208_v45  ;;  %v1727_v17 = vadd.f32 %v1599_v51, %v1209_v29 }
 0x2d3   :  { %v880_v40 = vpop.permute.xlu0 %879  ;;  %v2241_v45 = vmul.f32 %v14099_v23, %v13088_v9 }
 0x2d4   :  { %v3871_v36 = vsel %vm3787_vm0, %v3622_v38, %v3750_v58  ;;  %4564 = vst [vmem:[#allocation3 + $0x108] sm:$0x33] %v4556_v48  ;;  %v2240_v48 = vmul.f32 %v14099_v23, %v13086_v49 }
 0x2d5   :  { %v2040_v6 = vpop.permute.xlu1 %2039  ;;  %4071 = vst [vmem:[#allocation2 + $0x6c] sm:$0xf] %v3871_v36 }
 0x2d6   :  { %v2238_v26 = vmul.f32 %v2040_v6, %v13086_v49  ;;  %v2239_v34 = vmul.f32 %v2040_v6, %v13088_v9 }
 0x2d8   :  { %v2366_v12 = vadd.f32 %v2238_v26, %v1854_v50  ;;  %v2367_v24 = vadd.f32 %v2239_v34, %v1855_v27  ;;  %12047 = vset.pattern.permute.xlu1 %v15475_v41  ;;  %v15496_v34 = vld [vmem:[#allocation33_spill] sm:$0xff] }
 0x2d9   :  { %2583 = vperm.xlu1 %12047, %v12202_v59   ;;  %v14140_v30 = vpop.permute.xlu2 %2559  ;;  %v4537_v44 = vld.sshfl [vmem:[#allocation1] sm:$0xff pattern:$0x73625140]  ;;  %v4539_v20 = vld.sshfl [vmem:[#allocation1 + $0x8] sm:$0xff pattern:$0x73625140] }
 0x2da   :  { %v2878_v5 = vadd.f32 %v2750_v25, %v2366_v12  ;;  %v2879_v21 = vadd.f32 %v2751_v28, %v2367_v24  ;;  %12048 = vset.pattern.permute.xlu2 %v15464_v60  ;;  %v4551_v35 = vunpack.c.l.b16 %v4537_v44  ;;  %v4552_v33 = vunpack.c.l.b16 %v4539_v20 }
 0x2db   :  { %911 = vperm.xlu2 %12048, %v12203_v10   ;;  %v1083_v28 = vmul.f32 %v13088_v9, %v880_v40  ;;  %v692_v12 = vmul.f32 %v13081_v18, %v15496_v34  ;;  %v693_v24 = vmul.f32 %v13083_v55, %v15496_v34  ;;  %v1859_v34 = vmul.f32 %v13999_v31, %v13083_v55 }
 0x2dc   :  { %v3006_v38 = vmax.f32 %v1726_v11, %v2878_v5  ;;  %v3007_v14 = vmax.f32 %v1727_v17, %v2879_v21  ;;  %v6188_v54 = vpop.f32.mrf.mxu2  ;;  %v4522_v43 = vld [vmem:[#allocation2 + $0x6c] sm:$0xf]  ;;  %v4557_v19 = vpack.c.b16 %v4552_v33, %v4551_v35  ;;  %v6246_v58 = vpop.f32.mrf.mxu3 }
 0x2dd   :  { %v6189_v42 = vadd.f32 %v6188_v54, %v6131_v0  ;;  %4542 = vst [vmem:[#allocation1] ss:$4 sm:$0xff] %v4522_v43  ;;  %v1082_v0 = vmul.f32 %v13086_v49, %v880_v40  ;;  %v4567_v5 = vld [vmem:[#allocation2 + $0x6c] sm:$0xf]  ;;  %v1211_v33 = vadd.f32 %v1083_v28, %v693_v24 }
 0x2de   :  { %v3139_v59 = vadd.f32 %v13125_v32, %v3006_v38  ;;  %v3140_v1 = vadd.f32 %v13127_v22, %v3007_v14  ;;  %v1398_v63 = vpop.permute.xlu1 %1397  ;;  %4565 = vst [vmem:[#allocation3 + $0x110] sm:$0x33] %v4557_v19 }
 0x2df   :  { %v14148_v47 = vadd.f32 %v6246_v58, %v6189_v42  ;;  %v1856_v29 = vmul.f32 %v1398_v63, %v13081_v18  ;;  %v1857_v26 = vmul.f32 %v1398_v63, %v13083_v55  ;;  %v1600_v21 = vmul.f32 %v13105_v2, %v1398_v63 }
 0x2e0   :  { %vm3267_vm12 = vcmp.gt.f32.partialorder %v3139_v59, 0.0  ;;  %vm3268_vm13 = vcmp.gt.f32.partialorder %v3140_v1, 0.0  ;;  %v3395_v51 = vmul.f32 0.01, %v3139_v59  ;;  %v3396_v50 = vmul.f32 0.01, %v3140_v1 }
 0x2e1   :  { %12049 = vset.pattern.permute.xlu1 %v15460_v8  ;;  %v1601_v23 = vmul.f32 %v13107_v16, %v1398_v63  ;;  %v1210_v35 = vadd.f32 %v1082_v0, %v692_v12  ;;  %v2368_v43 = vadd.f32 %v2240_v48, %v1856_v29  ;;  %v2369_v42 = vadd.f32 %v2241_v45, %v1857_v26 }
 0x2e2   :  { %v3523_v27 = vsel %vm3267_vm12, %v3139_v59, %v3395_v51  ;;  %v3524_v25 = vsel %vm3268_vm13, %v3140_v1, %v3396_v50  ;;  %1429 = vperm.xlu1 %12049, %v12203_v10   ;;  %v14153_v6 = vpop.permute.xlu2 %1405  ;;  %v1084_v59 = vmul.f32 %v13086_v49, %v14114_v13  ;;  %v1085_v50 = vmul.f32 %v13088_v9, %v14114_v13 }
 0x2e3   :  { %v3623_v36 = vpack.c.bf16 %v3524_v25, %v3523_v27  ;;  %12050 = vset.pattern.permute.xlu2 %v15468_v7  ;;  %v1728_v58 = vadd.f32 %v1600_v21, %v1210_v35  ;;  %v1729_v63 = vadd.f32 %v1601_v23, %v1211_v33  ;;  %v15497_v27 = vld [vmem:[#allocation47_spill] sm:$0xff]  ;;  %v1602_v45 = vmul.f32 %v13105_v2, %v13999_v31 }
 0x2e4   :  { %2075 = vperm.xlu2 %12050, %v12203_v10   ;;  %v4543_v17 = vld.sshfl [vmem:[#allocation1] sm:$0xff pattern:$0x73625140]  ;;  %v4545_v44 = vld.sshfl [vmem:[#allocation1 + $0x8] sm:$0xff pattern:$0x73625140]  ;;  %v694_v25 = vmul.f32 %v13081_v18, %v15497_v27  ;;  %v695_v48 = vmul.f32 %v13083_v55, %v15497_v27  ;;  %v1603_v13 = vmul.f32 %v13107_v16, %v13999_v31  ;;  %v1858_v29 = vmul.f32 %v13999_v31, %v13081_v18 }
 0x2e5   :  { %v3751_v11 = vrot.slane %v3623_v36, 2  ;;  %v4553_v20 = vunpack.c.l.b16 %v4543_v17  ;;  %4575 = vst [vmem:[#allocation1] ss:$4 sm:$0xff] %v4567_v5  ;;  %v4554_v54 = vunpack.c.l.b16 %v4545_v44  ;;  %v2754_v44 = vmul.f32 %v14140_v30, %v13105_v2 }
 0x2e6   :  { %v1212_v12 = vadd.f32 %v1084_v59, %v694_v25  ;;  %v1213_v21 = vadd.f32 %v1085_v50, %v695_v48 }
 0x2e7   :  { %v3874_v38 = vsel %vm3787_vm0, %v3623_v36, %v3751_v11  ;;  %v2556_v14 = vpop.permute.xlu1 %2555  ;;  %v4558_v1 = vpack.c.b16 %v4554_v54, %v4553_v20  ;;  %v12204_v36 = vld [vmem:[%s15365_s0 + $0x98] sm:$0xf] }
 0x2e8   :  { %4072 = vst [vmem:[#allocation2 + $0x70] sm:$0xf] %v3874_v38  ;;  %v2752_v10 = vmul.f32 %v2556_v14, %v13105_v2  ;;  %v2753_v19 = vmul.f32 %v2556_v14, %v13107_v16  ;;  %v2755_v14 = vmul.f32 %v14140_v30, %v13107_v16 }
 0x2e9   :  { %4566 = vst [vmem:[#allocation3 + $0x118] sm:$0x33] %v4558_v1 }
 0x2ea   :  { %v2880_v40 = vadd.f32 %v2752_v10, %v2368_v43  ;;  %v2881_v51 = vadd.f32 %v2753_v19, %v2369_v42  ;;  %12052 = vset.pattern.permute.xlu1 %v15464_v60 }
 0x2eb   :  { %915 = vperm.xlu1 %12052, %v12204_v36   ;;  %v14190_v26 = vpop.permute.xlu2 %891 }
 0x2ec   :  { %v3008_v0 = vmax.f32 %v1728_v58, %v2880_v40  ;;  %v3009_v28 = vmax.f32 %v1729_v63, %v2881_v51  ;;  %12053 = vset.pattern.permute.xlu2 %v15460_v8  ;;  %v4576_v17 = vld.sshfl [vmem:[#allocation1] sm:$0xff pattern:$0x73625140]  ;;  %v4578_v5 = vld.sshfl [vmem:[#allocation1 + $0x8] sm:$0xff pattern:$0x73625140]  ;;  %v1730_v63 = vadd.f32 %v1602_v45, %v1212_v12  ;;  %v1731_v40 = vadd.f32 %v1603_v13, %v1213_v21 }
 0x2ed   :  { %1433 = vperm.xlu2 %12053, %v12204_v36   ;;  %v4598_v20 = vunpack.c.l.b16 %v4576_v17  ;;  %v4599_v35 = vunpack.c.l.b16 %v4578_v5  ;;  %v2245_v17 = vmul.f32 %v14046_v3, %v13088_v9  ;;  %v1860_v5 = vmul.f32 %v14153_v6, %v13081_v18  ;;  %v11431_v21 = vld [vmem:[#allocation3 + $0x104] sm:$0xf] }
 0x2ee   :  { %v3141_v24 = vadd.f32 %v13125_v32, %v3008_v0  ;;  %v3142_v11 = vadd.f32 %v13127_v22, %v3009_v28 }
 0x2ef   :  { %v4569_v23 = vld [vmem:[#allocation2 + $0x70] sm:$0xf]  ;;  %v4606_v42 = vpack.c.b16 %v4599_v35, %v4598_v20 }
 0x2f0   :  { %vm3269_vm14 = vcmp.gt.f32.partialorder %v3141_v24, 0.0  ;;  %vm3270_vm15 = vcmp.gt.f32.partialorder %v3142_v11, 0.0  ;;  %v3397_v33 = vmul.f32 0.01, %v3141_v24  ;;  %v3398_v38 = vmul.f32 0.01, %v3142_v11  ;;  %v2048_v31 = vpop.permute.xlu1 %2047 }
 0x2f1   :  { %v2242_v54 = vmul.f32 %v2048_v31, %v13086_v49  ;;  %v2243_v43 = vmul.f32 %v2048_v31, %v13088_v9  ;;  %4581 = vst [vmem:[#allocation1] ss:$4 sm:$0xff] %v4569_v23 }
 0x2f2   :  { %v3525_v10 = vsel %vm3269_vm14, %v3141_v24, %v3397_v33  ;;  %v3526_v19 = vsel %vm3270_vm15, %v3142_v11, %v3398_v38  ;;  %4614 = vst [vmem:[#allocation3 + $0x120] sm:$0x33] %v4606_v42  ;;  %v2244_v11 = vmul.f32 %v14046_v3, %v13086_v49  ;;  %v1861_v33 = vmul.f32 %v14153_v6, %v13083_v55 }
 0x2f3   :  { %v3624_v59 = vpack.c.bf16 %v3526_v19, %v3525_v10  ;;  %v2370_v1 = vadd.f32 %v2242_v54, %v1858_v29  ;;  %v2371_v58 = vadd.f32 %v2243_v43, %v1859_v34  ;;  %12054 = vset.pattern.permute.xlu1 %v15468_v7  ;;  %v9573_v34 = vld [vmem:[#allocation3 + $0x100] sm:$0xf]  ;;  %v12205_v19 = vld [vmem:[%s15365_s0 + $0x9c] sm:$0xf] }
 0x2f4   :  { %2079 = vperm.xlu1 %12054, %v12204_v36   ;;  %v14203_v30 = vpop.permute.xlu2 %2055 }
 0x2f5   :  { %v3752_v51 = vrot.slane %v3624_v59, 2  ;;  %v2882_v50 = vadd.f32 %v2754_v44, %v2370_v1  ;;  %v2883_v27 = vadd.f32 %v2755_v14, %v2371_v58  ;;  %12055 = vset.pattern.permute.xlu2 %v15475_v41  ;;  %v15498_v1 = vld [vmem:[#allocation46_spill] sm:$0xff] }
 0x2f6   :  { %2591 = vperm.xlu2 %12055, %v12204_v36   ;;  %v696_v58 = vmul.f32 %v13081_v18, %v15498_v1 }
 0x2f7   :  { %v3877_v25 = vsel %vm3787_vm0, %v3624_v59, %v3752_v51  ;;  %v3010_v0 = vmax.f32 %v1730_v63, %v2882_v50  ;;  %v3011_v28 = vmax.f32 %v1731_v40, %v2883_v27  ;;  %v697_v63 = vmul.f32 %v13083_v55, %v15498_v1 }
 0x2f8   :  { %4073 = vst [vmem:[#allocation2 + $0x74] sm:$0xf] %v3877_v25  ;;  %v4582_v48 = vld.sshfl [vmem:[#allocation1] sm:$0xff pattern:$0x73625140]  ;;  %v1604_v51 = vmul.f32 %v13105_v2, %v14153_v6  ;;  %v1605_v50 = vmul.f32 %v13107_v16, %v14153_v6 }
 0x2f9   :  { %v3143_v45 = vadd.f32 %v13125_v32, %v3010_v0  ;;  %v3144_v29 = vadd.f32 %v13127_v22, %v3011_v28  ;;  %v888_v13 = vpop.permute.xlu1 %887  ;;  %v4584_v12 = vld.sshfl [vmem:[#allocation1 + $0x8] sm:$0xff pattern:$0x73625140]  ;;  %v4600_v24 = vunpack.c.l.b16 %v4582_v48  ;;  %v2372_v28 = vadd.f32 %v2244_v11, %v1860_v5  ;;  %v9581_v6 = vld [vmem:[#allocation3 + $0x108] sm:$0xf] }
 0x2fa   :  { %v11435_v36 = vld [vmem:[#allocation3 + $0x11c] sm:$0xf0]  ;;  %v9575_v23 = vld [vmem:[#allocation3 + $0x120] sm:$0xf0]  ;;  %v4601_v44 = vunpack.c.l.b16 %v4584_v12  ;;  %v1086_v38 = vmul.f32 %v13086_v49, %v888_v13  ;;  %v1087_v43 = vmul.f32 %v13088_v9, %v888_v13  ;;  %v2373_v48 = vadd.f32 %v2245_v17, %v1861_v33 }
 0x2fb   :  { %vm3271_vm1 = vcmp.gt.f32.partialorder %v3143_v45, 0.0  ;;  %vm3272_vm2 = vcmp.gt.f32.partialorder %v3144_v29, 0.0  ;;  %v3399_v20 = vmul.f32 0.01, %v3143_v45  ;;  %v3400_v35 = vmul.f32 0.01, %v3144_v29 }
 0x2fc   :  { %v9574_v31 = vor.u32 %v11435_v36, %v9573_v34  ;;  %v9578_v14 = vor.u32 %v11431_v21, %v9575_v23  ;;  %12057 = vset.pattern.permute.xlu1 %v15460_v8  ;;  %v4607_v42 = vpack.c.b16 %v4601_v44, %v4600_v24  ;;  %v1214_v25 = vadd.f32 %v1086_v38, %v696_v58  ;;  %v11432_v44 = vld [vmem:[#allocation3 + $0x10c] sm:$0xf]  ;;  %v12206_v58 = vld [vmem:[%s15365_s0 + $0xa0] sm:$0xf] }
 0x2fd   :  { %v3527_v54 = vsel %vm3271_vm1, %v3143_v45, %v3399_v20  ;;  %v3528_v3 = vsel %vm3272_vm2, %v3144_v29, %v3400_v35  ;;  %1437 = vperm.xlu1 %12057, %v12205_v19   ;;  %v14223_v59 = vpop.permute.xlu2 %1413  ;;  %v1215_v0 = vadd.f32 %v1087_v43, %v697_v63  ;;  %v1089_v63 = vmul.f32 %v13088_v9, %v14190_v26 }
 0x2fe   :  { %v3625_v10 = vpack.c.bf16 %v3528_v3, %v3527_v54  ;;  %6081 = vmatmul.bf16.gmra.mxu0 %v9574_v31  ;;  %12058 = vset.pattern.permute.xlu2 %v15468_v7  ;;  %4615 = vst [vmem:[#allocation3 + $0x128] sm:$0x33] %v4607_v42  ;;  %v1732_v12 = vadd.f32 %v1604_v51, %v1214_v25  ;;  %v15499_v31 = vld [vmem:[#allocation36_spill] sm:$0xff] }
 0x2ff   :  { %v4571_v40 = vld [vmem:[#allocation2 + $0x74] sm:$0xf]  ;;  %6139 = vmatmul.bf16.gmra.mxu1 %v9578_v14  ;;  %2083 = vperm.xlu2 %12058, %v12205_v19   ;;  %v1733_v24 = vadd.f32 %v1605_v50, %v1215_v0  ;;  %v698_v14 = vmul.f32 %v13081_v18, %v15499_v31  ;;  %v699_v54 = vmul.f32 %v13083_v55, %v15499_v31 }
 0x300   :  { %v3753_v27 = vrot.slane %v3625_v10, 2  ;;  %4587 = vst [vmem:[#allocation1] ss:$4 sm:$0xff] %v4571_v40  ;;  %v2246_v51 = vmul.f32 %v14203_v30, %v13086_v49  ;;  %v2247_v50 = vmul.f32 %v14203_v30, %v13088_v9  ;;  %v2759_v30 = vmul.f32 %v14133_v15, %v13107_v16 }
 0x302   :  { %v3880_v45 = vsel %vm3787_vm0, %v3625_v10, %v3753_v27  ;;  %v2564_v29 = vpop.permute.xlu1 %2563  ;;  %v1088_v10 = vmul.f32 %v13086_v49, %v14190_v26 }
 0x303   :  { %4074 = vst [vmem:[#allocation2 + $0x78] sm:$0xf] %v3880_v45  ;;  %v2756_v13 = vmul.f32 %v2564_v29, %v13105_v2  ;;  %v2757_v34 = vmul.f32 %v2564_v29, %v13107_v16 }
 0x305   :  { %v2884_v36 = vadd.f32 %v2756_v13, %v2372_v28  ;;  %v2885_v21 = vadd.f32 %v2757_v34, %v2373_v48  ;;  %12059 = vset.pattern.permute.xlu1 %v15475_v41  ;;  %v11436_v23 = vld [vmem:[#allocation3 + $0x124] sm:$0xf0]  ;;  %v9583_v20 = vld [vmem:[#allocation3 + $0x128] sm:$0xf0]  ;;  %v2758_v48 = vmul.f32 %v14133_v15, %v13105_v2 }
 0x306   :  { %2595 = vperm.xlu1 %12059, %v12205_v19   ;;  %v9582_v33 = vor.u32 %v11436_v23, %v9581_v6  ;;  %v9586_v38 = vor.u32 %v11432_v44, %v9583_v20  ;;  %v1217_v6 = vadd.f32 %v1089_v63, %v699_v54 }
 0x307   :  { %v3012_v11 = vmax.f32 %v1732_v12, %v2884_v36  ;;  %v3013_v17 = vmax.f32 %v1733_v24, %v2885_v21  ;;  %v4588_v5 = vld.sshfl [vmem:[#allocation1] sm:$0xff pattern:$0x73625140]  ;;  %v4590_v35 = vld.sshfl [vmem:[#allocation1 + $0x8] sm:$0xff pattern:$0x73625140]  ;;  %12060 = vset.pattern.permute.xlu2 %v15464_v60  ;;  %v14243_v3 = vpop.permute.xlu2 %2571  ;;  %v1216_v24 = vadd.f32 %v1088_v10, %v698_v14 }
 0x308   :  { %v4602_v43 = vunpack.c.l.b16 %v4588_v5  ;;  %v4603_v42 = vunpack.c.l.b16 %v4590_v35  ;;  %923 = vperm.xlu2 %12060, %v12206_v58   ;;  %6197 = vmatmul.bf16.gmra.mxu2 %v9582_v33 }
 0x309   :  { %v3145_v19 = vadd.f32 %v13125_v32, %v3012_v11  ;;  %v3146_v1 = vadd.f32 %v13127_v22, %v3013_v17  ;;  %6255 = vmatmul.bf16.gmra.mxu3 %v9586_v38 }
 0x30a   :  { %v4573_v40 = vld [vmem:[#allocation2 + $0x78] sm:$0xf]  ;;  %v4608_v27 = vpack.c.b16 %v4603_v42, %v4602_v43 }
 0x30b   :  { %vm3273_vm3 = vcmp.gt.f32.partialorder %v3145_v19, 0.0  ;;  %vm3274_vm4 = vcmp.gt.f32.partialorder %v3146_v1, 0.0  ;;  %v3401_v25 = vmul.f32 0.01, %v3145_v19  ;;  %v3402_v0 = vmul.f32 0.01, %v3146_v1  ;;  %v1410_v28 = vpop.permute.xlu1 %1409 }
 0x30c   :  { %4593 = vst [vmem:[#allocation1] ss:$4 sm:$0xff] %v4573_v40  ;;  %v1606_v26 = vmul.f32 %v13105_v2, %v1410_v28  ;;  %v1862_v45 = vmul.f32 %v1410_v28, %v13081_v18  ;;  %v1863_v29 = vmul.f32 %v1410_v28, %v13083_v55  ;;  %v1607_v12 = vmul.f32 %v13107_v16, %v1410_v28  ;;  %v4618_v14 = vld [vmem:[#allocation2 + $0x78] sm:$0xf] }
 0x30d   :  { %v3529_v13 = vsel %vm3273_vm3, %v3145_v19, %v3401_v25  ;;  %v3530_v34 = vsel %vm3274_vm4, %v3146_v1, %v3402_v0  ;;  %4616 = vst [vmem:[#allocation3 + $0x130] sm:$0x33] %v4608_v27  ;;  %v12207_v27 = vld [vmem:[%s15365_s0 + $0xa4] sm:$0xf] }
 0x30e   :  { %v3626_v36 = vpack.c.bf16 %v3530_v34, %v3529_v13  ;;  %v2374_v21 = vadd.f32 %v2246_v51, %v1862_v45  ;;  %v2375_v23 = vadd.f32 %v2247_v50, %v1863_v29  ;;  %12062 = vset.pattern.permute.xlu1 %v15468_v7  ;;  %v1734_v20 = vadd.f32 %v1606_v26, %v1216_v24  ;;  %v15500_v26 = vld [vmem:[#allocation50_spill] sm:$0xff] }
 0x30f   :  { %2087 = vperm.xlu1 %12062, %v12206_v58   ;;  %v1735_v17 = vadd.f32 %v1607_v12, %v1217_v6  ;;  %v700_v45 = vmul.f32 %v13081_v18, %v15500_v26  ;;  %v701_v29 = vmul.f32 %v13083_v55, %v15500_v26  ;;  %v1609_v24 = vmul.f32 %v13107_v16, %v14223_v59 }
 0x310   :  { %v3754_v44 = vrot.slane %v3626_v36, 2  ;;  %v2886_v11 = vadd.f32 %v2758_v48, %v2374_v21  ;;  %v2887_v5 = vadd.f32 %v2759_v30, %v2375_v23  ;;  %12063 = vset.pattern.permute.xlu2 %v15475_v41  ;;  %v1608_v30 = vmul.f32 %v13105_v2, %v14223_v59 }
 0x311   :  { %2599 = vperm.xlu2 %12063, %v12206_v58   ;;  %v14269_v33 = vpop.permute.xlu2 %2063  ;;  %v1865_v21 = vmul.f32 %v14223_v59, %v13083_v55 }
 0x312   :  { %v3883_v15 = vsel %vm3787_vm0, %v3626_v36, %v3754_v44  ;;  %v3014_v35 = vmax.f32 %v1734_v20, %v2886_v11  ;;  %v3015_v38 = vmax.f32 %v1735_v17, %v2887_v5  ;;  %v1864_v36 = vmul.f32 %v14223_v59, %v13081_v18 }
 0x313   :  { %4075 = vst [vmem:[#allocation2 + $0x7c] sm:$0xf] %v3883_v15  ;;  %v4594_v31 = vld.sshfl [vmem:[#allocation1] sm:$0xff pattern:$0x73625140]  ;;  %v2760_v44 = vmul.f32 %v14243_v3, %v13105_v2  ;;  %v2761_v20 = vmul.f32 %v14243_v3, %v13107_v16 }
 0x314   :  { %v3147_v54 = vadd.f32 %v13125_v32, %v3014_v35  ;;  %v896_v43 = vpop.permute.xlu1 %895  ;;  %v4596_v42 = vld.sshfl [vmem:[#allocation1 + $0x8] sm:$0xff pattern:$0x73625140]  ;;  %v4604_v10 = vunpack.c.l.b16 %v4594_v31  ;;  %v3148_v19 = vadd.f32 %v13127_v22, %v3015_v38  ;;  %v14301_v31 = vpop.f32.mrf.mxu0 }
 0x315   :  { %4626 = vst [vmem:[#allocation1] ss:$4 sm:$0xff] %v4618_v14  ;;  %v4605_v63 = vunpack.c.l.b16 %v4596_v42  ;;  %v1090_v0 = vmul.f32 %v13086_v49, %v896_v43  ;;  %v1091_v48 = vmul.f32 %v13088_v9, %v896_v43  ;;  %v14303_v14 = vpop.f32.mrf.mxu1 }
 0x316   :  { %vm3275_vm5 = vcmp.gt.f32.partialorder %v3147_v54, 0.0  ;;  %v3403_v1 = vmul.f32 0.01, %v3147_v54  ;;  %vm3276_vm6 = vcmp.gt.f32.partialorder %v3148_v19, 0.0  ;;  %v3404_v40 = vmul.f32 0.01, %v3148_v19 }
 0x317   :  { %12064 = vset.pattern.permute.xlu1 %v15464_v60  ;;  %v4609_v51 = vpack.c.b16 %v4605_v63, %v4604_v10  ;;  %v1218_v17 = vadd.f32 %v1090_v0, %v700_v45  ;;  %v1219_v15 = vadd.f32 %v1091_v48, %v701_v29  ;;  %v12208_v63 = vld [vmem:[%s15365_s0 + $0xa8] sm:$0xf] }
 0x318   :  { %v3531_v58 = vsel %vm3275_vm5, %v3147_v54, %v3403_v1  ;;  %v3532_v50 = vsel %vm3276_vm6, %v3148_v19, %v3404_v40  ;;  %927 = vperm.xlu1 %12064, %v12207_v27  }
 0x319   :  { %v3627_v25 = vpack.c.bf16 %v3532_v50, %v3531_v58  ;;  %12065 = vset.pattern.permute.xlu2 %v15460_v8  ;;  %4617 = vst [vmem:[#allocation3 + $0x138] sm:$0x33] %v4609_v51  ;;  %v1736_v42 = vadd.f32 %v1608_v30, %v1218_v17  ;;  %v1737_v10 = vadd.f32 %v1609_v24, %v1219_v15 }
 0x31a   :  { %v4620_v28 = vld [vmem:[#allocation2 + $0x7c] sm:$0xf]  ;;  %1445 = vperm.xlu2 %12065, %v12207_v27   ;;  %v14286_v34 = vpop.permute.xlu2 %903  ;;  %v2250_v17 = vmul.f32 %v14269_v33, %v13086_v49 }
 0x31b   :  { %v3755_v13 = vrot.slane %v3627_v25, 2 }
 0x31c   :  { %v4627_v12 = vld.sshfl [vmem:[#allocation1] sm:$0xff pattern:$0x73625140]  ;;  %v4629_v6 = vld.sshfl [vmem:[#allocation1 + $0x8] sm:$0xff pattern:$0x73625140] }
 0x31d   :  { %v4649_v23 = vunpack.c.l.b16 %v4627_v12  ;;  %v3886_v11 = vsel %vm3787_vm0, %v3627_v25, %v3755_v13  ;;  %4632 = vst [vmem:[#allocation1] ss:$4 sm:$0xff] %v4620_v28  ;;  %v4650_v59 = vunpack.c.l.b16 %v4629_v6 }
 0x31e   :  { %v2060_v5 = vpop.permute.xlu1 %2059  ;;  %4076 = vst [vmem:[#allocation2 + $0x80] sm:$0xf] %v3886_v11 }
 0x31f   :  { %v2248_v35 = vmul.f32 %v2060_v5, %v13086_v49  ;;  %v2249_v38 = vmul.f32 %v2060_v5, %v13088_v9  ;;  %v4657_v3 = vpack.c.b16 %v4650_v59, %v4649_v23 }
 0x320   :  { %12067 = vset.pattern.permute.xlu1 %v15475_v41 }
 0x321   :  { %v2376_v54 = vadd.f32 %v2248_v35, %v1864_v36  ;;  %v2377_v43 = vadd.f32 %v2249_v38, %v1865_v21  ;;  %2603 = vperm.xlu1 %12067, %v12207_v27   ;;  %4665 = vst [vmem:[#allocation3 + $0x140] sm:$0x33] %v4657_v3  ;;  %v900_v36 = vpop.permute.xlu0 %899  ;;  %v2251_v35 = vmul.f32 %v14269_v33, %v13088_v9 }
 0x322   :  { %12068 = vset.pattern.permute.xlu2 %v15464_v60  ;;  %v1093_v11 = vmul.f32 %v13088_v9, %v900_v36 }
 0x323   :  { %v2888_v19 = vadd.f32 %v2760_v44, %v2376_v54  ;;  %v2889_v1 = vadd.f32 %v2761_v20, %v2377_v43  ;;  %931 = vperm.xlu2 %12068, %v12208_v63   ;;  %v14310_v40 = vpop.permute.xlu2 %2579  ;;  %v1092_v20 = vmul.f32 %v13086_v49, %v900_v36  ;;  %v15501_v43 = vld [vmem:[#allocation49_spill] sm:$0xff] }
 0x324   :  { %v4633_v50 = vld.sshfl [vmem:[#allocation1] sm:$0xff pattern:$0x73625140]  ;;  %v4635_v25 = vld.sshfl [vmem:[#allocation1 + $0x8] sm:$0xff pattern:$0x73625140]  ;;  %v702_v3 = vmul.f32 %v13081_v18, %v15501_v43 }
 0x325   :  { %v3016_v58 = vmax.f32 %v1736_v42, %v2888_v19  ;;  %v3017_v51 = vmax.f32 %v1737_v10, %v2889_v1  ;;  %v4622_v0 = vld [vmem:[#allocation2 + $0x80] sm:$0xf]  ;;  %v4651_v28 = vunpack.c.l.b16 %v4633_v50  ;;  %v4652_v27 = vunpack.c.l.b16 %v4635_v25 }
 0x326   :  { %4638 = vst [vmem:[#allocation1] ss:$4 sm:$0xff] %v4622_v0  ;;  %v703_v42 = vmul.f32 %v13083_v55, %v15501_v43  ;;  %v1220_v50 = vadd.f32 %v1092_v20, %v702_v3 }
 0x327   :  { %v3149_v48 = vadd.f32 %v13125_v32, %v3016_v58  ;;  %v3150_v26 = vadd.f32 %v13127_v22, %v3017_v51  ;;  %v1418_v45 = vpop.permute.xlu1 %1417  ;;  %v4658_v30 = vpack.c.b16 %v4652_v27, %v4651_v28  ;;  %v14335_v27 = vpop.f32.mrf.mxu3 }
 0x328   :  { %v6077_v29 = vpop.f32.mrf.mxu0  ;;  %v6135_v24 = vpop.f32.mrf.mxu1  ;;  %v1866_v5 = vmul.f32 %v1418_v45, %v13081_v18  ;;  %v1867_v59 = vmul.f32 %v1418_v45, %v13083_v55  ;;  %v1610_v10 = vmul.f32 %v13105_v2, %v1418_v45  ;;  %v1611_v33 = vmul.f32 %v13107_v16, %v1418_v45  ;;  %15503 = vst [vmem:[#allocation25_spill] sm:$0xff] %v14335_v27 }
 0x329   :  { %vm3277_vm7 = vcmp.gt.f32.partialorder %v3149_v48, 0.0  ;;  %vm3278_vm8 = vcmp.gt.f32.partialorder %v3150_v26, 0.0  ;;  %v3405_v13 = vmul.f32 0.01, %v3149_v48  ;;  %v3406_v12 = vmul.f32 0.01, %v3150_v26  ;;  %12069 = vset.pattern.permute.xlu1 %v15460_v8 }
 0x32a   :  { %v6136_v23 = vadd.f32 %v6135_v24, %v6077_v29  ;;  %1449 = vperm.xlu1 %12069, %v12208_v63   ;;  %4666 = vst [vmem:[#allocation3 + $0x148] sm:$0x33] %v4658_v30  ;;  %v1221_v25 = vadd.f32 %v1093_v11, %v703_v42  ;;  %v2378_v28 = vadd.f32 %v2250_v17, %v1866_v5  ;;  %v1422_v11 = vpop.permute.xlu0 %1421 }
 0x32b   :  { %v3533_v21 = vsel %vm3277_vm7, %v3149_v48, %v3405_v13  ;;  %v3534_v6 = vsel %vm3278_vm8, %v3150_v26, %v3406_v12  ;;  %12070 = vset.pattern.permute.xlu2 %v15468_v7  ;;  %v2379_v48 = vadd.f32 %v2251_v35, %v1867_v59  ;;  %v1094_v13 = vmul.f32 %v13086_v49, %v14286_v34 }
 0x32c   :  { %v3628_v44 = vpack.c.bf16 %v3534_v6, %v3533_v21  ;;  %2095 = vperm.xlu2 %12070, %v12208_v63   ;;  %v14321_v15 = vpop.permute.xlu2 %1425  ;;  %v14331_v63 = vpop.f32.mrf.mxu2  ;;  %v1095_v45 = vmul.f32 %v13088_v9, %v14286_v34  ;;  %v1738_v12 = vadd.f32 %v1610_v10, %v1220_v50  ;;  %v1739_v24 = vadd.f32 %v1611_v33, %v1221_v25  ;;  %v12209_v6 = vld [vmem:[%s15365_s0 + $0xac] sm:$0xf] }
 0x32d   :  { %v4639_v54 = vld.sshfl [vmem:[#allocation1] sm:$0xff pattern:$0x73625140]  ;;  %v4641_v19 = vld.sshfl [vmem:[#allocation1 + $0x8] sm:$0xff pattern:$0x73625140]  ;;  %v1612_v35 = vmul.f32 %v13105_v2, %v1422_v11  ;;  %v1868_v33 = vmul.f32 %v1422_v11, %v13081_v18 }
 0x32e   :  { %v3756_v38 = vrot.slane %v3628_v44, 2  ;;  %v4653_v1 = vunpack.c.l.b16 %v4639_v54  ;;  %15502 = vst [vmem:[#allocation29_spill] sm:$0xff] %v14331_v63  ;;  %v4654_v51 = vunpack.c.l.b16 %v4641_v19 }
 0x330   :  { %v3889_v58 = vsel %vm3787_vm0, %v3628_v44, %v3756_v38  ;;  %v2576_v0 = vpop.permute.xlu1 %2575  ;;  %v4659_v30 = vpack.c.b16 %v4654_v51, %v4653_v1  ;;  %v15504_v44 = vld [vmem:[#allocation39_spill] sm:$0xff]  ;;  %v1613_v38 = vmul.f32 %v13107_v16, %v1422_v11  ;;  %v2764_v1 = vmul.f32 %v14310_v40, %v13105_v2 }
 0x331   :  { %4077 = vst [vmem:[#allocation2 + $0x84] sm:$0xf] %v3889_v58  ;;  %v2762_v26 = vmul.f32 %v2576_v0, %v13105_v2  ;;  %v2763_v29 = vmul.f32 %v2576_v0, %v13107_v16  ;;  %v704_v20 = vmul.f32 %v13081_v18, %v15504_v44  ;;  %v705_v34 = vmul.f32 %v13083_v55, %v15504_v44 }
 0x332   :  { %12072 = vset.pattern.permute.xlu1 %v15464_v60  ;;  %4667 = vst [vmem:[#allocation3 + $0x150] sm:$0x33] %v4659_v30  ;;  %v1869_v51 = vmul.f32 %v1422_v11, %v13083_v55 }
 0x333   :  { %v2890_v36 = vadd.f32 %v2762_v26, %v2378_v28  ;;  %v2891_v21 = vadd.f32 %v2763_v29, %v2379_v48  ;;  %935 = vperm.xlu1 %12072, %v12209_v6   ;;  %v1222_v54 = vadd.f32 %v1094_v13, %v704_v20  ;;  %v1223_v43 = vadd.f32 %v1095_v45, %v705_v34 }
 0x334   :  { %12073 = vset.pattern.permute.xlu2 %v15460_v8  ;;  %v2765_v48 = vmul.f32 %v14310_v40, %v13107_v16 }
 0x335   :  { %v3018_v17 = vmax.f32 %v1738_v12, %v2890_v36  ;;  %v3019_v5 = vmax.f32 %v1739_v24, %v2891_v21  ;;  %1453 = vperm.xlu2 %12073, %v12209_v6   ;;  %v14354_v59 = vpop.permute.xlu2 %911  ;;  %v1740_v36 = vadd.f32 %v1612_v35, %v1222_v54  ;;  %v1741_v21 = vadd.f32 %v1613_v38, %v1223_v43  ;;  %v2072_v54 = vpop.permute.xlu0 %2071 }
 0x336   :  { %v6193_v19 = vpop.f32.mrf.mxu2 }
 0x337   :  { %v3151_v42 = vadd.f32 %v13125_v32, %v3018_v17  ;;  %v3152_v10 = vadd.f32 %v13127_v22, %v3019_v5  ;;  %v6194_v58 = vadd.f32 %v6193_v19, %v6136_v23 }
 0x338   :  { %v4624_v3 = vld [vmem:[#allocation2 + $0x84] sm:$0xf]  ;;  %v6251_v0 = vpop.f32.mrf.mxu3 }
 0x339   :  { %4644 = vst [vmem:[#allocation1] ss:$4 sm:$0xff] %v4624_v3  ;;  %vm3279_vm9 = vcmp.gt.f32.partialorder %v3151_v42, 0.0  ;;  %vm3280_vm10 = vcmp.gt.f32.partialorder %v3152_v10, 0.0  ;;  %v3407_v50 = vmul.f32 0.01, %v3151_v42  ;;  %v2068_v28 = vpop.permute.xlu1 %2067  ;;  %v14364_v26 = vadd.f32 %v6251_v0, %v6194_v58 }
 0x33a   :  { %v3408_v25 = vmul.f32 0.01, %v3152_v10  ;;  %v2252_v29 = vmul.f32 %v2068_v28, %v13086_v49  ;;  %v2253_v23 = vmul.f32 %v2068_v28, %v13088_v9  ;;  %v4669_v44 = vld [vmem:[#allocation2 + $0x84] sm:$0xf]  ;;  %v1871_v0 = vmul.f32 %v14321_v15, %v13083_v55  ;;  %v12210_v28 = vld [vmem:[%s15365_s0 + $0xb0] sm:$0xf] }
 0x33b   :  { %15505 = vst [vmem:[#allocation32_spill] sm:$0xff] %v14364_v26  ;;  %v3535_v30 = vsel %vm3279_vm9, %v3151_v42, %v3407_v50  ;;  %12074 = vset.pattern.permute.xlu1 %v15468_v7  ;;  %v2255_v50 = vmul.f32 %v2072_v54, %v13088_v9 }
 0x33c   :  { %v3536_v13 = vsel %vm3280_vm10, %v3152_v10, %v3408_v25  ;;  %v2380_v12 = vadd.f32 %v2252_v29, %v1868_v33  ;;  %v2381_v24 = vadd.f32 %v2253_v23, %v1869_v51  ;;  %2099 = vperm.xlu1 %12074, %v12209_v6   ;;  %v1870_v25 = vmul.f32 %v14321_v15, %v13081_v18 }
 0x33d   :  { %v3629_v45 = vpack.c.bf16 %v3536_v13, %v3535_v30  ;;  %12075 = vset.pattern.permute.xlu2 %v15475_v41 }
 0x33e   :  { %v2892_v20 = vadd.f32 %v2764_v1, %v2380_v12  ;;  %v2893_v34 = vadd.f32 %v2765_v48, %v2381_v24  ;;  %2611 = vperm.xlu2 %12075, %v12209_v6   ;;  %v14370_v11 = vpop.permute.xlu2 %2075  ;;  %v2254_v6 = vmul.f32 %v2072_v54, %v13086_v49 }
 0x33f   :  { %v3757_v40 = vrot.slane %v3629_v45, 2 }
 0x340   :  { %v4645_v17 = vld.sshfl [vmem:[#allocation1] sm:$0xff pattern:$0x73625140]  ;;  %v4647_v5 = vld.sshfl [vmem:[#allocation1 + $0x8] sm:$0xff pattern:$0x73625140]  ;;  %v3020_v42 = vmax.f32 %v1740_v36, %v2892_v20  ;;  %v3021_v10 = vmax.f32 %v1741_v21, %v2893_v34 }
 0x341   :  { %v3892_v3 = vsel %vm3787_vm0, %v3629_v45, %v3757_v40  ;;  %4677 = vst [vmem:[#allocation1] ss:$4 sm:$0xff] %v4669_v44  ;;  %v4655_v19 = vunpack.c.l.b16 %v4645_v17  ;;  %v4656_v35 = vunpack.c.l.b16 %v4647_v5  ;;  %v15506_v36 = vld [vmem:[#allocation53_spill] sm:$0xff]  ;;  %v1614_v17 = vmul.f32 %v13105_v2, %v14321_v15 }
 0x342   :  { %4078 = vst [vmem:[#allocation2 + $0x88] sm:$0xf] %v3892_v3  ;;  %v3153_v38 = vadd.f32 %v13125_v32, %v3020_v42  ;;  %v3154_v43 = vadd.f32 %v13127_v22, %v3021_v10  ;;  %v908_v1 = vpop.permute.xlu1 %907  ;;  %v706_v21 = vmul.f32 %v13081_v18, %v15506_v36  ;;  %v707_v44 = vmul.f32 %v13083_v55, %v15506_v36 }
 0x343   :  { %v4660_v58 = vpack.c.b16 %v4656_v35, %v4655_v19  ;;  %v1096_v23 = vmul.f32 %v13086_v49, %v908_v1  ;;  %v1097_v30 = vmul.f32 %v13088_v9, %v908_v1  ;;  %v1615_v5 = vmul.f32 %v13107_v16, %v14321_v15 }
 0x344   :  { %vm3281_vm11 = vcmp.gt.f32.partialorder %v3153_v38, 0.0  ;;  %vm3282_vm12 = vcmp.gt.f32.partialorder %v3154_v43, 0.0  ;;  %v3409_v33 = vmul.f32 0.01, %v3153_v38  ;;  %v3410_v51 = vmul.f32 0.01, %v3154_v43  ;;  %12077 = vset.pattern.permute.xlu1 %v15460_v8 }
 0x345   :  { %1457 = vperm.xlu1 %12077, %v12210_v28   ;;  %4668 = vst [vmem:[#allocation3 + $0x158] sm:$0x33] %v4660_v58  ;;  %v2382_v42 = vadd.f32 %v2254_v6, %v1870_v25  ;;  %v1224_v10 = vadd.f32 %v1096_v23, %v706_v21  ;;  %v1225_v19 = vadd.f32 %v1097_v30, %v707_v44  ;;  %v12211_v23 = vld [vmem:[%s15365_s0 + $0xb4] sm:$0xf] }
 0x346   :  { %v3537_v48 = vsel %vm3281_vm11, %v3153_v38, %v3409_v33  ;;  %v3538_v29 = vsel %vm3282_vm12, %v3154_v43, %v3410_v51  ;;  %12078 = vset.pattern.permute.xlu2 %v15468_v7  ;;  %v2383_v35 = vadd.f32 %v2255_v50, %v1871_v0  ;;  %v15507_v50 = vld [vmem:[#allocation52_spill] sm:$0xff]  ;;  %v2588_v0 = vpop.permute.xlu0 %2587 }
 0x347   :  { %v3630_v13 = vpack.c.bf16 %v3538_v29, %v3537_v48  ;;  %2103 = vperm.xlu2 %12078, %v12210_v28   ;;  %v14388_v45 = vpop.permute.xlu2 %1433  ;;  %v1742_v33 = vadd.f32 %v1614_v17, %v1224_v10  ;;  %v1743_v15 = vadd.f32 %v1615_v5, %v1225_v19  ;;  %v708_v25 = vmul.f32 %v13081_v18, %v15507_v50  ;;  %v9605_v10 = vld [vmem:[#allocation3 + $0x140] sm:$0xf]  ;;  %v11439_v19 = vld [vmem:[#allocation3 + $0x144] sm:$0xf] }
 0x348   :  { %v4678_v12 = vld.sshfl [vmem:[#allocation1] sm:$0xff pattern:$0x73625140]  ;;  %v4680_v24 = vld.sshfl [vmem:[#allocation1 + $0x8] sm:$0xff pattern:$0x73625140]  ;;  %v2769_v44 = vmul.f32 %v2588_v0, %v13107_v16  ;;  %v1099_v17 = vmul.f32 %v13088_v9, %v14354_v59 }
 0x349   :  { %v4671_v40 = vld [vmem:[#allocation2 + $0x88] sm:$0xf]  ;;  %v4700_v20 = vunpack.c.l.b16 %v4678_v12  ;;  %v4701_v34 = vunpack.c.l.b16 %v4680_v24  ;;  %v3758_v3 = vrot.slane %v3630_v13, 2  ;;  %v2768_v24 = vmul.f32 %v2588_v0, %v13105_v2 }
 0x34a   :  { %4683 = vst [vmem:[#allocation1] ss:$4 sm:$0xff] %v4671_v40  ;;  %v1098_v40 = vmul.f32 %v13086_v49, %v14354_v59 }
 0x34b   :  { %v4708_v54 = vpack.c.b16 %v4701_v34, %v4700_v20  ;;  %v3895_v38 = vsel %vm3787_vm0, %v3630_v13, %v3758_v3  ;;  %v2584_v43 = vpop.permute.xlu1 %2583  ;;  %v2256_v3 = vmul.f32 %v14370_v11, %v13086_v49 }
 0x34c   :  { %4079 = vst [vmem:[#allocation2 + $0x8c] sm:$0xf] %v3895_v38  ;;  %v2766_v1 = vmul.f32 %v2584_v43, %v13105_v2  ;;  %v2767_v58 = vmul.f32 %v2584_v43, %v13107_v16 }
 0x34d   :  { %12079 = vset.pattern.permute.xlu1 %v15475_v41  ;;  %4716 = vst [vmem:[#allocation3 + $0x160] sm:$0x33] %v4708_v54 }
 0x34e   :  { %v2894_v51 = vadd.f32 %v2766_v1, %v2382_v42  ;;  %v2895_v6 = vadd.f32 %v2767_v58, %v2383_v35  ;;  %2615 = vperm.xlu1 %12079, %v12210_v28   ;;  %v709_v28 = vmul.f32 %v13083_v55, %v15507_v50  ;;  %v2257_v42 = vmul.f32 %v14370_v11, %v13088_v9 }
 0x34f   :  { %12080 = vset.pattern.permute.xlu2 %v15464_v60 }
 0x350   :  { %v3022_v48 = vmax.f32 %v1742_v33, %v2894_v51  ;;  %v3023_v29 = vmax.f32 %v1743_v15, %v2895_v6  ;;  %943 = vperm.xlu2 %12080, %v12211_v23   ;;  %v14408_v30 = vpop.permute.xlu2 %2591 }
 0x351   :  { %v4684_v13 = vld.sshfl [vmem:[#allocation1] sm:$0xff pattern:$0x73625140]  ;;  %v4686_v12 = vld.sshfl [vmem:[#allocation1 + $0x8] sm:$0xff pattern:$0x73625140] }
 0x352   :  { %v4702_v36 = vunpack.c.l.b16 %v4684_v13  ;;  %v4703_v21 = vunpack.c.l.b16 %v4686_v12  ;;  %v3155_v20 = vadd.f32 %v13125_v32, %v3022_v48  ;;  %v3156_v34 = vadd.f32 %v13127_v22, %v3023_v29 }
 0x353   :  { %v4673_v5 = vld [vmem:[#allocation2 + $0x8c] sm:$0xf]  ;;  %v1226_v48 = vadd.f32 %v1098_v40, %v708_v25  ;;  %v1227_v12 = vadd.f32 %v1099_v17, %v709_v28 }
 0x354   :  { %v4709_v35 = vpack.c.b16 %v4703_v21, %v4702_v36  ;;  %vm3283_vm13 = vcmp.gt.f32.partialorder %v3155_v20, 0.0  ;;  %vm3284_vm14 = vcmp.gt.f32.partialorder %v3156_v34, 0.0  ;;  %v3411_v54 = vmul.f32 0.01, %v3155_v20  ;;  %v1430_v43 = vpop.permute.xlu1 %1429  ;;  %v11443_v15 = vld [vmem:[#allocation3 + $0x15c] sm:$0xf0] }
 0x355   :  { %v3412_v38 = vmul.f32 0.01, %v3156_v34  ;;  %v1616_v1 = vmul.f32 %v13105_v2, %v1430_v43  ;;  %v1617_v58 = vmul.f32 %v13107_v16, %v1430_v43  ;;  %v1872_v59 = vmul.f32 %v1430_v43, %v13081_v18  ;;  %v9607_v51 = vld [vmem:[#allocation3 + $0x160] sm:$0xf0]  ;;  %4689 = vst [vmem:[#allocation1] ss:$4 sm:$0xff] %v4673_v5 }
 0x356   :  { %v1873_v33 = vmul.f32 %v1430_v43, %v13083_v55  ;;  %v3539_v11 = vsel %vm3283_vm13, %v3155_v20, %v3411_v54  ;;  %12082 = vset.pattern.permute.xlu1 %v15468_v7  ;;  %v9606_v50 = vor.u32 %v11443_v15, %v9605_v10  ;;  %v9610_v0 = vor.u32 %v11439_v19, %v9607_v51  ;;  %v11440_v54 = vld [vmem:[#allocation3 + $0x14c] sm:$0xf] }
 0x357   :  { %v3540_v6 = vsel %vm3284_vm14, %v3156_v34, %v3412_v38  ;;  %v2384_v13 = vadd.f32 %v2256_v3, %v1872_v59  ;;  %2107 = vperm.xlu1 %12082, %v12211_v23   ;;  %4717 = vst [vmem:[#allocation3 + $0x168] sm:$0x33] %v4709_v35  ;;  %v1744_v43 = vadd.f32 %v1616_v1, %v1226_v48 }
 0x358   :  { %v3631_v29 = vpack.c.bf16 %v3540_v6, %v3539_v11  ;;  %v2385_v36 = vadd.f32 %v2257_v42, %v1873_v33  ;;  %12083 = vset.pattern.permute.xlu2 %v15475_v41  ;;  %6086 = vmatmul.bf16.gmra.mxu0 %v9606_v50  ;;  %v1745_v34 = vadd.f32 %v1617_v58, %v1227_v12  ;;  %v12212_v58 = vld [vmem:[%s15365_s0 + $0xb8] sm:$0xf] }
 0x359   :  { %v2896_v26 = vadd.f32 %v2768_v24, %v2384_v13  ;;  %6144 = vmatmul.bf16.gmra.mxu1 %v9610_v0  ;;  %2619 = vperm.xlu2 %12083, %v12211_v23   ;;  %v14430_v20 = vpop.permute.xlu2 %2083  ;;  %v9613_v24 = vld [vmem:[#allocation3 + $0x148] sm:$0xf]  ;;  %v15508_v13 = vld [vmem:[#allocation42_spill] sm:$0xff] }
 0x35a   :  { %v3759_v21 = vrot.slane %v3631_v29, 2  ;;  %v2897_v5 = vadd.f32 %v2769_v44, %v2385_v36  ;;  %v710_v12 = vmul.f32 %v13081_v18, %v15508_v13  ;;  %v711_v36 = vmul.f32 %v13083_v55, %v15508_v13 }
 0x35b   :  { %v3024_v40 = vmax.f32 %v1744_v43, %v2896_v26  ;;  %v1618_v43 = vmul.f32 %v13105_v2, %v14388_v45 }
 0x35c   :  { %v3898_v25 = vsel %vm3787_vm0, %v3631_v29, %v3759_v21  ;;  %v3025_v3 = vmax.f32 %v1745_v34, %v2897_v5  ;;  %v4690_v28 = vld.sshfl [vmem:[#allocation1] sm:$0xff pattern:$0x73625140]  ;;  %v4692_v10 = vld.sshfl [vmem:[#allocation1 + $0x8] sm:$0xff pattern:$0x73625140]  ;;  %v1619_v34 = vmul.f32 %v13107_v16, %v14388_v45 }
 0x35d   :  { %4080 = vst [vmem:[#allocation2 + $0x90] sm:$0xf] %v3898_v25  ;;  %v3157_v17 = vadd.f32 %v13125_v32, %v3024_v40  ;;  %v916_v42 = vpop.permute.xlu1 %915  ;;  %v4704_v19 = vunpack.c.l.b16 %v4690_v28  ;;  %v4705_v23 = vunpack.c.l.b16 %v4692_v10  ;;  %v1874_v25 = vmul.f32 %v14388_v45, %v13081_v18 }
 0x35e   :  { %v3158_v35 = vadd.f32 %v13127_v22, %v3025_v3  ;;  %v11444_v44 = vld [vmem:[#allocation3 + $0x164] sm:$0xf0]  ;;  %v9615_v1 = vld [vmem:[#allocation3 + $0x168] sm:$0xf0]  ;;  %v1100_v0 = vmul.f32 %v13086_v49, %v916_v42  ;;  %v1101_v29 = vmul.f32 %v13088_v9, %v916_v42  ;;  %v1875_v40 = vmul.f32 %v14388_v45, %v13083_v55 }
 0x35f   :  { %vm3285_vm15 = vcmp.gt.f32.partialorder %v3157_v17, 0.0  ;;  %v3413_v38 = vmul.f32 0.01, %v3157_v17  ;;  %12084 = vset.pattern.permute.xlu1 %v15464_v60  ;;  %v9614_v33 = vor.u32 %v11444_v44, %v9613_v24  ;;  %v9618_v15 = vor.u32 %v11440_v54, %v9615_v1  ;;  %v12213_v44 = vld [vmem:[%s15365_s0 + $0xbc] sm:$0xf] }
 0x360   :  { %vm3286_vm1 = vcmp.gt.f32.partialorder %v3158_v35, 0.0  ;;  %v3414_v26 = vmul.f32 0.01, %v3158_v35  ;;  %947 = vperm.xlu1 %12084, %v12212_v58   ;;  %v4710_v51 = vpack.c.b16 %v4705_v23, %v4704_v19  ;;  %v2770_v3 = vmul.f32 %v14408_v30, %v13105_v2 }
 0x361   :  { %v3541_v59 = vsel %vm3285_vm15, %v3157_v17, %v3413_v38  ;;  %12085 = vset.pattern.permute.xlu2 %v15460_v8  ;;  %6202 = vmatmul.bf16.gmra.mxu2 %v9614_v33  ;;  %v1228_v17 = vadd.f32 %v1100_v0, %v710_v12  ;;  %v2771_v10 = vmul.f32 %v14408_v30, %v13107_v16 }
 0x362   :  { %v3542_v11 = vsel %vm3286_vm1, %v3158_v35, %v3414_v26  ;;  %1465 = vperm.xlu2 %12085, %v12212_v58   ;;  %6260 = vmatmul.bf16.gmra.mxu3 %v9618_v15  ;;  %v14441_v48 = vpop.permute.xlu2 %923  ;;  %4718 = vst [vmem:[#allocation3 + $0x170] sm:$0x33] %v4710_v51  ;;  %v1229_v19 = vadd.f32 %v1101_v29, %v711_v36  ;;  %v920_v29 = vpop.permute.xlu0 %919 }
 0x363   :  { %v3632_v50 = vpack.c.bf16 %v3542_v11, %v3541_v59  ;;  %v1746_v23 = vadd.f32 %v1618_v43, %v1228_v17  ;;  %v14473_v36 = vpop.f32.mrf.mxu0 }
 0x364   :  { %v4675_v6 = vld [vmem:[#allocation2 + $0x90] sm:$0xf]  ;;  %v1747_v59 = vadd.f32 %v1619_v34, %v1229_v19  ;;  %15509 = vst [vmem:[#allocation31_spill] sm:$0xff] %v14473_v36  ;;  %v1102_v34 = vmul.f32 %v13086_v49, %v920_v29 }
 0x365   :  { %4695 = vst [vmem:[#allocation1] ss:$4 sm:$0xff] %v4675_v6  ;;  %v3760_v21 = vrot.slane %v3632_v50, 2  ;;  %v4720_v45 = vld [vmem:[#allocation2 + $0x90] sm:$0xf] }
 0x366   :  { %v2080_v5 = vpop.permute.xlu1 %2079 }
 0x367   :  { %v3901_v28 = vsel %vm3787_vm0, %v3632_v50, %v3760_v21  ;;  %v2258_v42 = vmul.f32 %v2080_v5, %v13086_v49  ;;  %v2259_v35 = vmul.f32 %v2080_v5, %v13088_v9  ;;  %v1103_v5 = vmul.f32 %v13088_v9, %v920_v29 }
 0x368   :  { %4081 = vst [vmem:[#allocation2 + $0x94] sm:$0xf] %v3901_v28  ;;  %12087 = vset.pattern.permute.xlu1 %v15475_v41 }
 0x369   :  { %v2386_v24 = vadd.f32 %v2258_v42, %v1874_v25  ;;  %2623 = vperm.xlu1 %12087, %v12212_v58   ;;  %v2387_v54 = vadd.f32 %v2259_v35, %v1875_v40  ;;  %v14477_v25 = vpop.f32.mrf.mxu1  ;;  %v2260_v40 = vmul.f32 %v14430_v20, %v13086_v49 }
 0x36a   :  { %12088 = vset.pattern.permute.xlu2 %v15464_v60  ;;  %15510 = vst [vmem:[#allocation26_spill] sm:$0xff] %v14477_v25 }
 0x36b   :  { %v2898_v38 = vadd.f32 %v2770_v3, %v2386_v24  ;;  %951 = vperm.xlu2 %12088, %v12213_v44   ;;  %v14468_v30 = vpop.permute.xlu2 %2599  ;;  %v2899_v33 = vadd.f32 %v2771_v10, %v2387_v54 }
 0x36c   :  { %v4696_v26 = vld.sshfl [vmem:[#allocation1] sm:$0xff pattern:$0x73625140]  ;;  %v4698_v1 = vld.sshfl [vmem:[#allocation1 + $0x8] sm:$0xff pattern:$0x73625140] }
 0x36d   :  { %4728 = vst [vmem:[#allocation1] ss:$4 sm:$0xff] %v4720_v45  ;;  %v4706_v15 = vunpack.c.l.b16 %v4696_v26  ;;  %v3026_v58 = vmax.f32 %v1746_v23, %v2898_v38  ;;  %v4707_v51 = vunpack.c.l.b16 %v4698_v1  ;;  %v3027_v11 = vmax.f32 %v1747_v59, %v2899_v33  ;;  %v15511_v38 = vld [vmem:[#allocation56_spill] sm:$0xff] }
 0x36e   :  { %v2261_v45 = vmul.f32 %v14430_v20, %v13088_v9  ;;  %v712_v26 = vmul.f32 %v13081_v18, %v15511_v38  ;;  %v713_v1 = vmul.f32 %v13083_v55, %v15511_v38 }
 0x36f   :  { %v3159_v6 = vadd.f32 %v13125_v32, %v3026_v58  ;;  %v1438_v50 = vpop.permute.xlu1 %1437  ;;  %v4711_v0 = vpack.c.b16 %v4707_v51, %v4706_v15  ;;  %v3160_v13 = vadd.f32 %v13127_v22, %v3027_v11  ;;  %v4722_v21 = vld [vmem:[#allocation2 + $0x94] sm:$0xf] }
 0x370   :  { %v1876_v10 = vmul.f32 %v1438_v50, %v13081_v18  ;;  %v1877_v23 = vmul.f32 %v1438_v50, %v13083_v55  ;;  %v1621_v15 = vmul.f32 %v13107_v16, %v1438_v50  ;;  %v1230_v58 = vadd.f32 %v1102_v34, %v712_v26 }
 0x371   :  { %vm3287_vm2 = vcmp.gt.f32.partialorder %v3159_v6, 0.0  ;;  %v3415_v12 = vmul.f32 0.01, %v3159_v6  ;;  %12089 = vset.pattern.permute.xlu1 %v15460_v8  ;;  %4719 = vst [vmem:[#allocation3 + $0x178] sm:$0x33] %v4711_v0  ;;  %vm3288_vm3 = vcmp.gt.f32.partialorder %v3160_v13, 0.0  ;;  %v1231_v51 = vadd.f32 %v1103_v5, %v713_v1  ;;  %v1442_v1 = vpop.permute.xlu0 %1441 }
 0x372   :  { %v3416_v43 = vmul.f32 0.01, %v3160_v13  ;;  %1469 = vperm.xlu1 %12089, %v12213_v44   ;;  %v2389_v0 = vadd.f32 %v2261_v45, %v1877_v23  ;;  %v15512_v23 = vld [vmem:[#allocation55_spill] sm:$0xff] }
 0x373   :  { %v3543_v3 = vsel %vm3287_vm2, %v3159_v6, %v3415_v12  ;;  %12090 = vset.pattern.permute.xlu2 %v15468_v7  ;;  %v2388_v6 = vadd.f32 %v2260_v40, %v1876_v10  ;;  %v1104_v12 = vmul.f32 %v13086_v49, %v14441_v48  ;;  %v714_v38 = vmul.f32 %v13081_v18, %v15512_v23 }
 0x374   :  { %v4729_v28 = vld.sshfl [vmem:[#allocation1] sm:$0xff pattern:$0x73625140]  ;;  %v4731_v17 = vld.sshfl [vmem:[#allocation1 + $0x8] sm:$0xff pattern:$0x73625140]  ;;  %v3544_v42 = vsel %vm3288_vm3, %v3160_v13, %v3416_v43  ;;  %2115 = vperm.xlu2 %12090, %v12213_v44   ;;  %v14483_v19 = vpop.permute.xlu2 %1445  ;;  %v1620_v44 = vmul.f32 %v13105_v2, %v1438_v50  ;;  %v1749_v43 = vadd.f32 %v1621_v15, %v1231_v51  ;;  %v715_v26 = vmul.f32 %v13083_v55, %v15512_v23 }
 0x375   :  { %4734 = vst [vmem:[#allocation1] ss:$4 sm:$0xff] %v4722_v21  ;;  %v4751_v35 = vunpack.c.l.b16 %v4729_v28  ;;  %v4752_v24 = vunpack.c.l.b16 %v4731_v17  ;;  %v3633_v54 = vpack.c.bf16 %v3544_v42, %v3543_v3  ;;  %v12214_v3 = vld [vmem:[%s15365_s0 + $0xc0] sm:$0xf]  ;;  %v1105_v42 = vmul.f32 %v13088_v9, %v14441_v48 }
 0x376   :  { %v1748_v50 = vadd.f32 %v1620_v44, %v1230_v58  ;;  %v1622_v48 = vmul.f32 %v13105_v2, %v1442_v1  ;;  %v1623_v44 = vmul.f32 %v13107_v16, %v1442_v1  ;;  %v1232_v51 = vadd.f32 %v1104_v12, %v714_v38 }
 0x377   :  { %v4759_v59 = vpack.c.b16 %v4752_v24, %v4751_v35  ;;  %v3761_v33 = vrot.slane %v3633_v54, 2 }
 0x378   :  { %v2596_v11 = vpop.permute.xlu1 %2595 }
 0x379   :  { %4767 = vst [vmem:[#allocation3 + $0x180] sm:$0x33] %v4759_v59  ;;  %v3904_v20 = vsel %vm3787_vm0, %v3633_v54, %v3761_v33  ;;  %v2772_v29 = vmul.f32 %v2596_v11, %v13105_v2  ;;  %v2773_v13 = vmul.f32 %v2596_v11, %v13107_v16  ;;  %v1233_v11 = vadd.f32 %v1105_v42, %v715_v26 }
 0x37a   :  { %4082 = vst [vmem:[#allocation2 + $0x98] sm:$0xf] %v3904_v20  ;;  %12092 = vset.pattern.permute.xlu1 %v15464_v60  ;;  %v1879_v20 = vmul.f32 %v1442_v1, %v13083_v55 }
 0x37b   :  { %v6082_v21 = vpop.f32.mrf.mxu0  ;;  %v2900_v34 = vadd.f32 %v2772_v29, %v2388_v6  ;;  %v2901_v5 = vadd.f32 %v2773_v13, %v2389_v0  ;;  %955 = vperm.xlu1 %12092, %v12214_v3   ;;  %v1878_v6 = vmul.f32 %v1442_v1, %v13081_v18  ;;  %v2774_v29 = vmul.f32 %v14468_v30, %v13105_v2 }
 0x37c   :  { %v6140_v40 = vpop.f32.mrf.mxu1  ;;  %v4735_v28 = vld.sshfl [vmem:[#allocation1] sm:$0xff pattern:$0x73625140]  ;;  %v4737_v17 = vld.sshfl [vmem:[#allocation1 + $0x8] sm:$0xff pattern:$0x73625140]  ;;  %12093 = vset.pattern.permute.xlu2 %v15460_v8 }
 0x37d   :  { %v14505_v10 = vadd.f32 %v6140_v40, %v6082_v21  ;;  %v4753_v35 = vunpack.c.l.b16 %v4735_v28  ;;  %v4754_v24 = vunpack.c.l.b16 %v4737_v17  ;;  %v3028_v45 = vmax.f32 %v1748_v50, %v2900_v34  ;;  %1473 = vperm.xlu2 %12093, %v12214_v3   ;;  %v14512_v59 = vpop.permute.xlu2 %931 }
 0x37e   :  { %v3029_v54 = vmax.f32 %v1749_v43, %v2901_v5  ;;  %v2775_v50 = vmul.f32 %v14468_v30, %v13107_v16  ;;  %v14526_v5 = vpop.f32.mrf.mxu2  ;;  %v1750_v30 = vadd.f32 %v1622_v48, %v1232_v51 }
 0x37f   :  { %v4760_v33 = vpack.c.b16 %v4754_v24, %v4753_v35  ;;  %v3161_v15 = vadd.f32 %v13125_v32, %v3028_v45  ;;  %15513 = vst [vmem:[#allocation35_spill] sm:$0xff] %v14526_v5  ;;  %v14530_v24 = vpop.f32.mrf.mxu3  ;;  %v1751_v45 = vadd.f32 %v1623_v44, %v1233_v11 }
 0x380   :  { %v3162_v58 = vadd.f32 %v13127_v22, %v3029_v54  ;;  %15514 = vst [vmem:[#allocation34_spill] sm:$0xff] %v14530_v24 }
 0x381   :  { %4768 = vst [vmem:[#allocation3 + $0x188] sm:$0x33] %v4760_v33  ;;  %v4724_v0 = vld [vmem:[#allocation2 + $0x98] sm:$0xf]  ;;  %vm3289_vm4 = vcmp.gt.f32.partialorder %v3161_v15, 0.0  ;;  %v2088_v21 = vpop.permute.xlu1 %2087 }
 0x382   :  { %vm3290_vm5 = vcmp.gt.f32.partialorder %v3162_v58, 0.0  ;;  %v3417_v13 = vmul.f32 0.01, %v3161_v15  ;;  %v3418_v43 = vmul.f32 0.01, %v3162_v58  ;;  %v2262_v12 = vmul.f32 %v2088_v21, %v13086_v49 }
 0x383   :  { %v2263_v34 = vmul.f32 %v2088_v21, %v13088_v9  ;;  %4740 = vst [vmem:[#allocation1] ss:$4 sm:$0xff] %v4724_v0  ;;  %12094 = vset.pattern.permute.xlu1 %v15468_v7 }
 0x384   :  { %v3545_v40 = vsel %vm3289_vm4, %v3161_v15, %v3417_v13  ;;  %v3546_v28 = vsel %vm3290_vm5, %v3162_v58, %v3418_v43  ;;  %v2390_v17 = vadd.f32 %v2262_v12, %v1878_v6  ;;  %2119 = vperm.xlu1 %12094, %v12214_v3   ;;  %v1880_v43 = vmul.f32 %v14483_v19, %v13081_v18 }
 0x385   :  { %v2391_v42 = vadd.f32 %v2263_v34, %v1879_v20  ;;  %v3634_v35 = vpack.c.bf16 %v3546_v28, %v3545_v40  ;;  %12095 = vset.pattern.permute.xlu2 %v15475_v41  ;;  %v2092_v20 = vpop.permute.xlu0 %2091  ;;  %v1881_v12 = vmul.f32 %v14483_v19, %v13083_v55  ;;  %v12215_v40 = vld [vmem:[%s15365_s0 + $0xc4] sm:$0xf] }
 0x386   :  { %v2902_v54 = vadd.f32 %v2774_v29, %v2390_v17  ;;  %2631 = vperm.xlu2 %12095, %v12214_v3   ;;  %v14532_v38 = vpop.permute.xlu2 %2095  ;;  %v2264_v3 = vmul.f32 %v2092_v20, %v13086_v49  ;;  %v2265_v11 = vmul.f32 %v2092_v20, %v13088_v9 }
 0x387   :  { %v2903_v23 = vadd.f32 %v2775_v50, %v2391_v42  ;;  %v3762_v26 = vrot.slane %v3634_v35, 2 }
 0x388   :  { %v3030_v1 = vmax.f32 %v1750_v30, %v2902_v54 }
 0x389   :  { %v3031_v33 = vmax.f32 %v1751_v45, %v2903_v23  ;;  %v3907_v15 = vsel %vm3787_vm0, %v3634_v35, %v3762_v26  ;;  %v15516_v26 = vld [vmem:[#allocation45_spill] sm:$0xff] }
 0x38a   :  { %v4741_v58 = vld.sshfl [vmem:[#allocation1] sm:$0xff pattern:$0x73625140]  ;;  %v4743_v6 = vld.sshfl [vmem:[#allocation1 + $0x8] sm:$0xff pattern:$0x73625140]  ;;  %v3163_v0 = vadd.f32 %v13125_v32, %v3030_v1  ;;  %v928_v48 = vpop.permute.xlu1 %927  ;;  %v716_v1 = vmul.f32 %v13081_v18, %v15516_v26 }
 0x38b   :  { %4083 = vst [vmem:[#allocation2 + $0x9c] sm:$0xf] %v3907_v15  ;;  %v3164_v13 = vadd.f32 %v13127_v22, %v3031_v33  ;;  %v4755_v44 = vunpack.c.l.b16 %v4741_v58  ;;  %v4756_v51 = vunpack.c.l.b16 %v4743_v6  ;;  %v6198_v29 = vpop.f32.mrf.mxu2  ;;  %v1106_v35 = vmul.f32 %v13086_v49, %v928_v48 }
 0x38c   :  { %vm3291_vm6 = vcmp.gt.f32.partialorder %v3163_v0, 0.0  ;;  %v3419_v21 = vmul.f32 0.01, %v3163_v0  ;;  %12097 = vset.pattern.permute.xlu1 %v15460_v8  ;;  %v6199_v34 = vadd.f32 %v6198_v29, %v14505_v10  ;;  %v1107_v30 = vmul.f32 %v13088_v9, %v928_v48  ;;  %v6256_v45 = vpop.f32.mrf.mxu3 }
 0x38d   :  { %vm3292_vm7 = vcmp.gt.f32.partialorder %v3164_v13, 0.0  ;;  %v3420_v50 = vmul.f32 0.01, %v3164_v13  ;;  %1477 = vperm.xlu1 %12097, %v12215_v40   ;;  %v4761_v28 = vpack.c.b16 %v4756_v51, %v4755_v44  ;;  %v717_v33 = vmul.f32 %v13083_v55, %v15516_v26 }
 0x38e   :  { %v3547_v17 = vsel %vm3291_vm6, %v3163_v0, %v3419_v21  ;;  %12098 = vset.pattern.permute.xlu2 %v15468_v7  ;;  %v14551_v23 = vadd.f32 %v6256_v45, %v6199_v34  ;;  %v1624_v15 = vmul.f32 %v13105_v2, %v14483_v19  ;;  %v1625_v58 = vmul.f32 %v13107_v16, %v14483_v19 }
 0x38f   :  { %v3548_v42 = vsel %vm3292_vm7, %v3164_v13, %v3420_v50  ;;  %2123 = vperm.xlu2 %12098, %v12215_v40   ;;  %v14553_v10 = vpop.permute.xlu2 %1453  ;;  %4769 = vst [vmem:[#allocation3 + $0x190] sm:$0x33] %v4761_v28  ;;  %v1234_v0 = vadd.f32 %v1106_v35, %v716_v1  ;;  %v1235_v13 = vadd.f32 %v1107_v30, %v717_v33  ;;  %v15517_v30 = vld [vmem:[#allocation59_spill] sm:$0xff] }
 0x390   :  { %v3635_v54 = vpack.c.bf16 %v3548_v42, %v3547_v17  ;;  %15515 = vst [vmem:[#allocation27_spill] sm:$0xff] %v14551_v23  ;;  %v2392_v48 = vadd.f32 %v2264_v3, %v1880_v43  ;;  %v2393_v44 = vadd.f32 %v2265_v11, %v1881_v12  ;;  %v2608_v3 = vpop.permute.xlu0 %2607  ;;  %v12216_v42 = vld [vmem:[%s15365_s0 + $0xc8] sm:$0xf]  ;;  %v718_v45 = vmul.f32 %v13081_v18, %v15517_v30 }
 0x391   :  { %v1752_v34 = vadd.f32 %v1624_v15, %v1234_v0  ;;  %v1753_v28 = vadd.f32 %v1625_v58, %v1235_v13  ;;  %v1109_v0 = vmul.f32 %v13088_v9, %v14512_v59  ;;  %v2266_v13 = vmul.f32 %v14532_v38, %v13086_v49 }
 0x392   :  { %v4726_v6 = vld [vmem:[#allocation2 + $0x9c] sm:$0xf]  ;;  %v3763_v20 = vrot.slane %v3635_v54, 2 }
 0x393   :  { %4746 = vst [vmem:[#allocation1] ss:$4 sm:$0xff] %v4726_v6  ;;  %v2604_v29 = vpop.permute.xlu1 %2603  ;;  %v4771_v11 = vld [vmem:[#allocation2 + $0x9c] sm:$0xf] }
 0x394   :  { %v3910_v51 = vsel %vm3787_vm0, %v3635_v54, %v3763_v20  ;;  %v2776_v21 = vmul.f32 %v2604_v29, %v13105_v2  ;;  %v2777_v50 = vmul.f32 %v2604_v29, %v13107_v16  ;;  %v719_v54 = vmul.f32 %v13083_v55, %v15517_v30 }
 0x395   :  { %4084 = vst [vmem:[#allocation2 + $0xa0] sm:$0xf] %v3910_v51  ;;  %12099 = vset.pattern.permute.xlu1 %v15475_v41  ;;  %v1108_v20 = vmul.f32 %v13086_v49, %v14512_v59 }
 0x396   :  { %v2904_v19 = vadd.f32 %v2776_v21, %v2392_v48  ;;  %v2905_v17 = vadd.f32 %v2777_v50, %v2393_v44  ;;  %2635 = vperm.xlu1 %12099, %v12215_v40   ;;  %v2778_v40 = vmul.f32 %v2608_v3, %v13105_v2  ;;  %v2267_v48 = vmul.f32 %v14532_v38, %v13088_v9 }
 0x397   :  { %12100 = vset.pattern.permute.xlu2 %v15464_v60  ;;  %v2779_v21 = vmul.f32 %v2608_v3, %v13107_v16  ;;  %v1237_v30 = vadd.f32 %v1109_v0, %v719_v54 }
 0x398   :  { %v3032_v43 = vmax.f32 %v1752_v34, %v2904_v19  ;;  %v3033_v12 = vmax.f32 %v1753_v28, %v2905_v17  ;;  %963 = vperm.xlu2 %12100, %v12216_v42   ;;  %v14571_v35 = vpop.permute.xlu2 %2611 }
 0x39a   :  { %v4747_v26 = vld.sshfl [vmem:[#allocation1] sm:$0xff pattern:$0x73625140]  ;;  %v4749_v1 = vld.sshfl [vmem:[#allocation1 + $0x8] sm:$0xff pattern:$0x73625140]  ;;  %v3165_v33 = vadd.f32 %v13125_v32, %v3032_v43  ;;  %v3166_v15 = vadd.f32 %v13127_v22, %v3033_v12 }
 0x39b   :  { %4779 = vst [vmem:[#allocation1] ss:$4 sm:$0xff] %v4771_v11  ;;  %v4757_v58 = vunpack.c.l.b16 %v4747_v26  ;;  %v4758_v6 = vunpack.c.l.b16 %v4749_v1  ;;  %v1236_v11 = vadd.f32 %v1108_v20, %v718_v45 }
 0x39c   :  { %vm3293_vm8 = vcmp.gt.f32.partialorder %v3165_v33, 0.0  ;;  %vm3294_vm9 = vcmp.gt.f32.partialorder %v3166_v15, 0.0  ;;  %v3421_v44 = vmul.f32 0.01, %v3165_v33  ;;  %v3422_v51 = vmul.f32 0.01, %v3166_v15  ;;  %v1450_v29 = vpop.permute.xlu1 %1449 }
 0x39d   :  { %v1626_v50 = vmul.f32 %v13105_v2, %v1450_v29  ;;  %v1882_v34 = vmul.f32 %v1450_v29, %v13081_v18  ;;  %v1883_v28 = vmul.f32 %v1450_v29, %v13083_v55  ;;  %v1627_v17 = vmul.f32 %v13107_v16, %v1450_v29 }
 0x39e   :  { %v3549_v59 = vsel %vm3293_vm8, %v3165_v33, %v3421_v44  ;;  %v3550_v19 = vsel %vm3294_vm9, %v3166_v15, %v3422_v51  ;;  %12102 = vset.pattern.permute.xlu1 %v15468_v7  ;;  %v4762_v38 = vpack.c.b16 %v4758_v6, %v4757_v58  ;;  %v4773_v44 = vld [vmem:[#allocation2 + $0xa0] sm:$0xf] }
 0x39f   :  { %v3636_v43 = vpack.c.bf16 %v3550_v19, %v3549_v59  ;;  %v2394_v12 = vadd.f32 %v2266_v13, %v1882_v34  ;;  %2127 = vperm.xlu1 %12102, %v12216_v42   ;;  %v2395_v26 = vadd.f32 %v2267_v48, %v1883_v28  ;;  %v1754_v1 = vadd.f32 %v1626_v50, %v1236_v11 }
 0x3a0   :  { %12103 = vset.pattern.permute.xlu2 %v15475_v41  ;;  %4770 = vst [vmem:[#allocation3 + $0x198] sm:$0x33] %v4762_v38  ;;  %v1755_v51 = vadd.f32 %v1627_v17, %v1237_v30 }
 0x3a1   :  { %v3764_v3 = vrot.slane %v3636_v43, 2  ;;  %v2906_v23 = vadd.f32 %v2778_v40, %v2394_v12  ;;  %2639 = vperm.xlu2 %12103, %v12216_v42   ;;  %v14595_v33 = vpop.permute.xlu2 %2103  ;;  %v2907_v29 = vadd.f32 %v2779_v21, %v2395_v26  ;;  %v15518_v26 = vld [vmem:[#allocation58_spill] sm:$0xff] }
 0x3a2   :  { %v4780_v15 = vld.sshfl [vmem:[#allocation1] sm:$0xff pattern:$0x73625140]  ;;  %v4782_v58 = vld.sshfl [vmem:[#allocation1 + $0x8] sm:$0xff pattern:$0x73625140] }
 0x3a3   :  { %v4802_v45 = vunpack.c.l.b16 %v4780_v15  ;;  %v3913_v6 = vsel %vm3787_vm0, %v3636_v43, %v3764_v3  ;;  %v3034_v20 = vmax.f32 %v1754_v1, %v2906_v23  ;;  %v4803_v54 = vunpack.c.l.b16 %v4782_v58  ;;  %4785 = vst [vmem:[#allocation1] ss:$4 sm:$0xff] %v4773_v44  ;;  %v12217_v23 = vld [vmem:[%s15365_s0 + $0xcc] sm:$0xf] }
 0x3a4   :  { %4085 = vst [vmem:[#allocation2 + $0xa4] sm:$0xf] %v3913_v6  ;;  %v3035_v0 = vmax.f32 %v1755_v51, %v2907_v29  ;;  %v720_v3 = vmul.f32 %v13081_v18, %v15518_v26  ;;  %v721_v1 = vmul.f32 %v13083_v55, %v15518_v26  ;;  %v1628_v44 = vmul.f32 %v13105_v2, %v14553_v10 }
 0x3a5   :  { %v3167_v13 = vadd.f32 %v13125_v32, %v3034_v20  ;;  %v936_v48 = vpop.permute.xlu1 %935  ;;  %v4810_v40 = vpack.c.b16 %v4803_v54, %v4802_v45  ;;  %v1629_v51 = vmul.f32 %v13107_v16, %v14553_v10  ;;  %v1884_v58 = vmul.f32 %v14553_v10, %v13081_v18 }
 0x3a6   :  { %v3168_v42 = vadd.f32 %v13127_v22, %v3035_v0  ;;  %v1110_v11 = vmul.f32 %v13086_v49, %v936_v48  ;;  %v1111_v43 = vmul.f32 %v13088_v9, %v936_v48  ;;  %v2780_v45 = vmul.f32 %v14571_v35, %v13105_v2 }
 0x3a7   :  { %vm3295_vm10 = vcmp.gt.f32.partialorder %v3167_v13, 0.0  ;;  %v3423_v50 = vmul.f32 0.01, %v3167_v13  ;;  %12104 = vset.pattern.permute.xlu1 %v15464_v60  ;;  %4818 = vst [vmem:[#allocation3 + $0x1a0] sm:$0x33] %v4810_v40  ;;  %v2781_v6 = vmul.f32 %v14571_v35, %v13107_v16  ;;  %v1885_v54 = vmul.f32 %v14553_v10, %v13083_v55 }
 0x3a8   :  { %vm3296_vm11 = vcmp.gt.f32.partialorder %v3168_v42, 0.0  ;;  %v3424_v21 = vmul.f32 0.01, %v3168_v42  ;;  %967 = vperm.xlu1 %12104, %v12217_v23  }
 0x3a9   :  { %v3551_v34 = vsel %vm3295_vm10, %v3167_v13, %v3423_v50  ;;  %12105 = vset.pattern.permute.xlu2 %v15460_v8  ;;  %v1239_v50 = vadd.f32 %v1111_v43, %v721_v1 }
 0x3aa   :  { %v3552_v28 = vsel %vm3296_vm11, %v3168_v42, %v3424_v21  ;;  %1485 = vperm.xlu2 %12105, %v12217_v23   ;;  %v4786_v59 = vld.sshfl [vmem:[#allocation1] sm:$0xff pattern:$0x73625140]  ;;  %v4788_v19 = vld.sshfl [vmem:[#allocation1 + $0x8] sm:$0xff pattern:$0x73625140]  ;;  %v14607_v12 = vpop.permute.xlu2 %943  ;;  %v1238_v42 = vadd.f32 %v1110_v11, %v720_v3 }
 0x3ab   :  { %v4775_v17 = vld [vmem:[#allocation2 + $0xa4] sm:$0xf]  ;;  %v3637_v38 = vpack.c.bf16 %v3552_v28, %v3551_v34  ;;  %v4804_v30 = vunpack.c.l.b16 %v4786_v59  ;;  %v4805_v15 = vunpack.c.l.b16 %v4788_v19  ;;  %v9637_v34 = vld [vmem:[#allocation3 + $0x180] sm:$0xf]  ;;  %v1757_v3 = vadd.f32 %v1629_v51, %v1239_v50 }
 0x3ac   :  { %4791 = vst [vmem:[#allocation1] ss:$4 sm:$0xff] %v4775_v17  ;;  %v11447_v28 = vld [vmem:[#allocation3 + $0x184] sm:$0xf] }
 0x3ad   :  { %v3765_v29 = vrot.slane %v3637_v38, 2  ;;  %v4811_v48 = vpack.c.b16 %v4805_v15, %v4804_v30  ;;  %v12218_v15 = vld [vmem:[%s15365_s0 + $0xd0] sm:$0xf] }
 0x3ae   :  { %v2100_v20 = vpop.permute.xlu1 %2099  ;;  %v11451_v0 = vld [vmem:[#allocation3 + $0x19c] sm:$0xf0]  ;;  %v9639_v13 = vld [vmem:[#allocation3 + $0x1a0] sm:$0xf0] }
 0x3af   :  { %v3916_v40 = vsel %vm3787_vm0, %v3637_v38, %v3765_v29  ;;  %v2268_v21 = vmul.f32 %v2100_v20, %v13086_v49  ;;  %v2269_v59 = vmul.f32 %v2100_v20, %v13088_v9  ;;  %v9638_v19 = vor.u32 %v11451_v0, %v9637_v34  ;;  %4819 = vst [vmem:[#allocation3 + $0x1a8] sm:$0x33] %v4811_v48  ;;  %v9645_v0 = vld [vmem:[#allocation3 + $0x188] sm:$0xf] }
 0x3b0   :  { %4086 = vst [vmem:[#allocation2 + $0xa8] sm:$0xf] %v3916_v40  ;;  %v9642_v35 = vor.u32 %v11447_v28, %v9639_v13  ;;  %12107 = vset.pattern.permute.xlu1 %v15475_v41  ;;  %v1756_v38 = vadd.f32 %v1628_v44, %v1238_v42  ;;  %v11448_v13 = vld [vmem:[#allocation3 + $0x18c] sm:$0xf]  ;;  %v940_v40 = vpop.permute.xlu0 %939 }
 0x3b1   :  { %v2396_v17 = vadd.f32 %v2268_v21, %v1884_v58  ;;  %2643 = vperm.xlu1 %12107, %v12217_v23   ;;  %v2397_v10 = vadd.f32 %v2269_v59, %v1885_v54  ;;  %6091 = vmatmul.bf16.gmra.mxu0 %v9638_v19  ;;  %v1112_v59 = vmul.f32 %v13086_v49, %v940_v40 }
 0x3b2   :  { %6149 = vmatmul.bf16.gmra.mxu1 %v9642_v35  ;;  %12108 = vset.pattern.permute.xlu2 %v15464_v60  ;;  %v1113_v19 = vmul.f32 %v13088_v9, %v940_v40 }
 0x3b3   :  { %v2908_v11 = vadd.f32 %v2780_v45, %v2396_v17  ;;  %v14630_v43 = vpop.permute.xlu2 %2619  ;;  %v4792_v30 = vld.sshfl [vmem:[#allocation1] sm:$0xff pattern:$0x73625140]  ;;  %v4794_v26 = vld.sshfl [vmem:[#allocation1 + $0x8] sm:$0xff pattern:$0x73625140]  ;;  %v2909_v1 = vadd.f32 %v2781_v6, %v2397_v10  ;;  %971 = vperm.xlu2 %12108, %v12218_v15   ;;  %v2270_v17 = vmul.f32 %v14595_v33, %v13086_v49 }
 0x3b4   :  { %v4806_v23 = vunpack.c.l.b16 %v4792_v30  ;;  %v4807_v58 = vunpack.c.l.b16 %v4794_v26  ;;  %v2271_v30 = vmul.f32 %v14595_v33, %v13088_v9 }
 0x3b5   :  { %v3036_v29 = vmax.f32 %v1756_v38, %v2908_v11  ;;  %v3037_v20 = vmax.f32 %v1757_v3, %v2909_v1  ;;  %v15519_v1 = vld [vmem:[#allocation48_spill] sm:$0xff] }
 0x3b6   :  { %v4812_v48 = vpack.c.b16 %v4807_v58, %v4806_v23  ;;  %v11452_v6 = vld [vmem:[#allocation3 + $0x1a4] sm:$0xf0]  ;;  %v9647_v42 = vld [vmem:[#allocation3 + $0x1a8] sm:$0xf0]  ;;  %v722_v23 = vmul.f32 %v13081_v18, %v15519_v1 }
 0x3b7   :  { %v4777_v54 = vld [vmem:[#allocation2 + $0xa8] sm:$0xf]  ;;  %v3169_v44 = vadd.f32 %v13125_v32, %v3036_v29  ;;  %v1458_v45 = vpop.permute.xlu1 %1457  ;;  %v3170_v51 = vadd.f32 %v13127_v22, %v3037_v20  ;;  %v9646_v21 = vor.u32 %v11452_v6, %v9645_v0  ;;  %v9650_v28 = vor.u32 %v11448_v13, %v9647_v42 }
 0x3b8   :  { %4797 = vst [vmem:[#allocation1] ss:$4 sm:$0xff] %v4777_v54  ;;  %v1886_v38 = vmul.f32 %v1458_v45, %v13081_v18  ;;  %v1887_v3 = vmul.f32 %v1458_v45, %v13083_v55  ;;  %v723_v29 = vmul.f32 %v13083_v55, %v15519_v1  ;;  %v1630_v20 = vmul.f32 %v13105_v2, %v1458_v45 }
 0x3b9   :  { %vm3297_vm12 = vcmp.gt.f32.partialorder %v3169_v44, 0.0  ;;  %v3425_v50 = vmul.f32 0.01, %v3169_v44  ;;  %12109 = vset.pattern.permute.xlu1 %v15460_v8  ;;  %4820 = vst [vmem:[#allocation3 + $0x1b0] sm:$0x33] %v4812_v48  ;;  %vm3298_vm13 = vcmp.gt.f32.partialorder %v3170_v51, 0.0  ;;  %6207 = vmatmul.bf16.gmra.mxu2 %v9646_v21  ;;  %v1631_v54 = vmul.f32 %v13107_v16, %v1458_v45 }
 0x3ba   :  { %v3426_v34 = vmul.f32 0.01, %v3170_v51  ;;  %1489 = vperm.xlu1 %12109, %v12218_v15   ;;  %6265 = vmatmul.bf16.gmra.mxu3 %v9650_v28  ;;  %v1240_v0 = vadd.f32 %v1112_v59, %v722_v23  ;;  %v1241_v13 = vadd.f32 %v1113_v19, %v723_v29  ;;  %v4822_v48 = vld [vmem:[#allocation2 + $0xa8] sm:$0xf]  ;;  %v2399_v42 = vadd.f32 %v2271_v30, %v1887_v3  ;;  %v15520_v30 = vld [vmem:[#allocation62_spill] sm:$0xff]  ;;  %v1462_v3 = vpop.permute.xlu0 %1461 }
 0x3bb   :  { %v3553_v35 = vsel %vm3297_vm12, %v3169_v44, %v3425_v50  ;;  %12110 = vset.pattern.permute.xlu2 %v15468_v7  ;;  %v1115_v45 = vmul.f32 %v13088_v9, %v14607_v12  ;;  %v1632_v29 = vmul.f32 %v13105_v2, %v1462_v3 }
 0x3bc   :  { %v3554_v10 = vsel %vm3298_vm13, %v3170_v51, %v3426_v34  ;;  %v14644_v11 = vpop.permute.xlu2 %1465  ;;  %2135 = vperm.xlu2 %12110, %v12218_v15   ;;  %v2398_v51 = vadd.f32 %v2270_v17, %v1886_v38  ;;  %v1114_v34 = vmul.f32 %v13086_v49, %v14607_v12  ;;  %v1758_v59 = vadd.f32 %v1630_v20, %v1240_v0 }
 0x3bd   :  { %v3638_v26 = vpack.c.bf16 %v3554_v10, %v3553_v35  ;;  %v1759_v19 = vadd.f32 %v1631_v54, %v1241_v13  ;;  %v12219_v10 = vld [vmem:[%s15365_s0 + $0xd4] sm:$0xf]  ;;  %v725_v12 = vmul.f32 %v13083_v55, %v15520_v30 }
 0x3bf   :  { %v3766_v58 = vrot.slane %v3638_v26, 2  ;;  %v4798_v44 = vld.sshfl [vmem:[#allocation1] sm:$0xff pattern:$0x73625140] }
 0x3c0   :  { %v4800_v33 = vld.sshfl [vmem:[#allocation1 + $0x8] sm:$0xff pattern:$0x73625140]  ;;  %v2616_v40 = vpop.permute.xlu1 %2615  ;;  %v4808_v6 = vunpack.c.l.b16 %v4798_v44  ;;  %v1243_v44 = vadd.f32 %v1115_v45, %v725_v12 }
 0x3c1   :  { %v3919_v15 = vsel %vm3787_vm0, %v3638_v26, %v3766_v58  ;;  %4830 = vst [vmem:[#allocation1] ss:$4 sm:$0xff] %v4822_v48  ;;  %v2782_v50 = vmul.f32 %v2616_v40, %v13105_v2  ;;  %v2783_v21 = vmul.f32 %v2616_v40, %v13107_v16  ;;  %v4809_v28 = vunpack.c.l.b16 %v4800_v33 }
 0x3c2   :  { %4087 = vst [vmem:[#allocation2 + $0xac] sm:$0xf] %v3919_v15  ;;  %12112 = vset.pattern.permute.xlu1 %v15464_v60  ;;  %v724_v26 = vmul.f32 %v13081_v18, %v15520_v30  ;;  %v1633_v58 = vmul.f32 %v13107_v16, %v1462_v3  ;;  %v2784_v48 = vmul.f32 %v14630_v43, %v13105_v2 }
 0x3c3   :  { %v2910_v35 = vadd.f32 %v2782_v50, %v2398_v51  ;;  %v2911_v17 = vadd.f32 %v2783_v21, %v2399_v42  ;;  %975 = vperm.xlu1 %12112, %v12219_v10   ;;  %v4813_v38 = vpack.c.b16 %v4809_v28, %v4808_v6  ;;  %v2785_v33 = vmul.f32 %v14630_v43, %v13107_v16 }
 0x3c4   :  { %12113 = vset.pattern.permute.xlu2 %v15460_v8  ;;  %v1242_v54 = vadd.f32 %v1114_v34, %v724_v26  ;;  %v1888_v6 = vmul.f32 %v1462_v3, %v13081_v18  ;;  %v1889_v15 = vmul.f32 %v1462_v3, %v13083_v55  ;;  %v14686_v26 = vpop.f32.mrf.mxu0 }
 0x3c5   :  { %v3038_v1 = vmax.f32 %v1758_v59, %v2910_v35  ;;  %v3039_v23 = vmax.f32 %v1759_v19, %v2911_v17  ;;  %1493 = vperm.xlu2 %12113, %v12219_v10   ;;  %v14673_v20 = vpop.permute.xlu2 %951  ;;  %4821 = vst [vmem:[#allocation3 + $0x1b8] sm:$0x33] %v4813_v38 }
 0x3c6   :  { %15521 = vst [vmem:[#allocation38_spill] sm:$0xff] %v14686_v26  ;;  %v1760_v12 = vadd.f32 %v1632_v29, %v1242_v54  ;;  %v2112_v29 = vpop.permute.xlu0 %2111 }
 0x3c7   :  { %v3171_v0 = vadd.f32 %v13125_v32, %v3038_v1  ;;  %v3172_v13 = vadd.f32 %v13127_v22, %v3039_v23  ;;  %v14688_v1 = vpop.f32.mrf.mxu1  ;;  %v1761_v23 = vadd.f32 %v1633_v58, %v1243_v44 }
 0x3c8   :  { %v4831_v40 = vld.sshfl [vmem:[#allocation1] sm:$0xff pattern:$0x73625140]  ;;  %v4833_v51 = vld.sshfl [vmem:[#allocation1 + $0x8] sm:$0xff pattern:$0x73625140] }
 0x3c9   :  { %v4824_v42 = vld [vmem:[#allocation2 + $0xac] sm:$0xf]  ;;  %vm3299_vm14 = vcmp.gt.f32.partialorder %v3171_v0, 0.0  ;;  %vm3300_vm15 = vcmp.gt.f32.partialorder %v3172_v13, 0.0  ;;  %v3427_v50 = vmul.f32 0.01, %v3171_v0  ;;  %v2108_v21 = vpop.permute.xlu1 %2107  ;;  %v4853_v34 = vunpack.c.l.b16 %v4831_v40 }
 0x3ca   :  { %v3428_v45 = vmul.f32 0.01, %v3172_v13  ;;  %4836 = vst [vmem:[#allocation1] ss:$4 sm:$0xff] %v4824_v42  ;;  %v2272_v28 = vmul.f32 %v2108_v21, %v13086_v49  ;;  %v2273_v59 = vmul.f32 %v2108_v21, %v13088_v9  ;;  %v4854_v19 = vunpack.c.l.b16 %v4833_v51 }
 0x3cb   :  { %v3555_v43 = vsel %vm3299_vm14, %v3171_v0, %v3427_v50  ;;  %12114 = vset.pattern.permute.xlu1 %v15468_v7  ;;  %15522 = vst [vmem:[#allocation37_spill] sm:$0xff] %v14688_v1 }
 0x3cc   :  { %v3556_v35 = vsel %vm3300_vm15, %v3172_v13, %v3428_v45  ;;  %v2400_v17 = vadd.f32 %v2272_v28, %v1888_v6  ;;  %v2401_v38 = vadd.f32 %v2273_v59, %v1889_v15  ;;  %2139 = vperm.xlu1 %12114, %v12219_v10   ;;  %v4861_v30 = vpack.c.b16 %v4854_v19, %v4853_v34 }
 0x3cd   :  { %v3639_v3 = vpack.c.bf16 %v3556_v35, %v3555_v43  ;;  %12115 = vset.pattern.permute.xlu2 %v15475_v41  ;;  %v2274_v34 = vmul.f32 %v2112_v29, %v13086_v49  ;;  %v2275_v28 = vmul.f32 %v2112_v29, %v13088_v9  ;;  %v1890_v59 = vmul.f32 %v14644_v11, %v13081_v18  ;;  %v12220_v35 = vld [vmem:[%s15365_s0 + $0xd8] sm:$0xf] }
 0x3ce   :  { %v2912_v40 = vadd.f32 %v2784_v48, %v2400_v17  ;;  %v2913_v42 = vadd.f32 %v2785_v33, %v2401_v38  ;;  %v14691_v51 = vpop.permute.xlu2 %2115  ;;  %4869 = vst [vmem:[#allocation3 + $0x1c0] sm:$0x33] %v4861_v30  ;;  %2651 = vperm.xlu2 %12115, %v12219_v10   ;;  %v1891_v19 = vmul.f32 %v14644_v11, %v13083_v55 }
 0x3cf   :  { %v3767_v0 = vrot.slane %v3639_v3, 2 }
 0x3d0   :  { %v3040_v13 = vmax.f32 %v1760_v12, %v2912_v40  ;;  %v3041_v6 = vmax.f32 %v1761_v23, %v2913_v42 }
 0x3d1   :  { %v3922_v15 = vsel %vm3787_vm0, %v3639_v3, %v3767_v0  ;;  %v4837_v50 = vld.sshfl [vmem:[#allocation1] sm:$0xff pattern:$0x73625140]  ;;  %v4839_v21 = vld.sshfl [vmem:[#allocation1 + $0x8] sm:$0xff pattern:$0x73625140] }
 0x3d2   :  { %4088 = vst [vmem:[#allocation2 + $0xb0] sm:$0xf] %v3922_v15  ;;  %v3173_v54 = vadd.f32 %v13125_v32, %v3040_v13  ;;  %v3174_v58 = vadd.f32 %v13127_v22, %v3041_v6  ;;  %v948_v44 = vpop.permute.xlu1 %947  ;;  %v4855_v48 = vunpack.c.l.b16 %v4837_v50  ;;  %v4856_v33 = vunpack.c.l.b16 %v4839_v21  ;;  %v15523_v13 = vld [vmem:[#allocation60_spill] sm:$0xff] }
 0x3d3   :  { %v1116_v12 = vmul.f32 %v13086_v49, %v948_v44  ;;  %v1117_v3 = vmul.f32 %v13088_v9, %v948_v44  ;;  %v726_v6 = vmul.f32 %v13081_v18, %v15523_v13  ;;  %v727_v15 = vmul.f32 %v13083_v55, %v15523_v13 }
 0x3d4   :  { %vm3301_vm1 = vcmp.gt.f32.partialorder %v3173_v54, 0.0  ;;  %vm3302_vm2 = vcmp.gt.f32.partialorder %v3174_v58, 0.0  ;;  %v3429_v10 = vmul.f32 0.01, %v3173_v54  ;;  %v3430_v45 = vmul.f32 0.01, %v3174_v58  ;;  %12117 = vset.pattern.permute.xlu1 %v15460_v8 }
 0x3d5   :  { %v6087_v43 = vpop.f32.mrf.mxu0  ;;  %1497 = vperm.xlu1 %12117, %v12220_v35   ;;  %v4862_v17 = vpack.c.b16 %v4856_v33, %v4855_v48  ;;  %v1634_v50 = vmul.f32 %v13105_v2, %v14644_v11  ;;  %v1635_v21 = vmul.f32 %v13107_v16, %v14644_v11  ;;  %v1245_v44 = vadd.f32 %v1117_v3, %v727_v15  ;;  %v15526_v3 = vld [vmem:[#allocation51_spill] sm:$0xff] }
 0x3d6   :  { %v3557_v38 = vsel %vm3301_vm1, %v3173_v54, %v3429_v10  ;;  %v3558_v30 = vsel %vm3302_vm2, %v3174_v58, %v3430_v45  ;;  %v6145_v23 = vpop.f32.mrf.mxu1  ;;  %12118 = vset.pattern.permute.xlu2 %v15468_v7  ;;  %v1244_v58 = vadd.f32 %v1116_v12, %v726_v6  ;;  %v2402_v48 = vadd.f32 %v2274_v34, %v1890_v59  ;;  %v2628_v12 = vpop.permute.xlu0 %2627 }
 0x3d7   :  { %v3640_v40 = vpack.c.bf16 %v3558_v30, %v3557_v38  ;;  %v14708_v42 = vadd.f32 %v6145_v23, %v6087_v43  ;;  %v14711_v0 = vpop.permute.xlu2 %1473  ;;  %2143 = vperm.xlu2 %12118, %v12220_v35   ;;  %4870 = vst [vmem:[#allocation3 + $0x1c8] sm:$0x33] %v4862_v17  ;;  %v2403_v33 = vadd.f32 %v2275_v28, %v1891_v19  ;;  %v14725_v38 = vpop.f32.mrf.mxu2 }
 0x3d8   :  { %15524 = vst [vmem:[#allocation28_spill] sm:$0xff] %v14725_v38  ;;  %v1762_v11 = vadd.f32 %v1634_v50, %v1244_v58  ;;  %v1763_v30 = vadd.f32 %v1635_v21, %v1245_v44  ;;  %v14727_v34 = vpop.f32.mrf.mxu3  ;;  %v729_v6 = vmul.f32 %v13083_v55, %v15526_v3  ;;  %v2788_v15 = vmul.f32 %v2628_v12, %v13105_v2 }
 0x3d9   :  { %v4826_v29 = vld [vmem:[#allocation2 + $0xb0] sm:$0xf]  ;;  %v3768_v54 = vrot.slane %v3640_v40, 2  ;;  %15525 = vst [vmem:[#allocation41_spill] sm:$0xff] %v14727_v34 }
 0x3da   :  { %4842 = vst [vmem:[#allocation1] ss:$4 sm:$0xff] %v4826_v29 }
 0x3db   :  { %v3925_v10 = vsel %vm3787_vm0, %v3640_v40, %v3768_v54  ;;  %v2624_v45 = vpop.permute.xlu1 %2623  ;;  %v728_v40 = vmul.f32 %v13081_v18, %v15526_v3 }
 0x3dc   :  { %4089 = vst [vmem:[#allocation2 + $0xb4] sm:$0xf] %v3925_v10  ;;  %v2786_v43 = vmul.f32 %v2624_v45, %v13105_v2  ;;  %v2787_v17 = vmul.f32 %v2624_v45, %v13107_v16  ;;  %v2276_v45 = vmul.f32 %v14691_v51, %v13086_v49 }
 0x3dd   :  { %12119 = vset.pattern.permute.xlu1 %v15475_v41 }
 0x3de   :  { %v2914_v23 = vadd.f32 %v2786_v43, %v2402_v48  ;;  %v2915_v13 = vadd.f32 %v2787_v17, %v2403_v33  ;;  %2655 = vperm.xlu1 %12119, %v12220_v35   ;;  %v12221_v35 = vld [vmem:[%s15365_s0 + $0xdc] sm:$0xf]  ;;  %v1118_v48 = vmul.f32 %v13086_v49, %v14673_v20  ;;  %v1119_v33 = vmul.f32 %v13088_v9, %v14673_v20 }
 0x3df   :  { %12120 = vset.pattern.permute.xlu2 %v15464_v60  ;;  %v2277_v43 = vmul.f32 %v14691_v51, %v13088_v9 }
 0x3e0   :  { %v3042_v28 = vmax.f32 %v1762_v11, %v2914_v23  ;;  %v3043_v59 = vmax.f32 %v1763_v30, %v2915_v13  ;;  %v14730_v19 = vpop.permute.xlu2 %2631  ;;  %983 = vperm.xlu2 %12120, %v12221_v35   ;;  %v2789_v23 = vmul.f32 %v2628_v12, %v13107_v16  ;;  %v1246_v51 = vadd.f32 %v1118_v48, %v728_v40 }
 0x3e1   :  { %v4843_v50 = vld.sshfl [vmem:[#allocation1] sm:$0xff pattern:$0x73625140]  ;;  %v4845_v21 = vld.sshfl [vmem:[#allocation1 + $0x8] sm:$0xff pattern:$0x73625140]  ;;  %v1247_v12 = vadd.f32 %v1119_v33, %v729_v6 }
 0x3e2   :  { %v3175_v29 = vadd.f32 %v13125_v32, %v3042_v28  ;;  %v3176_v54 = vadd.f32 %v13127_v22, %v3043_v59  ;;  %v4857_v58 = vunpack.c.l.b16 %v4843_v50  ;;  %v4858_v44 = vunpack.c.l.b16 %v4845_v21 }
 0x3e3   :  { %v4828_v10 = vld [vmem:[#allocation2 + $0xb4] sm:$0xf] }
 0x3e4   :  { %4848 = vst [vmem:[#allocation1] ss:$4 sm:$0xff] %v4828_v10  ;;  %vm3303_vm3 = vcmp.gt.f32.partialorder %v3175_v29, 0.0  ;;  %vm3304_vm4 = vcmp.gt.f32.partialorder %v3176_v54, 0.0  ;;  %v3431_v17 = vmul.f32 0.01, %v3175_v29  ;;  %v1470_v11 = vpop.permute.xlu1 %1469  ;;  %v4863_v30 = vpack.c.b16 %v4858_v44, %v4857_v58  ;;  %v6203_v3 = vpop.f32.mrf.mxu2 }
 0x3e5   :  { %v3432_v13 = vmul.f32 0.01, %v3176_v54  ;;  %v1636_v28 = vmul.f32 %v13105_v2, %v1470_v11  ;;  %v1892_v20 = vmul.f32 %v1470_v11, %v13081_v18  ;;  %v1637_v50 = vmul.f32 %v13107_v16, %v1470_v11  ;;  %v6261_v34 = vpop.f32.mrf.mxu3 }
 0x3e6   :  { %v3559_v59 = vsel %vm3303_vm3, %v3175_v29, %v3431_v17  ;;  %v1893_v21 = vmul.f32 %v1470_v11, %v13083_v55  ;;  %12122 = vset.pattern.permute.xlu1 %v15468_v7  ;;  %4871 = vst [vmem:[#allocation3 + $0x1d0] sm:$0x33] %v4863_v30  ;;  %v6204_v58 = vadd.f32 %v6203_v3, %v14708_v42  ;;  %v4873_v11 = vld [vmem:[#allocation2 + $0xb4] sm:$0xf]  ;;  %v15528_v3 = vld [vmem:[#allocation64_spill] sm:$0xff] }
 0x3e7   :  { %v3560_v10 = vsel %vm3304_vm4, %v3176_v54, %v3432_v13  ;;  %2147 = vperm.xlu1 %12122, %v12221_v35   ;;  %v2404_v38 = vadd.f32 %v2276_v45, %v1892_v20  ;;  %v1764_v29 = vadd.f32 %v1636_v28, %v1246_v51  ;;  %v1765_v30 = vadd.f32 %v1637_v50, %v1247_v12 }
 0x3e8   :  { %v3641_v44 = vpack.c.bf16 %v3560_v10, %v3559_v59  ;;  %v2405_v1 = vadd.f32 %v2277_v43, %v1893_v21  ;;  %v14757_v26 = vadd.f32 %v6261_v34, %v6204_v58  ;;  %12123 = vset.pattern.permute.xlu2 %v15475_v41  ;;  %v730_v50 = vmul.f32 %v13081_v18, %v15528_v3 }
 0x3e9   :  { %v14760_v17 = vpop.permute.xlu2 %2123  ;;  %v2916_v40 = vadd.f32 %v2788_v15, %v2404_v38  ;;  %2659 = vperm.xlu2 %12123, %v12221_v35  }
 0x3ea   :  { %15527 = vst [vmem:[#allocation40_spill] sm:$0xff] %v14757_v26  ;;  %v3769_v24 = vrot.slane %v3641_v44, 2  ;;  %v2917_v54 = vadd.f32 %v2789_v23, %v2405_v1 }
 0x3eb   :  { %v4849_v42 = vld.sshfl [vmem:[#allocation1] sm:$0xff pattern:$0x73625140]  ;;  %v4851_v48 = vld.sshfl [vmem:[#allocation1 + $0x8] sm:$0xff pattern:$0x73625140]  ;;  %v3044_v33 = vmax.f32 %v1764_v29, %v2916_v40  ;;  %v1638_v29 = vmul.f32 %v13105_v2, %v14711_v0 }
 0x3ec   :  { %4881 = vst [vmem:[#allocation1] ss:$4 sm:$0xff] %v4873_v11  ;;  %v3928_v6 = vsel %vm3787_vm0, %v3641_v44, %v3769_v24  ;;  %v3045_v45 = vmax.f32 %v1765_v30, %v2917_v54  ;;  %v4859_v34 = vunpack.c.l.b16 %v4849_v42  ;;  %v4860_v13 = vunpack.c.l.b16 %v4851_v48  ;;  %v12222_v24 = vld [vmem:[%s15365_s0 + $0xe0] sm:$0xf] }
 0x3ed   :  { %4090 = vst [vmem:[#allocation2 + $0xb8] sm:$0xf] %v3928_v6  ;;  %v956_v43 = vpop.permute.xlu1 %955  ;;  %v3177_v28 = vadd.f32 %v13125_v32, %v3044_v33  ;;  %v731_v44 = vmul.f32 %v13083_v55, %v15528_v3  ;;  %v1639_v54 = vmul.f32 %v13107_v16, %v14711_v0  ;;  %v1894_v48 = vmul.f32 %v14711_v0, %v13081_v18 }
 0x3ee   :  { %v3178_v20 = vadd.f32 %v13127_v22, %v3045_v45  ;;  %v4864_v38 = vpack.c.b16 %v4860_v13, %v4859_v34  ;;  %v1120_v59 = vmul.f32 %v13086_v49, %v956_v43  ;;  %v1121_v58 = vmul.f32 %v13088_v9, %v956_v43 }
 0x3ef   :  { %12124 = vset.pattern.permute.xlu1 %v15464_v60  ;;  %vm3305_vm5 = vcmp.gt.f32.partialorder %v3177_v28, 0.0  ;;  %v3433_v1 = vmul.f32 0.01, %v3177_v28  ;;  %v1895_v6 = vmul.f32 %v14711_v0, %v13083_v55  ;;  %v2790_v33 = vmul.f32 %v14730_v19, %v13105_v2 }
 0x3f0   :  { %vm3306_vm6 = vcmp.gt.f32.partialorder %v3178_v20, 0.0  ;;  %v3434_v15 = vmul.f32 0.01, %v3178_v20  ;;  %987 = vperm.xlu1 %12124, %v12222_v24   ;;  %4872 = vst [vmem:[#allocation3 + $0x1d8] sm:$0x33] %v4864_v38  ;;  %v2791_v45 = vmul.f32 %v14730_v19, %v13107_v16  ;;  %v1248_v34 = vadd.f32 %v1120_v59, %v730_v50 }
 0x3f1   :  { %v3561_v35 = vsel %vm3305_vm5, %v3177_v28, %v3433_v1  ;;  %12125 = vset.pattern.permute.xlu2 %v15460_v8 }
 0x3f2   :  { %v3562_v23 = vsel %vm3306_vm6, %v3178_v20, %v3434_v15  ;;  %1505 = vperm.xlu2 %12125, %v12222_v24   ;;  %v14774_v12 = vpop.permute.xlu2 %963  ;;  %v1249_v20 = vadd.f32 %v1121_v58, %v731_v44 }
 0x3f3   :  { %v3642_v21 = vpack.c.bf16 %v3562_v23, %v3561_v35  ;;  %v4882_v51 = vld.sshfl [vmem:[#allocation1] sm:$0xff pattern:$0x73625140]  ;;  %v4884_v10 = vld.sshfl [vmem:[#allocation1 + $0x8] sm:$0xff pattern:$0x73625140]  ;;  %v1766_v35 = vadd.f32 %v1638_v29, %v1248_v34 }
 0x3f4   :  { %v4875_v11 = vld [vmem:[#allocation2 + $0xb8] sm:$0xf]  ;;  %v4904_v30 = vunpack.c.l.b16 %v4882_v51  ;;  %v4905_v40 = vunpack.c.l.b16 %v4884_v10  ;;  %v1767_v23 = vadd.f32 %v1639_v54, %v1249_v20  ;;  %v12223_v51 = vld [vmem:[%s15365_s0 + $0xe4] sm:$0xf]  ;;  %v9669_v54 = vld [vmem:[#allocation3 + $0x1c0] sm:$0xf] }
 0x3f5   :  { %v3770_v42 = vrot.slane %v3642_v21, 2  ;;  %4887 = vst [vmem:[#allocation1] ss:$4 sm:$0xff] %v4875_v11 }
 0x3f6   :  { %v2120_v43 = vpop.permute.xlu1 %2119  ;;  %v4912_v13 = vpack.c.b16 %v4905_v40, %v4904_v30 }
 0x3f7   :  { %v3931_v28 = vsel %vm3787_vm0, %v3642_v21, %v3770_v42  ;;  %v2278_v38 = vmul.f32 %v2120_v43, %v13086_v49  ;;  %v2279_v1 = vmul.f32 %v2120_v43, %v13088_v9  ;;  %v11455_v42 = vld [vmem:[#allocation3 + $0x1c4] sm:$0xf] }
 0x3f8   :  { %4091 = vst [vmem:[#allocation2 + $0xbc] sm:$0xf] %v3931_v28  ;;  %12127 = vset.pattern.permute.xlu1 %v15475_v41 }
 0x3f9   :  { %v2406_v0 = vadd.f32 %v2278_v38, %v1894_v48  ;;  %v2407_v15 = vadd.f32 %v2279_v1, %v1895_v6  ;;  %2663 = vperm.xlu1 %12127, %v12222_v24   ;;  %4920 = vst [vmem:[#allocation3 + $0x1e0] sm:$0x33] %v4912_v13  ;;  %v960_v6 = vpop.permute.xlu0 %959 }
 0x3fa   :  { %12128 = vset.pattern.permute.xlu2 %v15464_v60  ;;  %v1122_v20 = vmul.f32 %v13086_v49, %v960_v6 }
 0x3fb   :  { %v2918_v19 = vadd.f32 %v2790_v33, %v2406_v0  ;;  %v2919_v59 = vadd.f32 %v2791_v45, %v2407_v15  ;;  %v14795_v3 = vpop.permute.xlu2 %2639  ;;  %991 = vperm.xlu2 %12128, %v12223_v51   ;;  %v15529_v0 = vld [vmem:[#allocation63_spill] sm:$0xff] }
 0x3fc   :  { %v4888_v50 = vld.sshfl [vmem:[#allocation1] sm:$0xff pattern:$0x73625140]  ;;  %v4890_v21 = vld.sshfl [vmem:[#allocation1 + $0x8] sm:$0xff pattern:$0x73625140]  ;;  %v732_v15 = vmul.f32 %v13081_v18, %v15529_v0 }
 0x3fd   :  { %v3046_v10 = vmax.f32 %v1766_v35, %v2918_v19  ;;  %v3047_v58 = vmax.f32 %v1767_v23, %v2919_v59  ;;  %v4906_v44 = vunpack.c.l.b16 %v4888_v50  ;;  %v4907_v24 = vunpack.c.l.b16 %v4890_v21 }
 0x3fe   :  { %v1123_v35 = vmul.f32 %v13088_v9, %v960_v6  ;;  %v2280_v19 = vmul.f32 %v14760_v17, %v13086_v49  ;;  %v2281_v59 = vmul.f32 %v14760_v17, %v13088_v9  ;;  %v14824_v6 = vld [vmem:[%s15365_s0 + $0xec] sm:$0xf] }
 0x3ff   :  { %v4877_v11 = vld [vmem:[#allocation2 + $0xbc] sm:$0xf]  ;;  %v3179_v29 = vadd.f32 %v13125_v32, %v3046_v10  ;;  %v3180_v30 = vadd.f32 %v13127_v22, %v3047_v58  ;;  %v1478_v40 = vpop.permute.xlu1 %1477  ;;  %v4913_v48 = vpack.c.b16 %v4907_v24, %v4906_v44  ;;  %v733_v58 = vmul.f32 %v13083_v55, %v15529_v0  ;;  %v11456_v0 = vld [vmem:[#allocation3 + $0x1cc] sm:$0xf] }
 0x400   :  { %4893 = vst [vmem:[#allocation1] ss:$4 sm:$0xff] %v4877_v11  ;;  %v11459_v33 = vld [vmem:[#allocation3 + $0x1dc] sm:$0xf0]  ;;  %v9671_v45 = vld [vmem:[#allocation3 + $0x1e0] sm:$0xf0]  ;;  %v1896_v50 = vmul.f32 %v1478_v40, %v13081_v18  ;;  %v1897_v21 = vmul.f32 %v1478_v40, %v13083_v55  ;;  %v1640_v24 = vmul.f32 %v13105_v2, %v1478_v40  ;;  %v1641_v11 = vmul.f32 %v13107_v16, %v1478_v40 }
 0x401   :  { %vm3307_vm7 = vcmp.gt.f32.partialorder %v3179_v29, 0.0  ;;  %vm3308_vm8 = vcmp.gt.f32.partialorder %v3180_v30, 0.0  ;;  %v3435_v34 = vmul.f32 0.01, %v3179_v29  ;;  %v3436_v43 = vmul.f32 0.01, %v3180_v30  ;;  %12129 = vset.pattern.permute.xlu1 %v15460_v8 }
 0x402   :  { %1509 = vperm.xlu1 %12129, %v12223_v51   ;;  %v9670_v13 = vor.u32 %v11459_v33, %v9669_v54  ;;  %v9674_v28 = vor.u32 %v11455_v42, %v9671_v45  ;;  %4921 = vst [vmem:[#allocation3 + $0x1e8] sm:$0x33] %v4913_v48  ;;  %v1251_v54 = vadd.f32 %v1123_v35, %v733_v58 }
 0x403   :  { %v3563_v38 = vsel %vm3307_vm7, %v3179_v29, %v3435_v34  ;;  %v3564_v1 = vsel %vm3308_vm8, %v3180_v30, %v3436_v43  ;;  %12130 = vset.pattern.permute.xlu2 %v15468_v7  ;;  %v1250_v29 = vadd.f32 %v1122_v20, %v732_v15  ;;  %v2408_v34 = vadd.f32 %v2280_v19, %v1896_v50  ;;  %v14836_v50 = vld [vmem:[%s15365_s0 + $0xf0] sm:$0xf] }
 0x404   :  { %v3643_v23 = vpack.c.bf16 %v3564_v1, %v3563_v38  ;;  %6096 = vmatmul.bf16.gmra.mxu0 %v9670_v13  ;;  %6154 = vmatmul.bf16.gmra.mxu1 %v9674_v28  ;;  %v14813_v10 = vpop.permute.xlu2 %1485  ;;  %v2409_v43 = vadd.f32 %v2281_v59, %v1897_v21  ;;  %v9677_v13 = vld [vmem:[#allocation3 + $0x1c8] sm:$0xf]  ;;  %v1769_v20 = vadd.f32 %v1641_v11, %v1251_v54  ;;  %v12224_v38 = vld [vmem:[#allocation3 + $0x1f0] sm:$0xff]  ;;  %v1482_v54 = vpop.permute.xlu0 %1481 }
 0x405   :  { %2155 = vperm.xlu2 %12130, %v12223_v51   ;;  %v1768_v28 = vadd.f32 %v1640_v24, %v1250_v29  ;;  %v1124_v19 = vmul.f32 %v13086_v49, %v14774_v12  ;;  %v1125_v59 = vmul.f32 %v13088_v9, %v14774_v12  ;;  %v15530_v11 = vld [vmem:[#allocation54_spill] sm:$0xff]  ;;  %v1642_v12 = vmul.f32 %v13105_v2, %v1482_v54 }
 0x406   :  { %v3771_v44 = vrot.slane %v3643_v23, 2  ;;  %v734_v29 = vmul.f32 %v13081_v18, %v15530_v11 }
 0x407   :  { %v4894_v30 = vld.sshfl [vmem:[#allocation1] sm:$0xff pattern:$0x73625140]  ;;  %v4896_v17 = vld.sshfl [vmem:[#allocation1 + $0x8] sm:$0xff pattern:$0x73625140] }
 0x408   :  { %v3934_v42 = vsel %vm3787_vm0, %v3643_v23, %v3771_v44  ;;  %v2636_v48 = vpop.permute.xlu1 %2635  ;;  %v4908_v33 = vunpack.c.l.b16 %v4894_v30  ;;  %v4909_v45 = vunpack.c.l.b16 %v4896_v17  ;;  %v735_v17 = vmul.f32 %v13083_v55, %v15530_v11 }
 0x409   :  { %4092 = vst [vmem:[#allocation2 + $0xc0] sm:$0xf] %v3934_v42  ;;  %v2792_v40 = vmul.f32 %v2636_v48, %v13105_v2  ;;  %v2793_v51 = vmul.f32 %v2636_v48, %v13107_v16  ;;  %v11460_v1 = vld [vmem:[#allocation3 + $0x1e4] sm:$0xf0]  ;;  %v9679_v15 = vld [vmem:[#allocation3 + $0x1e8] sm:$0xf0]  ;;  %v1643_v42 = vmul.f32 %v13107_v16, %v1482_v54 }
 0x40a   :  { %12132 = vset.pattern.permute.xlu1 %v12224_v38  ;;  %v4914_v35 = vpack.c.b16 %v4909_v45, %v4908_v33  ;;  %v9678_v44 = vor.u32 %v11460_v1, %v9677_v13  ;;  %v9682_v30 = vor.u32 %v11456_v0, %v9679_v15  ;;  %v1899_v13 = vmul.f32 %v1482_v54, %v13083_v55 }
 0x40b   :  { %v2920_v23 = vadd.f32 %v2792_v40, %v2408_v34  ;;  %v2921_v58 = vadd.f32 %v2793_v51, %v2409_v43  ;;  %604 = vperm.xlu1 %12132, %v14824_v6   ;;  %v1252_v34 = vadd.f32 %v1124_v19, %v734_v29  ;;  %v1253_v43 = vadd.f32 %v1125_v59, %v735_v17 }
 0x40c   :  { %4922 = vst [vmem:[#allocation3 + $0x1f0] sm:$0x33] %v4914_v35  ;;  %6212 = vmatmul.bf16.gmra.mxu2 %v9678_v44  ;;  %6270 = vmatmul.bf16.gmra.mxu3 %v9682_v30  ;;  %v1898_v51 = vmul.f32 %v1482_v54, %v13081_v18  ;;  %v2795_v15 = vmul.f32 %v14795_v3, %v13107_v16 }
 0x40d   :  { %v3048_v21 = vmax.f32 %v1768_v28, %v2920_v23  ;;  %v3049_v24 = vmax.f32 %v1769_v20, %v2921_v58  ;;  %12133 = vset.pattern.permute.xlu2 %v12224_v38  ;;  %v14846_v45 = vpop.permute.xlu2 %971  ;;  %v14854_v28 = vld [vmem:[%s15365_s0 + $0xf4] sm:$0xf]  ;;  %v14859_v20 = vld [vmem:[%s15365_s0 + $0xfc] sm:$0xf]  ;;  %v2794_v38 = vmul.f32 %v14795_v3, %v13105_v2  ;;  %v1770_v11 = vadd.f32 %v1642_v12, %v1252_v34 }
 0x40e   :  { %609 = vperm.xlu2 %12133, %v14836_v50   ;;  %624 = vperm.xlu0 %12134, %v14859_v20   ;;  %v1771_v29 = vadd.f32 %v1643_v42, %v1253_v43 }
 0x40f   :  { %v3181_v48 = vadd.f32 %v13125_v32, %v3048_v21  ;;  %v3182_v33 = vadd.f32 %v13127_v22, %v3049_v24  ;;  %v14872_v21 = vld [vmem:[%s15365_s0 + $0xf8] sm:$0xf] }
 0x410   :  { %v4879_v40 = vld [vmem:[#allocation2 + $0xc0] sm:$0xf] }
 0x411   :  { %4899 = vst [vmem:[#allocation1] ss:$4 sm:$0xff] %v4879_v40  ;;  %vm3309_vm9 = vcmp.gt.f32.partialorder %v3181_v48, 0.0  ;;  %vm3310_vm10 = vcmp.gt.f32.partialorder %v3182_v33, 0.0  ;;  %v3437_v1 = vmul.f32 0.01, %v3181_v48  ;;  %v2128_v0 = vpop.permute.xlu1 %2127 }
 0x412   :  { %v3438_v35 = vmul.f32 0.01, %v3182_v33  ;;  %v2282_v23 = vmul.f32 %v2128_v0, %v13086_v49  ;;  %v2283_v58 = vmul.f32 %v2128_v0, %v13088_v9  ;;  %v4924_v54 = vld [vmem:[#allocation2 + $0xc0] sm:$0xf] }
 0x413   :  { %v3565_v44 = vsel %vm3309_vm9, %v3181_v48, %v3437_v1  ;;  %614 = vperm.xlu1 %12132, %v14854_v28  }
 0x414   :  { %v3566_v30 = vsel %vm3310_vm10, %v3182_v33, %v3438_v35  ;;  %v2410_v19 = vadd.f32 %v2282_v23, %v1898_v51  ;;  %v2411_v59 = vadd.f32 %v2283_v58, %v1899_v13  ;;  %v14886_v58 = vld [vmem:[%s15365_s0 + $0xe8] sm:$0xf] }
 0x415   :  { %v3644_v24 = vpack.c.bf16 %v3566_v30, %v3565_v44 }
 0x416   :  { %v2922_v3 = vadd.f32 %v2794_v38, %v2410_v19  ;;  %v2923_v17 = vadd.f32 %v2795_v15, %v2411_v59  ;;  %v14874_v26 = vpop.permute.xlu2 %2135  ;;  %619 = vperm.xlu2 %12133, %v14872_v21   ;;  %12137 = vset.pattern.permute.xlu0 %v15464_v60  ;;  %v2132_v38 = vpop.permute.xlu0 %2131  ;;  %v1900_v19 = vmul.f32 %v14813_v10, %v13081_v18 }
 0x417   :  { %v3772_v40 = vrot.slane %v3644_v24, 2  ;;  %1011 = vperm.xlu0 %12137, %v14872_v21   ;;  %v2284_v44 = vmul.f32 %v2132_v38, %v13086_v49  ;;  %v2285_v30 = vmul.f32 %v2132_v38, %v13088_v9  ;;  %v1901_v59 = vmul.f32 %v14813_v10, %v13083_v55 }
 0x418   :  { %v4900_v48 = vld.sshfl [vmem:[#allocation1] sm:$0xff pattern:$0x73625140]  ;;  %v4902_v33 = vld.sshfl [vmem:[#allocation1 + $0x8] sm:$0xff pattern:$0x73625140]  ;;  %v3050_v51 = vmax.f32 %v1770_v11, %v2922_v3  ;;  %v3051_v13 = vmax.f32 %v1771_v29, %v2923_v17 }
 0x419   :  { %4932 = vst [vmem:[#allocation1] ss:$4 sm:$0xff] %v4924_v54  ;;  %v3937_v1 = vsel %vm3787_vm0, %v3644_v24, %v3772_v40  ;;  %v4910_v0 = vunpack.c.l.b16 %v4900_v48  ;;  %v4911_v35 = vunpack.c.l.b16 %v4902_v33  ;;  %v15531_v54 = vld [vmem:[#allocation66_spill] sm:$0xff] }
 0x41a   :  { %4093 = vst [vmem:[#allocation2 + $0xc4] sm:$0xf] %v3937_v1  ;;  %v3183_v12 = vadd.f32 %v13125_v32, %v3050_v51  ;;  %v3184_v42 = vadd.f32 %v13127_v22, %v3051_v13  ;;  %v968_v34 = vpop.permute.xlu1 %967  ;;  %v736_v40 = vmul.f32 %v13081_v18, %v15531_v54  ;;  %v737_v48 = vmul.f32 %v13083_v55, %v15531_v54  ;;  %v14917_v54 = vpop.f32.mrf.mxu1 }
 0x41b   :  { %12135 = vset.pattern.permute.xlu1 %v15464_v60  ;;  %v4915_v43 = vpack.c.b16 %v4911_v35, %v4910_v0  ;;  %v1126_v29 = vmul.f32 %v13086_v49, %v968_v34  ;;  %v1127_v3 = vmul.f32 %v13088_v9, %v968_v34  ;;  %v1644_v1 = vmul.f32 %v13105_v2, %v14813_v10 }
 0x41c   :  { %vm3311_vm11 = vcmp.gt.f32.partialorder %v3183_v12, 0.0  ;;  %vm3312_vm12 = vcmp.gt.f32.partialorder %v3184_v42, 0.0  ;;  %v3439_v15 = vmul.f32 0.01, %v3183_v12  ;;  %v3440_v23 = vmul.f32 0.01, %v3184_v42  ;;  %995 = vperm.xlu1 %12135, %v14886_v58  }
 0x41d   :  { %4923 = vst [vmem:[#allocation3 + $0x1f8] sm:$0x33] %v4915_v43  ;;  %v1645_v0 = vmul.f32 %v13107_v16, %v14813_v10  ;;  %v1255_v34 = vadd.f32 %v1127_v3, %v737_v48  ;;  %v2413_v43 = vadd.f32 %v2285_v30, %v1901_v59  ;;  %v14915_v3 = vpop.f32.mrf.mxu0  ;;  %v15534_v48 = vld [vmem:[#allocation65_spill] sm:$0xff] }
 0x41e   :  { %v3567_v24 = vsel %vm3311_vm11, %v3183_v12, %v3439_v15  ;;  %v3568_v11 = vsel %vm3312_vm12, %v3184_v42, %v3440_v23  ;;  %12136 = vset.pattern.permute.xlu2 %v15464_v60  ;;  %v2412_v12 = vadd.f32 %v2284_v44, %v1900_v19  ;;  %v1254_v42 = vadd.f32 %v1126_v29, %v736_v40 }
 0x41f   :  { %v3645_v17 = vpack.c.bf16 %v3568_v11, %v3567_v24  ;;  %v14902_v13 = vpop.permute.xlu2 %1493  ;;  %999 = vperm.xlu2 %12136, %v14824_v6   ;;  %12140 = vset.pattern.permute.xlu0 %v15460_v8  ;;  %v1773_v29 = vadd.f32 %v1645_v0, %v1255_v34  ;;  %15532 = vst [vmem:[#allocation30_spill] sm:$0xff] %v14915_v3 }
 0x420   :  { %v4933_v33 = vld.sshfl [vmem:[#allocation1] sm:$0xff pattern:$0x73625140]  ;;  %v4935_v51 = vld.sshfl [vmem:[#allocation1 + $0x8] sm:$0xff pattern:$0x73625140]  ;;  %1525 = vperm.xlu0 %12140, %v14854_v28   ;;  %v1772_v19 = vadd.f32 %v1644_v1, %v1254_v42  ;;  %v1128_v42 = vmul.f32 %v13086_v49, %v14846_v45 }
 0x421   :  { %v4926_v35 = vld [vmem:[#allocation2 + $0xc4] sm:$0xf]  ;;  %v3773_v60 = vrot.slane %v3645_v17, 2  ;;  %v4955_v38 = vunpack.c.l.b16 %v4933_v33  ;;  %v4956_v24 = vunpack.c.l.b16 %v4935_v51  ;;  %15533 = vst [vmem:[#allocation44_spill] sm:$0xff] %v14917_v54  ;;  %v738_v33 = vmul.f32 %v13081_v18, %v15534_v48 }
 0x422   :  { %4938 = vst [vmem:[#allocation1] ss:$4 sm:$0xff] %v4926_v35  ;;  %v739_v51 = vmul.f32 %v13083_v55, %v15534_v48  ;;  %v2648_v35 = vpop.permute.xlu0 %2647 }
 0x423   :  { %v3940_v15 = vsel %vm3787_vm0, %v3645_v17, %v3773_v60  ;;  %v2644_v23 = vpop.permute.xlu1 %2643  ;;  %v4963_v44 = vpack.c.b16 %v4956_v24, %v4955_v38  ;;  %v1129_v38 = vmul.f32 %v13088_v9, %v14846_v45  ;;  %v2799_v45 = vmul.f32 %v2648_v35, %v13107_v16 }
 0x424   :  { %4094 = vst [vmem:[#allocation2 + $0xc8] sm:$0xf] %v3940_v15  ;;  %v2796_v11 = vmul.f32 %v2644_v23, %v13105_v2  ;;  %v2797_v10 = vmul.f32 %v2644_v23, %v13107_v16  ;;  %1003 = vperm.xlu1 %12135, %v14836_v50   ;;  %v2286_v23 = vmul.f32 %v14874_v26, %v13086_v49 }
 0x425   :  { %4971 = vst [vmem:[#allocation3 + $0x200] sm:$0x33] %v4963_v44 }
 0x426   :  { %v2924_v30 = vadd.f32 %v2796_v11, %v2412_v12  ;;  %v2925_v59 = vadd.f32 %v2797_v10, %v2413_v43  ;;  %v2798_v12 = vmul.f32 %v2648_v35, %v13105_v2  ;;  %v2287_v10 = vmul.f32 %v14874_v26, %v13088_v9 }
 0x427   :  { %1007 = vperm.xlu2 %12136, %v14854_v28   ;;  %v1256_v26 = vadd.f32 %v1128_v42, %v738_v33 }
 0x428   :  { %v3052_v17 = vmax.f32 %v1772_v19, %v2924_v30  ;;  %v3053_v40 = vmax.f32 %v1773_v29, %v2925_v59  ;;  %v14924_v60 = vpop.permute.xlu2 %2651  ;;  %12145 = vset.pattern.permute.xlu0 %v15475_v41 }
 0x429   :  { %v4939_v1 = vld.sshfl [vmem:[#allocation1] sm:$0xff pattern:$0x73625140]  ;;  %v4941_v0 = vld.sshfl [vmem:[#allocation1 + $0x8] sm:$0xff pattern:$0x73625140] }
 0x42a   :  { %v3185_v34 = vadd.f32 %v13125_v32, %v3052_v17  ;;  %v3186_v43 = vadd.f32 %v13127_v22, %v3053_v40  ;;  %v4957_v24 = vunpack.c.l.b16 %v4939_v1  ;;  %v4958_v11 = vunpack.c.l.b16 %v4941_v0 }
 0x42b   :  { %v4928_v15 = vld [vmem:[#allocation2 + $0xc8] sm:$0xf]  ;;  %v1257_v0 = vadd.f32 %v1129_v38, %v739_v51 }
 0x42c   :  { %4944 = vst [vmem:[#allocation1] ss:$4 sm:$0xff] %v4928_v15  ;;  %vm3313_vm13 = vcmp.gt.f32.partialorder %v3185_v34, 0.0  ;;  %vm3314_vm14 = vcmp.gt.f32.partialorder %v3186_v43, 0.0  ;;  %v3441_v44 = vmul.f32 0.01, %v3185_v34  ;;  %1015 = vperm.xlu1 %12135, %v14859_v20   ;;  %v1490_v19 = vpop.permute.xlu1 %1489  ;;  %v4964_v1 = vpack.c.b16 %v4958_v11, %v4957_v24 }
 0x42d   :  { %v3442_v29 = vmul.f32 0.01, %v3186_v43  ;;  %v1646_v30 = vmul.f32 %v13105_v2, %v1490_v19  ;;  %v1902_v59 = vmul.f32 %v1490_v19, %v13081_v18  ;;  %v1647_v40 = vmul.f32 %v13107_v16, %v1490_v19 }
 0x42e   :  { %v3569_v17 = vsel %vm3313_vm13, %v3185_v34, %v3441_v44  ;;  %v1903_v48 = vmul.f32 %v1490_v19, %v13083_v55  ;;  %v6092_v3 = vpop.f32.mrf.mxu0  ;;  %4972 = vst [vmem:[#allocation3 + $0x208] sm:$0x33] %v4964_v1 }
 0x42f   :  { %v3570_v15 = vsel %vm3314_vm14, %v3186_v43, %v3442_v29  ;;  %v2414_v54 = vadd.f32 %v2286_v23, %v1902_v59  ;;  %v6150_v5 = vpop.f32.mrf.mxu1  ;;  %12138 = vset.pattern.permute.xlu2 %v15460_v8  ;;  %v1774_v27 = vadd.f32 %v1646_v30, %v1256_v26  ;;  %v1775_v44 = vadd.f32 %v1647_v40, %v1257_v0  ;;  %v14952_v23 = vpop.f32.mrf.mxu2  ;;  %v15537_v59 = vld [vmem:[#allocation57_spill] sm:$0xff] }
 0x430   :  { %v3646_v25 = vpack.c.bf16 %v3570_v15, %v3569_v17  ;;  %v2415_v36 = vadd.f32 %v2287_v10, %v1903_v48  ;;  %v6151_v35 = vadd.f32 %v6150_v5, %v6092_v3  ;;  %1513 = vperm.xlu2 %12138, %v14886_v58   ;;  %15535 = vst [vmem:[#allocation43_spill] sm:$0xff] %v14952_v23 }
 0x431   :  { %v2926_v63 = vadd.f32 %v2798_v12, %v2414_v54  ;;  %v14946_v24 = vpop.permute.xlu2 %2143  ;;  %v740_v17 = vmul.f32 %v13081_v18, %v15537_v59  ;;  %v741_v40 = vmul.f32 %v13083_v55, %v15537_v59  ;;  %v1648_v48 = vmul.f32 %v13105_v2, %v14902_v13 }
 0x432   :  { %v3774_v34 = vrot.slane %v3646_v25, 2  ;;  %v2927_v19 = vadd.f32 %v2799_v45, %v2415_v36  ;;  %v1649_v0 = vmul.f32 %v13107_v16, %v14902_v13 }
 0x433   :  { %v4945_v33 = vld.sshfl [vmem:[#allocation1] sm:$0xff pattern:$0x73625140]  ;;  %v4947_v51 = vld.sshfl [vmem:[#allocation1 + $0x8] sm:$0xff pattern:$0x73625140]  ;;  %v3054_v42 = vmax.f32 %v1774_v27, %v2926_v63  ;;  %v14955_v27 = vpop.f32.mrf.mxu3 }
 0x434   :  { %v3943_v43 = vsel %vm3787_vm0, %v3646_v25, %v3774_v34  ;;  %v3055_v38 = vmax.f32 %v1775_v44, %v2927_v19  ;;  %12139 = vset.pattern.permute.xlu1 %v15460_v8  ;;  %v4959_v5 = vunpack.c.l.b16 %v4945_v33  ;;  %v4960_v3 = vunpack.c.l.b16 %v4947_v51  ;;  %15536 = vst [vmem:[#allocation33_spill] sm:$0xff] %v14955_v27 }
 0x435   :  { %4095 = vst [vmem:[#allocation2 + $0xcc] sm:$0xf] %v3943_v43  ;;  %v3187_v54 = vadd.f32 %v13125_v32, %v3054_v42  ;;  %1517 = vperm.xlu1 %12139, %v14824_v6   ;;  %v976_v12 = vpop.permute.xlu1 %975  ;;  %v1904_v34 = vmul.f32 %v14902_v13, %v13081_v18  ;;  %v1905_v44 = vmul.f32 %v14902_v13, %v13083_v55  ;;  %v11526_v13 = vld [vmem:[#allocation11 + $0x1b8] sm:$0xff] }
 0x436   :  { %v3188_v36 = vadd.f32 %v13127_v22, %v3055_v38  ;;  %v4965_v11 = vpack.c.b16 %v4960_v3, %v4959_v5  ;;  %v1130_v45 = vmul.f32 %v13086_v49, %v976_v12  ;;  %v1131_v29 = vmul.f32 %v13088_v9, %v976_v12  ;;  %6401 = vmatpush.bf16.msrb.mxu2 %v11526_v13 }
 0x437   :  { %vm3315_vm15 = vcmp.gt.f32.partialorder %v3187_v54, 0.0  ;;  %v3443_v63 = vmul.f32 0.01, %v3187_v54  ;;  %v2800_v19 = vmul.f32 %v14924_v60, %v13105_v2  ;;  %v2801_v33 = vmul.f32 %v14924_v60, %v13107_v16 }
 0x438   :  { %vm3316_vm1 = vcmp.gt.f32.partialorder %v3188_v36, 0.0  ;;  %v3444_v25 = vmul.f32 0.01, %v3188_v36  ;;  %4973 = vst [vmem:[#allocation3 + $0x210] sm:$0x33] %v4965_v11  ;;  %1521 = vperm.xlu2 %12138, %v14836_v50   ;;  %v1258_v51 = vadd.f32 %v1130_v45, %v740_v17  ;;  %v1259_v42 = vadd.f32 %v1131_v29, %v741_v40 }
 0x439   :  { %v3571_v8 = vsel %vm3315_vm15, %v3187_v54, %v3443_v63 }
 0x43a   :  { %v3572_v10 = vsel %vm3316_vm1, %v3188_v36, %v3444_v25  ;;  %v14966_v26 = vpop.permute.xlu2 %983 }
 0x43b   :  { %v3647_v30 = vpack.c.bf16 %v3572_v10, %v3571_v8  ;;  %v1776_v8 = vadd.f32 %v1648_v48, %v1258_v51  ;;  %v1777_v10 = vadd.f32 %v1649_v0, %v1259_v42 }
 0x43c   :  { %v4930_v1 = vld [vmem:[#allocation2 + $0xcc] sm:$0xf]  ;;  %v6208_v43 = vpop.f32.mrf.mxu2 }
 0x43d   :  { %4950 = vst [vmem:[#allocation1] ss:$4 sm:$0xff] %v4930_v1  ;;  %v3775_v15 = vrot.slane %v3647_v30, 2  ;;  %1529 = vperm.xlu1 %12139, %v14872_v21   ;;  %v6209_v3 = vadd.f32 %v6208_v43, %v6151_v35  ;;  %v6266_v36 = vpop.f32.mrf.mxu3  ;;  %v4975_v60 = vld [vmem:[#allocation2 + $0xcc] sm:$0xf] }
 0x43e   :  { %v2140_v38 = vpop.permute.xlu1 %2139 }
 0x43f   :  { %v3946_v5 = vsel %vm3787_vm0, %v3647_v30, %v3775_v15  ;;  %v2288_v54 = vmul.f32 %v2140_v38, %v13086_v49  ;;  %v2289_v12 = vmul.f32 %v2140_v38, %v13088_v9  ;;  %v14982_v11 = vadd.f32 %v6266_v36, %v6209_v3 }
 0x440   :  { %4096 = vst [vmem:[#allocation2 + $0xd0] sm:$0xf] %v3946_v5  ;;  %1533 = vperm.xlu2 %12138, %v14859_v20  }
 0x441   :  { %15538 = vst [vmem:[#allocation47_spill] sm:$0xff] %v14982_v11  ;;  %v2416_v63 = vadd.f32 %v2288_v54, %v1904_v34  ;;  %v2417_v25 = vadd.f32 %v2289_v12, %v1905_v44  ;;  %v980_v44 = vpop.permute.xlu0 %979  ;;  %v2290_v54 = vmul.f32 %v14946_v24, %v13086_v49  ;;  %v2291_v12 = vmul.f32 %v14946_v24, %v13088_v9 }
 0x442   :  { %v1132_v51 = vmul.f32 %v13086_v49, %v980_v44  ;;  %v1133_v3 = vmul.f32 %v13088_v9, %v980_v44 }
 0x443   :  { %v2928_v45 = vadd.f32 %v2800_v19, %v2416_v63  ;;  %v2929_v29 = vadd.f32 %v2801_v33, %v2417_v25  ;;  %v14985_v59 = vpop.permute.xlu2 %2659 }
 0x444   :  { %v4951_v35 = vld.sshfl [vmem:[#allocation1] sm:$0xff pattern:$0x73625140]  ;;  %v4953_v30 = vld.sshfl [vmem:[#allocation1 + $0x8] sm:$0xff pattern:$0x73625140] }
 0x445   :  { %4983 = vst [vmem:[#allocation1] ss:$4 sm:$0xff] %v4975_v60  ;;  %v3056_v17 = vmax.f32 %v1776_v8, %v2928_v45  ;;  %v3057_v40 = vmax.f32 %v1777_v10, %v2929_v29  ;;  %12141 = vset.pattern.permute.xlu1 %v15468_v7  ;;  %v4961_v48 = vunpack.c.l.b16 %v4951_v35  ;;  %v4962_v0 = vunpack.c.l.b16 %v4953_v30  ;;  %v15539_v10 = vld [vmem:[#allocation68_spill] sm:$0xff] }
 0x446   :  { %2159 = vperm.xlu1 %12141, %v14886_v58   ;;  %v742_v45 = vmul.f32 %v13081_v18, %v15539_v10  ;;  %v743_v29 = vmul.f32 %v13083_v55, %v15539_v10 }
 0x447   :  { %v3189_v1 = vadd.f32 %v13125_v32, %v3056_v17  ;;  %v3190_v15 = vadd.f32 %v13127_v22, %v3057_v40  ;;  %v1498_v34 = vpop.permute.xlu1 %1497  ;;  %v4977_v42 = vld [vmem:[#allocation2 + $0xd0] sm:$0xf]  ;;  %v4966_v5 = vpack.c.b16 %v4962_v0, %v4961_v48 }
 0x448   :  { %12142 = vset.pattern.permute.xlu2 %v15468_v7  ;;  %v1906_v7 = vmul.f32 %v1498_v34, %v13081_v18  ;;  %v1907_v25 = vmul.f32 %v1498_v34, %v13083_v55  ;;  %v1650_v24 = vmul.f32 %v13105_v2, %v1498_v34  ;;  %v1651_v17 = vmul.f32 %v13107_v16, %v1498_v34 }
 0x449   :  { %vm3317_vm2 = vcmp.gt.f32.partialorder %v3189_v1, 0.0  ;;  %vm3318_vm3 = vcmp.gt.f32.partialorder %v3190_v15, 0.0  ;;  %v3445_v19 = vmul.f32 0.01, %v3189_v1  ;;  %v3446_v33 = vmul.f32 0.01, %v3190_v15  ;;  %2163 = vperm.xlu2 %12142, %v14824_v6  }
 0x44a   :  { %4974 = vst [vmem:[#allocation3 + $0x218] sm:$0x33] %v4966_v5  ;;  %v2418_v44 = vadd.f32 %v2290_v54, %v1906_v7  ;;  %v1135_v34 = vmul.f32 %v13088_v9, %v14966_v26  ;;  %v11534_v5 = vld [vmem:[#allocation11 + $0x1f8] sm:$0xff]  ;;  %v11509_v7 = vld [vmem:[#allocation11 + $0x130] sm:$0xff] }
 0x44b   :  { %v3573_v43 = vsel %vm3317_vm2, %v3189_v1, %v3445_v19  ;;  %v3574_v38 = vsel %vm3318_vm3, %v3190_v15, %v3446_v33  ;;  %v1260_v1 = vadd.f32 %v1132_v51, %v742_v45  ;;  %v1261_v15 = vadd.f32 %v1133_v3, %v743_v29  ;;  %v11518_v51 = vld [vmem:[#allocation11 + $0x178] sm:$0xff]  ;;  %v1502_v3 = vpop.permute.xlu0 %1501  ;;  %6459 = vmatpush.bf16.msrb.mxu3 %v11534_v5 }
 0x44c   :  { %v3648_v36 = vpack.c.bf16 %v3574_v38, %v3573_v43  ;;  %v4984_v13 = vld.sshfl [vmem:[#allocation1] sm:$0xff pattern:$0x73625140]  ;;  %v4986_v63 = vld.sshfl [vmem:[#allocation1 + $0x8] sm:$0xff pattern:$0x73625140]  ;;  %v15005_v30 = vpop.permute.xlu2 %1505  ;;  %v2419_v19 = vadd.f32 %v2291_v12, %v1907_v25  ;;  %v1134_v43 = vmul.f32 %v13086_v49, %v14966_v26  ;;  %6343 = vmatpush.bf16.msrb.mxu1 %v11518_v51  ;;  %v1909_v5 = vmul.f32 %v1502_v3, %v13083_v55 }
 0x44d   :  { %4989 = vst [vmem:[#allocation1] ss:$4 sm:$0xff] %v4977_v42  ;;  %v5006_v60 = vunpack.c.l.b16 %v4984_v13  ;;  %v5007_v8 = vunpack.c.l.b16 %v4986_v63  ;;  %v11510_v38 = vld [vmem:[#allocation11 + $0x138] sm:$0xff]  ;;  %v1779_v54 = vadd.f32 %v1651_v17, %v1261_v15  ;;  %v11525_v63 = vld [vmem:[#allocation11 + $0x1b0] sm:$0xff]  ;;  %v1653_v15 = vmul.f32 %v13107_v16, %v1502_v3 }
 0x44e   :  { %v3776_v35 = vrot.slane %v3648_v36, 2  ;;  %2167 = vperm.xlu1 %12141, %v14836_v50   ;;  %v11533_v25 = vld [vmem:[#allocation11 + $0x1f0] sm:$0xff]  ;;  %6285 = vmatpush.bf16.msrb.mxu0 %v11510_v38  ;;  %v1908_v38 = vmul.f32 %v1502_v3, %v13081_v18  ;;  %v9701_v51 = vld [vmem:[#allocation3 + $0x200] sm:$0xf] }
 0x44f   :  { %v5014_v40 = vpack.c.b16 %v5007_v8, %v5006_v60  ;;  %v15540_v60 = vld [vmem:[#allocation67_spill] sm:$0xff]  ;;  %6402 = vmatpush.bf16.msrb.mxu2 %v11525_v63  ;;  %6460 = vmatpush.bf16.msrb.mxu3 %v11533_v25 }
 0x450   :  { %v3949_v48 = vsel %vm3787_vm0, %v3648_v36, %v3776_v35  ;;  %v2656_v0 = vpop.permute.xlu1 %2655  ;;  %v1778_v36 = vadd.f32 %v1650_v24, %v1260_v1  ;;  %v744_v8 = vmul.f32 %v13081_v18, %v15540_v60  ;;  %v745_v26 = vmul.f32 %v13083_v55, %v15540_v60 }
 0x451   :  { %4097 = vst [vmem:[#allocation2 + $0xd4] sm:$0xf] %v3949_v48  ;;  %v2802_v33 = vmul.f32 %v2656_v0, %v13105_v2  ;;  %v2803_v42 = vmul.f32 %v2656_v0, %v13107_v16  ;;  %2171 = vperm.xlu2 %12142, %v14854_v28   ;;  %v1652_v1 = vmul.f32 %v13105_v2, %v1502_v3 }
 0x452   :  { %5022 = vst [vmem:[#allocation3 + $0x220] sm:$0x33] %v5014_v40  ;;  %v11517_v40 = vld [vmem:[#allocation11 + $0x170] sm:$0xff]  ;;  %v1262_v48 = vadd.f32 %v1134_v43, %v744_v8  ;;  %v1263_v0 = vadd.f32 %v1135_v34, %v745_v26  ;;  %6286 = vmatpush.bf16.msrb.mxu0 %v11509_v7  ;;  %v2804_v43 = vmul.f32 %v14985_v59, %v13105_v2 }
 0x453   :  { %v2930_v12 = vadd.f32 %v2802_v33, %v2418_v44  ;;  %v2931_v13 = vadd.f32 %v2803_v42, %v2419_v19  ;;  %6344 = vmatpush.bf16.msrb.mxu1 %v11517_v40 }
 0x454   :  { %v4990_v10 = vld.sshfl [vmem:[#allocation1] sm:$0xff pattern:$0x73625140]  ;;  %v4992_v45 = vld.sshfl [vmem:[#allocation1 + $0x8] sm:$0xff pattern:$0x73625140] }
 0x455   :  { %v3058_v29 = vmax.f32 %v1778_v36, %v2930_v12  ;;  %v3059_v35 = vmax.f32 %v1779_v54, %v2931_v13  ;;  %v5008_v24 = vunpack.c.l.b16 %v4990_v10  ;;  %v5009_v17 = vunpack.c.l.b16 %v4992_v45  ;;  %v15027_v42 = vpop.permute.xlu2 %991  ;;  %v11463_v36 = vld [vmem:[#allocation3 + $0x204] sm:$0xf] }
 0x456   :  { %2175 = vperm.xlu1 %12141, %v14872_v21   ;;  %v2805_v13 = vmul.f32 %v14985_v59, %v13107_v16  ;;  %v1780_v59 = vadd.f32 %v1652_v1, %v1262_v48 }
 0x457   :  { %v3191_v44 = vadd.f32 %v13125_v32, %v3058_v29  ;;  %v3192_v19 = vadd.f32 %v13127_v22, %v3059_v35  ;;  %v5015_v54 = vpack.c.b16 %v5009_v17, %v5008_v24  ;;  %v1781_v17 = vadd.f32 %v1653_v15, %v1263_v0 }
 0x458   :  { %v4979_v33 = vld [vmem:[#allocation2 + $0xd4] sm:$0xf] }
 0x459   :  { %4995 = vst [vmem:[#allocation1] ss:$4 sm:$0xff] %v4979_v33  ;;  %vm3319_vm4 = vcmp.gt.f32.partialorder %v3191_v44, 0.0  ;;  %vm3320_vm5 = vcmp.gt.f32.partialorder %v3192_v19, 0.0  ;;  %v3447_v34 = vmul.f32 0.01, %v3191_v44  ;;  %v2148_v12 = vpop.permute.xlu1 %2147  ;;  %2179 = vperm.xlu2 %12142, %v14859_v20  }
 0x45a   :  { %v3448_v63 = vmul.f32 0.01, %v3192_v19  ;;  %v2292_v3 = vmul.f32 %v2148_v12, %v13086_v49  ;;  %v2293_v60 = vmul.f32 %v2148_v12, %v13088_v9  ;;  %v11467_v8 = vld [vmem:[#allocation3 + $0x21c] sm:$0xf0]  ;;  %v9703_v7 = vld [vmem:[#allocation3 + $0x220] sm:$0xf0] }
 0x45b   :  { %v3575_v25 = vsel %vm3319_vm4, %v3191_v44, %v3447_v34  ;;  %v9702_v26 = vor.u32 %v11467_v8, %v9701_v51  ;;  %v9706_v10 = vor.u32 %v11463_v36, %v9703_v7  ;;  %5023 = vst [vmem:[#allocation3 + $0x228] sm:$0x33] %v5015_v54  ;;  %v11516_v8 = vld [vmem:[#allocation11 + $0x168] sm:$0xff] }
 0x45c   :  { %v3576_v45 = vsel %vm3320_vm5, %v3192_v19, %v3448_v63  ;;  %v2420_v29 = vadd.f32 %v2292_v3, %v1908_v38  ;;  %v2421_v35 = vadd.f32 %v2293_v60, %v1909_v5  ;;  %v9709_v38 = vld [vmem:[#allocation3 + $0x208] sm:$0xf]  ;;  %v11464_v5 = vld [vmem:[#allocation3 + $0x20c] sm:$0xf]  ;;  %v1911_v63 = vmul.f32 %v15005_v30, %v13083_v55  ;;  %6345 = vmatpush.bf16.msrb.mxu1 %v11516_v8 }
 0x45d   :  { %v3649_v24 = vpack.c.bf16 %v3576_v45, %v3575_v25  ;;  %6101 = vmatmul.bf16.gmra.mxu0 %v9702_v26  ;;  %6159 = vmatmul.bf16.gmra.mxu1 %v9706_v10  ;;  %v11508_v60 = vld [vmem:[#allocation11 + $0x128] sm:$0xff] }
 0x45e   :  { %v2932_v40 = vadd.f32 %v2804_v43, %v2420_v29  ;;  %v2933_v33 = vadd.f32 %v2805_v13, %v2421_v35  ;;  %12143 = vset.pattern.permute.xlu1 %v15475_v41  ;;  %v2152_v43 = vpop.permute.xlu0 %2151  ;;  %6287 = vmatpush.bf16.msrb.mxu0 %v11508_v60  ;;  %v15541_v29 = vld [vmem:[#allocation61_spill] sm:$0xff] }
 0x45f   :  { %v3777_v11 = vrot.slane %v3649_v24, 2  ;;  %2671 = vperm.xlu1 %12143, %v14886_v58   ;;  %v15040_v51 = vpop.permute.xlu2 %2155  ;;  %v746_v35 = vmul.f32 %v13081_v18, %v15541_v29  ;;  %v15542_v60 = vld [vmem:[#allocation69_spill] sm:$0xff] }
 0x460   :  { %v4996_v12 = vld.sshfl [vmem:[#allocation1] sm:$0xff pattern:$0x73625140]  ;;  %v4998_v27 = vld.sshfl [vmem:[#allocation1 + $0x8] sm:$0xff pattern:$0x73625140]  ;;  %v3060_v23 = vmax.f32 %v1780_v59, %v2932_v40  ;;  %v3061_v44 = vmax.f32 %v1781_v17, %v2933_v33  ;;  %v1654_v59 = vmul.f32 %v13105_v2, %v15005_v30  ;;  %v1655_v17 = vmul.f32 %v13107_v16, %v15005_v30 }
 0x461   :  { %v3952_v19 = vsel %vm3787_vm0, %v3649_v24, %v3777_v11  ;;  %v5010_v36 = vunpack.c.l.b16 %v4996_v12  ;;  %v5011_v34 = vunpack.c.l.b16 %v4998_v27  ;;  %12144 = vset.pattern.permute.xlu2 %v15475_v41  ;;  %v1910_v11 = vmul.f32 %v15005_v30, %v13081_v18 }
 0x462   :  { %4098 = vst [vmem:[#allocation2 + $0xd8] sm:$0xf] %v3952_v19  ;;  %v3193_v1 = vadd.f32 %v13125_v32, %v3060_v23  ;;  %v3194_v15 = vadd.f32 %v13127_v22, %v3061_v44  ;;  %v988_v48 = vpop.permute.xlu1 %987  ;;  %v11468_v0 = vld [vmem:[#allocation3 + $0x224] sm:$0xf0]  ;;  %v9711_v54 = vld [vmem:[#allocation3 + $0x228] sm:$0xf0]  ;;  %2675 = vperm.xlu2 %12144, %v14824_v6   ;;  %v2294_v27 = vmul.f32 %v2152_v43, %v13086_v49 }
 0x463   :  { %v9710_v58 = vor.u32 %v11468_v0, %v9709_v38  ;;  %v9714_v13 = vor.u32 %v11464_v5, %v9711_v54  ;;  %v2295_v41 = vmul.f32 %v2152_v43, %v13088_v9  ;;  %v5016_v7 = vpack.c.b16 %v5011_v34, %v5010_v36  ;;  %v11507_v44 = vld [vmem:[#allocation11 + $0x120] sm:$0xff]  ;;  %v11524_v0 = vld [vmem:[#allocation11 + $0x1a8] sm:$0xff]  ;;  %v11506_v43 = vld [vmem:[#allocation11 + $0x118] sm:$0xff] }
 0x464   :  { %vm3321_vm6 = vcmp.gt.f32.partialorder %v3193_v1, 0.0  ;;  %vm3322_vm7 = vcmp.gt.f32.partialorder %v3194_v15, 0.0  ;;  %v3449_v23 = vmul.f32 0.01, %v3193_v1  ;;  %v3450_v3 = vmul.f32 0.01, %v3194_v15  ;;  %6288 = vmatpush.bf16.msrb.mxu0 %v11507_v44  ;;  %6403 = vmatpush.bf16.msrb.mxu2 %v11524_v0 }
 0x465   :  { %6217 = vmatmul.bf16.gmra.mxu2 %v9710_v58  ;;  %6275 = vmatmul.bf16.gmra.mxu3 %v9714_v13  ;;  %v1136_v10 = vmul.f32 %v13086_v49, %v988_v48  ;;  %v1137_v45 = vmul.f32 %v13088_v9, %v988_v48  ;;  %5024 = vst [vmem:[#allocation3 + $0x230] sm:$0x33] %v5016_v7  ;;  %v11532_v54 = vld [vmem:[#allocation11 + $0x1e8] sm:$0xff] }
 0x466   :  { %v3577_v25 = vsel %vm3321_vm6, %v3193_v1, %v3449_v23  ;;  %v3578_v26 = vsel %vm3322_vm7, %v3194_v15, %v3450_v3  ;;  %v747_v24 = vmul.f32 %v13083_v55, %v15541_v29  ;;  %v2422_v5 = vadd.f32 %v2294_v27, %v1910_v11  ;;  %v11515_v1 = vld [vmem:[#allocation11 + $0x160] sm:$0xff]  ;;  %v2668_v23 = vpop.permute.xlu0 %2667  ;;  %6461 = vmatpush.bf16.msrb.mxu3 %v11532_v54 }
 0x467   :  { %v3650_v6 = vpack.c.bf16 %v3578_v26, %v3577_v25  ;;  %2679 = vperm.xlu1 %12143, %v14836_v50   ;;  %v1264_v19 = vadd.f32 %v1136_v10, %v746_v35  ;;  %v2423_v36 = vadd.f32 %v2295_v41, %v1911_v63  ;;  %6346 = vmatpush.bf16.msrb.mxu1 %v11515_v1  ;;  %v11514_v63 = vld [vmem:[#allocation11 + $0x158] sm:$0xff]  ;;  %v11523_v3 = vld [vmem:[#allocation11 + $0x1a0] sm:$0xff]  ;;  %v11512_v1 = vld [vmem:[#allocation11 + $0x148] sm:$0xff] }
 0x468   :  { %v610_v12 = vpop.permute.xlu2 %609  ;;  %v1265_v38 = vadd.f32 %v1137_v45, %v747_v24  ;;  %6289 = vmatpush.bf16.msrb.mxu0 %v11506_v43  ;;  %v748_v8 = vmul.f32 %v13081_v18, %v15542_v60  ;;  %v749_v7 = vmul.f32 %v13083_v55, %v15542_v60  ;;  %v1138_v10 = vmul.f32 %v13086_v49, %v15027_v42 }
 0x469   :  { %v4981_v40 = vld [vmem:[#allocation2 + $0xd8] sm:$0xf]  ;;  %v3778_v33 = vrot.slane %v3650_v6, 2  ;;  %v1782_v34 = vadd.f32 %v1654_v59, %v1264_v19  ;;  %v2808_v24 = vmul.f32 %v2668_v23, %v13105_v2  ;;  %v2297_v12 = vmul.f32 %v15040_v51, %v13088_v9  ;;  %6404 = vmatpush.bf16.msrb.mxu2 %v11523_v3  ;;  %v11503_v3 = vld [vmem:[#allocation11 + $0x100] sm:$0xff] }
 0x46a   :  { %5001 = vst [vmem:[#allocation1] ss:$4 sm:$0xff] %v4981_v40  ;;  %2683 = vperm.xlu2 %12144, %v14854_v28   ;;  %v1783_v58 = vadd.f32 %v1655_v17, %v1265_v38  ;;  %v5026_v27 = vld [vmem:[#allocation2 + $0xd8] sm:$0xf]  ;;  %v11531_v40 = vld [vmem:[#allocation11 + $0x1e0] sm:$0xff]  ;;  %v1266_v54 = vadd.f32 %v1138_v10, %v748_v8 }
 0x46b   :  { %v3955_v15 = vsel %vm3787_vm0, %v3650_v6, %v3778_v33  ;;  %v2664_v48 = vpop.permute.xlu1 %2663  ;;  %6347 = vmatpush.bf16.msrb.mxu1 %v11514_v63  ;;  %v1139_v6 = vmul.f32 %v13088_v9, %v15027_v42  ;;  %v11505_v59 = vld [vmem:[#allocation11 + $0x110] sm:$0xff]  ;;  %v2296_v33 = vmul.f32 %v15040_v51, %v13086_v49  ;;  %v2809_v9 = vmul.f32 %v2668_v23, %v13107_v16  ;;  %v11504_v51 = vld [vmem:[#allocation11 + $0x108] sm:$0xff] }
 0x46c   :  { %4099 = vst [vmem:[#allocation2 + $0xdc] sm:$0xf] %v3955_v15  ;;  %v2806_v50 = vmul.f32 %v2664_v48, %v13105_v2  ;;  %v2807_v30 = vmul.f32 %v2664_v48, %v13107_v16  ;;  %v11513_v17 = vld [vmem:[#allocation11 + $0x150] sm:$0xff]  ;;  %6290 = vmatpush.bf16.msrb.mxu0 %v11505_v59  ;;  %6462 = vmatpush.bf16.msrb.mxu3 %v11531_v40  ;;  %v11522_v15 = vld [vmem:[#allocation11 + $0x198] sm:$0xff]  ;;  %v11520_v59 = vld [vmem:[#allocation11 + $0x188] sm:$0xff] }
 0x46d   :  { %6405 = vmatpush.bf16.msrb.mxu2 %v11522_v15 }
 0x46e   :  { %v2934_v13 = vadd.f32 %v2806_v50, %v2422_v5  ;;  %v2935_v11 = vadd.f32 %v2807_v30, %v2423_v36  ;;  %v11530_v30 = vld [vmem:[#allocation11 + $0x1d8] sm:$0xff] }
 0x46f   :  { %2687 = vperm.xlu1 %12143, %v14872_v21   ;;  %6348 = vmatpush.bf16.msrb.mxu1 %v11513_v17  ;;  %v11528_v17 = vld [vmem:[#allocation11 + $0x1c8] sm:$0xff] }
 0x470   :  { %v3062_v28 = vmax.f32 %v1782_v34, %v2934_v13  ;;  %v3063_v41 = vmax.f32 %v1783_v58, %v2935_v11  ;;  %v620_v45 = vpop.permute.xlu2 %619  ;;  %6291 = vmatpush.bf16.msrb.mxu0 %v11504_v51  ;;  %v15092_v13 = vpop.f32.mrf.mxu1  ;;  %6463 = vmatpush.bf16.msrb.mxu3 %v11530_v30 }
 0x471   :  { %v5002_v25 = vld.sshfl [vmem:[#allocation1] sm:$0xff pattern:$0x73625140]  ;;  %v5004_v26 = vld.sshfl [vmem:[#allocation1 + $0x8] sm:$0xff pattern:$0x73625140] }
 0x472   :  { %5034 = vst [vmem:[#allocation1] ss:$4 sm:$0xff] %v5026_v27  ;;  %v3195_v29 = vadd.f32 %v13125_v32, %v3062_v28  ;;  %v3196_v35 = vadd.f32 %v13127_v22, %v3063_v41  ;;  %v5012_v21 = vunpack.c.l.b16 %v5002_v25  ;;  %v5013_v44 = vunpack.c.l.b16 %v5004_v26  ;;  %2691 = vperm.xlu2 %12144, %v14859_v20   ;;  %v11511_v27 = vld [vmem:[#allocation11 + $0x140] sm:$0xff]  ;;  %v11521_v25 = vld [vmem:[#allocation11 + $0x190] sm:$0xff] }
 0x473   :  { %6349 = vmatpush.bf16.msrb.mxu1 %v11512_v1  ;;  %v11529_v26 = vld [vmem:[#allocation11 + $0x1d0] sm:$0xff]  ;;  %6406 = vmatpush.bf16.msrb.mxu2 %v11521_v25 }
 0x474   :  { %vm3323_vm8 = vcmp.gt.f32.partialorder %v3195_v29, 0.0  ;;  %vm3324_vm9 = vcmp.gt.f32.partialorder %v3196_v35, 0.0  ;;  %v3451_v42 = vmul.f32 0.01, %v3195_v29  ;;  %v3452_v19 = vmul.f32 0.01, %v3196_v35  ;;  %v1510_v38 = vpop.permute.xlu1 %1509  ;;  %6292 = vmatpush.bf16.msrb.mxu0 %v11503_v3  ;;  %6464 = vmatpush.bf16.msrb.mxu3 %v11529_v26 }
 0x475   :  { %v1656_v5 = vmul.f32 %v13105_v2, %v1510_v38  ;;  %v1912_v36 = vmul.f32 %v1510_v38, %v13081_v18  ;;  %v1913_v49 = vmul.f32 %v1510_v38, %v13083_v55  ;;  %v1657_v50 = vmul.f32 %v13107_v16, %v1510_v38  ;;  %v5028_v18 = vld [vmem:[#allocation2 + $0xdc] sm:$0xf]  ;;  %v15090_v55 = vpop.f32.mrf.mxu0  ;;  %v11519_v38 = vld [vmem:[#allocation11 + $0x180] sm:$0xff] }
 0x476   :  { %v3579_v20 = vsel %vm3323_vm8, %v3195_v29, %v3451_v42  ;;  %v3580_v48 = vsel %vm3324_vm9, %v3196_v35, %v3452_v19  ;;  %v5017_v0 = vpack.c.b16 %v5013_v44, %v5012_v21  ;;  %v1267_v2 = vadd.f32 %v1139_v6, %v749_v7 }
 0x477   :  { %v3651_v43 = vpack.c.bf16 %v3580_v48, %v3579_v20  ;;  %v2424_v34 = vadd.f32 %v2296_v33, %v1912_v36  ;;  %v2425_v58 = vadd.f32 %v2297_v12, %v1913_v49  ;;  %v1784_v63 = vadd.f32 %v1656_v5, %v1266_v54  ;;  %6350 = vmatpush.bf16.msrb.mxu1 %v11511_v27 }
 0x478   :  { %5025 = vst [vmem:[#allocation3 + $0x238] sm:$0x33] %v5017_v0  ;;  %v1785_v28 = vadd.f32 %v1657_v50, %v1267_v2  ;;  %6407 = vmatpush.bf16.msrb.mxu2 %v11520_v59  ;;  %6465 = vmatpush.bf16.msrb.mxu3 %v11528_v17  ;;  %v9463_v59 = vld [vmem:[#allocation3 + $0x30] sm:$0xf0] }
 0x479   :  { %v3779_v11 = vrot.slane %v3651_v43, 2  ;;  %v2936_v23 = vadd.f32 %v2808_v24, %v2424_v34  ;;  %v5035_v16 = vld.sshfl [vmem:[#allocation1] sm:$0xff pattern:$0x73625140]  ;;  %v2937_v41 = vadd.f32 %v2809_v9, %v2425_v58  ;;  %v1000_v60 = vpop.permute.xlu2 %999 }
 0x47a   :  { %v5037_v8 = vld.sshfl [vmem:[#allocation1 + $0x8] sm:$0xff pattern:$0x73625140]  ;;  %v5057_v7 = vunpack.c.l.b16 %v5035_v16 }
 0x47b   :  { %v3958_v10 = vsel %vm3787_vm0, %v3651_v43, %v3779_v11  ;;  %v3064_v45 = vmax.f32 %v1784_v63, %v2936_v23  ;;  %5040 = vst [vmem:[#allocation1] ss:$4 sm:$0xff] %v5028_v18  ;;  %v3065_v6 = vmax.f32 %v1785_v28, %v2937_v41  ;;  %v5058_v29 = vunpack.c.l.b16 %v5037_v8  ;;  %v15098_v43 = vpop.f32.mrf.mxu2  ;;  %v15100_v18 = vpop.f32.mrf.mxu3 }
 0x47c   :  { %4100 = vst [vmem:[#allocation2 + $0xe0] sm:$0xf] %v3958_v10  ;;  %6408 = vmatpush.bf16.msrb.mxu2 %v11519_v38 }
 0x47d   :  { %v3197_v35 = vadd.f32 %v13125_v32, %v3064_v45  ;;  %v605_v24 = vpop.permute.xlu1 %604  ;;  %v3198_v40 = vadd.f32 %v13127_v22, %v3065_v6  ;;  %v5065_v33 = vpack.c.b16 %v5058_v29, %v5057_v7  ;;  %v11527_v32 = vld [vmem:[#allocation11 + $0x1c0] sm:$0xff] }
 0x47e   :  { %6466 = vmatpush.bf16.msrb.mxu3 %v11527_v32  ;;  %v11405_v24 = vld [vmem:[#allocation3 + $0x2c] sm:$0xf0] }
 0x47f   :  { %vm3325_vm10 = vcmp.gt.f32.partialorder %v3197_v35, 0.0  ;;  %v3453_v12 = vmul.f32 0.01, %v3197_v35  ;;  %vm3326_vm11 = vcmp.gt.f32.partialorder %v3198_v40, 0.0  ;;  %v3454_v21 = vmul.f32 0.01, %v3198_v40 }
 0x480   :  { %5073 = vst [vmem:[#allocation3 + $0x240] sm:$0x33] %v5065_v33  ;;  %v9461_v33 = vld [vmem:[#allocation3 + $0x10] sm:$0xf] }
 0x481   :  { %v3581_v44 = vsel %vm3325_vm10, %v3197_v35, %v3453_v12  ;;  %v6097_v42 = vpop.f32.mrf.mxu0  ;;  %v6155_v19 = vpop.f32.mrf.mxu1  ;;  %v3582_v5 = vsel %vm3326_vm11, %v3198_v40, %v3454_v21  ;;  %v11401_v12 = vld [vmem:[#allocation3 + $0x14] sm:$0xf]  ;;  %v9462_v21 = vor.u32 %v11405_v24, %v9461_v33  ;;  %v11429_v24 = vld [vmem:[#allocation3 + $0xec] sm:$0xf0]  ;;  %vm9349_vm11 = vcmask 1043456  }
 0x482   :  { %v6156_v36 = vadd.f32 %v6155_v19, %v6097_v42  ;;  %v5041_v49 = vld.sshfl [vmem:[#allocation1] sm:$0xff pattern:$0x73625140]  ;;  %v5043_v9 = vld.sshfl [vmem:[#allocation1 + $0x8] sm:$0xff pattern:$0x73625140]  ;;  %v3652_v1 = vpack.c.bf16 %v3582_v5, %v3581_v44  ;;  %v1008_v22 = vpop.permute.xlu2 %1007  ;;  %v9466_v44 = vor.u32 %v11401_v12, %v9463_v59 }
 0x483   :  { %v5030_v51 = vld [vmem:[#allocation2 + $0xe0] sm:$0xf]  ;;  %v5059_v15 = vunpack.c.l.b16 %v5041_v49  ;;  %v5060_v20 = vunpack.c.l.b16 %v5043_v9  ;;  %v11406_v5 = vld [vmem:[#allocation3 + $0x34] sm:$0xf0]  ;;  %v9559_v59 = vld [vmem:[#allocation3 + $0xf0] sm:$0xf0] }
 0x484   :  { %5046 = vst [vmem:[#allocation1] ss:$4 sm:$0xff] %v5030_v51  ;;  %v3780_v48 = vrot.slane %v3652_v1, 2  ;;  %v9469_v49 = vld [vmem:[#allocation3 + $0x18] sm:$0xf] }
 0x485   :  { %v615_v50 = vpop.permute.xlu1 %614  ;;  %v5066_v30 = vpack.c.b16 %v5060_v20, %v5059_v15  ;;  %v9470_v9 = vor.u32 %v11406_v5, %v9469_v49  ;;  %v11402_v51 = vld [vmem:[#allocation3 + $0x1c] sm:$0xf]  ;;  %v11413_v15 = vld [vmem:[#allocation3 + $0x6c] sm:$0xf0]  ;;  %v9495_v20 = vld [vmem:[#allocation3 + $0x70] sm:$0xf0] }
 0x486   :  { %v3961_v0 = vsel %vm3787_vm0, %v3652_v1, %v3780_v48  ;;  %v9493_v48 = vld [vmem:[#allocation3 + $0x50] sm:$0xf]  ;;  %v11409_v50 = vld [vmem:[#allocation3 + $0x54] sm:$0xf] }
 0x487   :  { %v5149_v54 = vld [vmem:[#allocation3 + $0x240] sm:$0xff]  ;;  %4101 = vst [vmem:[#allocation2 + $0xe4] sm:$0xf] %v3961_v0  ;;  %v9498_v0 = vor.u32 %v11409_v50, %v9495_v20  ;;  %v11425_v33 = vld [vmem:[#allocation3 + $0xd4] sm:$0xf] }
 0x488   :  { %v5501_v34 = vunpack.c.l.b16 %v5149_v54  ;;  %v5502_v2 = vunpack.c.h.b16 %v5149_v54  ;;  %5074 = vst [vmem:[#allocation3 + $0x248] sm:$0x33] %v5066_v30  ;;  %v9494_v30 = vor.u32 %v11413_v15, %v9493_v48  ;;  %v9589_v15 = vld [vmem:[#allocation3 + $0x110] sm:$0xf]  ;;  %v11433_v20 = vld [vmem:[#allocation3 + $0x114] sm:$0xf] }
 0x48a   :  { %v5581_v58 = vpack.c.b16 %v5501_v34, %v5501_v34  ;;  %v5582_v11 = vpack.c.b16 %v5502_v2, %v5502_v2  ;;  %v11414_v34 = vld [vmem:[#allocation3 + $0x74] sm:$0xf0]  ;;  %v9503_v2 = vld [vmem:[#allocation3 + $0x78] sm:$0xf0] }
 0x48b   :  { %v5047_v63 = vld.sshfl [vmem:[#allocation1] sm:$0xff pattern:$0x73625140]  ;;  %v5049_v23 = vld.sshfl [vmem:[#allocation1 + $0x8] sm:$0xff pattern:$0x73625140] }
 0x48c   :  { %6106 = vmatmul.bf16.gmra.mxu0 %v5581_v58  ;;  %6164 = vmatmul.bf16.gmra.mxu1 %v5582_v11  ;;  %v5061_v16 = vunpack.c.l.b16 %v5047_v63  ;;  %v5062_v3 = vunpack.c.l.b16 %v5049_v23  ;;  %v9501_v58 = vld [vmem:[#allocation3 + $0x58] sm:$0xf]  ;;  %v11410_v63 = vld [vmem:[#allocation3 + $0x5c] sm:$0xf] }
 0x48d   :  { %v9502_v11 = vor.u32 %v11414_v34, %v9501_v58  ;;  %v9506_v23 = vor.u32 %v11410_v63, %v9503_v2  ;;  %v11438_v2 = vld [vmem:[#allocation3 + $0x134] sm:$0xf0]  ;;  %v9599_v58 = vld [vmem:[#allocation3 + $0x138] sm:$0xf0] }
 0x48e   :  { %v996_v27 = vpop.permute.xlu1 %995  ;;  %v5067_v28 = vpack.c.b16 %v5062_v3, %v5061_v16  ;;  %v5032_v41 = vld [vmem:[#allocation2 + $0xe4] sm:$0xf]  ;;  %v11421_v16 = vld [vmem:[#allocation3 + $0xac] sm:$0xf0]  ;;  %v9527_v3 = vld [vmem:[#allocation3 + $0xb0] sm:$0xf0] }
 0x48f   :  { %v6213_v60 = vpop.f32.mrf.mxu2  ;;  %v5150_v8 = vld [vmem:[#allocation3 + $0x248] sm:$0xff]  ;;  %5052 = vst [vmem:[#allocation1] ss:$4 sm:$0xff] %v5032_v41  ;;  %v6271_v26 = vpop.f32.mrf.mxu3  ;;  %v11417_v41 = vld [vmem:[#allocation3 + $0x94] sm:$0xf] }
 0x490   :  { %5075 = vst [vmem:[#allocation3 + $0x250] sm:$0x33] %v5067_v28  ;;  %v6214_v7 = vadd.f32 %v6213_v60, %v6156_v36  ;;  %v5503_v25 = vunpack.c.l.b16 %v5150_v8  ;;  %v5504_v10 = vunpack.c.h.b16 %v5150_v8  ;;  %v9471_v36 = vld [vmem:[#allocation3 + $0x38] sm:$0xf0]  ;;  %v9525_v28 = vld [vmem:[#allocation3 + $0x90] sm:$0xf]  ;;  %v9530_v8 = vor.u32 %v11417_v41, %v9527_v3 }
 0x491   :  { %v9474_v1 = vor.u32 %v11402_v51, %v9471_v36  ;;  %v9526_v60 = vor.u32 %v11421_v16, %v9525_v28  ;;  %v9565_v36 = vld [vmem:[#allocation3 + $0xd8] sm:$0xf]  ;;  %v11434_v16 = vld [vmem:[#allocation3 + $0x11c] sm:$0xf]  ;;  %v9623_v28 = vld [vmem:[#allocation3 + $0x170] sm:$0xf0] }
 0x492   :  { %v15102_v45 = vadd.f32 %v6271_v26, %v6214_v7  ;;  %v5583_v6 = vpack.c.b16 %v5503_v25, %v5503_v25  ;;  %v5584_v29 = vpack.c.b16 %v5504_v10, %v5504_v10  ;;  %v11422_v7 = vld [vmem:[#allocation3 + $0xb4] sm:$0xf0]  ;;  %v9535_v26 = vld [vmem:[#allocation3 + $0xb8] sm:$0xf0]  ;;  %v9602_v3 = vor.u32 %v11434_v16, %v9599_v58 }
 0x493   :  { %v9533_v10 = vld [vmem:[#allocation3 + $0x98] sm:$0xf] }
 0x494   :  { %6222 = vmatmul.bf16.gmra.mxu2 %v5583_v6  ;;  %6280 = vmatmul.bf16.gmra.mxu3 %v5584_v29  ;;  %v9534_v6 = vor.u32 %v11422_v7, %v9533_v10  ;;  %v11418_v29 = vld [vmem:[#allocation3 + $0x9c] sm:$0xf]  ;;  %v9597_v63 = vld [vmem:[#allocation3 + $0x118] sm:$0xf]  ;;  %v11441_v7 = vld [vmem:[#allocation3 + $0x154] sm:$0xf] }
 0x495   :  { %v9626_v10 = vor.u32 %v11441_v7, %v9623_v28  ;;  %v11565_v16 = vld [vmem:[#allocation14 + $0xec] sm:$0xf0]  ;;  %v9695_v7 = vld [vmem:[#allocation3 + $0x1f8] sm:$0xf0] }
 0x496   :  { %v1004_v35 = vpop.permute.xlu1 %1003  ;;  %v5053_v17 = vld.sshfl [vmem:[#allocation1] sm:$0xff pattern:$0x73625140]  ;;  %v5055_v40 = vld.sshfl [vmem:[#allocation1 + $0x8] sm:$0xff pattern:$0x73625140] }
 0x497   :  { %v5063_v42 = vunpack.c.l.b16 %v5053_v17  ;;  %v5064_v19 = vunpack.c.l.b16 %v5055_v40  ;;  %v9538_v35 = vor.u32 %v11418_v29, %v9535_v26  ;;  %v9557_v40 = vld [vmem:[#allocation3 + $0xd0] sm:$0xf]  ;;  %v15108_v34 = vpop.f32.mrf.mxu2  ;;  %v11446_v29 = vld [vmem:[#allocation3 + $0x174] sm:$0xf0] }
 0x498   :  { %v9558_v12 = vor.u32 %v11429_v24, %v9557_v40  ;;  %v9629_v24 = vld [vmem:[#allocation3 + $0x158] sm:$0xf] }
 0x499   :  { %v5068_v38 = vpack.c.b16 %v5064_v19, %v5063_v42  ;;  %v11430_v42 = vld [vmem:[#allocation3 + $0xf4] sm:$0xf0]  ;;  %v15104_v19 = vpop.f32.mrf.mxu0 }
 0x49a   :  { %v9566_v49 = vor.u32 %v11430_v42, %v9565_v36 }
 0x49b   :  { %5076 = vst [vmem:[#allocation3 + $0x258] sm:$0x33] %v5068_v38  ;;  %v9567_v38 = vld [vmem:[#allocation3 + $0xf8] sm:$0xf0] }
 0x49c   :  { %6293 = vmatmul.bf16.vlgmr.msrb.gmra.mxu0 %v9462_v21  ;;  %6351 = vmatmul.bf16.vlgmr.msrb.gmra.mxu1 %v9466_v44  ;;  %v9562_v21 = vor.u32 %v11425_v33, %v9559_v59  ;;  %v1514_v44 = vpop.permute.xlu2 %1513  ;;  %v9630_v59 = vor.u32 %v11446_v29, %v9629_v24  ;;  %v11453_v33 = vld [vmem:[#allocation3 + $0x1ac] sm:$0xf0]  ;;  %v11561_v24 = vld [vmem:[#allocation14 + $0xcc] sm:$0xf0] }
 0x49d   :  { %v11449_v44 = vld [vmem:[#allocation3 + $0x194] sm:$0xf] }
 0x49e   :  { %v1016_v32 = vpop.permute.xlu1 %1015 }
 0x49f   :  { %v15106_v32 = vpop.f32.mrf.mxu1 }
 0x4a4   :  { %6409 = vmatmul.bf16.vlgmr.msrb.gmra.mxu2 %v9470_v9  ;;  %6467 = vmatmul.bf16.vlgmr.msrb.gmra.mxu3 %v9474_v1  ;;  %v11426_v9 = vld [vmem:[#allocation3 + $0xdc] sm:$0xf]  ;;  %v11437_v1 = vld [vmem:[#allocation3 + $0x12c] sm:$0xf0] }
 0x4a5   :  { %v9570_v51 = vor.u32 %v11426_v9, %v9567_v38  ;;  %v9663_v9 = vld [vmem:[#allocation3 + $0x1b8] sm:$0xf0] }
 0x4a7   :  { %v1518_v22 = vpop.permute.xlu1 %1517 }
 0x4a8   :  { %v9591_v22 = vld [vmem:[#allocation3 + $0x130] sm:$0xf0] }
 0x4ac   :  { %6298 = vmatmul.bf16.gmra.mxu0 %v9494_v30  ;;  %6356 = vmatmul.bf16.gmra.mxu1 %v9498_v0  ;;  %v9590_v30 = vor.u32 %v11437_v1, %v9589_v15  ;;  %v9594_v0 = vor.u32 %v11433_v20, %v9591_v22  ;;  %v11450_v22 = vld [vmem:[#allocation3 + $0x19c] sm:$0xf]  ;;  %v11461_v20 = vld [vmem:[#allocation3 + $0x1ec] sm:$0xf0] }
 0x4ad   :  { %v9666_v15 = vor.u32 %v11450_v22, %v9663_v9  ;;  %v9717_v9 = vld [vmem:[#allocation3 + $0x210] sm:$0xf] }
 0x4af   :  { %v1530_v54 = vpop.permute.xlu1 %1529 }
 0x4b4   :  { %6414 = vmatmul.bf16.gmra.mxu2 %v9502_v11  ;;  %6472 = vmatmul.bf16.gmra.mxu3 %v9506_v23  ;;  %v15110_v11 = vpop.f32.mrf.mxu3  ;;  %v9598_v23 = vor.u32 %v11438_v2, %v9597_v63 }
 0x4b8   :  { %v2160_v27 = vpop.permute.xlu1 %2159 }
 0x4b9   :  { %v11445_v27 = vld [vmem:[#allocation3 + $0x16c] sm:$0xf0] }
 0x4bc   :  { %6303 = vmatmul.bf16.gmra.mxu0 %v9526_v60  ;;  %6361 = vmatmul.bf16.gmra.mxu1 %v9530_v8  ;;  %v9621_v8 = vld [vmem:[#allocation3 + $0x150] sm:$0xf] }
 0x4bd   :  { %v9622_v26 = vor.u32 %v11445_v27, %v9621_v8 }
 0x4c0   :  { %v2168_v25 = vpop.permute.xlu1 %2167 }
 0x4c4   :  { %6419 = vmatmul.bf16.gmra.mxu2 %v9534_v6  ;;  %6477 = vmatmul.bf16.gmra.mxu3 %v9538_v35  ;;  %v9631_v35 = vld [vmem:[#allocation3 + $0x178] sm:$0xf0] }
 0x4c8   :  { %v2176_v17 = vpop.permute.xlu1 %2175 }
 0x4c9   :  { %v11442_v17 = vld [vmem:[#allocation3 + $0x15c] sm:$0xf] }
 0x4ca   :  { %v9634_v40 = vor.u32 %v11442_v17, %v9631_v35  ;;  %v10085_v35 = vld [vmem:[#allocation14 + $0xc0] sm:$0xf] }
 0x4cb   :  { %v10069_v17 = vld [vmem:[#allocation14 + $0xa0] sm:$0xf] }
 0x4cc   :  { %6308 = vmatmul.bf16.gmra.mxu0 %v9558_v12  ;;  %6366 = vmatmul.bf16.gmra.mxu1 %v9562_v21  ;;  %v9655_v12 = vld [vmem:[#allocation3 + $0x1b0] sm:$0xf0]  ;;  %v9653_v21 = vld [vmem:[#allocation3 + $0x190] sm:$0xf] }
 0x4cd   :  { %v9654_v42 = vor.u32 %v11453_v33, %v9653_v21  ;;  %v9658_v38 = vor.u32 %v11449_v44, %v9655_v12  ;;  %v11469_v33 = vld [vmem:[#allocation3 + $0x22c] sm:$0xf0]  ;;  %v9719_v12 = vld [vmem:[#allocation3 + $0x230] sm:$0xf0] }
 0x4ce   :  { %v9718_v22 = vor.u32 %v11469_v33, %v9717_v9  ;;  %v10213_v33 = vld [vmem:[#allocation14 + $0x1c0] sm:$0xf] }
 0x4d1   :  { %v2672_v5 = vpop.permute.xlu1 %2671 }
 0x4d2   :  { %v11454_v5 = vld [vmem:[#allocation3 + $0x1b4] sm:$0xf0] }
 0x4d4   :  { %6424 = vmatmul.bf16.gmra.mxu2 %v9566_v49  ;;  %6482 = vmatmul.bf16.gmra.mxu3 %v9570_v51  ;;  %v9661_v51 = vld [vmem:[#allocation3 + $0x198] sm:$0xf] }
 0x4d5   :  { %v9662_v1 = vor.u32 %v11454_v5, %v9661_v51  ;;  %v11465_v51 = vld [vmem:[#allocation3 + $0x214] sm:$0xf] }
 0x4da   :  { %v6102_v48 = vpop.f32.mrf.mxu0  ;;  %v6160_v50 = vpop.f32.mrf.mxu1 }
 0x4db   :  { %v6161_v54 = vadd.f32 %v6160_v50, %v6102_v48  ;;  %v9687_v48 = vld [vmem:[#allocation3 + $0x1f0] sm:$0xf0] }
 0x4dc   :  { %6313 = vmatmul.bf16.gmra.mxu0 %v9590_v30  ;;  %6371 = vmatmul.bf16.gmra.mxu1 %v9594_v0  ;;  %v9685_v0 = vld [vmem:[#allocation3 + $0x1d0] sm:$0xf] }
 0x4dd   :  { %v9686_v58 = vor.u32 %v11461_v20, %v9685_v0  ;;  %v10037_v0 = vld [vmem:[#allocation14 + $0x60] sm:$0xf] }
 0x4e2   :  { %v15114_v36 = vpop.f32.mrf.mxu0  ;;  %v15116_v49 = vpop.f32.mrf.mxu1 }
 0x4e4   :  { %6429 = vmatmul.bf16.gmra.mxu2 %v9598_v23  ;;  %6487 = vmatmul.bf16.gmra.mxu3 %v9602_v3  ;;  %v10101_v23 = vld [vmem:[#allocation14 + $0xe0] sm:$0xf] }
 0x4e5   :  { %v10102_v3 = vor.u32 %v11565_v16, %v10101_v23 }
 0x4e7   :  { %8360 = vmatpush.bf16.msra.mxu0 %v10102_v3  ;;  %v11470_v3 = vld [vmem:[#allocation3 + $0x234] sm:$0xf0] }
 0x4e8   :  { %v6218_v41 = vpop.f32.mrf.mxu2  ;;  %v6276_v25 = vpop.f32.mrf.mxu3 }
 0x4e9   :  { %v6219_v60 = vadd.f32 %v6218_v41, %v6161_v54  ;;  %v11457_v54 = vld [vmem:[#allocation3 + $0x1d4] sm:$0xf]  ;;  %v11462_v41 = vld [vmem:[#allocation3 + $0x1f4] sm:$0xf0] }
 0x4ea   :  { %v9690_v63 = vor.u32 %v11457_v54, %v9687_v48  ;;  %v10053_v48 = vld [vmem:[#allocation14 + $0x80] sm:$0xf]  ;;  %v11549_v54 = vld [vmem:[#allocation14 + $0x6c] sm:$0xf0] }
 0x4eb   :  { %v15112_v6 = vadd.f32 %v6276_v25, %v6219_v60  ;;  %v9693_v25 = vld [vmem:[#allocation3 + $0x1d8] sm:$0xf] }
 0x4ec   :  { %6318 = vmatmul.bf16.gmra.mxu0 %v9622_v26  ;;  %6376 = vmatmul.bf16.gmra.mxu1 %v9626_v10  ;;  %v9694_v26 = vor.u32 %v11462_v41, %v9693_v25  ;;  %v11458_v10 = vld [vmem:[#allocation3 + $0x1dc] sm:$0xf]  ;;  %v9725_v25 = vld [vmem:[#allocation3 + $0x218] sm:$0xf] }
 0x4ed   :  { %v9698_v29 = vor.u32 %v11458_v10, %v9695_v7 }
 0x4f0   :  { %v15118_v27 = vpop.f32.mrf.mxu2  ;;  %v15120_v28 = vpop.f32.mrf.mxu3 }
 0x4f4   :  { %6434 = vmatmul.bf16.gmra.mxu2 %v9630_v59  ;;  %6492 = vmatmul.bf16.gmra.mxu3 %v9634_v40  ;;  %v10086_v59 = vor.u32 %v11561_v24, %v10085_v35  ;;  %v11557_v40 = vld [vmem:[#allocation14 + $0xac] sm:$0xf0]  ;;  %v11466_v35 = vld [vmem:[#allocation3 + $0x21c] sm:$0xf] }
 0x4f5   :  { %v10070_v21 = vor.u32 %v11557_v40, %v10069_v17  ;;  %v5151_v24 = vld [vmem:[#allocation3 + $0x250] sm:$0xff]  ;;  %v10021_v17 = vld [vmem:[#allocation14 + $0x40] sm:$0xf] }
 0x4f6   :  { %8361 = vmatpush.bf16.msra.mxu0 %v10086_v59  ;;  %v11545_v40 = vld [vmem:[#allocation14 + $0x4c] sm:$0xf0]  ;;  %v5505_v9 = vunpack.c.l.b16 %v5151_v24 }
 0x4fa   :  { %8362 = vmatpush.bf16.msra.mxu0 %v10070_v21  ;;  %v10022_v21 = vor.u32 %v11545_v40, %v10021_v17 }
 0x4fc   :  { %6323 = vmatmul.bf16.gmra.mxu0 %v9654_v42  ;;  %6381 = vmatmul.bf16.gmra.mxu1 %v9658_v38 }
 0x504   :  { %6439 = vmatmul.bf16.gmra.mxu2 %v9662_v1  ;;  %6497 = vmatmul.bf16.gmra.mxu3 %v9666_v15  ;;  %v9722_v15 = vor.u32 %v11465_v51, %v9719_v12 }
 0x509   :  { %v6107_v50 = vpop.f32.mrf.mxu0  ;;  %v6165_v30 = vpop.f32.mrf.mxu1 }
 0x50a   :  { %v6166_v2 = vadd.f32 %v6165_v30, %v6107_v50  ;;  %v11553_v50 = vld [vmem:[#allocation14 + $0x8c] sm:$0xf0] }
 0x50b   :  { %v10054_v30 = vor.u32 %v11553_v50, %v10053_v48 }
 0x50c   :  { %6328 = vmatmul.bf16.gmra.mxu0 %v9686_v58  ;;  %6386 = vmatmul.bf16.gmra.mxu1 %v9690_v63  ;;  %v10229_v58 = vld [vmem:[#allocation14 + $0x1e0] sm:$0xf]  ;;  %v11597_v63 = vld [vmem:[#allocation14 + $0x1ec] sm:$0xf0] }
 0x50d   :  { %8363 = vmatpush.bf16.msra.mxu0 %v10054_v30  ;;  %v10230_v23 = vor.u32 %v11597_v63, %v10229_v58  ;;  %v5585_v58 = vpack.c.b16 %v5505_v9, %v5505_v9 }
 0x50f   :  { %8373 = vmatpush.bf16.msra.mxu1 %v10230_v23 }
 0x511   :  { %v6109_v60 = vpop.f32.mrf.mxu0  ;;  %v6167_v8 = vpop.f32.mrf.mxu1 }
 0x512   :  { %v9727_v8 = vld [vmem:[#allocation3 + $0x238] sm:$0xf0] }
 0x513   :  { %v9730_v59 = vor.u32 %v11466_v35, %v9727_v8 }
 0x514   :  { %6444 = vmatmul.bf16.gmra.mxu2 %v9694_v26  ;;  %6502 = vmatmul.bf16.gmra.mxu3 %v9698_v29  ;;  %v6123_v26 = vadd.f32 %v13897_v62, %v13895_v57  ;;  %v9726_v29 = vor.u32 %v11470_v3, %v9725_v25  ;;  %v5506_v57 = vunpack.c.h.b16 %v5151_v24  ;;  %v11537_v3 = vld [vmem:[#allocation14 + $0xc] sm:$0xf0] }
 0x516   :  { %v6181_v12 = vadd.f32 %v13930_v52, %v6123_v26  ;;  %v5586_v63 = vpack.c.b16 %v5506_v57, %v5506_v57  ;;  %v10165_v26 = vld [vmem:[#allocation14 + $0x160] sm:$0xf] }
 0x517   :  { %v6223_v44 = vpop.f32.mrf.mxu2  ;;  %v6281_v38 = vpop.f32.mrf.mxu3 }
 0x518   :  { %v6224_v42 = vadd.f32 %v6223_v44, %v6166_v2  ;;  %v10038_v2 = vor.u32 %v11549_v54, %v10037_v0  ;;  %v11593_v44 = vld [vmem:[#allocation14 + $0x1cc] sm:$0xf0]  ;;  %v6239_v48 = vadd.f32 %v13933_v46, %v6181_v12 }
 0x519   :  { %v6294_v5 = vpop.f32.mrf.mxu0  ;;  %v6352_v1 = vpop.f32.mrf.mxu1  ;;  %v10214_v62 = vor.u32 %v11593_v44, %v10213_v33  ;;  %v11585_v46 = vld [vmem:[#allocation14 + $0x18c] sm:$0xf0] }
 0x51a   :  { %v15122_v20 = vadd.f32 %v6281_v38, %v6224_v42  ;;  %v6295_v10 = vadd.f32 %v6294_v5, %v13755_v37  ;;  %8364 = vmatpush.bf16.msra.mxu0 %v10038_v2  ;;  %v10005_v42 = vld [vmem:[#allocation14 + $0x20] sm:$0xf]  ;;  %v11541_v38 = vld [vmem:[#allocation14 + $0x2c] sm:$0xf0] }
 0x51b   :  { %v10197_v37 = vld [vmem:[#allocation14 + $0x1a0] sm:$0xf]  ;;  %v11589_v5 = vld [vmem:[#allocation14 + $0x1ac] sm:$0xf0]  ;;  %8374 = vmatpush.bf16.msra.mxu1 %v10214_v62 }
 0x51c   :  { %6333 = vmatmul.bf16.gmra.mxu0 %v9718_v22  ;;  %6391 = vmatmul.bf16.gmra.mxu1 %v9722_v15  ;;  %v6353_v51 = vadd.f32 %v6352_v1, %v6295_v10  ;;  %v10006_v22 = vor.u32 %v11541_v38, %v10005_v42  ;;  %v10198_v0 = vor.u32 %v11589_v5, %v10197_v37  ;;  %v9989_v1 = vld [vmem:[#allocation14] sm:$0xf]  ;;  %v11581_v10 = vld [vmem:[#allocation14 + $0x16c] sm:$0xf0] }
 0x51d   :  { %v9990_v8 = vor.u32 %v11537_v3, %v9989_v1  ;;  %v10166_v44 = vor.u32 %v11581_v10, %v10165_v26  ;;  %v6128_v38 = vadd.f32 %v14096_v56, %v14094_v53  ;;  %v10149_v37 = vld [vmem:[#allocation14 + $0x140] sm:$0xf]  ;;  %v11577_v5 = vld [vmem:[#allocation14 + $0x14c] sm:$0xf0] }
 0x51e   :  { %8365 = vmatpush.bf16.msra.mxu0 %v10022_v21  ;;  %v10325_v53 = vld [vmem:[#allocation14 + $0x2a0] sm:$0xf]  ;;  %v11617_v26 = vld [vmem:[#allocation14 + $0x28c] sm:$0xf0] }
 0x51f   :  { %v6225_v16 = vpop.f32.mrf.mxu2  ;;  %v6283_v41 = vpop.f32.mrf.mxu3  ;;  %8375 = vmatpush.bf16.msra.mxu1 %v10198_v0  ;;  %v11573_v0 = vld [vmem:[#allocation14 + $0x12c] sm:$0xf0] }
 0x520   :  { %v5152_v16 = vld [vmem:[#allocation3 + $0x258] sm:$0xff]  ;;  %v10181_v41 = vld [vmem:[#allocation14 + $0x180] sm:$0xf] }
 0x521   :  { %v6296_v60 = vpop.f32.mrf.mxu0  ;;  %v6354_v7 = vpop.f32.mrf.mxu1  ;;  %v10182_v25 = vor.u32 %v11585_v46, %v10181_v41  ;;  %v5507_v24 = vunpack.c.l.b16 %v5152_v16  ;;  %v5508_v17 = vunpack.c.h.b16 %v5152_v16  ;;  %v11569_v46 = vld [vmem:[#allocation14 + $0x10c] sm:$0xf0] }
 0x522   :  { %v6297_v2 = vadd.f32 %v6296_v60, %v6239_v48  ;;  %8366 = vmatpush.bf16.msra.mxu0 %v10006_v22  ;;  %v11629_v60 = vld [vmem:[#allocation14 + $0x2ec] sm:$0xf0]  ;;  %v10150_v22 = vor.u32 %v11577_v5, %v10149_v37  ;;  %v15137_v37 = vld [vmem:[#allocation12] ss:$0 sm:$0xff] }
 0x523   :  { %8376 = vmatpush.bf16.msra.mxu1 %v10182_v25  ;;  %v5588_v62 = vpack.c.b16 %v5508_v17, %v5508_v17  ;;  %v11625_v48 = vld [vmem:[#allocation14 + $0x2cc] sm:$0xf0]  ;;  %v10309_v25 = vld [vmem:[#allocation14 + $0x280] sm:$0xf] }
 0x524   :  { %6449 = vmatmul.bf16.gmra.mxu2 %v9726_v29  ;;  %6507 = vmatmul.bf16.gmra.mxu3 %v9730_v59  ;;  %v10357_v29 = vld [vmem:[#allocation14 + $0x2e0] sm:$0xf]  ;;  %v6355_v35 = vadd.f32 %v6354_v7, %v6297_v2  ;;  %v5587_v7 = vpack.c.b16 %v5507_v24, %v5507_v24  ;;  %v10310_v10 = vor.u32 %v11617_v26, %v10309_v25 }
 0x525   :  { %v10358_v40 = vor.u32 %v11629_v60, %v10357_v29  ;;  %v10485_v29 = vld [vmem:[#allocation14 + $0x3e0] sm:$0xf] }
 0x526   :  { %8367 = vmatpush.bf16.msra.mxu0 %v9990_v8  ;;  %v10117_v8 = vld [vmem:[#allocation14 + $0x100] sm:$0xf] }
 0x527   :  { %v6410_v15 = vpop.f32.mrf.mxu2  ;;  %v6468_v52 = vpop.f32.mrf.mxu3  ;;  %8386 = vmatpush.bf16.msra.mxu2 %v10358_v40  ;;  %8377 = vmatpush.bf16.msra.mxu1 %v10166_v44 }
 0x528   :  { %v6411_v50 = vadd.f32 %v6410_v15, %v6353_v51  ;;  %v6186_v51 = vadd.f32 %v14118_v61, %v6128_v38  ;;  %v10341_v15 = vld [vmem:[#allocation14 + $0x2c0] sm:$0xf] }
 0x529   :  { %v6299_v30 = vpop.f32.mrf.mxu0  ;;  %v6357_v54 = vpop.f32.mrf.mxu1 }
 0x52a   :  { %v6469_v23 = vadd.f32 %v6468_v52, %v6411_v50  ;;  %v6300_v9 = vadd.f32 %v6299_v30, %v13954_v39  ;;  %v10342_v50 = vor.u32 %v11625_v48, %v10341_v15  ;;  %v10133_v52 = vld [vmem:[#allocation14 + $0x120] sm:$0xf]  ;;  %v11621_v39 = vld [vmem:[#allocation14 + $0x2ac] sm:$0xf0]  ;;  %v15543_v15 = vld [vmem:[#allocation29_spill] sm:$0xff] }
 0x52b   :  { %8378 = vmatpush.bf16.msra.mxu1 %v10150_v22  ;;  %v10134_v16 = vor.u32 %v11573_v0, %v10133_v52  ;;  %v11609_v22 = vld [vmem:[#allocation14 + $0x24c] sm:$0xf0]  ;;  %v10469_v0 = vld [vmem:[#allocation14 + $0x3c0] sm:$0xf] }
 0x52c   :  { %6338 = vmatmul.bf16.gmra.mxu0 %v5585_v58  ;;  %6396 = vmatmul.bf16.gmra.mxu1 %v5586_v63  ;;  %6517 = vst [vmem:[#allocation4] sm:$0xff] %v6469_v23  ;;  %v6358_v56 = vadd.f32 %v6357_v54, %v6300_v9  ;;  %v10326_v58 = vor.u32 %v11621_v39, %v10325_v53  ;;  %v11657_v53 = vld [vmem:[#allocation14 + $0x3cc] sm:$0xf0] }
 0x52d   :  { %8387 = vmatpush.bf16.msra.mxu2 %v10342_v50  ;;  %v6244_v63 = vadd.f32 %v14135_v4, %v6186_v51  ;;  %v10118_v54 = vor.u32 %v11569_v46, %v10117_v8  ;;  %v10293_v4 = vld [vmem:[#allocation14 + $0x260] sm:$0xf] }
 0x52e   :  { %v10277_v51 = vld [vmem:[#allocation14 + $0x240] sm:$0xf] }
 0x52f   :  { %v6412_v59 = vpop.f32.mrf.mxu2  ;;  %v6470_v12 = vpop.f32.mrf.mxu3  ;;  %8379 = vmatpush.bf16.msra.mxu1 %v10134_v16  ;;  %v10278_v52 = vor.u32 %v11609_v22, %v10277_v51  ;;  %v11645_v51 = vld [vmem:[#allocation14 + $0x36c] sm:$0xf0]  ;;  %v10613_v22 = vld [vmem:[#allocation14 + $0x4e0] sm:$0xf] }
 0x530   :  { %v6413_v33 = vadd.f32 %v6412_v59, %v6355_v35  ;;  %v11661_v35 = vld [vmem:[#allocation14 + $0x3ec] sm:$0xf0] }
 0x531   :  { %v6301_v21 = vpop.f32.mrf.mxu0  ;;  %v6359_v42 = vpop.f32.mrf.mxu1  ;;  %8388 = vmatpush.bf16.msra.mxu2 %v10326_v58  ;;  %v10486_v60 = vor.u32 %v11661_v35, %v10485_v29  ;;  %v11613_v59 = vld [vmem:[#allocation14 + $0x26c] sm:$0xf0] }
 0x532   :  { %v6471_v57 = vadd.f32 %v6470_v12, %v6413_v33  ;;  %v6302_v3 = vadd.f32 %v6301_v21, %v6244_v63  ;;  %v10294_v33 = vor.u32 %v11613_v59, %v10293_v4  ;;  %v11605_v63 = vld [vmem:[#allocation14 + $0x22c] sm:$0xf0] }
 0x533   :  { %8380 = vmatpush.bf16.msra.mxu1 %v10118_v54  ;;  %8399 = vmatpush.bf16.msra.mxu3 %v10486_v60  ;;  %v6537_v9 = vld [vmem:[#allocation4] sm:$0xf]  ;;  %v11721_v29 = vld [vmem:[#allocation14 + $0x5cc] sm:$0xf0] }
 0x534   :  { %6518 = vst [vmem:[#allocation4 + $0x38] sm:$0xff] %v6471_v57  ;;  %6454 = vmatmul.bf16.gmra.mxu2 %v5587_v7  ;;  %6512 = vmatmul.bf16.gmra.mxu3 %v5588_v62  ;;  %v6360_v24 = vadd.f32 %v6359_v42, %v6302_v3  ;;  %v6133_v57 = vadd.f32 %v14303_v14, %v14301_v31  ;;  %v10741_v14 = vld [vmem:[#allocation14 + $0x5e0] sm:$0xf] }
 0x535   :  { %8389 = vmatpush.bf16.msra.mxu2 %v10310_v10  ;;  %v10470_v31 = vor.u32 %v11657_v53, %v10469_v0 }
 0x536   :  { %v6191_v48 = vadd.f32 %v15543_v15, %v6133_v57  ;;  %v10709_v57 = vld [vmem:[#allocation14 + $0x5a0] sm:$0xf]  ;;  %v11693_v15 = vld [vmem:[#allocation14 + $0x4ec] sm:$0xf0] }
 0x537   :  { %v6415_v30 = vpop.f32.mrf.mxu2  ;;  %v6473_v61 = vpop.f32.mrf.mxu3  ;;  %8400 = vmatpush.bf16.msra.mxu3 %v10470_v31  ;;  %v10614_v0 = vor.u32 %v11693_v15, %v10613_v22 }
 0x538   :  { %v6416_v2 = vadd.f32 %v6415_v30, %v6358_v56  ;;  %v10261_v56 = vld [vmem:[#allocation14 + $0x220] sm:$0xf] }
 0x539   :  { %v6304_v23 = vpop.f32.mrf.mxu0  ;;  %v6362_v1 = vpop.f32.mrf.mxu1  ;;  %8390 = vmatpush.bf16.msra.mxu2 %v10294_v33  ;;  %v10262_v16 = vor.u32 %v11605_v63, %v10261_v56  ;;  %v11713_v56 = vld [vmem:[#allocation14 + $0x58c] sm:$0xf0]  ;;  %8412 = vmatpush.bf16.msrb.mxu0 %v10614_v0 }
 0x53a   :  { %v6474_v41 = vadd.f32 %v6473_v61, %v6416_v2  ;;  %v6305_v7 = vadd.f32 %v6304_v23, %v14148_v47  ;;  %v11725_v47 = vld [vmem:[#allocation14 + $0x5ec] sm:$0xf0]  ;;  %v10453_v2 = vld [vmem:[#allocation14 + $0x3a0] sm:$0xf] }
 0x53b   :  { %v6538_v40 = vld [vmem:[#allocation4 + $0x38] sm:$0xf]  ;;  %v10742_v58 = vor.u32 %v11725_v47, %v10741_v14  ;;  %v10693_v47 = vld [vmem:[#allocation14 + $0x580] sm:$0xf] }
 0x53c   :  { %6519 = vst [vmem:[#allocation4 + $0x50] sm:$0xff] %v6474_v41  ;;  %v6556_v42 = vmax.f32 %v6537_v9, %v6538_v40  ;;  %v6363_v39 = vadd.f32 %v6362_v1, %v6305_v7  ;;  %v11653_v61 = vld [vmem:[#allocation14 + $0x3ac] sm:$0xf0]  ;;  %v15544_v41 = vld [vmem:[#allocation25_spill] sm:$0xff]  ;;  %v10725_v1 = vld [vmem:[#allocation14 + $0x5c0] sm:$0xf]  ;;  %v10694_v63 = vor.u32 %v11713_v56, %v10693_v47 }
 0x53d   :  { %8391 = vmatpush.bf16.msra.mxu2 %v10278_v52  ;;  %v10454_v3 = vor.u32 %v11653_v61, %v10453_v2  ;;  %v6249_v8 = vadd.f32 %v15544_v41, %v6191_v48  ;;  %8425 = vmatpush.bf16.msrb.mxu1 %v10742_v58  ;;  %v10726_v60 = vor.u32 %v11721_v29, %v10725_v1  ;;  %v11601_v40 = vld [vmem:[#allocation14 + $0x20c] sm:$0xf0]  ;;  %v15547_v2 = vld [vmem:[#allocation32_spill] sm:$0xff] }
 0x53e   :  { %v11717_v7 = vld [vmem:[#allocation14 + $0x5ac] sm:$0xf0]  ;;  %v10597_v29 = vld [vmem:[#allocation14 + $0x4c0] sm:$0xf] }
 0x53f   :  { %v6417_v17 = vpop.f32.mrf.mxu2  ;;  %v6475_v21 = vpop.f32.mrf.mxu3  ;;  %8401 = vmatpush.bf16.msra.mxu3 %v10454_v3  ;;  %v15548_v3 = vld [vmem:[#allocation35_spill] sm:$0xff]  ;;  %v10853_v47 = vld [vmem:[#allocation14 + $0x6c0] sm:$0xf]  ;;  %v11753_v56 = vld [vmem:[#allocation14 + $0x6cc] sm:$0xf0] }
 0x540   :  { %v6418_v12 = vadd.f32 %v6417_v17, %v6360_v24  ;;  %v10245_v17 = vld [vmem:[#allocation14 + $0x200] sm:$0xf] }
 0x541   :  { %v6306_v44 = vpop.f32.mrf.mxu0  ;;  %v6364_v38 = vpop.f32.mrf.mxu1  ;;  %8392 = vmatpush.bf16.msra.mxu2 %v10262_v16  ;;  %8426 = vmatpush.bf16.msrb.mxu1 %v10726_v60  ;;  %v10246_v33 = vor.u32 %v11601_v40, %v10245_v17  ;;  %v10869_v60 = vld [vmem:[#allocation14 + $0x6e0] sm:$0xf] }
 0x542   :  { %v6476_v62 = vadd.f32 %v6475_v21, %v6418_v12  ;;  %v6307_v35 = vadd.f32 %v6306_v44, %v6249_v8  ;;  %v10437_v12 = vld [vmem:[#allocation14 + $0x380] sm:$0xf]  ;;  %v11649_v21 = vld [vmem:[#allocation14 + $0x38c] sm:$0xf0] }
 0x543   :  { %v15139_v5 = vld [vmem:[#allocation4 + $0x50] sm:$0xf]  ;;  %v10438_v9 = vor.u32 %v11649_v21, %v10437_v12  ;;  %v10421_v44 = vld [vmem:[#allocation14 + $0x360] sm:$0xf]  ;;  %v11637_v21 = vld [vmem:[#allocation14 + $0x32c] sm:$0xf0] }
 0x544   :  { %6520 = vst [vmem:[#allocation4 + $0x18] sm:$0xff] %v6476_v62  ;;  %v6557_v50 = vmax.f32 %v6556_v42, %v15139_v5  ;;  %v6365_v62 = vadd.f32 %v6364_v38, %v6307_v35  ;;  %v10710_v42 = vor.u32 %v11717_v7, %v10709_v57  ;;  %v10422_v52 = vor.u32 %v11645_v51, %v10421_v44  ;;  %v11689_v35 = vld [vmem:[#allocation14 + $0x4cc] sm:$0xf0]  ;;  %v10389_v12 = vld [vmem:[#allocation14 + $0x320] sm:$0xf] }
 0x545   :  { %8393 = vmatpush.bf16.msra.mxu2 %v10246_v33  ;;  %8402 = vmatpush.bf16.msra.mxu3 %v10438_v9  ;;  %v11757_v33 = vld [vmem:[#allocation14 + $0x6ec] sm:$0xf0] }
 0x546   :  { %v6561_v30 = vadd.f32 %v15137_v37, %v6557_v50  ;;  %8427 = vmatpush.bf16.msrb.mxu1 %v10710_v42  ;;  %v15549_v9 = vld [vmem:[#allocation34_spill] sm:$0xff]  ;;  %v10870_v44 = vor.u32 %v11757_v33, %v10869_v60  ;;  %v10581_v42 = vld [vmem:[#allocation14 + $0x4a0] sm:$0xf] }
 0x547   :  { %v6420_v23 = vpop.f32.mrf.mxu2  ;;  %v6478_v54 = vpop.f32.mrf.mxu3  ;;  %v11685_v51 = vld [vmem:[#allocation14 + $0x4ac] sm:$0xf0] }
 0x548   :  { %v6421_v46 = vadd.f32 %v6420_v23, %v6363_v39  ;;  %vm6562_vm12 = vcmp.gt.f32.partialorder %v6561_v30, 0.0  ;;  %v6563_v26 = vmul.f32 0.01, %v6561_v30  ;;  %v15545_v39 = vld [vmem:[#allocation31_spill] sm:$0xff] }
 0x549   :  { %v6309_v25 = vpop.f32.mrf.mxu0  ;;  %v6367_v10 = vpop.f32.mrf.mxu1  ;;  %8403 = vmatpush.bf16.msra.mxu3 %v10422_v52  ;;  %v10661_v52 = vld [vmem:[#allocation14 + $0x540] sm:$0xf]  ;;  %8438 = vmatpush.bf16.msrb.mxu2 %v10870_v44  ;;  %v15551_v44 = vld [vmem:[#allocation37_spill] sm:$0xff] }
 0x54a   :  { %v6479_v4 = vadd.f32 %v6478_v54, %v6421_v46  ;;  %v6564_v24 = vsel %vm6562_vm12, %v6561_v30, %v6563_v26  ;;  %v15546_v30 = vld [vmem:[#allocation26_spill] sm:$0xff]  ;;  %v6310_v61 = vadd.f32 %v6309_v25, %v15547_v2  ;;  %v10405_v46 = vld [vmem:[#allocation14 + $0x340] sm:$0xf]  ;;  %8428 = vmatpush.bf16.msrb.mxu1 %v10694_v63  ;;  %v10854_v63 = vor.u32 %v11753_v56, %v10853_v47 }
 0x54b   :  { %v15145_v59 = vpack.c.bf16 %v6564_v24, %v6564_v24  ;;  %v6540_v50 = vld [vmem:[#allocation4 + $0x18] sm:$0xf]  ;;  %v6138_v58 = vadd.f32 %v15546_v30, %v15545_v39  ;;  %v10677_v24 = vld [vmem:[#allocation14 + $0x560] sm:$0xf]  ;;  %vm9345_vm12 = vcmask 31744  }
 0x54c   :  { %6521 = vst [vmem:[#allocation4 + $0x30] sm:$0xff] %v6479_v4  ;;  %v6566_v16 = vmax.f32 %v15139_v5, %v6540_v50  ;;  %v11641_v54 = vld [vmem:[#allocation14 + $0x34c] sm:$0xf0]  ;;  %v10598_v4 = vor.u32 %v11689_v35, %v10597_v29  ;;  %v6368_v17 = vadd.f32 %v6367_v10, %v6310_v61  ;;  %v10582_v50 = vor.u32 %v11685_v51, %v10581_v42  ;;  %v10373_v61 = vld [vmem:[#allocation14 + $0x300] sm:$0xf] }
 0x54d   :  { %8368 = vmatmul.bf16.vlgmr.msra.gmra.mxu0 %v15145_v59  ;;  %v6196_v41 = vadd.f32 %v15548_v3, %v6138_v58  ;;  %v10406_v1 = vor.u32 %v11641_v54, %v10405_v46  ;;  %v11709_v25 = vld [vmem:[#allocation14 + $0x56c] sm:$0xf0]  ;;  %8439 = vmatpush.bf16.msrb.mxu2 %v10854_v63  ;;  %v10645_v46 = vld [vmem:[#allocation14 + $0x520] sm:$0xf] }
 0x54e   :  { %v10678_v40 = vor.u32 %v11709_v25, %v10677_v24  ;;  %8413 = vmatpush.bf16.msrb.mxu0 %v10598_v4  ;;  %v11681_v3 = vld [vmem:[#allocation14 + $0x48c] sm:$0xf0]  ;;  %v10549_v4 = vld [vmem:[#allocation14 + $0x460] sm:$0xf] }
 0x54f   :  { %v6422_v48 = vpop.f32.mrf.mxu2  ;;  %v6480_v31 = vpop.f32.mrf.mxu3  ;;  %v6254_v57 = vadd.f32 %v15549_v9, %v6196_v41  ;;  %8404 = vmatpush.bf16.msra.mxu3 %v10406_v1  ;;  %v11701_v54 = vld [vmem:[#allocation14 + $0x52c] sm:$0xf0]  ;;  %v15553_v56 = vld [vmem:[#allocation28_spill] sm:$0xff] }
 0x550   :  { %v6423_v53 = vadd.f32 %v6422_v48, %v6365_v62  ;;  %v10390_v62 = vor.u32 %v11637_v21, %v10389_v12  ;;  %8429 = vmatpush.bf16.msrb.mxu1 %v10678_v40  ;;  %v10646_v29 = vor.u32 %v11701_v54, %v10645_v46  ;;  %v11749_v35 = vld [vmem:[#allocation14 + $0x6ac] sm:$0xf0]  ;;  %v10629_v21 = vld [vmem:[#allocation14 + $0x500] sm:$0xf] }
 0x551   :  { %v6311_v14 = vpop.f32.mrf.mxu0  ;;  %v15150_v38 = vpop.f32.mrf.mxu1  ;;  %v11677_v24 = vld [vmem:[#allocation14 + $0x46c] sm:$0xf0] }
 0x552   :  { %v6481_v23 = vadd.f32 %v6480_v31, %v6423_v53  ;;  %v6312_v0 = vadd.f32 %v6311_v14, %v6254_v57  ;;  %v11705_v31 = vld [vmem:[#allocation14 + $0x54c] sm:$0xf0]  ;;  %8414 = vmatpush.bf16.msrb.mxu0 %v10582_v50  ;;  %v10565_v14 = vld [vmem:[#allocation14 + $0x480] sm:$0xf]  ;;  %v10103_v50 = vld [vmem:[#allocation14 + $0xf0] sm:$0xf0] }
 0x553   :  { %v15155_v8 = vld [vmem:[#allocation4 + $0x30] sm:$0xf]  ;;  %v10662_v58 = vor.u32 %v11705_v31, %v10661_v52  ;;  %8405 = vmatpush.bf16.msra.mxu3 %v10390_v62  ;;  %v10566_v41 = vor.u32 %v11681_v3, %v10565_v14  ;;  %v11697_v9 = vld [vmem:[#allocation14 + $0x50c] sm:$0xf0]  ;;  %v10821_v57 = vld [vmem:[#allocation14 + $0x680] sm:$0xf] }
 0x554   :  { %6522 = vst [vmem:[#allocation4 + $0x68] sm:$0xff] %v6481_v23  ;;  %v6567_v26 = vmax.f32 %v6566_v16, %v15155_v8  ;;  %v11633_v23 = vld [vmem:[#allocation14 + $0x30c] sm:$0xf0]  ;;  %v6370_v1 = vadd.f32 %v15150_v38, %v6312_v0  ;;  %v15552_v62 = vld [vmem:[#allocation27_spill] sm:$0xff] }
 0x555   :  { %8430 = vmatpush.bf16.msrb.mxu1 %v10662_v58  ;;  %v10374_v16 = vor.u32 %v11633_v23, %v10373_v61  ;;  %v10533_v58 = vld [vmem:[#allocation14 + $0x440] sm:$0xf]  ;;  %v11673_v63 = vld [vmem:[#allocation14 + $0x44c] sm:$0xf0] }
 0x556   :  { %v6568_v5 = vadd.f32 %v15137_v37, %v6567_v26  ;;  %v10837_v26 = vld [vmem:[#allocation14 + $0x6a0] sm:$0xf]  ;;  %8415 = vmatpush.bf16.msrb.mxu0 %v10566_v41  ;;  %v10534_v61 = vor.u32 %v11673_v63, %v10533_v58  ;;  %v11789_v3 = vld [vmem:[#allocation14 + $0x7ec] sm:$0xf0]  ;;  %v11559_v41 = vld [vmem:[#allocation14 + $0xc4] sm:$0xf] }
 0x557   :  { %v6425_v7 = vpop.f32.mrf.mxu2  ;;  %v6483_v15 = vpop.f32.mrf.mxu3  ;;  %8406 = vmatpush.bf16.msra.mxu3 %v10374_v16  ;;  %v10805_v23 = vld [vmem:[#allocation14 + $0x660] sm:$0xf]  ;;  %v11741_v16 = vld [vmem:[#allocation14 + $0x66c] sm:$0xf0] }
 0x558   :  { %v6426_v22 = vadd.f32 %v6425_v7, %v6368_v17  ;;  %vm6569_vm13 = vcmp.gt.f32.partialorder %v6568_v5, 0.0  ;;  %v6570_v10 = vmul.f32 0.01, %v6568_v5  ;;  %v10838_v17 = vor.u32 %v11749_v35, %v10837_v26  ;;  %v15550_v7 = vld [vmem:[#allocation38_spill] sm:$0xff]  ;;  %v10965_v58 = vld [vmem:[#allocation14 + $0x7a0] sm:$0xf] }
 0x559   :  { %v6314_v48 = vpop.f32.mrf.mxu0  ;;  %v15160_v53 = vpop.f32.mrf.mxu1  ;;  %8431 = vmatpush.bf16.msrb.mxu1 %v10646_v29  ;;  %v6143_v38 = vadd.f32 %v15551_v44, %v15550_v7  ;;  %v10806_v14 = vor.u32 %v11741_v16, %v10805_v23  ;;  %v10517_v29 = vld [vmem:[#allocation14 + $0x420] sm:$0xf]  ;;  %v11669_v35 = vld [vmem:[#allocation14 + $0x42c] sm:$0xf0] }
 0x55a   :  { %v6484_v39 = vadd.f32 %v6483_v15, %v6426_v22  ;;  %v6571_v30 = vsel %vm6569_vm13, %v6568_v5, %v6570_v10  ;;  %v10550_v5 = vor.u32 %v11677_v24, %v10549_v4  ;;  %v6315_v42 = vadd.f32 %v6314_v48, %v15552_v62  ;;  %8440 = vmatpush.bf16.msrb.mxu2 %v10838_v17  ;;  %v11745_v15 = vld [vmem:[#allocation14 + $0x68c] sm:$0xf0]  ;;  %v11563_v10 = vld [vmem:[#allocation14 + $0xe4] sm:$0xf]  ;;  %v10981_v44 = vld [vmem:[#allocation14 + $0x7c0] sm:$0xf] }
 0x55b   :  { %v15162_v2 = vpack.c.bf16 %v6571_v30, %v6571_v30  ;;  %v6542_v60 = vld [vmem:[#allocation4 + $0x68] sm:$0xf]  ;;  %v10630_v22 = vor.u32 %v11697_v9, %v10629_v21  ;;  %v10822_v31 = vor.u32 %v11745_v15, %v10821_v57  ;;  %v10106_v47 = vor.u32 %v11563_v10, %v10103_v50  ;;  %v15554_v4 = vld [vmem:[#allocation41_spill] sm:$0xff]  ;;  %v11737_v7 = vld [vmem:[#allocation14 + $0x64c] sm:$0xf0] }
 0x55c   :  { %6523 = vst [vmem:[#allocation4 + $0x78] sm:$0xff] %v6484_v39  ;;  %v6573_v0 = vmax.f32 %v15155_v8, %v6542_v60  ;;  %v6201_v39 = vadd.f32 %v15553_v56, %v6143_v38  ;;  %8416 = vmatpush.bf16.msrb.mxu0 %v10550_v5  ;;  %v10997_v8 = vld [vmem:[#allocation14 + $0x7e0] sm:$0xf]  ;;  %v6373_v46 = vadd.f32 %v15160_v53, %v6315_v42  ;;  %v11785_v38 = vld [vmem:[#allocation14 + $0x7cc] sm:$0xf0] }
 0x55d   :  { %8381 = vmatmul.bf16.vlgmr.msra.gmra.mxu1 %v15162_v2  ;;  %v10998_v26 = vor.u32 %v11789_v3, %v10997_v8  ;;  %v10518_v17 = vor.u32 %v11669_v35, %v10517_v29  ;;  %v10789_v9 = vld [vmem:[#allocation14 + $0x640] sm:$0xf]  ;;  %v10982_v15 = vor.u32 %v11785_v38, %v10981_v44  ;;  %v11555_v10 = vld [vmem:[#allocation14 + $0xa4] sm:$0xf]  ;;  %v10071_v50 = vld [vmem:[#allocation14 + $0xb0] sm:$0xf0] }
 0x55e   :  { %8432 = vmatpush.bf16.msrb.mxu1 %v10630_v22  ;;  %8441 = vmatpush.bf16.msrb.mxu2 %v10822_v31  ;;  %v6259_v24 = vadd.f32 %v15554_v4, %v6201_v39  ;;  %v10790_v22 = vor.u32 %v11737_v7, %v10789_v9  ;;  %v10501_v31 = vld [vmem:[#allocation14 + $0x400] sm:$0xf]  ;;  %v11733_v39 = vld [vmem:[#allocation14 + $0x62c] sm:$0xf0]  ;;  %v10055_v8 = vld [vmem:[#allocation14 + $0x90] sm:$0xf0] }
 0x55f   :  { %v6427_v25 = vpop.f32.mrf.mxu2  ;;  %v6485_v33 = vpop.f32.mrf.mxu3  ;;  %8451 = vmatpush.bf16.msrb.mxu3 %v10998_v26  ;;  %v10773_v56 = vld [vmem:[#allocation14 + $0x620] sm:$0xf]  ;;  %v11781_v63 = vld [vmem:[#allocation14 + $0x7ac] sm:$0xf0]  ;;  %v10039_v9 = vld [vmem:[#allocation14 + $0x70] sm:$0xf0] }
 0x560   :  { %v6428_v40 = vadd.f32 %v6427_v25, %v6370_v1  ;;  %v10087_v1 = vld [vmem:[#allocation14 + $0xd0] sm:$0xf0]  ;;  %8417 = vmatpush.bf16.msrb.mxu0 %v10534_v61  ;;  %v10774_v16 = vor.u32 %v11733_v39, %v10773_v56  ;;  %v11729_v29 = vld [vmem:[#allocation14 + $0x60c] sm:$0xf0]  ;;  %v10949_v35 = vld [vmem:[#allocation14 + $0x780] sm:$0xf] }
 0x561   :  { %v6316_v12 = vpop.f32.mrf.mxu0  ;;  %v15169_v51 = vpop.f32.mrf.mxu1  ;;  %v10090_v60 = vor.u32 %v11559_v41, %v10087_v1  ;;  %v10757_v1 = vld [vmem:[#allocation14 + $0x600] sm:$0xf]  ;;  %v15555_v4 = vld [vmem:[#allocation30_spill] sm:$0xff]  ;;  %v11543_v56 = vld [vmem:[#allocation14 + $0x44] sm:$0xf] }
 0x562   :  { %v6486_v52 = vadd.f32 %v6485_v33, %v6428_v40  ;;  %8477 = vmatpush.bf16.msra.mxu1 %v10106_v47  ;;  %v6317_v53 = vadd.f32 %v6316_v12, %v6259_v24  ;;  %8442 = vmatpush.bf16.msrb.mxu2 %v10806_v14  ;;  %v11665_v47 = vld [vmem:[#allocation14 + $0x40c] sm:$0xf0]  ;;  %v10966_v14 = vor.u32 %v11781_v63, %v10965_v58  ;;  %v15556_v24 = vld [vmem:[#allocation44_spill] sm:$0xff] }
 0x563   :  { %v15173_v30 = vld [vmem:[#allocation4 + $0x78] sm:$0xf]  ;;  %8452 = vmatpush.bf16.msrb.mxu3 %v10982_v15  ;;  %v10502_v12 = vor.u32 %v11665_v47, %v10501_v31  ;;  %v10758_v7 = vor.u32 %v11729_v29, %v10757_v1  ;;  %v11125_v47 = vld [vmem:[#allocation14 + $0x8e0] sm:$0xf] }
 0x564   :  { %6524 = vst [vmem:[#allocation4 + $0x80] sm:$0xff] %v6486_v52  ;;  %v6574_v48 = vmax.f32 %v6573_v0, %v15173_v30  ;;  %8418 = vmatpush.bf16.msrb.mxu0 %v10518_v17  ;;  %v10074_v0 = vor.u32 %v11555_v10, %v10071_v50  ;;  %v6375_v61 = vadd.f32 %v15169_v51, %v6317_v53 }
 0x566   :  { %v6575_v54 = vadd.f32 %v15137_v37, %v6574_v48  ;;  %8478 = vmatpush.bf16.msra.mxu1 %v10090_v60  ;;  %v11551_v48 = vld [vmem:[#allocation14 + $0x84] sm:$0xf]  ;;  %8443 = vmatpush.bf16.msrb.mxu2 %v10790_v22  ;;  %v15558_v22 = vld [vmem:[#allocation43_spill] sm:$0xff] }
 0x567   :  { %v6430_v25 = vpop.f32.mrf.mxu2  ;;  %v6488_v40 = vpop.f32.mrf.mxu3  ;;  %v10058_v41 = vor.u32 %v11551_v48, %v10055_v8  ;;  %8453 = vmatpush.bf16.msrb.mxu3 %v10966_v14  ;;  %v15557_v60 = vld [vmem:[#allocation40_spill] sm:$0xff]  ;;  %v10023_v48 = vld [vmem:[#allocation14 + $0x50] sm:$0xf0] }
 0x568   :  { %v6431_v5 = vadd.f32 %v6430_v25, %v6373_v46  ;;  %vm6576_vm14 = vcmp.gt.f32.partialorder %v6575_v54, 0.0  ;;  %v6577_v21 = vmul.f32 0.01, %v6575_v54  ;;  %8419 = vmatpush.bf16.msrb.mxu0 %v10502_v12  ;;  %v6148_v25 = vadd.f32 %v15556_v24, %v15555_v4  ;;  %v11821_v12 = vld [vmem:[#allocation14 + $0x8ec] sm:$0xf0] }
 0x569   :  { %v6319_v33 = vpop.f32.mrf.mxu0  ;;  %v15179_v57 = vpop.f32.mrf.mxu1  ;;  %v11126_v63 = vor.u32 %v11821_v12, %v11125_v47  ;;  %v11769_v24 = vld [vmem:[#allocation14 + $0x74c] sm:$0xf0]  ;;  %v9991_v47 = vld [vmem:[#allocation14 + $0x10] sm:$0xf0]  ;;  %v11583_v12 = vld [vmem:[#allocation14 + $0x184] sm:$0xf] }
 0x56a   :  { %v6489_v62 = vadd.f32 %v6488_v40, %v6431_v5  ;;  %v6578_v42 = vsel %vm6576_vm14, %v6575_v54, %v6577_v21  ;;  %8479 = vmatpush.bf16.msra.mxu1 %v10074_v0  ;;  %v6320_v51 = vadd.f32 %v6319_v33, %v15557_v60  ;;  %v11777_v40 = vld [vmem:[#allocation14 + $0x78c] sm:$0xf0]  ;;  %v11547_v21 = vld [vmem:[#allocation14 + $0x64] sm:$0xf]  ;;  %8444 = vmatpush.bf16.msrb.mxu2 %v10774_v16 }
 0x56b   :  { %v15181_v52 = vpack.c.bf16 %v6578_v42, %v6578_v42  ;;  %v6544_v23 = vld [vmem:[#allocation4 + $0x80] sm:$0xf]  ;;  %v10950_v44 = vor.u32 %v11777_v40, %v10949_v35  ;;  %v10042_v38 = vor.u32 %v11547_v21, %v10039_v9  ;;  %v10231_v42 = vld [vmem:[#allocation14 + $0x1f0] sm:$0xf0]  ;;  %v6206_v15 = vadd.f32 %v15558_v22, %v6148_v25  ;;  %v11773_v0 = vld [vmem:[#allocation14 + $0x76c] sm:$0xf0] }
 0x56c   :  { %6525 = vst [vmem:[#allocation4 + $0x8] sm:$0xff] %v6489_v62  ;;  %v6580_v5 = vmax.f32 %v15173_v30, %v6544_v23  ;;  %v11595_v62 = vld [vmem:[#allocation14 + $0x1e4] sm:$0xf]  ;;  %v10933_v30 = vld [vmem:[#allocation14 + $0x760] sm:$0xf]  ;;  %v6378_v39 = vadd.f32 %v15179_v57, %v6320_v51  ;;  %8464 = vmatpush.bf16.msra.mxu0 %v11126_v63 }
 0x56d   :  { %8394 = vmatmul.bf16.vlgmr.msra.gmra.mxu2 %v15181_v52  ;;  %v10234_v33 = vor.u32 %v11595_v62, %v10231_v42  ;;  %8454 = vmatpush.bf16.msrb.mxu3 %v10950_v44  ;;  %v10934_v31 = vor.u32 %v11773_v0, %v10933_v30  ;;  %v10215_v23 = vld [vmem:[#allocation14 + $0x1d0] sm:$0xf0]  ;;  %v15559_v16 = vld [vmem:[#allocation33_spill] sm:$0xff]  ;;  %v10917_v57 = vld [vmem:[#allocation14 + $0x740] sm:$0xf] }
 0x56e   :  { %8480 = vmatpush.bf16.msra.mxu1 %v10058_v41  ;;  %8445 = vmatpush.bf16.msrb.mxu2 %v10758_v7  ;;  %v6264_v14 = vadd.f32 %v15559_v16, %v6206_v15  ;;  %v11109_v25 = vld [vmem:[#allocation14 + $0x8c0] sm:$0xf]  ;;  %v11817_v60 = vld [vmem:[#allocation14 + $0x8cc] sm:$0xf0]  ;;  %v10918_v40 = vor.u32 %v11769_v24, %v10917_v57  ;;  %v11539_v9 = vld [vmem:[#allocation14 + $0x24] sm:$0xf] }
 0x56f   :  { %v6432_v3 = vpop.f32.mrf.mxu2  ;;  %v6490_v54 = vpop.f32.mrf.mxu3  ;;  %v11110_v21 = vor.u32 %v11817_v60, %v11109_v25  ;;  %v11587_v7 = vld [vmem:[#allocation14 + $0x1a4] sm:$0xf]  ;;  %v10199_v62 = vld [vmem:[#allocation14 + $0x1b0] sm:$0xf0]  ;;  %v10901_v42 = vld [vmem:[#allocation14 + $0x720] sm:$0xf] }
 0x570   :  { %v6433_v46 = vadd.f32 %v6432_v3, %v6375_v61  ;;  %v11591_v61 = vld [vmem:[#allocation14 + $0x1c4] sm:$0xf]  ;;  %v10026_v3 = vor.u32 %v11543_v56, %v10023_v48  ;;  %v11765_v22 = vld [vmem:[#allocation14 + $0x72c] sm:$0xf0]  ;;  %v10183_v56 = vld [vmem:[#allocation14 + $0x190] sm:$0xf0] }
 0x571   :  { %v6321_v26 = vpop.f32.mrf.mxu0  ;;  %v15188_v17 = vpop.f32.mrf.mxu1  ;;  %v10218_v41 = vor.u32 %v11591_v61, %v10215_v23  ;;  %8455 = vmatpush.bf16.msrb.mxu3 %v10934_v31  ;;  %8465 = vmatpush.bf16.msra.mxu0 %v11110_v21  ;;  %v10902_v15 = vor.u32 %v11765_v22, %v10901_v42  ;;  %v11535_v30 = vld [vmem:[#allocation14 + $0x4] sm:$0xf]  ;;  %v10186_v48 = vor.u32 %v11583_v12, %v10183_v56  ;;  %v10167_v57 = vld [vmem:[#allocation14 + $0x170] sm:$0xf0]  ;;  %v11045_v56 = vld [vmem:[#allocation14 + $0x840] sm:$0xf] }
 0x572   :  { %v6491_v53 = vadd.f32 %v6490_v54, %v6433_v46  ;;  %8481 = vmatpush.bf16.msra.mxu1 %v10042_v38  ;;  %8490 = vmatpush.bf16.msra.mxu2 %v10234_v33  ;;  %v6322_v35 = vadd.f32 %v6321_v26, %v6264_v14  ;;  %v10202_v26 = vor.u32 %v11587_v7, %v10199_v62  ;;  %v11093_v33 = vld [vmem:[#allocation14 + $0x8a0] sm:$0xf]  ;;  %v10151_v62 = vld [vmem:[#allocation14 + $0x150] sm:$0xf0] }
 0x573   :  { %v15192_v10 = vld [vmem:[#allocation4 + $0x8] sm:$0xf]  ;;  %v9994_v63 = vor.u32 %v11535_v30, %v9991_v47 }
 0x574   :  { %6526 = vst [vmem:[#allocation4 + $0x88] sm:$0xff] %v6491_v53  ;;  %v6581_v50 = vmax.f32 %v6580_v5, %v15192_v10  ;;  %v10007_v53 = vld [vmem:[#allocation14 + $0x30] sm:$0xf0]  ;;  %v6380_v0 = vadd.f32 %v15188_v17, %v6322_v35  ;;  %v10885_v14 = vld [vmem:[#allocation14 + $0x700] sm:$0xf]  ;;  %v6153_v17 = vadd.f32 %v15092_v13, %v15090_v55 }
 0x575   :  { %v10010_v38 = vor.u32 %v11539_v9, %v10007_v53  ;;  %8456 = vmatpush.bf16.msrb.mxu3 %v10918_v40  ;;  %v15560_v35 = vld [vmem:[#allocation47_spill] sm:$0xff]  ;;  %v11061_v7 = vld [vmem:[#allocation14 + $0x860] sm:$0xf] }
 0x576   :  { %v6582_v58 = vadd.f32 %v15137_v37, %v6581_v50  ;;  %8482 = vmatpush.bf16.msra.mxu1 %v10026_v3  ;;  %8491 = vmatpush.bf16.msra.mxu2 %v10218_v41  ;;  %v11813_v50 = vld [vmem:[#allocation14 + $0x8ac] sm:$0xf0]  ;;  %v11077_v3 = vld [vmem:[#allocation14 + $0x880] sm:$0xf]  ;;  %v10359_v40 = vld [vmem:[#allocation14 + $0x2f0] sm:$0xf0]  ;;  %v6211_v13 = vadd.f32 %v15098_v43, %v6153_v17 }
 0x577   :  { %v6435_v8 = vpop.f32.mrf.mxu2  ;;  %v6493_v54 = vpop.f32.mrf.mxu3  ;;  %v11094_v31 = vor.u32 %v11813_v50, %v11093_v33 }
 0x578   :  { %v6436_v46 = vadd.f32 %v6435_v8, %v6378_v39  ;;  %vm6583_vm15 = vcmp.gt.f32.partialorder %v6582_v58, 0.0  ;;  %v6584_v29 = vmul.f32 0.01, %v6582_v58  ;;  %v11761_v8 = vld [vmem:[#allocation14 + $0x70c] sm:$0xf0]  ;;  %v6269_v30 = vadd.f32 %v15100_v18, %v6211_v13 }
 0x579   :  { %v6324_v1 = vpop.f32.mrf.mxu0  ;;  %v15198_v4 = vpop.f32.mrf.mxu1  ;;  %8457 = vmatpush.bf16.msrb.mxu3 %v10902_v15  ;;  %8466 = vmatpush.bf16.msra.mxu0 %v11094_v31  ;;  %v10343_v15 = vld [vmem:[#allocation14 + $0x2d0] sm:$0xf0] }
 0x57a   :  { %v6494_v51 = vadd.f32 %v6493_v54, %v6436_v46  ;;  %v6585_v5 = vsel %vm6583_vm15, %v6582_v58, %v6584_v29  ;;  %8483 = vmatpush.bf16.msra.mxu1 %v10010_v38  ;;  %8492 = vmatpush.bf16.msra.mxu2 %v10202_v26  ;;  %v10886_v46 = vor.u32 %v11761_v8, %v10885_v14  ;;  %v11809_v54 = vld [vmem:[#allocation14 + $0x88c] sm:$0xf0]  ;;  %v11579_v29 = vld [vmem:[#allocation14 + $0x164] sm:$0xf]  ;;  %vm9432_vm15 = vcmask 1024  }
 0x57b   :  { %v15200_v44 = vpack.c.bf16 %v6585_v5, %v6585_v5  ;;  %v6546_v58 = vld [vmem:[#allocation4 + $0x88] sm:$0xf]  ;;  %v6325_v24 = vadd.f32 %v6324_v1, %v15560_v35  ;;  %v10170_v9 = vor.u32 %v11579_v29, %v10167_v57  ;;  %v11805_v1 = vld [vmem:[#allocation14 + $0x86c] sm:$0xf0] }
 0x57c   :  { %6527 = vst [vmem:[#allocation4 + $0x28] sm:$0xff] %v6494_v51  ;;  %v6587_v60 = vmax.f32 %v15192_v10, %v6546_v58  ;;  %v11078_v51 = vor.u32 %v11809_v54, %v11077_v3  ;;  %v11627_v5 = vld [vmem:[#allocation14 + $0x2e4] sm:$0xf]  ;;  %v11062_v38 = vor.u32 %v11805_v1, %v11061_v7  ;;  %v10327_v3 = vld [vmem:[#allocation14 + $0x2b0] sm:$0xf0] }
 0x57d   :  { %8407 = vmatmul.bf16.vlgmr.msra.gmra.mxu3 %v15200_v44  ;;  %v10362_v55 = vor.u32 %v11627_v5, %v10359_v40  ;;  %v11575_v10 = vld [vmem:[#allocation14 + $0x144] sm:$0xf]  ;;  %v6383_v42 = vadd.f32 %v15198_v4, %v6325_v24  ;;  %v11801_v4 = vld [vmem:[#allocation14 + $0x84c] sm:$0xf0]  ;;  %v11029_v54 = vld [vmem:[#allocation14 + $0x820] sm:$0xf] }
 0x57e   :  { %8484 = vmatpush.bf16.msra.mxu1 %v9994_v63  ;;  %8493 = vmatpush.bf16.msra.mxu2 %v10186_v48  ;;  %v11623_v26 = vld [vmem:[#allocation14 + $0x2c4] sm:$0xf]  ;;  %v10154_v43 = vor.u32 %v11575_v10, %v10151_v62  ;;  %v10135_v63 = vld [vmem:[#allocation14 + $0x130] sm:$0xf0]  ;;  %v11046_v14 = vor.u32 %v11801_v4, %v11045_v56  ;;  %v11797_v29 = vld [vmem:[#allocation14 + $0x82c] sm:$0xf0] }
 0x57f   :  { %v6437_v39 = vpop.f32.mrf.mxu2  ;;  %v6495_v23 = vpop.f32.mrf.mxu3  ;;  %8458 = vmatpush.bf16.msrb.mxu3 %v10886_v46  ;;  %8467 = vmatpush.bf16.msra.mxu0 %v11078_v51  ;;  %v10346_v50 = vor.u32 %v11623_v26, %v10343_v15  ;;  %v11571_v58 = vld [vmem:[#allocation14 + $0x124] sm:$0xf]  ;;  %v11030_v57 = vor.u32 %v11797_v29, %v11029_v54  ;;  %v11013_v7 = vld [vmem:[#allocation14 + $0x800] sm:$0xf]  ;;  %v11793_v1 = vld [vmem:[#allocation14 + $0x80c] sm:$0xf0] }
 0x580   :  { %v6438_v61 = vadd.f32 %v6437_v39, %v6380_v0  ;;  %v11619_v8 = vld [vmem:[#allocation14 + $0x2a4] sm:$0xf]  ;;  %v10138_v17 = vor.u32 %v11571_v58, %v10135_v63  ;;  %v11014_v62 = vor.u32 %v11793_v1, %v11013_v7  ;;  %v10471_v56 = vld [vmem:[#allocation14 + $0x3d0] sm:$0xf0] }
 0x581   :  { %v6326_v16 = vpop.f32.mrf.mxu0  ;;  %v15206_v41 = vpop.f32.mrf.mxu1  ;;  %v10330_v46 = vor.u32 %v11619_v8, %v10327_v3  ;;  %v11567_v35 = vld [vmem:[#allocation14 + $0x104] sm:$0xf]  ;;  %v10615_v63 = vld [vmem:[#allocation14 + $0x4f0] sm:$0xf0] }
 0x582   :  { %v6496_v25 = vadd.f32 %v6495_v23, %v6438_v61  ;;  %8494 = vmatpush.bf16.msra.mxu2 %v10170_v9  ;;  %v6327_v48 = vadd.f32 %v6326_v16, %v6269_v30  ;;  %v10119_v16 = vld [vmem:[#allocation14 + $0x110] sm:$0xf0]  ;;  %v11615_v24 = vld [vmem:[#allocation14 + $0x284] sm:$0xf] }
 0x583   :  { %v15210_v21 = vld [vmem:[#allocation4 + $0x28] sm:$0xf]  ;;  %8503 = vmatpush.bf16.msra.mxu3 %v10362_v55  ;;  %8468 = vmatpush.bf16.msra.mxu0 %v11062_v38  ;;  %v10122_v40 = vor.u32 %v11567_v35, %v10119_v16  ;;  %v6158_v38 = vadd.f32 %v15106_v32, %v15104_v19  ;;  %v10263_v29 = vld [vmem:[#allocation14 + $0x230] sm:$0xf0] }
 0x584   :  { %6528 = vst [vmem:[#allocation4 + $0x40] sm:$0xff] %v6496_v25  ;;  %v6588_v53 = vmax.f32 %v6587_v60, %v15210_v21  ;;  %v6385_v25 = vadd.f32 %v15206_v41, %v6327_v48  ;;  %v10311_v60 = vld [vmem:[#allocation14 + $0x290] sm:$0xf0]  ;;  %v11611_v26 = vld [vmem:[#allocation14 + $0x264] sm:$0xf] }
 0x585   :  { %v10314_v9 = vor.u32 %v11615_v24, %v10311_v60  ;;  %v10295_v41 = vld [vmem:[#allocation14 + $0x270] sm:$0xf0]  ;;  %v11607_v32 = vld [vmem:[#allocation14 + $0x244] sm:$0xf] }
 0x586   :  { %v6589_v22 = vadd.f32 %v15137_v37, %v6588_v53  ;;  %8495 = vmatpush.bf16.msra.mxu2 %v10154_v43  ;;  %v10298_v43 = vor.u32 %v11611_v26, %v10295_v41  ;;  %v11691_v58 = vld [vmem:[#allocation14 + $0x4e4] sm:$0xf]  ;;  %v10455_v24 = vld [vmem:[#allocation14 + $0x3b0] sm:$0xf0] }
 0x587   :  { %v6440_v33 = vpop.f32.mrf.mxu2  ;;  %v6498_v31 = vpop.f32.mrf.mxu3  ;;  %8504 = vmatpush.bf16.msra.mxu3 %v10346_v50  ;;  %8469 = vmatpush.bf16.msra.mxu0 %v11046_v14  ;;  %v10487_v50 = vld [vmem:[#allocation14 + $0x3f0] sm:$0xf0]  ;;  %v11603_v54 = vld [vmem:[#allocation14 + $0x224] sm:$0xf] }
 0x588   :  { %v6441_v0 = vadd.f32 %v6440_v33, %v6383_v42  ;;  %vm6590_vm1 = vcmp.gt.f32.partialorder %v6589_v22, 0.0  ;;  %v6591_v12 = vmul.f32 0.01, %v6589_v22  ;;  %v11659_v42 = vld [vmem:[#allocation14 + $0x3e4] sm:$0xf]  ;;  %v10266_v16 = vor.u32 %v11603_v54, %v10263_v29 }
 0x589   :  { %v6329_v47 = vpop.f32.mrf.mxu0  ;;  %v15217_v39 = vpop.f32.mrf.mxu1  ;;  %v10599_v60 = vld [vmem:[#allocation14 + $0x4d0] sm:$0xf0] }
 0x58a   :  { %v6499_v61 = vadd.f32 %v6498_v31, %v6441_v0  ;;  %v6592_v23 = vsel %vm6590_vm1, %v6589_v22, %v6591_v12  ;;  %8496 = vmatpush.bf16.msra.mxu2 %v10138_v17  ;;  %v6330_v22 = vadd.f32 %v6329_v47, %v15102_v45  ;;  %v10490_v0 = vor.u32 %v11659_v42, %v10487_v50  ;;  %v10279_v12 = vld [vmem:[#allocation14 + $0x250] sm:$0xf0]  ;;  %v11655_v47 = vld [vmem:[#allocation14 + $0x3c4] sm:$0xf] }
 0x58b   :  { %v15219_v18 = vpack.c.bf16 %v6592_v23, %v6592_v23  ;;  %8505 = vmatpush.bf16.msra.mxu3 %v10330_v46  ;;  %v6548_v5 = vld [vmem:[#allocation4 + $0x40] sm:$0xf]  ;;  %8470 = vmatpush.bf16.msra.mxu0 %v11030_v57  ;;  %v6216_v31 = vadd.f32 %v15108_v34, %v6158_v38  ;;  %v10282_v45 = vor.u32 %v11607_v32, %v10279_v12  ;;  %v10583_v7 = vld [vmem:[#allocation14 + $0x4b0] sm:$0xf0]  ;;  %v11679_v32 = vld [vmem:[#allocation14 + $0x484] sm:$0xf] }
 0x58c   :  { %6529 = vst [vmem:[#allocation4 + $0x58] sm:$0xff] %v6499_v61  ;;  %v6594_v33 = vmax.f32 %v15210_v21, %v6548_v5  ;;  %v6388_v21 = vadd.f32 %v15217_v39, %v6330_v22  ;;  %v10474_v48 = vor.u32 %v11655_v47, %v10471_v56  ;;  %v10618_v46 = vor.u32 %v11691_v58, %v10615_v63  ;;  %v11651_v39 = vld [vmem:[#allocation14 + $0x3a4] sm:$0xf]  ;;  %v10439_v38 = vld [vmem:[#allocation14 + $0x390] sm:$0xf0] }
 0x58d   :  { %8420 = vmatmul.bf16.vlgmr.msrb.gmra.mxu0 %v15219_v18  ;;  %v6274_v34 = vadd.f32 %v15110_v11, %v6216_v31  ;;  %v11687_v11 = vld [vmem:[#allocation14 + $0x4c4] sm:$0xf]  ;;  %v6163_v50 = vadd.f32 %v15116_v49, %v15114_v36  ;;  %v10567_v12 = vld [vmem:[#allocation14 + $0x490] sm:$0xf0] }
 0x58e   :  { %8497 = vmatpush.bf16.msra.mxu2 %v10122_v40  ;;  %v11599_v5 = vld [vmem:[#allocation14 + $0x204] sm:$0xf]  ;;  %v10247_v40 = vld [vmem:[#allocation14 + $0x210] sm:$0xf0] }
 0x58f   :  { %v6442_v51 = vpop.f32.mrf.mxu2  ;;  %v6500_v13 = vpop.f32.mrf.mxu3  ;;  %8506 = vmatpush.bf16.msra.mxu3 %v10314_v9  ;;  %8471 = vmatpush.bf16.msra.mxu0 %v11014_v62  ;;  %v11647_v9 = vld [vmem:[#allocation14 + $0x384] sm:$0xf]  ;;  %v10250_v1 = vor.u32 %v11599_v5, %v10247_v40  ;;  %v10535_v5 = vld [vmem:[#allocation14 + $0x450] sm:$0xf0] }
 0x590   :  { %v6443_v55 = vadd.f32 %v6442_v51, %v6385_v25  ;;  %v10458_v51 = vor.u32 %v11651_v39, %v10455_v24  ;;  %v10442_v41 = vor.u32 %v11647_v9, %v10439_v38  ;;  %v11639_v49 = vld [vmem:[#allocation14 + $0x344] sm:$0xf] }
 0x591   :  { %v6331_v53 = vpop.f32.mrf.mxu0  ;;  %v6389_v10 = vpop.f32.mrf.mxu1  ;;  %v11675_v58 = vld [vmem:[#allocation14 + $0x464] sm:$0xf] }
 0x592   :  { %v6501_v15 = vadd.f32 %v6500_v13, %v6443_v55  ;;  %v6332_v57 = vadd.f32 %v6331_v53, %v6274_v34  ;;  %v10602_v13 = vor.u32 %v11687_v11, %v10599_v60  ;;  %v11683_v53 = vld [vmem:[#allocation14 + $0x4a4] sm:$0xf] }
 0x593   :  { %v15227_v30 = vld [vmem:[#allocation4 + $0x58] sm:$0xf]  ;;  %8507 = vmatpush.bf16.msra.mxu3 %v10298_v43  ;;  %8516 = vmatpush.bf16.msrb.mxu0 %v10490_v0  ;;  %v10586_v31 = vor.u32 %v11683_v53, %v10583_v7  ;;  %v11723_v34 = vld [vmem:[#allocation14 + $0x5e4] sm:$0xf] }
 0x594   :  { %6530 = vst [vmem:[#allocation4 + $0x10] sm:$0xff] %v6501_v15  ;;  %v6595_v19 = vmax.f32 %v6594_v33, %v15227_v30  ;;  %v6390_v55 = vadd.f32 %v6389_v10, %v6332_v57  ;;  %v11643_v33 = vld [vmem:[#allocation14 + $0x364] sm:$0xf]  ;;  %v10423_v43 = vld [vmem:[#allocation14 + $0x370] sm:$0xf0] }
 0x595   :  { %v10426_v47 = vor.u32 %v11643_v33, %v10423_v43  ;;  %v11671_v60 = vld [vmem:[#allocation14 + $0x444] sm:$0xf]  ;;  %v10375_v53 = vld [vmem:[#allocation14 + $0x310] sm:$0xf0] }
 0x596   :  { %v6596_v4 = vadd.f32 %v15137_v37, %v6595_v19  ;;  %v11719_v40 = vld [vmem:[#allocation14 + $0x5c4] sm:$0xf] }
 0x597   :  { %v6445_v61 = vpop.f32.mrf.mxu2  ;;  %v6503_v14 = vpop.f32.mrf.mxu3  ;;  %8508 = vmatpush.bf16.msra.mxu3 %v10282_v45  ;;  %8517 = vmatpush.bf16.msrb.mxu0 %v10474_v48  ;;  %v15245_v48 = vld [vmem:[#allocation12] ss:$0 sm:$0xff] }
 0x598   :  { %v6446_v23 = vadd.f32 %v6445_v61, %v6388_v21  ;;  %vm6597_vm2 = vcmp.gt.f32.partialorder %v6596_v4, 0.0  ;;  %v6598_v3 = vmul.f32 0.01, %v6596_v4  ;;  %v6221_v21 = vadd.f32 %v15118_v27, %v6163_v50  ;;  %v11635_v27 = vld [vmem:[#allocation14 + $0x324] sm:$0xf] }
 0x599   :  { %v6334_v8 = vpop.f32.mrf.mxu0  ;;  %v6392_v17 = vpop.f32.mrf.mxu1 }
 0x59a   :  { %v6504_v37 = vadd.f32 %v6503_v14, %v6446_v23  ;;  %v6599_v35 = vsel %vm6597_vm2, %v6596_v4, %v6598_v3  ;;  %v6335_v10 = vadd.f32 %v6334_v8, %v15112_v6  ;;  %v10407_v6 = vld [vmem:[#allocation14 + $0x350] sm:$0xf0]  ;;  %v10570_v4 = vor.u32 %v11679_v32, %v10567_v12  ;;  %v11663_v12 = vld [vmem:[#allocation14 + $0x404] sm:$0xf] }
 0x59b   :  { %v15234_v25 = vpack.c.bf16 %v6599_v35, %v6599_v35  ;;  %8509 = vmatpush.bf16.msra.mxu3 %v10266_v16  ;;  %8518 = vmatpush.bf16.msrb.mxu0 %v10458_v51  ;;  %v6550_v26 = vld [vmem:[#allocation4 + $0x10] sm:$0xf]  ;;  %v10743_v23 = vld [vmem:[#allocation14 + $0x5f0] sm:$0xf0]  ;;  %v10410_v14 = vor.u32 %v11639_v49, %v10407_v6  ;;  %v6279_v3 = vadd.f32 %v15120_v28, %v6221_v21  ;;  %v11711_v21 = vld [vmem:[#allocation14 + $0x584] sm:$0xf] }
 0x59c   :  { %6531 = vst [vmem:[#allocation4 + $0x20] sm:$0xff] %v6504_v37  ;;  %v6601_v45 = vmax.f32 %v15227_v30, %v6550_v26  ;;  %v6393_v63 = vadd.f32 %v6392_v17, %v6335_v10  ;;  %v10551_v30 = vld [vmem:[#allocation14 + $0x470] sm:$0xf0]  ;;  %v10746_v35 = vor.u32 %v11723_v34, %v10743_v23  ;;  %v11715_v26 = vld [vmem:[#allocation14 + $0x5a4] sm:$0xf] }
 0x59d   :  { %8433 = vmatmul.bf16.vlgmr.msrb.gmra.mxu1 %v15234_v25  ;;  %v10391_v17 = vld [vmem:[#allocation14 + $0x330] sm:$0xf0]  ;;  %v10554_v37 = vor.u32 %v11675_v58, %v10551_v30  ;;  %v11819_v6 = vld [vmem:[#allocation14 + $0x8e4] sm:$0xf] }
 0x59e   :  { %8529 = vmatpush.bf16.msrb.mxu1 %v10618_v46  ;;  %v10727_v28 = vld [vmem:[#allocation14 + $0x5d0] sm:$0xf0]  ;;  %v10394_v9 = vor.u32 %v11635_v27, %v10391_v17  ;;  %v11707_v34 = vld [vmem:[#allocation14 + $0x564] sm:$0xf] }
 0x59f   :  { %v6447_v62 = vpop.f32.mrf.mxu2  ;;  %v6505_v22 = vpop.f32.mrf.mxu3  ;;  %8510 = vmatpush.bf16.msra.mxu3 %v10250_v1  ;;  %8519 = vmatpush.bf16.msrb.mxu0 %v10442_v41  ;;  %v10538_v1 = vor.u32 %v11671_v60, %v10535_v5  ;;  %v10730_v38 = vor.u32 %v11719_v40, %v10727_v28  ;;  %v10711_v41 = vld [vmem:[#allocation14 + $0x5b0] sm:$0xf0]  ;;  %v11751_v5 = vld [vmem:[#allocation14 + $0x6c4] sm:$0xf] }
 0x5a0   :  { %v6448_v42 = vadd.f32 %v6447_v62, %v6390_v55  ;;  %v11667_v55 = vld [vmem:[#allocation14 + $0x424] sm:$0xf]  ;;  %v10519_v62 = vld [vmem:[#allocation14 + $0x430] sm:$0xf0] }
 0x5a1   :  { %v6336_v15 = vpop.f32.mrf.mxu0  ;;  %v6394_v0 = vpop.f32.mrf.mxu1  ;;  %v10679_v23 = vld [vmem:[#allocation14 + $0x570] sm:$0xf0]  ;;  %v11811_v28 = vld [vmem:[#allocation14 + $0x8a4] sm:$0xf] }
 0x5a2   :  { %v6506_v19 = vadd.f32 %v6505_v22, %v6448_v42  ;;  %8530 = vmatpush.bf16.msrb.mxu1 %v10602_v13  ;;  %v6337_v16 = vadd.f32 %v6336_v15, %v6279_v3  ;;  %v11631_v13 = vld [vmem:[#allocation14 + $0x304] sm:$0xf]  ;;  %v10871_v27 = vld [vmem:[#allocation14 + $0x6f0] sm:$0xf0] }
 0x5a3   :  { %v15241_v56 = vld [vmem:[#allocation4 + $0x20] sm:$0xf]  ;;  %8520 = vmatpush.bf16.msrb.mxu0 %v10426_v47  ;;  %v10378_v15 = vor.u32 %v11631_v13, %v10375_v53  ;;  %v11815_v3 = vld [vmem:[#allocation14 + $0x8c4] sm:$0xf]  ;;  %v10663_v60 = vld [vmem:[#allocation14 + $0x550] sm:$0xf0] }
 0x5a4   :  { %6532 = vst [vmem:[#allocation4 + $0x70] sm:$0xff] %v6506_v19  ;;  %v6602_v36 = vmax.f32 %v6601_v45, %v15241_v56  ;;  %v6395_v7 = vadd.f32 %v6394_v0, %v6337_v16  ;;  %v10714_v19 = vor.u32 %v11715_v26, %v10711_v41  ;;  %v10503_v45 = vld [vmem:[#allocation14 + $0x410] sm:$0xf0]  ;;  %v11699_v13 = vld [vmem:[#allocation14 + $0x524] sm:$0xf] }
 0x5a5   :  { %v10855_v40 = vld [vmem:[#allocation14 + $0x6d0] sm:$0xf0] }
 0x5a6   :  { %8531 = vmatpush.bf16.msrb.mxu1 %v10586_v31  ;;  %v6603_v61 = vadd.f32 %v15245_v48, %v6602_v36  ;;  %v10522_v31 = vor.u32 %v11667_v55, %v10519_v62  ;;  %v10695_v36 = vld [vmem:[#allocation14 + $0x590] sm:$0xf0]  ;;  %v11747_v62 = vld [vmem:[#allocation14 + $0x6a4] sm:$0xf] }
 0x5a7   :  { %v6450_v8 = vpop.f32.mrf.mxu2  ;;  %v6508_v54 = vpop.f32.mrf.mxu3  ;;  %8521 = vmatpush.bf16.msrb.mxu0 %v10410_v14 }
 0x5a8   :  { %v6451_v46 = vadd.f32 %v6450_v8, %v6393_v63  ;;  %vm6604_vm3 = vcmp.gt.f32.partialorder %v6603_v61, 0.0  ;;  %v6605_v39 = vmul.f32 0.01, %v6603_v61  ;;  %v10506_v63 = vor.u32 %v11663_v12, %v10503_v45  ;;  %v11755_v8 = vld [vmem:[#allocation14 + $0x6e4] sm:$0xf] }
 0x5a9   :  { %v6339_v29 = vpop.f32.mrf.mxu0  ;;  %v6397_v57 = vpop.f32.mrf.mxu1  ;;  %v10823_v12 = vld [vmem:[#allocation14 + $0x690] sm:$0xf0]  ;;  %v11803_v45 = vld [vmem:[#allocation14 + $0x864] sm:$0xf] }
 0x5aa   :  { %v6509_v24 = vadd.f32 %v6508_v54, %v6451_v46  ;;  %8532 = vmatpush.bf16.msrb.mxu1 %v10570_v4  ;;  %v6606_v11 = vsel %vm6604_vm3, %v6603_v61, %v6605_v39  ;;  %v6340_v32 = vadd.f32 %v6339_v29, %v15122_v20  ;;  %v11127_v4 = vld [vmem:[#allocation14 + $0x8f0] sm:$0xf0]  ;;  %v10698_v20 = vor.u32 %v11711_v21, %v10695_v36  ;;  %v10109_v36 = vld [vmem:[#allocation14 + $0xe8] sm:$0xf] }
 0x5ab   :  { %v15249_v51 = vpack.c.bf16 %v6606_v11, %v6606_v11  ;;  %v6552_v22 = vld [vmem:[#allocation4 + $0x70] sm:$0xf]  ;;  %8522 = vmatpush.bf16.msrb.mxu0 %v10394_v9  ;;  %v11130_v14 = vor.u32 %v11819_v6, %v11127_v4  ;;  %v11111_v39 = vld [vmem:[#allocation14 + $0x8d0] sm:$0xf0]  ;;  %v11566_v6 = vld [vmem:[#allocation14 + $0xf4] sm:$0xf0] }
 0x5ac   :  { %6533 = vst [vmem:[#allocation4 + $0x60] sm:$0xff] %v6509_v24  ;;  %v6608_v47 = vmax.f32 %v15241_v56, %v6552_v22  ;;  %v6398_v61 = vadd.f32 %v6397_v57, %v6340_v32  ;;  %v10874_v24 = vor.u32 %v11755_v8, %v10871_v27  ;;  %v11114_v11 = vor.u32 %v11815_v3, %v11111_v39  ;;  %v11095_v9 = vld [vmem:[#allocation14 + $0x8b0] sm:$0xf0]  ;;  %v11807_v22 = vld [vmem:[#allocation14 + $0x884] sm:$0xf] }
 0x5ad   :  { %8446 = vmatmul.bf16.vlgmr.msrb.gmra.mxu2 %v15249_v51  ;;  %8485 = vmatmul.bf16.vlgmr.msra.gmra.mxu1 %v15145_v59  ;;  %v11743_v32 = vld [vmem:[#allocation14 + $0x684] sm:$0xf]  ;;  %v11047_v8 = vld [vmem:[#allocation14 + $0x850] sm:$0xf0]  ;;  %v10093_v27 = vld [vmem:[#allocation14 + $0xc8] sm:$0xf] }
 0x5ae   :  { %8533 = vmatpush.bf16.msrb.mxu1 %v10554_v37  ;;  %8542 = vmatpush.bf16.msrb.mxu2 %v10746_v35  ;;  %v10682_v37 = vor.u32 %v11707_v34, %v10679_v23  ;;  %v11703_v35 = vld [vmem:[#allocation14 + $0x544] sm:$0xf]  ;;  %v10999_v34 = vld [vmem:[#allocation14 + $0x7f0] sm:$0xf0]  ;;  %v11562_v3 = vld [vmem:[#allocation14 + $0xd4] sm:$0xf0] }
 0x5af   :  { %v6452_v42 = vpop.f32.mrf.mxu2  ;;  %v6510_v43 = vpop.f32.mrf.mxu3  ;;  %8523 = vmatpush.bf16.msrb.mxu0 %v10378_v15  ;;  %v10666_v55 = vor.u32 %v11703_v35, %v10663_v60  ;;  %v11079_v15 = vld [vmem:[#allocation14 + $0x890] sm:$0xf0]  ;;  %v11799_v23 = vld [vmem:[#allocation14 + $0x844] sm:$0xf] }
 0x5b0   :  { %v6453_v33 = vadd.f32 %v6452_v42, %v6395_v7  ;;  %v10858_v7 = vor.u32 %v11751_v5, %v10855_v40  ;;  %v10839_v42 = vld [vmem:[#allocation14 + $0x6b0] sm:$0xf0]  ;;  %v11795_v60 = vld [vmem:[#allocation14 + $0x824] sm:$0xf]  ;;  %v10077_v40 = vld [vmem:[#allocation14 + $0xa8] sm:$0xf] }
 0x5b1   :  { %v6341_v50 = vpop.f32.mrf.mxu0  ;;  %v6399_v10 = vpop.f32.mrf.mxu1  ;;  %v10983_v35 = vld [vmem:[#allocation14 + $0x7d0] sm:$0xf0] }
 0x5b2   :  { %v6511_v0 = vadd.f32 %v6510_v43, %v6453_v33  ;;  %8534 = vmatpush.bf16.msrb.mxu1 %v10538_v1  ;;  %8543 = vmatpush.bf16.msrb.mxu2 %v10730_v38  ;;  %v11098_v1 = vor.u32 %v11811_v28, %v11095_v9  ;;  %v10647_v38 = vld [vmem:[#allocation14 + $0x530] sm:$0xf0]  ;;  %v11695_v43 = vld [vmem:[#allocation14 + $0x504] sm:$0xf]  ;;  %v10842_v10 = vor.u32 %v11747_v62, %v10839_v42  ;;  %v11558_v28 = vld [vmem:[#allocation14 + $0xb4] sm:$0xf0] }
 0x5b3   :  { %v15255_v49 = vld [vmem:[#allocation4 + $0x60] sm:$0xf]  ;;  %v10650_v33 = vor.u32 %v11699_v13, %v10647_v38  ;;  %v11031_v5 = vld [vmem:[#allocation14 + $0x830] sm:$0xf0]  ;;  %v6910_v9 = vld [vmem:[#allocation15] sm:$0xf] }
 0x5b4   :  { %6534 = vst [vmem:[#allocation4 + $0x90] sm:$0xff] %v6511_v0  ;;  %v6609_v58 = vmax.f32 %v6608_v47, %v15255_v49  ;;  %v11063_v47 = vld [vmem:[#allocation14 + $0x870] sm:$0xf0]  ;;  %v11731_v13 = vld [vmem:[#allocation14 + $0x624] sm:$0xf] }
 0x5b5   :  { %v11779_v38 = vld [vmem:[#allocation14 + $0x7a4] sm:$0xf]  ;;  %v10967_v62 = vld [vmem:[#allocation14 + $0x7b0] sm:$0xf0] }
 0x5b6   :  { %8535 = vmatpush.bf16.msrb.mxu1 %v10522_v31  ;;  %8544 = vmatpush.bf16.msrb.mxu2 %v10714_v19  ;;  %v6610_v30 = vadd.f32 %v15245_v48, %v6609_v58  ;;  %v11082_v31 = vor.u32 %v11807_v22, %v11079_v15  ;;  %v10631_v19 = vld [vmem:[#allocation14 + $0x510] sm:$0xf0]  ;;  %v10061_v22 = vld [vmem:[#allocation14 + $0x88] sm:$0xf]  ;;  %v11554_v15 = vld [vmem:[#allocation14 + $0x94] sm:$0xf0] }
 0x5b7   :  { %v6455_v56 = vpop.f32.mrf.mxu2  ;;  %v6513_v54 = vpop.f32.mrf.mxu3  ;;  %v10634_v4 = vor.u32 %v11695_v43, %v10631_v19  ;;  %v11015_v42 = vld [vmem:[#allocation14 + $0x810] sm:$0xf0]  ;;  %v11662_v43 = vld [vmem:[#allocation14 + $0x3f4] sm:$0xf0] }
 0x5b8   :  { %v6456_v46 = vadd.f32 %v6455_v56, %v6398_v61  ;;  %vm6611_vm4 = vcmp.gt.f32.partialorder %v6610_v30, 0.0  ;;  %v6612_v29 = vmul.f32 0.01, %v6610_v30  ;;  %v10807_v61 = vld [vmem:[#allocation14 + $0x670] sm:$0xf0]  ;;  %v10110_v56 = vor.u32 %v11566_v6, %v10109_v36 }
 0x5b9   :  { %v10759_v36 = vld [vmem:[#allocation14 + $0x610] sm:$0xf0]  ;;  %v10045_v6 = vld [vmem:[#allocation14 + $0x68] sm:$0xf] }
 0x5ba   :  { %v6514_v17 = vadd.f32 %v6513_v54, %v6456_v46  ;;  %8536 = vmatpush.bf16.msrb.mxu1 %v10506_v63  ;;  %8545 = vmatpush.bf16.msrb.mxu2 %v10698_v20  ;;  %v6613_v57 = vsel %vm6611_vm4, %v6610_v30, %v6612_v29  ;;  %v11739_v63 = vld [vmem:[#allocation14 + $0x664] sm:$0xf]  ;;  %v11066_v20 = vor.u32 %v11803_v45, %v11063_v47 }
 0x5bb   :  { %v15259_v16 = vpack.c.bf16 %v6613_v57, %v6613_v57  ;;  %v6554_v26 = vld [vmem:[#allocation4 + $0x90] sm:$0xf]  ;;  %v11787_v30 = vld [vmem:[#allocation14 + $0x7e4] sm:$0xf]  ;;  %v10810_v39 = vor.u32 %v11739_v63, %v10807_v61  ;;  %v10062_v45 = vor.u32 %v11554_v15, %v10061_v22  ;;  %v11598_v63 = vld [vmem:[#allocation14 + $0x1f4] sm:$0xf0] }
 0x5bc   :  { %6535 = vst [vmem:[#allocation4 + $0x48] sm:$0xff] %v6514_v17  ;;  %v6615_v50 = vmax.f32 %v15255_v49, %v6554_v26  ;;  %v10826_v49 = vor.u32 %v11743_v32, %v10823_v12  ;;  %v11050_v17 = vor.u32 %v11799_v23, %v11047_v8  ;;  %v11735_v57 = vld [vmem:[#allocation14 + $0x644] sm:$0xf]  ;;  %v10078_v26 = vor.u32 %v11558_v28, %v10077_v40  ;;  %v10951_v12 = vld [vmem:[#allocation14 + $0x790] sm:$0xf0] }
 0x5bd   :  { %8459 = vmatmul.bf16.vlgmr.msrb.gmra.mxu3 %v15259_v16  ;;  %8498 = vmatmul.bf16.vlgmr.msra.gmra.mxu2 %v15162_v2  ;;  %v10935_v23 = vld [vmem:[#allocation14 + $0x770] sm:$0xf0]  ;;  %v10029_v8 = vld [vmem:[#allocation14 + $0x48] sm:$0xf]  ;;  %v11538_v22 = vld [vmem:[#allocation14 + $0x14] sm:$0xf0] }
 0x5be   :  { %8581 = vmatpush.bf16.msra.mxu1 %v11130_v14  ;;  %8546 = vmatpush.bf16.msrb.mxu2 %v10682_v37  ;;  %v11783_v37 = vld [vmem:[#allocation14 + $0x7c4] sm:$0xf]  ;;  %v10013_v40 = vld [vmem:[#allocation14 + $0x28] sm:$0xf] }
 0x5bf   :  { %8537 = vmatmul.bf16.vlgmr.msrb.gmra.mxu1 %v15219_v18  ;;  %8555 = vmatpush.bf16.msrb.mxu3 %v10874_v24  ;;  %v6457_v53 = vpop.f32.mrf.mxu2  ;;  %v6515_v41 = vpop.f32.mrf.mxu3  ;;  %v10094_v24 = vor.u32 %v11562_v3, %v10093_v27 }
 0x5c0   :  { %v11791_v41 = vld [vmem:[#allocation14 + $0x804] sm:$0xf] }
 0x5c1   :  { %v11018_v32 = vor.u32 %v11791_v41, %v11015_v42  ;;  %v9997_v42 = vld [vmem:[#allocation14 + $0x8] sm:$0xf] }
 0x5c2   :  { %8582 = vmatpush.bf16.msra.mxu1 %v11114_v11  ;;  %8547 = vmatpush.bf16.msrb.mxu2 %v10666_v55  ;;  %v10791_v11 = vld [vmem:[#allocation14 + $0x650] sm:$0xf0]  ;;  %v10986_v55 = vor.u32 %v11783_v37, %v10983_v35  ;;  %v10461_v37 = vld [vmem:[#allocation14 + $0x3a8] sm:$0xf]  ;;  %v11654_v35 = vld [vmem:[#allocation14 + $0x3b4] sm:$0xf0] }
 0x5c3   :  { %8556 = vmatpush.bf16.msrb.mxu3 %v10858_v7  ;;  %v6555_v0 = vld [vmem:[#allocation4 + $0x48] sm:$0xf]  ;;  %v10794_v53 = vor.u32 %v11735_v57, %v10791_v11  ;;  %v11034_v7 = vor.u32 %v11795_v60, %v11031_v5  ;;  %v10919_v60 = vld [vmem:[#allocation14 + $0x750] sm:$0xf0]  ;;  %v10462_v28 = vor.u32 %v11654_v35, %v10461_v37  ;;  %v10589_v37 = vld [vmem:[#allocation14 + $0x4a8] sm:$0xf] }
 0x5c4   :  { %v6616_v21 = vmax.f32 %v6615_v50, %v6555_v0  ;;  %v11775_v0 = vld [vmem:[#allocation14 + $0x784] sm:$0xf]  ;;  %v11686_v35 = vld [vmem:[#allocation14 + $0x4b4] sm:$0xf0] }
 0x5c5   :  { %v10954_v61 = vor.u32 %v11775_v0, %v10951_v12  ;;  %v11767_v11 = vld [vmem:[#allocation14 + $0x744] sm:$0xf]  ;;  %v11694_v0 = vld [vmem:[#allocation14 + $0x4f4] sm:$0xf0] }
 0x5c6   :  { %8583 = vmatpush.bf16.msra.mxu1 %v11098_v1  ;;  %8548 = vmatpush.bf16.msrb.mxu2 %v10650_v33  ;;  %v6617_v58 = vadd.f32 %v15245_v48, %v6616_v21  ;;  %v11002_v48 = vor.u32 %v11787_v30, %v10999_v34  ;;  %v10775_v1 = vld [vmem:[#allocation14 + $0x630] sm:$0xf0]  ;;  %v10493_v33 = vld [vmem:[#allocation14 + $0x3e8] sm:$0xf]  ;;  %v11727_v21 = vld [vmem:[#allocation14 + $0x604] sm:$0xf] }
 0x5c7   :  { %8557 = vmatpush.bf16.msrb.mxu3 %v10842_v10  ;;  %v10970_v10 = vor.u32 %v11779_v38, %v10967_v62  ;;  %v10778_v19 = vor.u32 %v11731_v13, %v10775_v1  ;;  %v10494_v47 = vor.u32 %v11662_v43, %v10493_v33  ;;  %v10762_v30 = vor.u32 %v11727_v21, %v10759_v36  ;;  %v11771_v34 = vld [vmem:[#allocation14 + $0x764] sm:$0xf]  ;;  %v11590_v13 = vld [vmem:[#allocation14 + $0x1b4] sm:$0xf0]  ;;  %v10903_v62 = vld [vmem:[#allocation14 + $0x730] sm:$0xf0] }
 0x5c8   :  { %vm6618_vm5 = vcmp.gt.f32.partialorder %v6617_v58, 0.0  ;;  %v6619_v14 = vmul.f32 0.01, %v6617_v58  ;;  %v10938_v57 = vor.u32 %v11771_v34, %v10935_v23  ;;  %v11650_v1 = vld [vmem:[#allocation14 + $0x394] sm:$0xf0] }
 0x5c9   :  { %v11763_v38 = vld [vmem:[#allocation14 + $0x724] sm:$0xf]  ;;  %v10189_v33 = vld [vmem:[#allocation14 + $0x188] sm:$0xf]  ;;  %v11586_v43 = vld [vmem:[#allocation14 + $0x194] sm:$0xf0] }
 0x5ca   :  { %8584 = vmatpush.bf16.msra.mxu1 %v11082_v31  ;;  %8549 = vmatpush.bf16.msrb.mxu2 %v10634_v4  ;;  %v15266_v46 = vpop.f32.mrf.mxu0  ;;  %v6620_v54 = vsel %vm6618_vm5, %v6617_v58, %v6619_v14  ;;  %v6912_v31 = vperm.slane %v6910_v9, 0  ;;  %v11550_v4 = vld [vmem:[#allocation14 + $0x74] sm:$0xf0]  ;;  %v10237_v58 = vld [vmem:[#allocation14 + $0x1e8] sm:$0xf]  ;;  %v10190_v21 = vor.u32 %v11586_v43, %v10189_v33 }
 0x5cb   :  { %8558 = vmatpush.bf16.msrb.mxu3 %v10826_v49  ;;  %v15268_v29 = vpack.c.bf16 %v6620_v54, %v6620_v54  ;;  %v10477_v49 = vld [vmem:[#allocation14 + $0x3c8] sm:$0xf]  ;;  %v10238_v14 = vor.u32 %v11598_v63, %v10237_v58  ;;  %v11546_v54 = vld [vmem:[#allocation14 + $0x54] sm:$0xf0]  ;;  %v11759_v12 = vld [vmem:[#allocation14 + $0x704] sm:$0xf] }
 0x5cc   :  { %v8370_v27 = vadd.f32 %v15266_v46, %v6912_v31  ;;  %v10030_v5 = vor.u32 %v11546_v54, %v10029_v8  ;;  %v11542_v9 = vld [vmem:[#allocation14 + $0x34] sm:$0xf0]  ;;  %v10906_v31 = vor.u32 %v11763_v38, %v10903_v62  ;;  %v10365_v36 = vld [vmem:[#allocation14 + $0x2e8] sm:$0xf] }
 0x5cd   :  { %8472 = vmatmul.bf16.vlgmr.msra.gmra.mxu0 %v15268_v29  ;;  %8511 = vmatmul.bf16.vlgmr.msra.gmra.mxu3 %v15181_v52  ;;  %v10173_v63 = vld [vmem:[#allocation14 + $0x168] sm:$0xf]  ;;  %v11690_v23 = vld [vmem:[#allocation14 + $0x4d4] sm:$0xf0] }
 0x5ce   :  { %8585 = vmatpush.bf16.msra.mxu1 %v11066_v20  ;;  %8594 = vmatpush.bf16.msra.mxu2 %v10110_v56  ;;  %v11658_v20 = vld [vmem:[#allocation14 + $0x3d4] sm:$0xf0]  ;;  %v10046_v56 = vor.u32 %v11550_v4, %v10045_v6  ;;  %v10605_v34 = vld [vmem:[#allocation14 + $0x4c8] sm:$0xf] }
 0x5cf   :  { %8550 = vmatmul.bf16.vlgmr.msrb.gmra.mxu2 %v15234_v25  ;;  %8568 = vmatpush.bf16.msra.mxu0 %v11002_v48  ;;  %v10478_v3 = vor.u32 %v11658_v20, %v10477_v49  ;;  %v10221_v48 = vld [vmem:[#allocation14 + $0x1c8] sm:$0xf]  ;;  %v11630_v6 = vld [vmem:[#allocation14 + $0x2f4] sm:$0xf0]  ;;  %v10606_v54 = vor.u32 %v11690_v23, %v10605_v34 }
 0x5d0   :  { %8559 = vmatpush.bf16.msrb.mxu3 %v10810_v39  ;;  %v11594_v39 = vld [vmem:[#allocation14 + $0x1d4] sm:$0xf0]  ;;  %v10413_v49 = vld [vmem:[#allocation14 + $0x348] sm:$0xf] }
 0x5d1   :  { %v10222_v46 = vor.u32 %v11594_v39, %v10221_v48  ;;  %v10349_v8 = vld [vmem:[#allocation14 + $0x2c8] sm:$0xf]  ;;  %v11578_v39 = vld [vmem:[#allocation14 + $0x154] sm:$0xf0] }
 0x5d2   :  { %8586 = vmatpush.bf16.msra.mxu1 %v11050_v17  ;;  %8595 = vmatpush.bf16.msra.mxu2 %v10094_v24  ;;  %v8371_v50 = vpop.f32.mrf.mxu0  ;;  %v10157_v48 = vld [vmem:[#allocation14 + $0x148] sm:$0xf]  ;;  %v11722_v34 = vld [vmem:[#allocation14 + $0x5d4] sm:$0xf0] }
 0x5d3   :  { %8569 = vmatpush.bf16.msra.mxu0 %v10986_v55  ;;  %v10205_v55 = vld [vmem:[#allocation14 + $0x1a8] sm:$0xf] }
 0x5d4   :  { %8560 = vmatpush.bf16.msrb.mxu3 %v10794_v53  ;;  %v10922_v53 = vor.u32 %v11767_v11, %v10919_v60  ;;  %v10206_v41 = vor.u32 %v11590_v13, %v10205_v55  ;;  %v10429_v50 = vld [vmem:[#allocation14 + $0x368] sm:$0xf]  ;;  %v10158_v60 = vor.u32 %v11578_v39, %v10157_v48  ;;  %v11574_v55 = vld [vmem:[#allocation14 + $0x134] sm:$0xf0] }
 0x5d5   :  { %v10381_v13 = vld [vmem:[#allocation14 + $0x308] sm:$0xf] }
 0x5d6   :  { %8587 = vmatpush.bf16.msra.mxu1 %v11034_v7  ;;  %8596 = vmatpush.bf16.msra.mxu2 %v10078_v26  ;;  %v10445_v7 = vld [vmem:[#allocation14 + $0x388] sm:$0xf]  ;;  %v10014_v26 = vor.u32 %v11542_v9, %v10013_v40 }
 0x5d7   :  { %8570 = vmatpush.bf16.msra.mxu0 %v10970_v10  ;;  %v10446_v15 = vor.u32 %v11650_v1, %v10445_v7  ;;  %v10141_v9 = vld [vmem:[#allocation14 + $0x128] sm:$0xf]  ;;  %v11682_v1 = vld [vmem:[#allocation14 + $0x494] sm:$0xf0] }
 0x5d8   :  { %8561 = vmatpush.bf16.msrb.mxu3 %v10778_v19  ;;  %v11646_v19 = vld [vmem:[#allocation14 + $0x374] sm:$0xf0]  ;;  %v10573_v7 = vld [vmem:[#allocation14 + $0x488] sm:$0xf] }
 0x5d9   :  { %v10430_v4 = vor.u32 %v11646_v19, %v10429_v50  ;;  %v11005_v62 = vld [vmem:[#allocation14 + $0x7e8] sm:$0xf]  ;;  %v10574_v50 = vor.u32 %v11682_v1, %v10573_v7  ;;  %v11714_v1 = vld [vmem:[#allocation14 + $0x594] sm:$0xf0] }
 0x5da   :  { %8588 = vmatpush.bf16.msra.mxu1 %v11018_v32  ;;  %8597 = vmatpush.bf16.msra.mxu2 %v10062_v45  ;;  %v8382_v17 = vpop.f32.mrf.mxu1  ;;  %v10621_v32 = vld [vmem:[#allocation14 + $0x4e8] sm:$0xf]  ;;  %v10887_v45 = vld [vmem:[#allocation14 + $0x710] sm:$0xf0] }
 0x5db   :  { %8571 = vmatpush.bf16.msra.mxu0 %v10954_v61  ;;  %v15275_v24 = vadd.f32 %v8382_v17, %v8370_v27  ;;  %v10622_v58 = vor.u32 %v11694_v0, %v10621_v32  ;;  %v11582_v61 = vld [vmem:[#allocation14 + $0x174] sm:$0xf0]  ;;  %v10890_v20 = vor.u32 %v11759_v12, %v10887_v45  ;;  %v10397_v17 = vld [vmem:[#allocation14 + $0x328] sm:$0xf] }
 0x5dc   :  { %8562 = vmatpush.bf16.msrb.mxu3 %v10762_v30  ;;  %v11642_v30 = vld [vmem:[#allocation14 + $0x354] sm:$0xf0]  ;;  %v10557_v19 = vld [vmem:[#allocation14 + $0x468] sm:$0xf] }
 0x5dd   :  { %8589 = vmatmul.bf16.vlgmr.msra.gmra.mxu1 %v15268_v29  ;;  %8524 = vmatmul.bf16.vlgmr.msrb.gmra.mxu0 %v15200_v44  ;;  %v11626_v27 = vld [vmem:[#allocation14 + $0x2d4] sm:$0xf0]  ;;  %v10749_v12 = vld [vmem:[#allocation14 + $0x5e8] sm:$0xf] }
 0x5de   :  { %8633 = vmatpush.bf16.msrb.mxu1 %v10494_v47  ;;  %8598 = vmatpush.bf16.msra.mxu2 %v10046_v56  ;;  %v9998_v47 = vor.u32 %v11538_v22, %v9997_v42  ;;  %v10366_v56 = vor.u32 %v11630_v6, %v10365_v36  ;;  %v10350_v11 = vor.u32 %v11626_v27, %v10349_v8  ;;  %v10317_v22 = vld [vmem:[#allocation14 + $0x288] sm:$0xf]  ;;  %v11678_v0 = vld [vmem:[#allocation14 + $0x474] sm:$0xf0] }
 0x5df   :  { %8563 = vmatmul.bf16.vlgmr.msrb.gmra.mxu3 %v15249_v51  ;;  %8572 = vmatpush.bf16.msra.mxu0 %v10938_v57  ;;  %v11638_v57 = vld [vmem:[#allocation14 + $0x334] sm:$0xf0]  ;;  %v10142_v42 = vor.u32 %v11574_v55, %v10141_v9  ;;  %v10285_v27 = vld [vmem:[#allocation14 + $0x248] sm:$0xf] }
 0x5e0   :  { %8607 = vmatpush.bf16.msra.mxu3 %v10238_v14  ;;  %v10174_v14 = vor.u32 %v11582_v61, %v10173_v63  ;;  %v10398_v40 = vor.u32 %v11638_v57, %v10397_v17  ;;  %v11726_v45 = vld [vmem:[#allocation14 + $0x5f4] sm:$0xf0]  ;;  %v10541_v61 = vld [vmem:[#allocation14 + $0x448] sm:$0xf] }
 0x5e1   :  { %v11786_v36 = vld [vmem:[#allocation14 + $0x7d4] sm:$0xf0]  ;;  %v10750_v63 = vor.u32 %v11726_v45, %v10749_v12  ;;  %v10525_v39 = vld [vmem:[#allocation14 + $0x428] sm:$0xf] }
 0x5e2   :  { %8634 = vmatpush.bf16.msrb.mxu1 %v10478_v3  ;;  %8599 = vmatpush.bf16.msra.mxu2 %v10030_v5  ;;  %v8384_v10 = vpop.f32.mrf.mxu1  ;;  %v10414_v3 = vor.u32 %v11642_v30, %v10413_v49  ;;  %v10333_v5 = vld [vmem:[#allocation14 + $0x2a8] sm:$0xf]  ;;  %v11670_v57 = vld [vmem:[#allocation14 + $0x434] sm:$0xf0] }
 0x5e3   :  { %8573 = vmatpush.bf16.msra.mxu0 %v10922_v53  ;;  %v11634_v53 = vld [vmem:[#allocation14 + $0x314] sm:$0xf0]  ;;  %v10125_v10 = vld [vmem:[#allocation14 + $0x108] sm:$0xf] }
 0x5e4   :  { %8608 = vmatpush.bf16.msra.mxu3 %v10222_v46  ;;  %v11622_v46 = vld [vmem:[#allocation14 + $0x2b4] sm:$0xf0]  ;;  %v10382_v43 = vor.u32 %v11634_v53, %v10381_v13  ;;  %v10733_v30 = vld [vmem:[#allocation14 + $0x5c8] sm:$0xf] }
 0x5e5   :  { %v10334_v38 = vor.u32 %v11622_v46, %v10333_v5  ;;  %v10734_v48 = vor.u32 %v11722_v34, %v10733_v30  ;;  %v11778_v5 = vld [vmem:[#allocation14 + $0x794] sm:$0xf0]  ;;  %v10269_v46 = vld [vmem:[#allocation14 + $0x228] sm:$0xf] }
 0x5e6   :  { %8635 = vmatpush.bf16.msrb.mxu1 %v10462_v28  ;;  %8600 = vmatpush.bf16.msra.mxu2 %v10014_v26  ;;  %v10590_v28 = vor.u32 %v11686_v35, %v10589_v37  ;;  %v11790_v26 = vld [vmem:[#allocation14 + $0x7f4] sm:$0xf0]  ;;  %v10717_v37 = vld [vmem:[#allocation14 + $0x5a8] sm:$0xf] }
 0x5e7   :  { %8574 = vmatpush.bf16.msra.mxu0 %v10906_v31  ;;  %v11570_v31 = vld [vmem:[#allocation14 + $0x114] sm:$0xf0]  ;;  %v11006_v32 = vor.u32 %v11790_v26, %v11005_v62  ;;  %v10509_v55 = vld [vmem:[#allocation14 + $0x408] sm:$0xf] }
 0x5e8   :  { %8609 = vmatpush.bf16.msra.mxu3 %v10206_v41  ;;  %v10126_v6 = vor.u32 %v11570_v31, %v10125_v10  ;;  %v11718_v35 = vld [vmem:[#allocation14 + $0x5b4] sm:$0xf0]  ;;  %v10701_v7 = vld [vmem:[#allocation14 + $0x588] sm:$0xf] }
 0x5e9   :  { %v10718_v9 = vor.u32 %v11718_v35, %v10717_v37  ;;  %v11666_v13 = vld [vmem:[#allocation14 + $0x414] sm:$0xf0]  ;;  %v10702_v31 = vor.u32 %v11714_v1, %v10701_v7  ;;  %v10685_v45 = vld [vmem:[#allocation14 + $0x568] sm:$0xf] }
 0x5ea   :  { %8636 = vmatpush.bf16.msrb.mxu1 %v10446_v15  ;;  %8601 = vmatpush.bf16.msra.mxu2 %v9998_v47  ;;  %v11618_v15 = vld [vmem:[#allocation14 + $0x294] sm:$0xf0]  ;;  %v10510_v10 = vor.u32 %v11666_v13, %v10509_v55  ;;  %v10669_v30 = vld [vmem:[#allocation14 + $0x548] sm:$0xf]  ;;  %v11628_v55 = vld [vmem:[#allocation14 + $0x2ec] sm:$0xf] }
 0x5eb   :  { %8575 = vmatpush.bf16.msra.mxu0 %v10890_v20  ;;  %v10318_v47 = vor.u32 %v11618_v15, %v10317_v22  ;;  %v11674_v20 = vld [vmem:[#allocation14 + $0x454] sm:$0xf0]  ;;  %v10253_v15 = vld [vmem:[#allocation14 + $0x208] sm:$0xf]  ;;  %v10367_v13 = vld [vmem:[#allocation14 + $0x2f8] sm:$0xf0] }
 0x5ec   :  { %8610 = vmatpush.bf16.msra.mxu3 %v10190_v21  ;;  %v10989_v21 = vld [vmem:[#allocation14 + $0x7c8] sm:$0xf]  ;;  %v11774_v26 = vld [vmem:[#allocation14 + $0x774] sm:$0xf0] }
 0x5ed   :  { %8602 = vmatmul.bf16.vlgmr.msra.gmra.mxu2 %v15145_v59  ;;  %v10990_v49 = vor.u32 %v11786_v36, %v10989_v21  ;;  %v10925_v21 = vld [vmem:[#allocation14 + $0x748] sm:$0xf]  ;;  %v11706_v34 = vld [vmem:[#allocation14 + $0x554] sm:$0xf0] }
 0x5ee   :  { %8637 = vmatpush.bf16.msrb.mxu1 %v10430_v4  ;;  %8646 = vmatpush.bf16.msrb.mxu2 %v10622_v58  ;;  %v10301_v4 = vld [vmem:[#allocation14 + $0x268] sm:$0xf]  ;;  %v11614_v58 = vld [vmem:[#allocation14 + $0x274] sm:$0xf0] }
 0x5ef   :  { %8620 = vmatpush.bf16.msrb.mxu0 %v10366_v56  ;;  %v10302_v23 = vor.u32 %v11614_v58, %v10301_v4  ;;  %v10973_v56 = vld [vmem:[#allocation14 + $0x7a8] sm:$0xf]  ;;  %v11818_v58 = vld [vmem:[#allocation14 + $0x8d4] sm:$0xf0] }
 0x5f0   :  { %8611 = vmatpush.bf16.msra.mxu3 %v10174_v14  ;;  %8576 = vmatmul.bf16.vlgmr.msra.gmra.mxu0 %v15259_v16  ;;  %v8395_v41 = vpop.f32.mrf.mxu2  ;;  %v11782_v14 = vld [vmem:[#allocation14 + $0x7b4] sm:$0xf0]  ;;  %v11117_v4 = vld [vmem:[#allocation14 + $0x8c8] sm:$0xf] }
 0x5f1   :  { %v15282_v33 = vadd.f32 %v8395_v41, %v15275_v24  ;;  %v10558_v24 = vor.u32 %v11678_v0, %v10557_v19  ;;  %v10974_v17 = vor.u32 %v11782_v14, %v10973_v56  ;;  %v11133_v41 = vld [vmem:[#allocation14 + $0x8e8] sm:$0xf]  ;;  %v11766_v56 = vld [vmem:[#allocation14 + $0x734] sm:$0xf0] }
 0x5f2   :  { %8638 = vmatpush.bf16.msrb.mxu1 %v10414_v3  ;;  %8647 = vmatpush.bf16.msrb.mxu2 %v10606_v54  ;;  %v11610_v3 = vld [vmem:[#allocation14 + $0x254] sm:$0xf0]  ;;  %v10542_v54 = vor.u32 %v11674_v20, %v10541_v61  ;;  %v10877_v19 = vld [vmem:[#allocation14 + $0x6e8] sm:$0xf]  ;;  %v11118_v20 = vor.u32 %v11818_v58, %v11117_v4  ;;  %v11560_v58 = vld [vmem:[#allocation14 + $0xcc] sm:$0xf] }
 0x5f3   :  { %8621 = vmatpush.bf16.msrb.mxu0 %v10350_v11  ;;  %v10286_v11 = vor.u32 %v11610_v3, %v10285_v27  ;;  %v11754_v61 = vld [vmem:[#allocation14 + $0x6d4] sm:$0xf0]  ;;  %v11101_v14 = vld [vmem:[#allocation14 + $0x8a8] sm:$0xf] }
 0x5f4   :  { %8612 = vmatpush.bf16.msra.mxu3 %v10158_v60  ;;  %v10957_v60 = vld [vmem:[#allocation14 + $0x788] sm:$0xf]  ;;  %v11746_v1 = vld [vmem:[#allocation14 + $0x694] sm:$0xf0] }
 0x5f5   :  { %v10958_v53 = vor.u32 %v11778_v5, %v10957_v60  ;;  %v10653_v35 = vld [vmem:[#allocation14 + $0x528] sm:$0xf]  ;;  %v11802_v4 = vld [vmem:[#allocation14 + $0x854] sm:$0xf0] }
 0x5f6   :  { %8639 = vmatpush.bf16.msrb.mxu1 %v10398_v40  ;;  %8648 = vmatpush.bf16.msrb.mxu2 %v10590_v28  ;;  %v11606_v40 = vld [vmem:[#allocation14 + $0x234] sm:$0xf0]  ;;  %v10526_v28 = vor.u32 %v11670_v57, %v10525_v39  ;;  %v10893_v60 = vld [vmem:[#allocation14 + $0x708] sm:$0xf] }
 0x5f7   :  { %8622 = vmatpush.bf16.msrb.mxu0 %v10334_v38  ;;  %v10941_v38 = vld [vmem:[#allocation14 + $0x768] sm:$0xf]  ;;  %v10270_v62 = vor.u32 %v11606_v40, %v10269_v46  ;;  %v11750_v39 = vld [vmem:[#allocation14 + $0x6b4] sm:$0xf0] }
 0x5f8   :  { %8613 = vmatpush.bf16.msra.mxu3 %v10142_v42  ;;  %v8397_v8 = vpop.f32.mrf.mxu2  ;;  %v11822_v42 = vld [vmem:[#allocation14 + $0x8f4] sm:$0xf0]  ;;  %v10942_v0 = vor.u32 %v11774_v26, %v10941_v38  ;;  %v11085_v40 = vld [vmem:[#allocation14 + $0x888] sm:$0xf] }
 0x5f9   :  { %v11134_v12 = vor.u32 %v11822_v42, %v11133_v41  ;;  %v11814_v8 = vld [vmem:[#allocation14 + $0x8b4] sm:$0xf0]  ;;  %v10829_v7 = vld [vmem:[#allocation14 + $0x688] sm:$0xf] }
 0x5fa   :  { %8640 = vmatpush.bf16.msrb.mxu1 %v10382_v43  ;;  %8649 = vmatpush.bf16.msrb.mxu2 %v10574_v50  ;;  %v11602_v43 = vld [vmem:[#allocation14 + $0x214] sm:$0xf0]  ;;  %v11102_v37 = vor.u32 %v11814_v8, %v11101_v14  ;;  %v10637_v26 = vld [vmem:[#allocation14 + $0x508] sm:$0xf]  ;;  %v11556_v8 = vld [vmem:[#allocation14 + $0xac] sm:$0xf] }
 0x5fb   :  { %8623 = vmatpush.bf16.msrb.mxu0 %v10318_v47  ;;  %v11710_v47 = vld [vmem:[#allocation14 + $0x574] sm:$0xf0]  ;;  %v10254_v36 = vor.u32 %v11602_v43, %v10253_v15  ;;  %v11069_v42 = vld [vmem:[#allocation14 + $0x868] sm:$0xf]  ;;  %v11564_v43 = vld [vmem:[#allocation14 + $0xec] sm:$0xf] }
 0x5fc   :  { %8614 = vmatpush.bf16.msra.mxu3 %v10126_v6  ;;  %v11770_v6 = vld [vmem:[#allocation14 + $0x754] sm:$0xf0] }
 0x5fd   :  { %8641 = vmatmul.bf16.vlgmr.msrb.gmra.mxu1 %v15200_v44  ;;  %v11762_v46 = vld [vmem:[#allocation14 + $0x714] sm:$0xf0] }
 0x5fe   :  { %8685 = vmatpush.bf16.msra.mxu1 %v11006_v32  ;;  %8650 = vmatpush.bf16.msrb.mxu2 %v10558_v24  ;;  %v11758_v32 = vld [vmem:[#allocation14 + $0x6f4] sm:$0xf0]  ;;  %v10894_v38 = vor.u32 %v11762_v46, %v10893_v60 }
 0x5ff   :  { %8615 = vmatmul.bf16.vlgmr.msra.gmra.mxu3 %v15162_v2  ;;  %8624 = vmatpush.bf16.msrb.mxu0 %v10302_v23  ;;  %v10878_v24 = vor.u32 %v11758_v32, %v10877_v19  ;;  %v10909_v23 = vld [vmem:[#allocation14 + $0x728] sm:$0xf]  ;;  %v11698_v41 = vld [vmem:[#allocation14 + $0x514] sm:$0xf0]  ;;  %v10351_v19 = vld [vmem:[#allocation14 + $0x2d8] sm:$0xf0] }
 0x600   :  { %8659 = vmatpush.bf16.msrb.mxu3 %v10750_v63  ;;  %v8408_v22 = vpop.f32.mrf.mxu3  ;;  %v10686_v63 = vor.u32 %v11710_v47, %v10685_v45  ;;  %v10910_v57 = vor.u32 %v11766_v56, %v10909_v23  ;;  %v11806_v15 = vld [vmem:[#allocation14 + $0x874] sm:$0xf0]  ;;  %v10638_v32 = vor.u32 %v11698_v41, %v10637_v26  ;;  %v11037_v23 = vld [vmem:[#allocation14 + $0x828] sm:$0xf] }
 0x601   :  { %v8409_v50 = vadd.f32 %v8408_v22, %v15282_v33  ;;  %v10861_v33 = vld [vmem:[#allocation14 + $0x6c8] sm:$0xf]  ;;  %v10370_v22 = vor.u32 %v11628_v55, %v10367_v13  ;;  %v11070_v47 = vor.u32 %v11806_v15, %v11069_v42  ;;  %v11798_v14 = vld [vmem:[#allocation14 + $0x834] sm:$0xf0]  ;;  %v11612_v55 = vld [vmem:[#allocation14 + $0x26c] sm:$0xf] }
 0x602   :  { %8686 = vmatpush.bf16.msra.mxu1 %v10990_v49  ;;  %8651 = vmatpush.bf16.msrb.mxu2 %v10542_v54  ;;  %v10926_v49 = vor.u32 %v11770_v6, %v10925_v21  ;;  %v10862_v3 = vor.u32 %v11754_v61, %v10861_v33  ;;  %v10670_v54 = vor.u32 %v11706_v34, %v10669_v30  ;;  %v11620_v33 = vld [vmem:[#allocation14 + $0x2ac] sm:$0xf]  ;;  %v10335_v61 = vld [vmem:[#allocation14 + $0x2b8] sm:$0xf0]  ;;  %v11794_v60 = vld [vmem:[#allocation14 + $0x814] sm:$0xf0] }
 0x603   :  { %8625 = vmatpush.bf16.msrb.mxu0 %v10286_v11  ;;  %v11702_v11 = vld [vmem:[#allocation14 + $0x534] sm:$0xf0]  ;;  %v10338_v56 = vor.u32 %v11620_v33, %v10335_v61  ;;  %v11596_v42 = vld [vmem:[#allocation14 + $0x1ec] sm:$0xf]  ;;  %v10271_v33 = vld [vmem:[#allocation14 + $0x238] sm:$0xf0] }
 0x604   :  { %8660 = vmatpush.bf16.msrb.mxu3 %v10734_v48  ;;  %v10845_v48 = vld [vmem:[#allocation14 + $0x6a8] sm:$0xf]  ;;  %v11652_v61 = vld [vmem:[#allocation14 + $0x3ac] sm:$0xf] }
 0x606   :  { %8687 = vmatpush.bf16.msra.mxu1 %v10974_v17  ;;  %8652 = vmatpush.bf16.msrb.mxu2 %v10526_v28  ;;  %v11810_v28 = vld [vmem:[#allocation14 + $0x894] sm:$0xf0] }
 0x607   :  { %8626 = vmatpush.bf16.msrb.mxu0 %v10270_v62  ;;  %v11086_v62 = vor.u32 %v11810_v28, %v11085_v40  ;;  %v11552_v28 = vld [vmem:[#allocation14 + $0x8c] sm:$0xf] }
 0x608   :  { %8661 = vmatpush.bf16.msrb.mxu3 %v10718_v9  ;;  %v8410_v27 = vpop.f32.mrf.mxu3  ;;  %v10846_v9 = vor.u32 %v11750_v39, %v10845_v48  ;;  %v10319_v48 = vld [vmem:[#allocation14 + $0x298] sm:$0xf0]  ;;  %v10781_v39 = vld [vmem:[#allocation14 + $0x628] sm:$0xf] }
 0x609   :  { %v10079_v27 = vld [vmem:[#allocation14 + $0xb8] sm:$0xf0] }
 0x60a   :  { %8688 = vmatpush.bf16.msra.mxu1 %v10958_v53  ;;  %8653 = vmatpush.bf16.msrb.mxu2 %v10510_v10  ;;  %v8421_v17 = vpop.f32.mrf.mxu0  ;;  %v10654_v53 = vor.u32 %v11702_v11, %v10653_v35  ;;  %v10830_v10 = vor.u32 %v11746_v1, %v10829_v7  ;;  %v10082_v35 = vor.u32 %v11556_v8, %v10079_v27  ;;  %v11021_v11 = vld [vmem:[#allocation14 + $0x808] sm:$0xf]  ;;  %v11660_v7 = vld [vmem:[#allocation14 + $0x3ec] sm:$0xf]  ;;  %v10495_v1 = vld [vmem:[#allocation14 + $0x3f8] sm:$0xf0] }
 0x60b   :  { %8627 = vmatpush.bf16.msrb.mxu0 %v10254_v36  ;;  %v15289_v5 = vadd.f32 %v8421_v17, %v8409_v50  ;;  %v10111_v50 = vld [vmem:[#allocation14 + $0xf8] sm:$0xf0]  ;;  %v11053_v36 = vld [vmem:[#allocation14 + $0x848] sm:$0xf]  ;;  %v11734_v17 = vld [vmem:[#allocation14 + $0x634] sm:$0xf0]  ;;  %v11022_v26 = vor.u32 %v11794_v60, %v11021_v11  ;;  %v10498_v15 = vor.u32 %v11660_v7, %v10495_v1 }
 0x60c   :  { %8662 = vmatpush.bf16.msrb.mxu3 %v10702_v31  ;;  %v11624_v31 = vld [vmem:[#allocation14 + $0x2cc] sm:$0xf]  ;;  %v10114_v21 = vor.u32 %v11564_v43, %v10111_v50  ;;  %v11054_v30 = vor.u32 %v11802_v4, %v11053_v36  ;;  %v10782_v13 = vor.u32 %v11734_v17, %v10781_v39  ;;  %v10047_v50 = vld [vmem:[#allocation14 + $0x78] sm:$0xf0] }
 0x60d   :  { %8654 = vmatmul.bf16.vlgmr.msrb.gmra.mxu2 %v15219_v18  ;;  %v10354_v6 = vor.u32 %v11624_v31, %v10351_v19  ;;  %v11548_v43 = vld [vmem:[#allocation14 + $0x6c] sm:$0xf]  ;;  %v10287_v19 = vld [vmem:[#allocation14 + $0x258] sm:$0xf0] }
 0x60e   :  { %8689 = vmatpush.bf16.msra.mxu1 %v10942_v0  ;;  %8698 = vmatpush.bf16.msra.mxu2 %v11134_v12  ;;  %v10813_v0 = vld [vmem:[#allocation14 + $0x668] sm:$0xf]  ;;  %v11742_v12 = vld [vmem:[#allocation14 + $0x674] sm:$0xf0]  ;;  %v10223_v36 = vld [vmem:[#allocation14 + $0x1d8] sm:$0xf0] }
 0x60f   :  { %8672 = vmatpush.bf16.msra.mxu0 %v10878_v24  ;;  %v10095_v24 = vld [vmem:[#allocation14 + $0xd8] sm:$0xf0]  ;;  %v11540_v8 = vld [vmem:[#allocation14 + $0x2c] sm:$0xf] }
 0x610   :  { %8663 = vmatpush.bf16.msrb.mxu3 %v10686_v63  ;;  %8628 = vmatmul.bf16.vlgmr.msrb.gmra.mxu0 %v15181_v52  ;;  %v10814_v63 = vor.u32 %v11742_v12, %v10813_v0  ;;  %v10098_v34 = vor.u32 %v11560_v58, %v10095_v24  ;;  %v10479_v0 = vld [vmem:[#allocation14 + $0x3d8] sm:$0xf0]  ;;  %v11544_v58 = vld [vmem:[#allocation14 + $0x4c] sm:$0xf] }
 0x611   :  { %v10031_v24 = vld [vmem:[#allocation14 + $0x58] sm:$0xf0]  ;;  %v11584_v60 = vld [vmem:[#allocation14 + $0x18c] sm:$0xf] }
 0x612   :  { %8690 = vmatpush.bf16.msra.mxu1 %v10926_v49  ;;  %8699 = vmatpush.bf16.msra.mxu2 %v11118_v20  ;;  %v8423_v45 = vpop.f32.mrf.mxu0  ;;  %v10797_v49 = vld [vmem:[#allocation14 + $0x648] sm:$0xf]  ;;  %v11738_v20 = vld [vmem:[#allocation14 + $0x654] sm:$0xf0]  ;;  %v10015_v27 = vld [vmem:[#allocation14 + $0x38] sm:$0xf0] }
 0x613   :  { %8673 = vmatpush.bf16.msra.mxu0 %v10862_v3  ;;  %v10798_v3 = vor.u32 %v11738_v20, %v10797_v49  ;;  %v10463_v49 = vld [vmem:[#allocation14 + $0x3b8] sm:$0xf0]  ;;  %v10018_v11 = vor.u32 %v11540_v8, %v10015_v27  ;;  %v11632_v27 = vld [vmem:[#allocation14 + $0x30c] sm:$0xf] }
 0x614   :  { %8664 = vmatpush.bf16.msrb.mxu3 %v10670_v54  ;;  %v11616_v54 = vld [vmem:[#allocation14 + $0x28c] sm:$0xf]  ;;  %v10447_v39 = vld [vmem:[#allocation14 + $0x398] sm:$0xf0] }
 0x615   :  { %v10322_v40 = vor.u32 %v11616_v54, %v10319_v48  ;;  %v10255_v54 = vld [vmem:[#allocation14 + $0x218] sm:$0xf0]  ;;  %v11648_v48 = vld [vmem:[#allocation14 + $0x38c] sm:$0xf] }
 0x616   :  { %8691 = vmatpush.bf16.msra.mxu1 %v10910_v57  ;;  %8700 = vmatpush.bf16.msra.mxu2 %v11102_v37  ;;  %v11038_v37 = vor.u32 %v11798_v14, %v11037_v23  ;;  %v10207_v23 = vld [vmem:[#allocation14 + $0x1b8] sm:$0xf0]  ;;  %v10466_v14 = vor.u32 %v11652_v61, %v10463_v49 }
 0x617   :  { %8674 = vmatpush.bf16.msra.mxu0 %v10846_v9  ;;  %v10063_v9 = vld [vmem:[#allocation14 + $0x98] sm:$0xf0] }
 0x618   :  { %8665 = vmatpush.bf16.msrb.mxu3 %v10654_v53  ;;  %v10303_v53 = vld [vmem:[#allocation14 + $0x278] sm:$0xf0]  ;;  %v10066_v41 = vor.u32 %v11552_v28, %v10063_v9  ;;  %v10450_v9 = vor.u32 %v11648_v48, %v10447_v39  ;;  %v11680_v39 = vld [vmem:[#allocation14 + $0x48c] sm:$0xf] }
 0x619   :  { %v10431_v1 = vld [vmem:[#allocation14 + $0x378] sm:$0xf0] }
 0x61a   :  { %8692 = vmatpush.bf16.msra.mxu1 %v10894_v38  ;;  %8701 = vmatpush.bf16.msra.mxu2 %v11086_v62  ;;  %v8434_v57 = vpop.f32.mrf.mxu1  ;;  %v10765_v38 = vld [vmem:[#allocation14 + $0x608] sm:$0xf]  ;;  %v11730_v62 = vld [vmem:[#allocation14 + $0x614] sm:$0xf0]  ;;  %v10399_v49 = vld [vmem:[#allocation14 + $0x338] sm:$0xf0] }
 0x61b   :  { %8675 = vmatpush.bf16.msra.mxu0 %v10830_v10  ;;  %v15294_v46 = vadd.f32 %v8434_v57, %v15289_v5  ;;  %v10306_v5 = vor.u32 %v11612_v55, %v10303_v53  ;;  %v11608_v10 = vld [vmem:[#allocation14 + $0x24c] sm:$0xf]  ;;  %v10766_v31 = vor.u32 %v11730_v62, %v10765_v38  ;;  %v10623_v62 = vld [vmem:[#allocation14 + $0x4f8] sm:$0xf0] }
 0x61c   :  { %8666 = vmatpush.bf16.msrb.mxu3 %v10638_v32  ;;  %v11656_v32 = vld [vmem:[#allocation14 + $0x3cc] sm:$0xf] }
 0x61d   :  { %8693 = vmatmul.bf16.vlgmr.msra.gmra.mxu1 %v15259_v16  ;;  %v10482_v4 = vor.u32 %v11656_v32, %v10479_v0  ;;  %v11756_v57 = vld [vmem:[#allocation14 + $0x6ec] sm:$0xf]  ;;  %v10415_v32 = vld [vmem:[#allocation14 + $0x358] sm:$0xf0] }
 0x61e   :  { %8737 = vmatpush.bf16.msrb.mxu1 %v10370_v22  ;;  %8702 = vmatpush.bf16.msra.mxu2 %v11070_v47  ;;  %v10239_v22 = vld [vmem:[#allocation14 + $0x1f8] sm:$0xf0]  ;;  %v10050_v47 = vor.u32 %v11548_v43, %v10047_v50  ;;  %v11536_v55 = vld [vmem:[#allocation14 + $0xc] sm:$0xf] }
 0x61f   :  { %8667 = vmatmul.bf16.vlgmr.msrb.gmra.mxu3 %v15234_v25  ;;  %8676 = vmatpush.bf16.msra.mxu0 %v10814_v63  ;;  %v10242_v12 = vor.u32 %v11596_v42, %v10239_v22  ;;  %v11604_v63 = vld [vmem:[#allocation14 + $0x22c] sm:$0xf]  ;;  %v10863_v42 = vld [vmem:[#allocation14 + $0x6d8] sm:$0xf0] }
 0x620   :  { %8711 = vmatpush.bf16.msra.mxu3 %v10114_v21  ;;  %v11592_v21 = vld [vmem:[#allocation14 + $0x1cc] sm:$0xf] }
 0x621   :  { %v10226_v20 = vor.u32 %v11592_v21, %v10223_v36  ;;  %v11644_v53 = vld [vmem:[#allocation14 + $0x36c] sm:$0xf]  ;;  %v10847_v36 = vld [vmem:[#allocation14 + $0x6b8] sm:$0xf0] }
 0x622   :  { %8738 = vmatpush.bf16.msrb.mxu1 %v10354_v6  ;;  %8703 = vmatpush.bf16.msra.mxu2 %v11054_v30  ;;  %v8436_v45 = vpop.f32.mrf.mxu1  ;;  %v10290_v6 = vor.u32 %v11608_v10, %v10287_v19  ;;  %v10034_v30 = vor.u32 %v11544_v58, %v10031_v24  ;;  %v11692_v38 = vld [vmem:[#allocation14 + $0x4ec] sm:$0xf]  ;;  %v10434_v43 = vor.u32 %v11644_v53, %v10431_v1  ;;  %v10159_v58 = vld [vmem:[#allocation14 + $0x158] sm:$0xf0] }
 0x623   :  { %8677 = vmatpush.bf16.msra.mxu0 %v10798_v3  ;;  %v11600_v3 = vld [vmem:[#allocation14 + $0x20c] sm:$0xf]  ;;  %v10626_v50 = vor.u32 %v11692_v38, %v10623_v62 }
 0x624   :  { %8712 = vmatpush.bf16.msra.mxu3 %v10098_v34  ;;  %v11588_v34 = vld [vmem:[#allocation14 + $0x1ac] sm:$0xf]  ;;  %v10258_v28 = vor.u32 %v11600_v3, %v10255_v54  ;;  %v10383_v3 = vld [vmem:[#allocation14 + $0x318] sm:$0xf0] }
 0x625   :  { %v10210_v17 = vor.u32 %v11588_v34, %v10207_v23  ;;  %v11640_v10 = vld [vmem:[#allocation14 + $0x34c] sm:$0xf]  ;;  %v10831_v23 = vld [vmem:[#allocation14 + $0x698] sm:$0xf0] }
 0x626   :  { %8739 = vmatpush.bf16.msrb.mxu1 %v10338_v56  ;;  %8704 = vmatpush.bf16.msra.mxu2 %v11038_v37  ;;  %v10274_v56 = vor.u32 %v11604_v63, %v10271_v33  ;;  %v10879_v37 = vld [vmem:[#allocation14 + $0x6f8] sm:$0xf0]  ;;  %v11688_v0 = vld [vmem:[#allocation14 + $0x4cc] sm:$0xf]  ;;  %v10418_v24 = vor.u32 %v11640_v10, %v10415_v32 }
 0x627   :  { %8678 = vmatpush.bf16.msra.mxu0 %v10782_v13  ;;  %v9999_v13 = vld [vmem:[#allocation14 + $0x18] sm:$0xf0]  ;;  %v10882_v7 = vor.u32 %v11756_v57, %v10879_v37  ;;  %v11748_v21 = vld [vmem:[#allocation14 + $0x6ac] sm:$0xf] }
 0x628   :  { %8713 = vmatpush.bf16.msra.mxu3 %v10082_v35  ;;  %v10002_v22 = vor.u32 %v11536_v55, %v9999_v13  ;;  %v11636_v33 = vld [vmem:[#allocation14 + $0x32c] sm:$0xf]  ;;  %v10850_v61 = vor.u32 %v11748_v21, %v10847_v36  ;;  %v10815_v37 = vld [vmem:[#allocation14 + $0x678] sm:$0xf0]  ;;  %v10386_v55 = vor.u32 %v11632_v27, %v10383_v3 }
 0x629   :  { %v11744_v34 = vld [vmem:[#allocation14 + $0x68c] sm:$0xf]  ;;  %v10543_v21 = vld [vmem:[#allocation14 + $0x458] sm:$0xf0] }
 0x62a   :  { %8740 = vmatpush.bf16.msrb.mxu1 %v10322_v40  ;;  %8705 = vmatpush.bf16.msra.mxu2 %v11022_v26  ;;  %v15298_v35 = vpop.f32.mrf.mxu1  ;;  %v10191_v40 = vld [vmem:[#allocation14 + $0x198] sm:$0xf0]  ;;  %v10834_v48 = vor.u32 %v11744_v34, %v10831_v23  ;;  %v11740_v57 = vld [vmem:[#allocation14 + $0x66c] sm:$0xf] }
 0x62b   :  { %8679 = vmatpush.bf16.msra.mxu0 %v10766_v31  ;;  %v10194_v26 = vor.u32 %v11584_v60, %v10191_v40  ;;  %v11007_v60 = vld [vmem:[#allocation14 + $0x7f8] sm:$0xf0]  ;;  %v11568_v40 = vld [vmem:[#allocation14 + $0x10c] sm:$0xf]  ;;  %v10818_v1 = vor.u32 %v11740_v57, %v10815_v37 }
 0x62c   :  { %8714 = vmatpush.bf16.msra.mxu3 %v10066_v41  ;;  %v11752_v41 = vld [vmem:[#allocation14 + $0x6cc] sm:$0xf]  ;;  %v10527_v34 = vld [vmem:[#allocation14 + $0x438] sm:$0xf0] }
 0x62d   :  { %8706 = vmatmul.bf16.vlgmr.msra.gmra.mxu2 %v15268_v29  ;;  %v10866_v19 = vor.u32 %v11752_v41, %v10863_v42  ;;  %v11724_v53 = vld [vmem:[#allocation14 + $0x5ec] sm:$0xf]  ;;  %v11854_v27 = vld [vmem:[#allocation17 + $0xf4] sm:$0xf0] }
 0x62e   :  { %8741 = vmatpush.bf16.msrb.mxu1 %v10306_v5  ;;  %8750 = vmatpush.bf16.msrb.mxu2 %v10498_v15  ;;  %v11580_v5 = vld [vmem:[#allocation14 + $0x16c] sm:$0xf]  ;;  %v10175_v15 = vld [vmem:[#allocation14 + $0x178] sm:$0xf0] }
 0x62f   :  { %8724 = vmatpush.bf16.msrb.mxu0 %v10242_v12  ;;  %v10607_v12 = vld [vmem:[#allocation14 + $0x4d8] sm:$0xf0]  ;;  %v11676_v62 = vld [vmem:[#allocation14 + $0x46c] sm:$0xf] }
 0x630   :  { %8715 = vmatpush.bf16.msra.mxu3 %v10050_v47  ;;  %8680 = vmatmul.bf16.vlgmr.msra.gmra.mxu0 %v15249_v51  ;;  %v8447_v31 = vpop.f32.mrf.mxu2  ;;  %v10178_v47 = vor.u32 %v11580_v5, %v10175_v15  ;;  %v10610_v63 = vor.u32 %v11688_v0, %v10607_v12  ;;  %v11736_v41 = vld [vmem:[#allocation14 + $0x64c] sm:$0xf]  ;;  %v10991_v15 = vld [vmem:[#allocation14 + $0x7d8] sm:$0xf0] }
 0x631   :  { %v15301_v45 = vadd.f32 %v8447_v31, %v15294_v46  ;;  %v11684_v46 = vld [vmem:[#allocation14 + $0x4ac] sm:$0xf]  ;;  %v10735_v31 = vld [vmem:[#allocation14 + $0x5d8] sm:$0xf0] }
 0x632   :  { %8742 = vmatpush.bf16.msrb.mxu1 %v10290_v6  ;;  %8751 = vmatpush.bf16.msrb.mxu2 %v10482_v4  ;;  %v8488_v6 = vpop.f32.mrf.mxu1  ;;  %v11576_v4 = vld [vmem:[#allocation14 + $0x14c] sm:$0xf] }
 0x633   :  { %8725 = vmatpush.bf16.msrb.mxu0 %v10226_v20  ;;  %v10591_v20 = vld [vmem:[#allocation14 + $0x4b8] sm:$0xf0]  ;;  %v11784_v5 = vld [vmem:[#allocation14 + $0x7cc] sm:$0xf] }
 0x634   :  { %8716 = vmatpush.bf16.msra.mxu3 %v10034_v30  ;;  %v10162_v30 = vor.u32 %v11576_v4, %v10159_v58  ;;  %v10594_v8 = vor.u32 %v11684_v46, %v10591_v20  ;;  %v11720_v10 = vld [vmem:[#allocation14 + $0x5cc] sm:$0xf]  ;;  %v10994_v12 = vor.u32 %v11784_v5, %v10991_v15  ;;  %v10783_v6 = vld [vmem:[#allocation14 + $0x638] sm:$0xf0] }
 0x635   :  { %v11732_v36 = vld [vmem:[#allocation14 + $0x62c] sm:$0xf]  ;;  %v10975_v58 = vld [vmem:[#allocation14 + $0x7b8] sm:$0xf0] }
 0x636   :  { %8743 = vmatpush.bf16.msrb.mxu1 %v10274_v56  ;;  %8752 = vmatpush.bf16.msrb.mxu2 %v10466_v14  ;;  %v10143_v56 = vld [vmem:[#allocation14 + $0x138] sm:$0xf0]  ;;  %v10402_v14 = vor.u32 %v11636_v33, %v10399_v49  ;;  %v11780_v4 = vld [vmem:[#allocation14 + $0x7ac] sm:$0xf]  ;;  %v10786_v46 = vor.u32 %v11732_v36, %v10783_v6 }
 0x637   :  { %8726 = vmatpush.bf16.msrb.mxu0 %v10210_v17  ;;  %v10575_v17 = vld [vmem:[#allocation14 + $0x498] sm:$0xf0]  ;;  %v10978_v20 = vor.u32 %v11780_v4, %v10975_v58  ;;  %v11728_v23 = vld [vmem:[#allocation14 + $0x60c] sm:$0xf] }
 0x638   :  { %8717 = vmatpush.bf16.msra.mxu3 %v10018_v11  ;;  %v8449_v54 = vpop.f32.mrf.mxu2  ;;  %v11788_v11 = vld [vmem:[#allocation14 + $0x7ec] sm:$0xf]  ;;  %v10578_v13 = vor.u32 %v11680_v39, %v10575_v17  ;;  %v10719_v49 = vld [vmem:[#allocation14 + $0x5b8] sm:$0xf0] }
 0x639   :  { %v11010_v38 = vor.u32 %v11788_v11, %v11007_v60  ;;  %v11712_v54 = vld [vmem:[#allocation14 + $0x58c] sm:$0xf]  ;;  %v10511_v11 = vld [vmem:[#allocation14 + $0x418] sm:$0xf0] }
 0x63a   :  { %8744 = vmatpush.bf16.msrb.mxu1 %v10258_v28  ;;  %8753 = vmatpush.bf16.msrb.mxu2 %v10450_v9  ;;  %v10127_v28 = vld [vmem:[#allocation14 + $0x118] sm:$0xf0]  ;;  %v11664_v37 = vld [vmem:[#allocation14 + $0x40c] sm:$0xf] }
 0x63b   :  { %8727 = vmatpush.bf16.msrb.mxu0 %v10194_v26  ;;  %v10559_v26 = vld [vmem:[#allocation14 + $0x478] sm:$0xf0]  ;;  %v10130_v42 = vor.u32 %v11568_v40, %v10127_v28  ;;  %v11820_v28 = vld [vmem:[#allocation14 + $0x8ec] sm:$0xf] }
 0x63c   :  { %8718 = vmatpush.bf16.msra.mxu3 %v10002_v22  ;;  %v15305_v9 = vpop.f32.mrf.mxu1  ;;  %v10799_v22 = vld [vmem:[#allocation14 + $0x658] sm:$0xf0]  ;;  %v11764_v4 = vld [vmem:[#allocation14 + $0x72c] sm:$0xf] }
 0x63d   :  { %8745 = vmatmul.bf16.vlgmr.msrb.gmra.mxu1 %v15181_v52  ;;  %v11572_v52 = vld [vmem:[#allocation14 + $0x12c] sm:$0xf]  ;;  %v10802_v0 = vor.u32 %v11736_v41, %v10799_v22  ;;  %v10943_v40 = vld [vmem:[#allocation14 + $0x778] sm:$0xf0] }
 0x63e   :  { %8789 = vmatpush.bf16.msra.mxu1 %v10882_v7  ;;  %8754 = vmatpush.bf16.msrb.mxu2 %v10434_v43  ;;  %v10751_v7 = vld [vmem:[#allocation14 + $0x5f8] sm:$0xf0]  ;;  %v11768_v22 = vld [vmem:[#allocation14 + $0x74c] sm:$0xf] }
 0x63f   :  { %8719 = vmatmul.bf16.vlgmr.msra.gmra.mxu3 %v15145_v59  ;;  %8728 = vmatpush.bf16.msrb.mxu0 %v10178_v47  ;;  %v10146_v59 = vor.u32 %v11572_v52, %v10143_v56  ;;  %v10754_v43 = vor.u32 %v11724_v53, %v10751_v7  ;;  %v11672_v47 = vld [vmem:[#allocation14 + $0x44c] sm:$0xf]  ;;  %v10767_v52 = vld [vmem:[#allocation14 + $0x618] sm:$0xf0]  ;;  %v11253_v7 = vld [vmem:[#allocation17 + $0xe0] sm:$0xf] }
 0x640   :  { %8763 = vmatpush.bf16.msrb.mxu3 %v10626_v50  ;;  %v10562_v50 = vor.u32 %v11676_v62, %v10559_v26  ;;  %v15309_v32 = vpop.f32.mrf.mxu2  ;;  %v10546_v33 = vor.u32 %v11672_v47, %v10543_v21  ;;  %v11776_v56 = vld [vmem:[#allocation14 + $0x78c] sm:$0xf]  ;;  %v10770_v57 = vor.u32 %v11728_v23, %v10767_v52  ;;  %v10687_v26 = vld [vmem:[#allocation14 + $0x578] sm:$0xf0]  ;;  %v15319_v23 = vld [vmem:[#allocation15] sm:$0xf] }
 0x641   :  { %v11708_v62 = vld [vmem:[#allocation14 + $0x56c] sm:$0xf]  ;;  %v10927_v15 = vld [vmem:[#allocation14 + $0x758] sm:$0xf0]  ;;  %v6913_v52 = vperm.slane %v15319_v23, 1 }
 0x642   :  { %8790 = vmatpush.bf16.msra.mxu1 %v10866_v19  ;;  %8755 = vmatpush.bf16.msrb.mxu2 %v10418_v24  ;;  %v15307_v19 = vpop.f32.mrf.mxu3  ;;  %v10738_v24 = vor.u32 %v11720_v10, %v10735_v31  ;;  %v10690_v10 = vor.u32 %v11708_v62, %v10687_v26  ;;  %v11245_v31 = vld [vmem:[#allocation17 + $0xd0] sm:$0xf]  ;;  %v10671_v47 = vld [vmem:[#allocation14 + $0x558] sm:$0xf0]  ;;  %v10930_v36 = vor.u32 %v11768_v22, %v10927_v15  ;;  %v11189_v15 = vld [vmem:[#allocation17 + $0x60] sm:$0xf] }
 0x643   :  { %8729 = vmatpush.bf16.msrb.mxu0 %v10162_v30  ;;  %v11668_v30 = vld [vmem:[#allocation14 + $0x42c] sm:$0xf] }
 0x644   :  { %8764 = vmatpush.bf16.msrb.mxu3 %v10610_v63  ;;  %v8540_v63 = vpop.f32.mrf.mxu1  ;;  %v10530_v3 = vor.u32 %v11668_v30, %v10527_v34  ;;  %v11700_v30 = vld [vmem:[#allocation14 + $0x52c] sm:$0xf]  ;;  %v10655_v34 = vld [vmem:[#allocation14 + $0x538] sm:$0xf0] }
 0x645   :  { %v10911_v63 = vld [vmem:[#allocation14 + $0x738] sm:$0xf0] }
 0x646   :  { %8791 = vmatpush.bf16.msra.mxu1 %v10850_v61  ;;  %8756 = vmatpush.bf16.msrb.mxu2 %v10402_v14  ;;  %v11716_v61 = vld [vmem:[#allocation14 + $0x5ac] sm:$0xf]  ;;  %v10959_v14 = vld [vmem:[#allocation14 + $0x798] sm:$0xf0] }
 0x647   :  { %8730 = vmatpush.bf16.msrb.mxu0 %v10146_v59  ;;  %v10962_v59 = vor.u32 %v11776_v56, %v10959_v14  ;;  %v10914_v56 = vor.u32 %v11764_v4, %v10911_v63  ;;  %v11834_v4 = vld [vmem:[#allocation17 + $0x54] sm:$0xf0] }
 0x648   :  { %8765 = vmatpush.bf16.msrb.mxu3 %v10594_v8  ;;  %v11261_v8 = vld [vmem:[#allocation17 + $0xf0] sm:$0xf]  ;;  %v8501_v17 = vpop.f32.mrf.mxu2 }
 0x649   :  { %v11262_v60 = vor.u32 %v11854_v27, %v11261_v8  ;;  %v10895_v27 = vld [vmem:[#allocation14 + $0x718] sm:$0xf0] }
 0x64a   :  { %8792 = vmatpush.bf16.msra.mxu1 %v10834_v48  ;;  %8757 = vmatpush.bf16.msrb.mxu2 %v10386_v55  ;;  %v10703_v48 = vld [vmem:[#allocation14 + $0x598] sm:$0xf0]  ;;  %v8462_v39 = vpop.f32.mrf.mxu3 }
 0x64b   :  { %8731 = vmatpush.bf16.msrb.mxu0 %v10130_v42  ;;  %v11135_v55 = vld [vmem:[#allocation14 + $0x8f8] sm:$0xf0]  ;;  %v10706_v53 = vor.u32 %v11712_v54, %v10703_v48  ;;  %v10658_v54 = vor.u32 %v11700_v30, %v10655_v34  ;;  %v11229_v48 = vld [vmem:[#allocation17 + $0xb0] sm:$0xf] }
 0x64c   :  { %8766 = vmatpush.bf16.msrb.mxu3 %v10578_v13  ;;  %v15313_v13 = vpop.f32.mrf.mxu0  ;;  %v11138_v42 = vor.u32 %v11820_v28, %v11135_v55  ;;  %v11846_v39 = vld [vmem:[#allocation17 + $0xb4] sm:$0xf0] }
 0x64d   :  { %8758 = vmatmul.bf16.vlgmr.msrb.gmra.mxu2 %v15200_v44  ;;  %v10722_v44 = vor.u32 %v11716_v61, %v10719_v49  ;;  %v11103_v61 = vld [vmem:[#allocation14 + $0x8b8] sm:$0xf0] }
 0x64e   :  { %8793 = vmatpush.bf16.msra.mxu1 %v10818_v1  ;;  %8802 = vmatpush.bf16.msra.mxu2 %v11010_v38  ;;  %v11852_v1 = vld [vmem:[#allocation17 + $0xe4] sm:$0xf0]  ;;  %v10514_v38 = vor.u32 %v11664_v37, %v10511_v11  ;;  %v8487_v37 = vadd.f32 %v15298_v35, %v6913_v52  ;;  %v11838_v28 = vld [vmem:[#allocation17 + $0x74] sm:$0xf0]  ;;  %v11853_v52 = vld [vmem:[#allocation17 + $0xf4] sm:$0xf] }
 0x64f   :  { %8776 = vmatpush.bf16.msra.mxu0 %v10754_v43  ;;  %v11254_v5 = vor.u32 %v11852_v1, %v11253_v7  ;;  %v11816_v43 = vld [vmem:[#allocation14 + $0x8cc] sm:$0xf]  ;;  %v11071_v1 = vld [vmem:[#allocation14 + $0x878] sm:$0xf0] }
 0x650   :  { %8767 = vmatpush.bf16.msrb.mxu3 %v10562_v50  ;;  %8732 = vmatmul.bf16.vlgmr.msrb.gmra.mxu0 %v15162_v2  ;;  %v11772_v2 = vld [vmem:[#allocation14 + $0x76c] sm:$0xf]  ;;  %v11119_v50 = vld [vmem:[#allocation14 + $0x8d8] sm:$0xf0] }
 0x651   :  { %v10946_v41 = vor.u32 %v11772_v2, %v10943_v40  ;;  %v11122_v6 = vor.u32 %v11816_v43, %v11119_v50  ;;  %v11197_v40 = vld [vmem:[#allocation17 + $0x70] sm:$0xf]  ;;  %v11804_v7 = vld [vmem:[#allocation14 + $0x86c] sm:$0xf]  ;;  %v11870_v30 = vld [vmem:[#allocation17 + $0x174] sm:$0xf0] }
 0x652   :  { %8794 = vmatpush.bf16.msra.mxu1 %v10802_v0  ;;  %8803 = vmatpush.bf16.msra.mxu2 %v10994_v12  ;;  %v11850_v0 = vld [vmem:[#allocation17 + $0xd4] sm:$0xf0]  ;;  %v11704_v12 = vld [vmem:[#allocation14 + $0x54c] sm:$0xf]  ;;  %v8512_v21 = vpop.f32.mrf.mxu3  ;;  %v15316_v58 = vpop.f32.mrf.mxu2  ;;  %v11198_v35 = vor.u32 %v11838_v28, %v11197_v40 }
 0x653   :  { %8777 = vmatpush.bf16.msra.mxu0 %v10738_v24  ;;  %v11246_v24 = vor.u32 %v11850_v0, %v11245_v31  ;;  %v11836_v43 = vld [vmem:[#allocation17 + $0x64] sm:$0xf0]  ;;  %v11055_v31 = vld [vmem:[#allocation14 + $0x858] sm:$0xf0] }
 0x654   :  { %8768 = vmatpush.bf16.msrb.mxu3 %v10546_v33  ;;  %v11812_v33 = vld [vmem:[#allocation14 + $0x8ac] sm:$0xf]  ;;  %v8475_v49 = vpop.f32.mrf.mxu0 }
 0x655   :  { %v11106_v14 = vor.u32 %v11812_v33, %v11103_v61  ;;  %v11796_v33 = vld [vmem:[#allocation14 + $0x82c] sm:$0xf]  ;;  %v11039_v61 = vld [vmem:[#allocation14 + $0x838] sm:$0xf0]  ;;  %v11205_v49 = vld [vmem:[#allocation17 + $0x80] sm:$0xf] }
 0x656   :  { %8795 = vmatpush.bf16.msra.mxu1 %v10786_v46  ;;  %8804 = vmatpush.bf16.msra.mxu2 %v10978_v20  ;;  %v11237_v46 = vld [vmem:[#allocation17 + $0xc0] sm:$0xf]  ;;  %v11848_v20 = vld [vmem:[#allocation17 + $0xc4] sm:$0xf0] }
 0x657   :  { %8778 = vmatpush.bf16.msra.mxu0 %v10722_v44  ;;  %v11760_v44 = vld [vmem:[#allocation14 + $0x70c] sm:$0xf]  ;;  %v11238_v8 = vor.u32 %v11848_v20, %v11237_v46 }
 0x658   :  { %8769 = vmatpush.bf16.msrb.mxu3 %v10530_v3  ;;  %v11087_v3 = vld [vmem:[#allocation14 + $0x898] sm:$0xf0]  ;;  %v10898_v2 = vor.u32 %v11760_v44, %v10895_v27  ;;  %v11840_v20 = vld [vmem:[#allocation17 + $0x84] sm:$0xf0]  ;;  %v11042_v44 = vor.u32 %v11796_v33, %v11039_v61  ;;  %v11231_v33 = vld [vmem:[#allocation17 + $0xb8] sm:$0xf0] }
 0x659   :  { %v11832_v27 = vld [vmem:[#allocation17 + $0x44] sm:$0xf0]  ;;  %v11293_v61 = vld [vmem:[#allocation17 + $0x130] sm:$0xf] }
 0x65a   :  { %8796 = vmatpush.bf16.msra.mxu1 %v10770_v57  ;;  %8805 = vmatpush.bf16.msra.mxu2 %v10962_v59  ;;  %v15322_v17 = vpop.f32.mrf.mxu1  ;;  %v11696_v57 = vld [vmem:[#allocation14 + $0x50c] sm:$0xf]  ;;  %v10639_v59 = vld [vmem:[#allocation14 + $0x518] sm:$0xf0]  ;;  %v8514_v11 = vpop.f32.mrf.mxu3 }
 0x65b   :  { %8779 = vmatpush.bf16.msra.mxu0 %v10706_v53  ;;  %v8553_v55 = vpop.f32.mrf.mxu2  ;;  %v11230_v53 = vor.u32 %v11846_v39, %v11229_v48  ;;  %v10642_v26 = vor.u32 %v11696_v57, %v10639_v59  ;;  %v11851_v39 = vld [vmem:[#allocation17 + $0xe4] sm:$0xf]  ;;  %v11255_v57 = vld [vmem:[#allocation17 + $0xe8] sm:$0xf0]  ;;  %v11165_v59 = vld [vmem:[#allocation17 + $0x30] sm:$0xf] }
 0x65c   :  { %8770 = vmatpush.bf16.msrb.mxu3 %v10514_v38  ;;  %v8500_v38 = vadd.f32 %v15309_v32, %v8487_v37  ;;  %v8525_v62 = vpop.f32.mrf.mxu0  ;;  %v11842_v32 = vld [vmem:[#allocation17 + $0x94] sm:$0xf0] }
 0x65d   :  { %8797 = vmatmul.bf16.vlgmr.msra.gmra.mxu1 %v15249_v51  ;;  %v10674_v51 = vor.u32 %v11704_v12, %v10671_v47  ;;  %v11213_v12 = vld [vmem:[#allocation17 + $0x90] sm:$0xf]  ;;  %v11830_v11 = vld [vmem:[#allocation17 + $0x34] sm:$0xf0] }
 0x65e   :  { %9247 = vmatpush.bf16.msrb.mxu1 %v11262_v60  ;;  %8806 = vmatpush.bf16.msra.mxu2 %v10946_v41  ;;  %v11221_v41 = vld [vmem:[#allocation17 + $0xa0] sm:$0xf]  ;;  %v8513_v22 = vadd.f32 %v8512_v21, %v8500_v38  ;;  %v11214_v63 = vor.u32 %v11842_v32, %v11213_v12  ;;  %v11247_v38 = vld [vmem:[#allocation17 + $0xd8] sm:$0xf0]  ;;  %v11826_v12 = vld [vmem:[#allocation17 + $0x14] sm:$0xf0] }
 0x65f   :  { %8771 = vmatmul.bf16.vlgmr.msrb.gmra.mxu3 %v15219_v18  ;;  %8780 = vmatpush.bf16.msra.mxu0 %v10690_v10  ;;  %v11808_v18 = vld [vmem:[#allocation14 + $0x88c] sm:$0xf] }
 0x660   :  { %8815 = vmatpush.bf16.msra.mxu3 %v11138_v42  ;;  %v11090_v60 = vor.u32 %v11808_v18, %v11087_v3  ;;  %v11844_v42 = vld [vmem:[#allocation17 + $0xa4] sm:$0xf0]  ;;  %v8526_v0 = vadd.f32 %v8525_v62, %v8513_v22  ;;  %v11023_v3 = vld [vmem:[#allocation14 + $0x818] sm:$0xf0]  ;;  %v11157_v62 = vld [vmem:[#allocation17 + $0x20] sm:$0xf] }
 0x661   :  { %v11222_v50 = vor.u32 %v11844_v42, %v11221_v41  ;;  %v11800_v10 = vld [vmem:[#allocation14 + $0x84c] sm:$0xf]  ;;  %v11866_v22 = vld [vmem:[#allocation17 + $0x154] sm:$0xf0] }
 0x662   :  { %9248 = vmatpush.bf16.msrb.mxu1 %v11254_v5  ;;  %8807 = vmatpush.bf16.msra.mxu2 %v10930_v36  ;;  %v11074_v5 = vor.u32 %v11804_v7, %v11071_v1  ;;  %v8592_v47 = vpop.f32.mrf.mxu1  ;;  %v11190_v36 = vor.u32 %v11836_v43, %v11189_v15  ;;  %v11058_v21 = vor.u32 %v11800_v10, %v11055_v31  ;;  %v11792_v18 = vld [vmem:[#allocation14 + $0x80c] sm:$0xf]  ;;  %v11849_v1 = vld [vmem:[#allocation17 + $0xd4] sm:$0xf]  ;;  %v11847_v31 = vld [vmem:[#allocation17 + $0xc4] sm:$0xf] }
 0x663   :  { %8781 = vmatpush.bf16.msra.mxu0 %v10674_v51  ;;  %v8539_v51 = vadd.f32 %v15305_v9, %v8526_v0  ;;  %v11026_v37 = vor.u32 %v11792_v18, %v11023_v3  ;;  %v11828_v42 = vld [vmem:[#allocation17 + $0x24] sm:$0xf0]  ;;  %v11250_v10 = vor.u32 %v11849_v1, %v11247_v38  ;;  %v11301_v47 = vld [vmem:[#allocation17 + $0x140] sm:$0xf] }
 0x664   :  { %8816 = vmatpush.bf16.msra.mxu3 %v11122_v6  ;;  %v11181_v6 = vld [vmem:[#allocation17 + $0x50] sm:$0xf]  ;;  %v8527_v46 = vpop.f32.mrf.mxu0  ;;  %v11158_v0 = vor.u32 %v11828_v42, %v11157_v62  ;;  %v11869_v62 = vld [vmem:[#allocation17 + $0x174] sm:$0xf]  ;;  %v11207_v42 = vld [vmem:[#allocation17 + $0x88] sm:$0xf0] }
 0x665   :  { %v11182_v34 = vor.u32 %v11834_v4, %v11181_v6  ;;  %v8552_v9 = vadd.f32 %v15316_v58, %v8539_v51  ;;  %v11166_v58 = vor.u32 %v11830_v11, %v11165_v59  ;;  %v11845_v6 = vld [vmem:[#allocation17 + $0xb4] sm:$0xf]  ;;  %v11141_v51 = vld [vmem:[#allocation17] sm:$0xf]  ;;  %v11824_v46 = vld [vmem:[#allocation17 + $0x4] sm:$0xf0] }
 0x666   :  { %9249 = vmatpush.bf16.msrb.mxu1 %v11246_v24  ;;  %8808 = vmatpush.bf16.msra.mxu2 %v10914_v56  ;;  %v8564_v24 = vpop.f32.mrf.mxu3  ;;  %v11263_v56 = vld [vmem:[#allocation17 + $0xf8] sm:$0xf0] }
 0x667   :  { %8782 = vmatpush.bf16.msra.mxu0 %v10658_v54  ;;  %v11266_v54 = vor.u32 %v11853_v52, %v11263_v56  ;;  %v8565_v55 = vadd.f32 %v8564_v24, %v8552_v9  ;;  %v11285_v52 = vld [vmem:[#allocation17 + $0x120] sm:$0xf]  ;;  %v11860_v56 = vld [vmem:[#allocation17 + $0x124] sm:$0xf0]  ;;  %v11215_v59 = vld [vmem:[#allocation17 + $0x98] sm:$0xf0] }
 0x668   :  { %8817 = vmatpush.bf16.msra.mxu3 %v11106_v14  ;;  %v11286_v3 = vor.u32 %v11860_v56, %v11285_v52  ;;  %v11823_v52 = vld [vmem:[#allocation17 + $0x4] sm:$0xf]  ;;  %v11143_v56 = vld [vmem:[#allocation17 + $0x8] sm:$0xf0] }
 0x66a   :  { %9250 = vmatpush.bf16.msrb.mxu1 %v11238_v8  ;;  %8809 = vmatpush.bf16.msra.mxu2 %v10898_v2  ;;  %v11173_v8 = vld [vmem:[#allocation17 + $0x40] sm:$0xf] }
 0x66b   :  { %8783 = vmatpush.bf16.msra.mxu0 %v10642_v26  ;;  %v11174_v48 = vor.u32 %v11832_v27, %v11173_v8  ;;  %v11317_v2 = vld [vmem:[#allocation17 + $0x160] sm:$0xf]  ;;  %v8461_v26 = vadd.f32 %v15307_v19, %v15301_v45  ;;  %v11239_v45 = vld [vmem:[#allocation17 + $0xc8] sm:$0xf0]  ;;  %v11149_v19 = vld [vmem:[#allocation17 + $0x10] sm:$0xf]  ;;  %v11142_v8 = vor.u32 %v11824_v46, %v11141_v51 }
 0x66c   :  { %8818 = vmatpush.bf16.msra.mxu3 %v11090_v60  ;;  %v11868_v60 = vld [vmem:[#allocation17 + $0x164] sm:$0xf0]  ;;  %v11843_v27 = vld [vmem:[#allocation17 + $0xa4] sm:$0xf]  ;;  %v11303_v46 = vld [vmem:[#allocation17 + $0x148] sm:$0xf0] }
 0x66d   :  { %8810 = vmatmul.bf16.vlgmr.msra.gmra.mxu2 %v15259_v16  ;;  %v11325_v16 = vld [vmem:[#allocation17 + $0x170] sm:$0xf]  ;;  %v11318_v28 = vor.u32 %v11868_v60, %v11317_v2  ;;  %v8577_v7 = vpop.f32.mrf.mxu0  ;;  %v8474_v15 = vadd.f32 %v15313_v13, %v8461_v26  ;;  %v11833_v2 = vld [vmem:[#allocation17 + $0x54] sm:$0xf]  ;;  %v11327_v26 = vld [vmem:[#allocation17 + $0x178] sm:$0xf0] }
 0x66e   :  { %9251 = vmatpush.bf16.msrb.mxu1 %v11230_v53  ;;  %8784 = vmatmul.bf16.vlgmr.msra.gmra.mxu0 %v15234_v25  ;;  %v11326_v14 = vor.u32 %v11870_v30, %v11325_v16  ;;  %v11206_v25 = vor.u32 %v11840_v20, %v11205_v49  ;;  %v8566_v40 = vpop.f32.mrf.mxu3  ;;  %v11258_v53 = vor.u32 %v11851_v39, %v11255_v57  ;;  %v11862_v49 = vld [vmem:[#allocation17 + $0x134] sm:$0xf0]  ;;  %v11837_v20 = vld [vmem:[#allocation17 + $0x74] sm:$0xf]  ;;  %v11277_v60 = vld [vmem:[#allocation17 + $0x110] sm:$0xf] }
 0x66f   :  { %9234 = vmatpush.bf16.msrb.mxu0 %v11198_v35  ;;  %v8578_v41 = vadd.f32 %v8577_v7, %v8565_v55  ;;  %v11309_v35 = vld [vmem:[#allocation17 + $0x150] sm:$0xf]  ;;  %v8832_v13 = vmul.f32 0.01, %v8474_v15  ;;  %v11294_v16 = vor.u32 %v11862_v49, %v11293_v61  ;;  %vm8828_vm7 = vcmp.gt.f32.partialorder %v8474_v15, 0.0 }
 0x670   :  { %8819 = vmatpush.bf16.msra.mxu3 %v11074_v5  ;;  %9260 = vmatpush.bf16.msrb.mxu2 %v11326_v14  ;;  %v11310_v5 = vor.u32 %v11866_v22, %v11309_v35  ;;  %v11841_v57 = vld [vmem:[#allocation17 + $0x94] sm:$0xf]  ;;  %v11858_v40 = vld [vmem:[#allocation17 + $0x114] sm:$0xf0]  ;;  %v11183_v55 = vld [vmem:[#allocation17 + $0x58] sm:$0xf0] }
 0x671   :  { %v8591_v43 = vadd.f32 %v15322_v17, %v8578_v41  ;;  %v11242_v17 = vor.u32 %v11847_v31, %v11239_v45  ;;  %v8836_v9 = vsel %vm8828_vm7, %v8474_v15, %v8832_v13  ;;  %v11269_v7 = vld [vmem:[#allocation17 + $0x100] sm:$0xf]  ;;  %v11218_v38 = vor.u32 %v11841_v57, %v11215_v59  ;;  %v11839_v41 = vld [vmem:[#allocation17 + $0x84] sm:$0xf]  ;;  %v11175_v15 = vld [vmem:[#allocation17 + $0x48] sm:$0xf0] }
 0x672   :  { %9252 = vmatpush.bf16.msrb.mxu1 %v11222_v50  ;;  %v15334_v50 = vpop.f32.mrf.mxu2  ;;  %v11186_v35 = vor.u32 %v11833_v2, %v11183_v55  ;;  %v11167_v45 = vld [vmem:[#allocation17 + $0x38] sm:$0xf0]  ;;  %v11825_v61 = vld [vmem:[#allocation17 + $0x14] sm:$0xf]  ;;  %v11863_v51 = vld [vmem:[#allocation17 + $0x144] sm:$0xf] }
 0x673   :  { %9235 = vmatpush.bf16.msrb.mxu0 %v11190_v36  ;;  %vm8829_vm6 = vcmp.gt.f32.partialorder %v8591_v43, 0.0  ;;  %v8833_v32 = vmul.f32 0.01, %v8591_v43  ;;  %v11864_v36 = vld [vmem:[#allocation17 + $0x144] sm:$0xf0] }
 0x674   :  { %8820 = vmatpush.bf16.msra.mxu3 %v11058_v21  ;;  %9261 = vmatpush.bf16.msrb.mxu2 %v11318_v28  ;;  %v11302_v4 = vor.u32 %v11864_v36, %v11301_v47  ;;  %v11151_v49 = vld [vmem:[#allocation17 + $0x18] sm:$0xf0]  ;;  %v11857_v57 = vld [vmem:[#allocation17 + $0x114] sm:$0xf] }
 0x675   :  { %v8837_v21 = vsel %vm8829_vm6, %v8591_v43, %v8833_v32  ;;  %v11330_v43 = vor.u32 %v11869_v62, %v11327_v26  ;;  %v11279_v59 = vld [vmem:[#allocation17 + $0x118] sm:$0xf0] }
 0x676   :  { %9253 = vmatpush.bf16.msrb.mxu1 %v11214_v63  ;;  %v15337_v24 = vpack.c.bf16 %v8837_v21, %v8837_v21  ;;  %v8579_v63 = vpop.f32.mrf.mxu0  ;;  %v11827_v21 = vld [vmem:[#allocation17 + $0x24] sm:$0xf] }
 0x677   :  { %9236 = vmatpush.bf16.msrb.mxu0 %v11182_v34  ;;  %v11199_v34 = vld [vmem:[#allocation17 + $0x78] sm:$0xf0] }
 0x678   :  { %8821 = vmatpush.bf16.msra.mxu3 %v11042_v44  ;;  %9262 = vmatpush.bf16.msrb.mxu2 %v11310_v5  ;;  %v11234_v44 = vor.u32 %v11845_v6, %v11231_v33  ;;  %v11202_v18 = vor.u32 %v11837_v20, %v11199_v34  ;;  %v11831_v5 = vld [vmem:[#allocation17 + $0x44] sm:$0xf]  ;;  %v11865_v6 = vld [vmem:[#allocation17 + $0x154] sm:$0xf]  ;;  %v11306_v20 = vor.u32 %v11863_v51, %v11303_v46 }
 0x679   :  { %v11178_v31 = vor.u32 %v11831_v5, %v11175_v15  ;;  %v11154_v34 = vor.u32 %v11825_v61, %v11151_v49  ;;  %v11389_v5 = vld [vmem:[#allocation17 + $0x1f0] sm:$0xf]  ;;  %v11886_v15 = vld [vmem:[#allocation17 + $0x1f4] sm:$0xf0]  ;;  %v11349_v61 = vld [vmem:[#allocation17 + $0x1a0] sm:$0xf] }
 0x67a   :  { %9254 = vmatpush.bf16.msrb.mxu1 %v11206_v25  ;;  %v15339_v30 = vpop.f32.mrf.mxu1  ;;  %v8605_v14 = vpop.f32.mrf.mxu2  ;;  %v11223_v25 = vld [vmem:[#allocation17 + $0xa8] sm:$0xf0]  ;;  %v11876_v49 = vld [vmem:[#allocation17 + $0x1a4] sm:$0xf0] }
 0x67b   :  { %9237 = vmatpush.bf16.msrb.mxu0 %v11174_v48  ;;  %v11191_v48 = vld [vmem:[#allocation17 + $0x68] sm:$0xf0]  ;;  %v11226_v39 = vor.u32 %v11843_v27, %v11223_v25  ;;  %v11295_v14 = vld [vmem:[#allocation17 + $0x138] sm:$0xf0]  ;;  %v11859_v25 = vld [vmem:[#allocation17 + $0x124] sm:$0xf]  ;;  %v11350_v46 = vor.u32 %v11876_v49, %v11349_v61 }
 0x67c   :  { %8822 = vmatpush.bf16.msra.mxu3 %v11026_v37  ;;  %9263 = vmatpush.bf16.msrb.mxu2 %v11302_v4  ;;  %v15342_v37 = vpack.c.bf16 %v8836_v9, %v8836_v9  ;;  %v11311_v4 = vld [vmem:[#allocation17 + $0x158] sm:$0xf0]  ;;  %v11146_v9 = vor.u32 %v11823_v52, %v11143_v56  ;;  %v11333_v56 = vld [vmem:[#allocation17 + $0x180] sm:$0xf] }
 0x67d   :  { %9255 = vmatmul.bf16.vlgmr.msrb.gmra.mxu1 %v15337_v24  ;;  %v11314_v63 = vor.u32 %v11865_v6, %v11311_v4  ;;  %v11357_v4 = vld [vmem:[#allocation17 + $0x1b0] sm:$0xf] }
 0x67e   :  { %9299 = vmatpush.bf16.msra.mxu1 %v11266_v54  ;;  %v11835_v54 = vld [vmem:[#allocation17 + $0x64] sm:$0xf] }
 0x67f   :  { %8823 = vmatmul.bf16.vlgmr.msra.gmra.mxu3 %v15268_v29  ;;  %9238 = vmatpush.bf16.msrb.mxu0 %v11166_v58  ;;  %v11150_v29 = vor.u32 %v11826_v12, %v11149_v19  ;;  %v11194_v11 = vor.u32 %v11835_v54, %v11191_v48  ;;  %v11856_v58 = vld [vmem:[#allocation17 + $0x104] sm:$0xf0]  ;;  %v11867_v19 = vld [vmem:[#allocation17 + $0x164] sm:$0xf]  ;;  %v11319_v12 = vld [vmem:[#allocation17 + $0x168] sm:$0xf0] }
 0x680   :  { %9264 = vmatpush.bf16.msrb.mxu2 %v11294_v16  ;;  %v11270_v22 = vor.u32 %v11856_v58, %v11269_v7  ;;  %v11322_v47 = vor.u32 %v11867_v19, %v11319_v12  ;;  %v11373_v12 = vld [vmem:[#allocation17 + $0x1d0] sm:$0xf] }
 0x682   :  { %9300 = vmatpush.bf16.msra.mxu1 %v11258_v53  ;;  %v8644_v28 = vpop.f32.mrf.mxu1  ;;  %v11278_v53 = vor.u32 %v11858_v40, %v11277_v60  ;;  %v15344_v1 = vpop.f32.mrf.mxu3  ;;  %v11282_v60 = vor.u32 %v11857_v57, %v11279_v59  ;;  %v11855_v40 = vld [vmem:[#allocation17 + $0x104] sm:$0xf]  ;;  %v11375_v57 = vld [vmem:[#allocation17 + $0x1d8] sm:$0xf0] }
 0x683   :  { %9239 = vmatpush.bf16.msrb.mxu0 %v11158_v0  ;;  %v11829_v0 = vld [vmem:[#allocation17 + $0x34] sm:$0xf]  ;;  %v11271_v28 = vld [vmem:[#allocation17 + $0x108] sm:$0xf0] }
 0x684   :  { %9265 = vmatpush.bf16.msrb.mxu2 %v11286_v3  ;;  %v11170_v13 = vor.u32 %v11829_v0, %v11167_v45 }
 0x686   :  { %9301 = vmatpush.bf16.msra.mxu1 %v11250_v10  ;;  %v11210_v10 = vor.u32 %v11839_v41, %v11207_v42 }
 0x687   :  { %9240 = vmatpush.bf16.msrb.mxu0 %v11150_v29 }
 0x688   :  { %9266 = vmatpush.bf16.msrb.mxu2 %v11278_v53  ;;  %v11274_v53 = vor.u32 %v11855_v40, %v11271_v28  ;;  %v11367_v40 = vld [vmem:[#allocation17 + $0x1c8] sm:$0xf0]  ;;  %v6915_v28 = vperm.slane %v15319_v23, 3 }
 0x68a   :  { %9302 = vmatpush.bf16.msra.mxu1 %v11242_v17  ;;  %v8618_v32 = vpop.f32.mrf.mxu3  ;;  %v11159_v17 = vld [vmem:[#allocation17 + $0x28] sm:$0xf0] }
 0x68b   :  { %9241 = vmatpush.bf16.msrb.mxu0 %v11142_v8  ;;  %v11162_v33 = vor.u32 %v11827_v21, %v11159_v17  ;;  %v11882_v32 = vld [vmem:[#allocation17 + $0x1d4] sm:$0xf0] }
 0x68c   :  { %9267 = vmatpush.bf16.msrb.mxu2 %v11270_v22 }
 0x68d   :  { %v8629_v36 = vpop.f32.mrf.mxu0 }
 0x68e   :  { %9303 = vmatpush.bf16.msra.mxu1 %v11234_v44  ;;  %9242 = vmatmul.bf16.vlgmr.msrb.gmra.mxu0 %v15342_v37  ;;  %v6914_v44 = vperm.slane %v15319_v23, 2 }
 0x68f   :  { %9286 = vmatpush.bf16.msra.mxu0 %v11202_v18  ;;  %v11287_v18 = vld [vmem:[#allocation17 + $0x128] sm:$0xf0] }
 0x690   :  { %9312 = vmatpush.bf16.msra.mxu2 %v11330_v43  ;;  %v8655_v29 = vpop.f32.mrf.mxu2  ;;  %v11290_v54 = vor.u32 %v11859_v25, %v11287_v18  ;;  %v8604_v48 = vadd.f32 %v15334_v50, %v6914_v44  ;;  %v11381_v43 = vld [vmem:[#allocation17 + $0x1e0] sm:$0xf]  ;;  %v11883_v25 = vld [vmem:[#allocation17 + $0x1e4] sm:$0xf] }
 0x692   :  { %9304 = vmatpush.bf16.msra.mxu1 %v11226_v39  ;;  %v8617_v39 = vadd.f32 %v15344_v1, %v8604_v48 }
 0x693   :  { %9287 = vmatpush.bf16.msra.mxu0 %v11194_v11 }
 0x694   :  { %9313 = vmatpush.bf16.msra.mxu2 %v11322_v47  ;;  %v8630_v11 = vadd.f32 %v8629_v36, %v8617_v39  ;;  %v11374_v47 = vor.u32 %v11882_v32, %v11373_v12  ;;  %v11365_v36 = vld [vmem:[#allocation17 + $0x1c0] sm:$0xf]  ;;  %v11881_v39 = vld [vmem:[#allocation17 + $0x1d4] sm:$0xf] }
 0x695   :  { %v8631_v16 = vpop.f32.mrf.mxu0  ;;  %v11378_v59 = vor.u32 %v11881_v39, %v11375_v57  ;;  %v9344_v39 = vld [vmem:[%s15366_s1] sm:$0x3] }
 0x696   :  { %9305 = vmatpush.bf16.msra.mxu1 %v11218_v38  ;;  %v8643_v7 = vadd.f32 %v15339_v30, %v8630_v11  ;;  %v11874_v16 = vld [vmem:[#allocation17 + $0x194] sm:$0xf0] }
 0x697   :  { %9288 = vmatpush.bf16.msra.mxu0 %v11186_v35 }
 0x698   :  { %9314 = vmatpush.bf16.msra.mxu2 %v11314_v63  ;;  %v8657_v3 = vpop.f32.mrf.mxu2  ;;  %v8656_v50 = vadd.f32 %v8655_v29, %v8643_v7  ;;  %v11878_v63 = vld [vmem:[#allocation17 + $0x1b4] sm:$0xf0]  ;;  %v11359_v7 = vld [vmem:[#allocation17 + $0x1b8] sm:$0xf0] }
 0x699   :  { %v11358_v29 = vor.u32 %v11878_v63, %v11357_v4  ;;  %v11383_v3 = vld [vmem:[#allocation17 + $0x1e8] sm:$0xf0] }
 0x69a   :  { %9306 = vmatpush.bf16.msra.mxu1 %v11210_v10  ;;  %v8694_v8 = vpop.f32.mrf.mxu1  ;;  %v11390_v10 = vor.u32 %v11886_v15, %v11389_v5  ;;  %v11386_v48 = vor.u32 %v11883_v25, %v11383_v3 }
 0x69b   :  { %9289 = vmatpush.bf16.msra.mxu0 %v11178_v31  ;;  %v11884_v31 = vld [vmem:[#allocation17 + $0x1e4] sm:$0xf0] }
 0x69c   :  { %9315 = vmatpush.bf16.msra.mxu2 %v11306_v20  ;;  %9273 = vmatpush.bf16.msrb.mxu3 %v11390_v10  ;;  %v11382_v19 = vor.u32 %v11884_v31, %v11381_v43  ;;  %v11341_v20 = vld [vmem:[#allocation17 + $0x190] sm:$0xf]  ;;  %v11871_v10 = vld [vmem:[#allocation17 + $0x184] sm:$0xf]  ;;  %v11335_v31 = vld [vmem:[#allocation17 + $0x188] sm:$0xf0] }
 0x69d   :  { %9307 = vmatmul.bf16.vlgmr.msra.gmra.mxu1 %v15337_v24  ;;  %v11861_v24 = vld [vmem:[#allocation17 + $0x134] sm:$0xf] }
 0x69e   :  { %v11298_v27 = vor.u32 %v11861_v24, %v11295_v14  ;;  %v11872_v24 = vld [vmem:[#allocation17 + $0x184] sm:$0xf0] }
 0x69f   :  { %9290 = vmatpush.bf16.msra.mxu0 %v11170_v13  ;;  %v11880_v13 = vld [vmem:[#allocation17 + $0x1c4] sm:$0xf0]  ;;  %v11334_v44 = vor.u32 %v11872_v24, %v11333_v56 }
 0x6a0   :  { %9316 = vmatpush.bf16.msra.mxu2 %v11298_v27  ;;  %9274 = vmatpush.bf16.msrb.mxu3 %v11382_v19  ;;  %v11366_v6 = vor.u32 %v11880_v13, %v11365_v36  ;;  %v11391_v27 = vld [vmem:[#allocation17 + $0x1f8] sm:$0xf0] }
 0x6a2   :  { %v8696_v2 = vpop.f32.mrf.mxu1  ;;  %v8668_v55 = vpop.f32.mrf.mxu3 }
 0x6a3   :  { %9291 = vmatpush.bf16.msra.mxu0 %v11162_v33  ;;  %v8669_v1 = vadd.f32 %v8668_v55, %v8656_v50 }
 0x6a4   :  { %9317 = vmatpush.bf16.msra.mxu2 %v11290_v54  ;;  %9275 = vmatpush.bf16.msrb.mxu3 %v11374_v47 }
 0x6a7   :  { %9292 = vmatpush.bf16.msra.mxu0 %v11154_v34  ;;  %v11342_v34 = vor.u32 %v11874_v16, %v11341_v20 }
 0x6a8   :  { %9318 = vmatpush.bf16.msra.mxu2 %v11282_v60  ;;  %9276 = vmatpush.bf16.msrb.mxu3 %v11366_v6  ;;  %v11879_v60 = vld [vmem:[#allocation17 + $0x1c4] sm:$0xf] }
 0x6a9   :  { %v11370_v55 = vor.u32 %v11879_v60, %v11367_v40 }
 0x6aa   :  { %v8670_v58 = vpop.f32.mrf.mxu3 }
 0x6ab   :  { %9293 = vmatpush.bf16.msra.mxu0 %v11146_v9 }
 0x6ac   :  { %9319 = vmatpush.bf16.msra.mxu2 %v11274_v53  ;;  %9277 = vmatpush.bf16.msrb.mxu3 %v11358_v29  ;;  %v11877_v53 = vld [vmem:[#allocation17 + $0x1b4] sm:$0xf] }
 0x6ad   :  { %v8681_v38 = vpop.f32.mrf.mxu0  ;;  %v11362_v58 = vor.u32 %v11877_v53, %v11359_v7  ;;  %v625_v7 = vpop.permute.xlu0 %624 }
 0x6ae   :  { %9294 = vmatmul.bf16.vlgmr.msra.gmra.mxu0 %v15342_v37  ;;  %v8682_v62 = vadd.f32 %v8681_v38, %v8669_v1  ;;  %v11875_v1 = vld [vmem:[#allocation17 + $0x1a4] sm:$0xf]  ;;  %v11351_v38 = vld [vmem:[#allocation17 + $0x1a8] sm:$0xf0] }
 0x6b0   :  { %v8695_v26 = vadd.f32 %v8694_v8, %v8682_v62  ;;  %v8707_v41 = vpop.f32.mrf.mxu2  ;;  %9278 = vmatpush.bf16.msrb.mxu3 %v11350_v46  ;;  %v11885_v8 = vld [vmem:[#allocation17 + $0x1f4] sm:$0xf] }
 0x6b1   :  { %v11394_v18 = vor.u32 %v11885_v8, %v11391_v27 }
 0x6b2   :  { %v8708_v42 = vadd.f32 %v8707_v41, %v8695_v26  ;;  %v11354_v41 = vor.u32 %v11875_v1, %v11351_v38 }
 0x6b4   :  { %vm8830_vm8 = vcmp.gt.f32.partialorder %v8708_v42, 0.0  ;;  %v8834_v35 = vmul.f32 0.01, %v8708_v42  ;;  %9279 = vmatpush.bf16.msrb.mxu3 %v11342_v34 }
 0x6b5   :  { %v8683_v22 = vpop.f32.mrf.mxu0  ;;  %v1012_v1 = vpop.permute.xlu0 %1011 }
 0x6b6   :  { %v8838_v37 = vsel %vm8830_vm8, %v8708_v42, %v8834_v35  ;;  %v11873_v35 = vld [vmem:[#allocation17 + $0x194] sm:$0xf]  ;;  %v11343_v22 = vld [vmem:[#allocation17 + $0x198] sm:$0xf0] }
 0x6b7   :  { %v8842_v0 = vpack.c.bf16 %v8838_v37, %v8838_v37  ;;  %v11346_v15 = vor.u32 %v11873_v35, %v11343_v22 }
 0x6b8   :  { %v8709_v45 = vpop.f32.mrf.mxu2  ;;  %9280 = vmatpush.bf16.msrb.mxu3 %v11334_v44 }
 0x6b9   :  { %9268 = vmatmul.bf16.vlgmr.msrb.gmra.mxu2 %v8842_v0  ;;  %v11338_v45 = vor.u32 %v11871_v10, %v11335_v31 }
 0x6ba   :  { %v15353_v30 = vpop.f32.mrf.mxu1 }
 0x6bc   :  { %9325 = vmatpush.bf16.msra.mxu3 %v11394_v18 }
 0x6c0   :  { %9326 = vmatpush.bf16.msra.mxu3 %v11386_v48 }
 0x6c2   :  { %v8748_v21 = vpop.f32.mrf.mxu1  ;;  %v8720_v17 = vpop.f32.mrf.mxu3 }
 0x6c3   :  { %v8721_v50 = vadd.f32 %v8720_v17, %v6915_v28  ;;  %v8908_v17 = vld [vmem:[#allocation18] sm:$0x3] }
 0x6c4   :  { %9327 = vmatpush.bf16.msra.mxu3 %v11378_v59  ;;  %v8910_v63 = vperm.slane %v8908_v17, 0  ;;  %v8911_v34 = vperm.slane %v8908_v17, 1 }
 0x6c8   :  { %9328 = vmatpush.bf16.msra.mxu3 %v11370_v55  ;;  %v1522_v55 = vpop.permute.xlu2 %1521 }
 0x6c9   :  { %9320 = vmatmul.bf16.vlgmr.msra.gmra.mxu2 %v8842_v0 }
 0x6ca   :  { %v8722_v33 = vpop.f32.mrf.mxu3 }
 0x6cc   :  { %9329 = vmatpush.bf16.msra.mxu3 %v11362_v58 }
 0x6cd   :  { %v8733_v51 = vpop.f32.mrf.mxu0 }
 0x6ce   :  { %v8734_v62 = vadd.f32 %v8733_v51, %v8721_v50  ;;  %v2680_v50 = vpop.permute.xlu1 %2679 }
 0x6d0   :  { %v8759_v52 = vpop.f32.mrf.mxu2  ;;  %v8747_v5 = vadd.f32 %v15353_v30, %v8734_v62  ;;  %9330 = vmatpush.bf16.msra.mxu3 %v11354_v41  ;;  %v1534_v53 = vpop.permute.xlu2 %1533 }
 0x6d2   :  { %v8760_v43 = vadd.f32 %v8759_v52, %v8747_v5  ;;  %v1526_v5 = vpop.permute.xlu0 %1525 }
 0x6d4   :  { %9331 = vmatpush.bf16.msra.mxu3 %v11346_v15 }
 0x6d5   :  { %v8735_v14 = vpop.f32.mrf.mxu0 }
 0x6d6   :  { %v2688_v62 = vpop.permute.xlu1 %2687 }
 0x6d8   :  { %v8761_v54 = vpop.f32.mrf.mxu2  ;;  %9332 = vmatpush.bf16.msra.mxu3 %v11338_v45  ;;  %v2164_v58 = vpop.permute.xlu2 %2163  ;;  %v12148_v45 = vld [vmem:[#allocation6] ss:$0 sm:$0xff] }
 0x6da   :  { %v8798_v9 = vpop.f32.mrf.mxu1 }
 0x6e0   :  { %v2172_v38 = vpop.permute.xlu2 %2171 }
 0x6e2   :  { %v8800_v11 = vpop.f32.mrf.mxu1  ;;  %v8772_v2 = vpop.f32.mrf.mxu3 }
 0x6e3   :  { %v8773_v0 = vadd.f32 %v8772_v2, %v8760_v43 }
 0x6ea   :  { %v8774_v26 = vpop.f32.mrf.mxu3 }
 0x6eb   :  { %v8785_v42 = vpop.f32.mrf.mxu0  ;;  %v2180_v26 = vpop.permute.xlu2 %2179 }
 0x6ec   :  { %v8786_v19 = vadd.f32 %v8785_v42, %v8773_v0  ;;  %v12147_v0 = vld [vmem:[#allocation5] ss:$0 sm:$0xff] }
 0x6ee   :  { %v8799_v32 = vadd.f32 %v8798_v9, %v8786_v19 }
 0x6f0   :  { %v8811_v23 = vpop.f32.mrf.mxu2 }
 0x6f1   :  { %v8812_v47 = vadd.f32 %v8811_v23, %v8799_v32 }
 0x6f3   :  { %v8787_v37 = vpop.f32.mrf.mxu0  ;;  %v2676_v35 = vpop.permute.xlu2 %2675 }
 0x6f8   :  { %v8813_v12 = vpop.f32.mrf.mxu2 }
 0x6fa   :  { %v9256_v13 = vpop.f32.mrf.mxu1 }
 0x6fb   :  { %v2684_v10 = vpop.permute.xlu2 %2683 }
 0x702   :  { %v8824_v36 = vpop.f32.mrf.mxu3  ;;  %v9258_v33 = vpop.f32.mrf.mxu1 }
 0x703   :  { %v8825_v21 = vadd.f32 %v8824_v36, %v8812_v47  ;;  %v2692_v31 = vpop.permute.xlu2 %2691 }
 0x705   :  { %vm8831_vm9 = vcmp.gt.f32.partialorder %v8825_v21, 0.0  ;;  %v8835_v30 = vmul.f32 0.01, %v8825_v21 }
 0x707   :  { %v8839_v6 = vsel %vm8831_vm9, %v8825_v21, %v8835_v30 }
 0x708   :  { %v8843_v4 = vpack.c.bf16 %v8839_v6, %v8839_v6 }
 0x70a   :  { %v8826_v29 = vpop.f32.mrf.mxu3  ;;  %9281 = vmatmul.bf16.vlgmr.msrb.gmra.mxu3 %v8843_v4 }
 0x70b   :  { %v9243_v61 = vpop.f32.mrf.mxu0 }
 0x70c   :  { %v9244_v49 = vadd.f32 %v9243_v61, %v8910_v63 }
 0x70e   :  { %v9257_v51 = vadd.f32 %v9256_v13, %v9244_v49 }
 0x713   :  { %v9245_v46 = vpop.f32.mrf.mxu0 }
 0x71a   :  { %v9308_v20 = vpop.f32.mrf.mxu1  ;;  %9333 = vmatmul.bf16.vlgmr.msra.gmra.mxu3 %v8843_v4 }
 0x722   :  { %v9310_v16 = vpop.f32.mrf.mxu1 }
 0x72b   :  { %v9295_v52 = vpop.f32.mrf.mxu0 }
 0x72c   :  { %v9296_v56 = vadd.f32 %v9295_v52, %v8911_v34 }
 0x72e   :  { %v9309_v24 = vadd.f32 %v9308_v20, %v9296_v56 }
 0x733   :  { %v9297_v14 = vpop.f32.mrf.mxu0 }
 0x73c   :  { %v9269_v44 = vpop.f32.mrf.mxu2 }
 0x73d   :  { %v9270_v8 = vadd.f32 %v9269_v44, %v9257_v51 }
 0x744   :  { %v9271_v27 = vpop.f32.mrf.mxu2 }
 0x74c   :  { %v9321_v25 = vpop.f32.mrf.mxu2 }
 0x74d   :  { %v9322_v18 = vadd.f32 %v9321_v25, %v9309_v24 }
 0x754   :  { %v9323_v3 = vpop.f32.mrf.mxu2 }
 0x78d   :  { %v9282_v9 = vpop.f32.mrf.mxu3 }
 0x78e   :  { %v9283_v54 = vadd.f32 %v9282_v9, %v9270_v8 }
 0x790   :  { %vm9338_vm10 = vcmp.gt.f32.partialorder %v9283_v54, 0.0  ;;  %v9340_v48 = vmul.f32 0.01, %v9283_v54 }
 0x792   :  { %v9342_v57 = vsel %vm9338_vm10, %v9283_v54, %v9340_v48 }
 0x793   :  { %11395 = vmatpush.msk.msrb.mxu0 %vm9349_vm11, %v9342_v57 }
 0x794   :  { %11396 = vmatmul.msk.f32.vlgmr.msrb.gmra.mxu0 %vm9345_vm12, %v9344_v39 }
 0x795   :  { %v9284_v59 = vpop.f32.mrf.mxu3 }
 0x79d   :  { %v9334_v11 = vpop.f32.mrf.mxu3 }
 0x79e   :  { %v9335_v2 = vadd.f32 %v9334_v11, %v9322_v18 }
 0x7a0   :  { %vm9339_vm13 = vcmp.gt.f32.partialorder %v9335_v2, 0.0  ;;  %v9341_v60 = vmul.f32 0.01, %v9335_v2 }
 0x7a2   :  { %v9343_v40 = vsel %vm9339_vm13, %v9335_v2, %v9341_v60 }
 0x7a3   :  { %11397 = vmatpush.msk.msrb.mxu1 %vm9349_vm11, %v9343_v40 }
 0x7a4   :  { %11398 = vmatmul.msk.f32.vlgmr.msrb.gmra.mxu1 %vm9345_vm12, %v9344_v39 }
 0x7a5   :  { %v9336_v28 = vpop.f32.mrf.mxu3 }
 0x811   :  { %v9373_v41 = vpop.f32.mrf.mxu0 }
 0x812   :  { %v9396_v42 = vand.u32 2147483647, %v9373_v41 }
 0x814   :  { %v9398_v15 = vsel %vm3787_vm0, %v9396_v42, 0.0 }
 0x821   :  { %v9393_v22 = vpop.f32.mrf.mxu1 }
 0x822   :  { %v9397_v23 = vand.u32 2147483647, %v9393_v22 }
 0x824   :  { %v9399_v43 = vsel %vm3787_vm0, %v9397_v23, 0.0 }
 0x825   :  { %v9400_v37 = vadd.f32 %v9399_v43, %v9398_v15 }
 0x827   :  { %9401 = vadd.xlane.f32.xlu0 %v9400_v37 }
 0x89a   :  { %v9402_v19 = vpop.xlane.xlu0 %9401 }
 0x89b   :  { %v9407_v12 = vmul.f32 %v12147_v0, %v9402_v19 }
 0x89d   :  { %v9412_v32 = vadd.f32 %v12148_v45, %v9407_v12 }
 0x89f   :  { %v9413_v47 = vsub.f32 0.0, %v9412_v32 }
 0x8a1   :  { %v9414_v36 = vmul.f32 1.442695, %v9413_v47 }
 0x8a3   :  { %12149 = vpow2.f32 %v9414_v36 }
 0x8a9   :  { %v12150_v13 = vpop.eup %12149 }
 0x8aa   :  { %v9416_v21 = vadd.f32 1.0, %v12150_v13 }
 0x8ac   :  { %12151 = vrcp.f32 %v9416_v21  ;;  %v9428_v4 = vand.u32 2147483648, %v9416_v21  ;;  %v9426_v29 = vand.u32 2147483647, %v9416_v21  ;;  %vm9422_vm14 = vweird.f32 %v9416_v21 }
 0x8ae   :  { %v9429_v61 = vor.u32 1.1754944e-38, %v9428_v4  ;;  %vm9427_vm2 = vcmp.eq.f32.partialorder %v9426_v29, 8.507059e+37 }
 0x8b2   :  { %v12152_v30 = vpop.eup %12151 }
 0x8b3   :  { %v9418_v17 = vmul.f32 %v12152_v30, %v9416_v21  ;;  %vm9423_vm0 = vweird.f32 %v12152_v30 }
 0x8b4   :  { %vm9424_vm1 = vmor %vm9422_vm14, %vm9423_vm0 }
 0x8b5   :  { %v9419_v6 = vsub.f32 1.0, %v9418_v17 }
 0x8b7   :  { %v9420_v63 = vmul.f32 %v12152_v30, %v9419_v6 }
 0x8b9   :  { %v9421_v33 = vadd.f32 %v12152_v30, %v9420_v63 }
 0x8bb   :  { %v9425_v49 = vsel %vm9424_vm1, %v12152_v30, %v9421_v33 }
 0x8bc   :  { %v9430_v51 = vsel %vm9427_vm2, %v9429_v61, %v9425_v49 }
 0x8bd   :  { %9433 = vst.msk [vmem:[%s15376_s12] sm:$0x3] %vm9432_vm15, %v9430_v51 }
 0x8be   :  { %9438 = vsyncpa [#allocation8], 1 }
 0x8bf   :  { %9439 = vsyncpa [#allocation10], 1 }
 0x8c0   :  { %9440 = vsyncpa [#allocation13], 1 }
 0x8c1   :  { %9441 = vsyncpa [#allocation16], 1 }
 0x8c2   :  { %9442 = vsyncpa [#allocation19], 1 }

</bundles_post_ra>
